<compile_context>
chip_gen: v7x
topology: tpu7x:2x2x1
jax: 0.10.0
libtpu: 0.0.40
codegen_flags: <defaults>
</compile_context>

<pallas_src>
import functools

import jax
import jax.numpy as jnp
from jax import lax
from jax.experimental import pallas as pl
from jax.experimental.pallas import tpu as pltpu


# ---------------------------------------------------------------------------
# Stage B: batched projection  out = x @ w + b   (grid parallel over N tiles)
# ---------------------------------------------------------------------------
def _proj_kernel(x_ref, w_ref, b_ref, o_ref):
    x = x_ref[...].astype(w_ref.dtype)            # activation cast in-kernel
    o_ref[...] = jnp.dot(x, w_ref[...],
                         preferred_element_type=jnp.float32) + b_ref[...]


def _project(x, w, b, *, tn=None):
    """x: (M, K) f32, w: (K, N) matmul dtype, b: (1, N) f32 -> (M, N) f32."""
    M, K = x.shape
    N = w.shape[1]
    if tn is None:
        tn = next((c for c in (2048, 1024, 512, 256, 128) if N % c == 0), N)
    est = (2 * M * K * x.dtype.itemsize + 2 * K * tn * w.dtype.itemsize
           + 2 * tn * 4 + 2 * M * tn * 4)
    vmem_limit = max(32 * 1024 * 1024, int(1.25 * est))
    return pl.pallas_call(
        _proj_kernel,
        out_shape=jax.ShapeDtypeStruct((M, N), jnp.float32),
        grid=(N // tn,),
        in_specs=[
            pl.BlockSpec((M, K), lambda j: (0, 0)),   # fetched once (const idx)
            pl.BlockSpec((K, tn), lambda j: (0, j)),
            pl.BlockSpec((1, tn), lambda j: (0, j)),
        ],
        out_specs=pl.BlockSpec((M, tn), lambda j: (0, j)),
        compiler_params=pltpu.CompilerParams(
            dimension_semantics=("parallel",),
            vmem_limit_bytes=vmem_limit),
    )(x, w, b)


# ---------------------------------------------------------------------------
# Stage A: fused layer-0 projection + stacked-LSTM recurrence (one kernel).
# ---------------------------------------------------------------------------
def _lstm_fused_kernel(*refs, num_layers, hidden_size, batch, seq_len,
                       matmul_dtype):
    if num_layers > 1:
        (x_ref, wih0_ref, b0_ref, wcat_ref, whh0_ref, brest_ref,
         hid_ref, gates_scr, h_scr, c_scr) = refs
    else:
        (x_ref, wih0_ref, b0_ref, whh0_ref,
         hid_ref, gates_scr, h_scr, c_scr) = refs
        wcat_ref = brest_ref = None

    H, L, B, Tt = hidden_size, num_layers, batch, seq_len

    # --- Prologue (ex-Stage 1, fused in): one batched layer-0 projection of
    # all (T+1)*B rows with the folded layer-0 bias; result stays in VMEM.
    gates_scr[...] = (
        jnp.dot(x_ref[...].astype(matmul_dtype), wih0_ref[...],
                preferred_element_type=jnp.float32) + b0_ref[...])

    # h0 = c0 = 0 (torch.nn.LSTM default).
    h_scr[...] = jnp.zeros_like(h_scr)
    c_scr[...] = jnp.zeros_like(c_scr)

    # Hoist loop-invariant bias broadcasts out of the time loop.
    rest_bias = ([brest_ref[l][None, :] for l in range(L - 1)]
                 if L > 1 else [])

    def cell(gates, c_prev):
        # Gate order i, f, g, o matches torch.nn.LSTM; elementwise math in f32.
        i_g = jax.nn.sigmoid(gates[:, 0 * H:1 * H])
        f_g = jax.nn.sigmoid(gates[:, 1 * H:2 * H])
        g_g = jnp.tanh(gates[:, 2 * H:3 * H])
        o_g = jax.nn.sigmoid(gates[:, 3 * H:4 * H])
        c_new = f_g * c_prev + i_g * g_g
        return o_g * jnp.tanh(c_new), c_new

    def step(t, carry):
        row = pl.multiple_of(t * B, B)
        # Layer 0: input projection precomputed; only h @ W_hh remains here.
        gates = (gates_scr[pl.ds(row, B), :]
                 + jnp.dot(h_scr[0].astype(matmul_dtype), whh0_ref[...],
                           preferred_element_type=jnp.float32))
        h_new, c_new = cell(gates, c_scr[0])
        h_scr[0] = h_new
        c_scr[0] = c_new
        x = h_new
        # Upper layers: single fused dot  [x ; h] @ [W_ih ; W_hh]  per layer.
        for layer in range(1, L):
            xh = jnp.concatenate([x, h_scr[layer]], -1).astype(matmul_dtype)
            gates = (jnp.dot(xh, wcat_ref[layer - 1],
                             preferred_element_type=jnp.float32)
                     + rest_bias[layer - 1])
            h_new, c_new = cell(gates, c_scr[layer])
            h_scr[layer] = h_new
            c_scr[layer] = c_new
            x = h_new
        hid_ref[pl.ds(row, B), :] = x
        return carry

    # Full unroll only for short sequences; cap it for long captions to avoid
    # code bloat / vreg spills.
    lax.fori_loop(0, Tt, step, 0, unroll=(True if Tt <= 16 else 4))


def _lstm_fused(x2d, wih0, bias0, wcat, whh0, bias_rest, *, num_layers,
                hidden_size, batch, matmul_dtype):
    """x2d: (Tt*B, E) f32 time-major rows -> hiddens (Tt*B, H) f32."""
    N, E = x2d.shape
    H, L, B = hidden_size, num_layers, batch
    Tt = N // B

    args = [x2d, wih0, bias0]
    in_specs = [pl.BlockSpec((N, E), lambda i: (0, 0)),
                pl.BlockSpec(wih0.shape, lambda i: (0, 0)),
                pl.BlockSpec(bias0.shape, lambda i: (0, 0))]
    if L > 1:
        args.append(wcat)
        in_specs.append(pl.BlockSpec(wcat.shape, lambda i: (0, 0, 0)))
    args.append(whh0)
    in_specs.append(pl.BlockSpec(whh0.shape, lambda i: (0, 0)))
    if L > 1:
        args.append(bias_rest)
        in_specs.append(pl.BlockSpec(bias_rest.shape, lambda i: (0, 0)))

    mm_size = jnp.dtype(matmul_dtype).itemsize
    w_bytes = (wih0.size + whh0.size + (wcat.size if L > 1 else 0)) * mm_size
    est = (2 * N * E * 4 + 2 * N * H * 4 + 2 * w_bytes
           + N * 4 * H * 4 + 2 * L * B * H * 4 + 8 * L * 4 * H)
    vmem_limit = max(32 * 1024 * 1024, int(1.25 * est))
    # TODO(synk): for very large T*B on v7x (64 MiB VMEM) switch to a
    # time-chunked grid + a 'parallel' batch-shard axis for its 2nd TensorCore.

    kernel = functools.partial(_lstm_fused_kernel, num_layers=L,
                               hidden_size=H, batch=B, seq_len=Tt,
                               matmul_dtype=matmul_dtype)
    return pl.pallas_call(
        kernel,
        out_shape=jax.ShapeDtypeStruct((N, H), jnp.float32),
        grid=(1,),  # recurrence handled entirely in-kernel
        in_specs=in_specs,
        out_specs=pl.BlockSpec((N, H), lambda i: (0, 0)),
        scratch_shapes=[pltpu.VMEM((N, 4 * H), jnp.float32),   # layer-0 gates
                        pltpu.VMEM((L, B, H), jnp.float32),    # h per layer
                        pltpu.VMEM((L, B, H), jnp.float32)],   # c per layer
        compiler_params=pltpu.CompilerParams(
            dimension_semantics=("arbitrary",),
            vmem_limit_bytes=vmem_limit),
    )(*args)


# ---------------------------------------------------------------------------
# Full forward (mirrors DecoderRNN.forward, eval mode).
# ---------------------------------------------------------------------------
def decoder_rnn_forward(features, captions, params, *, num_layers, hidden_size,
                        matmul_dtype=jnp.bfloat16):
    """features: (B, E) f32; captions: (T, B) int32. Returns (T+1, B, V) f32."""
    H, L = hidden_size, num_layers
    embed_tbl = params["embed"]                          # (V, E)
    E = embed_tbl.shape[1]
    V = params["w_lin"].shape[1]

    # ---- glue (plain JAX): embedding gather, dropout (eval=identity), concat.
    # TODO(synk): training-mode Dropout(p=0.5) stochastic masking not implemented.
    emb = embed_tbl[captions]                            # (T, B, E)
    inputs = jnp.concatenate([features[None], emb], 0)   # (Tt, B, E)
    Tt, B, _ = inputs.shape
    x2d = inputs.reshape(Tt * B, E)                      # free metadata reshape

    mm = matmul_dtype
    # Pre-fold biases (b_ih + b_hh) once on the host.
    bias_all = params["b_ih"] + params["b_hh"]           # (L, 4H) f32
    bias0 = bias_all[0:1]                                # (1, 4H)
    bias_rest = bias_all[1:] if L > 1 else None          # (L-1, 4H)

    # Pre-cast weights to the MXU dtype once, outside the hot path.
    wih0 = params["w_ih0"].astype(mm)                    # (E, 4H)
    whh0 = params["w_hh"][0].astype(mm)                  # (H, 4H)
    wcat = (jnp.concatenate([params["w_ih_rest"][:L - 1],
                             params["w_hh"][1:]], axis=1).astype(mm)
            if L > 1 else None)                          # (L-1, 2H, 4H) fused
    w_lin = params["w_lin"].astype(mm)                   # (H, V)

    # Stage A: layer-0 projection + recurrence, one kernel, slab VMEM-resident.
    hiddens = _lstm_fused(x2d, wih0, bias0, wcat, whh0, bias_rest,
                          num_layers=L, hidden_size=H, batch=B,
                          matmul_dtype=mm)               # (Tt*B, H) f32

    # Stage B: vocab projection for all (T+1)*B rows at once.
    logits = _project(hiddens, w_lin, params["b_lin"])   # (Tt*B, V) f32
    return logits.reshape(Tt, B, V)


# ---------------------------------------------------------------------------
# Pure-JAX reference mirroring torch.nn.LSTM + Linear (eval mode).
# ---------------------------------------------------------------------------
def reference_forward(features, captions, params, *, num_layers, hidden_size):
    H, L = hidden_size, num_layers
    emb = params["embed"][captions]
    inputs = jnp.concatenate([features[None], emb], 0)
    Tt, B, _ = inputs.shape
    h = jnp.zeros((L, B, H), jnp.float32)
    c = jnp.zeros((L, B, H), jnp.float32)
    outs = []
    for t in range(Tt):
        x = inputs[t]
        for l in range(L):
            wih = params["w_ih0"] if l == 0 else params["w_ih_rest"][l - 1]
            gates = (x @ wih + h[l] @ params["w_hh"][l]
                     + params["b_ih"][l] + params["b_hh"][l])
            i_g = jax.nn.sigmoid(gates[:, 0 * H:1 * H])
            f_g = jax.nn.sigmoid(gates[:, 1 * H:2 * H])
            g_g = jnp.tanh(gates[:, 2 * H:3 * H])
            o_g = jax.nn.sigmoid(gates[:, 3 * H:4 * H])
            c_new = f_g * c[l] + i_g * g_g
            h_new = o_g * jnp.tanh(c_new)
            c = c.at[l].set(c_new)
            h = h.at[l].set(h_new)
            x = h_new
        outs.append(x @ params["w_lin"] + params["b_lin"][0])
    return jnp.stack(outs, 0)


def init_params(key, *, vocab_size, embed_size, hidden_size, num_layers):
    V, E, H, L = vocab_size, embed_size, hidden_size, num_layers
    ks = jax.random.split(key, 8)
    s = 0.1
    return {
        "embed":     jax.random.normal(ks[0], (V, E), jnp.float32) * s,
        "w_ih0":     jax.random.normal(ks[1], (E, 4 * H), jnp.float32) * s,
        "w_ih_rest": jax.random.normal(ks[2], (max(L - 1, 1), H, 4 * H),
                                       jnp.float32) * s,
        "w_hh":      jax.random.normal(ks[3], (L, H, 4 * H), jnp.float32) * s,
        "b_ih":      jax.random.normal(ks[4], (L, 4 * H), jnp.float32) * s,
        "b_hh":      jax.random.normal(ks[5], (L, 4 * H), jnp.float32) * s,
        "w_lin":     jax.random.normal(ks[6], (H, V), jnp.float32) * s,
        "b_lin":     jax.random.normal(ks[7], (1, V), jnp.float32) * s,
    }


if __name__ == "__main__":
    # Small shapes: batch=8, embed=32, hidden=128, vocab=256, seq=7, layers=2.
    B, E, H, V, T, L = 8, 32, 128, 256, 7, 2

    key = jax.random.PRNGKey(0)
    kf, kc, kp = jax.random.split(key, 3)
    features = jax.random.normal(kf, (B, E), jnp.float32)
    captions = jax.random.randint(kc, (T, B), 0, V, jnp.int32)
    params = init_params(kp, vocab_size=V, embed_size=E,
                         hidden_size=H, num_layers=L)

    ref = reference_forward(features, captions, params,
                            num_layers=L, hidden_size=H)

    # Exact path (f32 matmuls) vs PyTorch-eval-equivalent reference.
    out_f32 = jax.block_until_ready(
        decoder_rnn_forward(features, captions, params, num_layers=L,
                            hidden_size=H, matmul_dtype=jnp.float32))
    assert out_f32.shape == (T + 1, B, V), out_f32.shape
    assert jnp.allclose(out_f32, ref, atol=1e-3, rtol=1e-3), \
        float(jnp.max(jnp.abs(out_f32 - ref)))

    # Default fast path (bf16 MXU feeds, f32 accumulation / cell math).
    out_bf16 = jax.block_until_ready(
        decoder_rnn_forward(features, captions, params,
                            num_layers=L, hidden_size=H))
    assert out_bf16.shape == (T + 1, B, V), out_bf16.shape
    assert bool(jnp.all(jnp.isfinite(out_bf16)))
    assert float(jnp.max(jnp.abs(out_bf16 - ref))) < 0.25

    print("KERNEL_OK")
</pallas_src>

<mosaic_0001>
module attributes {stable_mosaic.version = 11 : i64} {
  func.func @_lstm_fused_kernel(%arg0: i32, %arg1: memref<64x32xf32, #tpu.memory_space<vmem>>, %arg2: memref<32x512xf32, #tpu.memory_space<vmem>>, %arg3: memref<1x512xf32, #tpu.memory_space<vmem>>, %arg4: memref<1x256x512xf32, #tpu.memory_space<vmem>>, %arg5: memref<128x512xf32, #tpu.memory_space<vmem>>, %arg6: memref<1x512xf32, #tpu.memory_space<vmem>>, %arg7: memref<64x128xf32, #tpu.memory_space<vmem>>, %arg8: memref<64x512xf32, #tpu.memory_space<vmem>>, %arg9: memref<2x8x128xf32, #tpu.memory_space<vmem>>, %arg10: memref<2x8x128xf32, #tpu.memory_space<vmem>>) attributes {dimension_semantics = [#tpu.dimension_semantics<arbitrary>], iteration_bounds = array<i64: 1>, scalar_prefetch = 0 : i64, scratch_operands = 3 : i64, tpu.core_type = #tpu.core_type<tc>, window_params = [{pipeline_mode = #tpu.pipeline_mode<synchronous>, transform_indices = @transform_0, window_bounds = array<i64: 64, 32>}, {pipeline_mode = #tpu.pipeline_mode<synchronous>, transform_indices = @transform_1, window_bounds = array<i64: 32, 512>}, {pipeline_mode = #tpu.pipeline_mode<synchronous>, transform_indices = @transform_2, window_bounds = array<i64: 1, 512>}, {pipeline_mode = #tpu.pipeline_mode<synchronous>, transform_indices = @transform_3, window_bounds = array<i64: 1, 256, 512>}, {pipeline_mode = #tpu.pipeline_mode<synchronous>, transform_indices = @transform_4, window_bounds = array<i64: 128, 512>}, {pipeline_mode = #tpu.pipeline_mode<synchronous>, transform_indices = @transform_5, window_bounds = array<i64: 1, 512>}, {pipeline_mode = #tpu.pipeline_mode<synchronous>, transform_indices = @transform_6, window_bounds = array<i64: 64, 128>}]} {
    %c0 = arith.constant 0 : index
    %c0_0 = arith.constant 0 : index
    %0 = vector.load %arg1[%c0, %c0_0] : memref<64x32xf32, #tpu.memory_space<vmem>>, vector<64x32xf32>
    %c0_1 = arith.constant 0 : index
    %c0_2 = arith.constant 0 : index
    %1 = vector.load %arg2[%c0_1, %c0_2] : memref<32x512xf32, #tpu.memory_space<vmem>>, vector<32x512xf32>
    %cst = arith.constant dense<0.000000e+00> : vector<64x512xf32>
    %2 = tpu.matmul %0, %1, %cst {dimension_numbers = #tpu.dot_dimension_numbers<[1], [0], [0], [1], [0, 0, 1, 1], [], []>} : vector<64x32xf32>, vector<32x512xf32>, vector<64x512xf32> -> vector<64x512xf32>
    %c0_3 = arith.constant 0 : index
    %c0_4 = arith.constant 0 : index
    %3 = vector.load %arg3[%c0_3, %c0_4] : memref<1x512xf32, #tpu.memory_space<vmem>>, vector<1x512xf32>
    %4 = vector.broadcast %3 : vector<1x512xf32> to vector<64x512xf32>
    %5 = arith.addf %2, %4 : vector<64x512xf32>
    %c0_5 = arith.constant 0 : index
    %c0_6 = arith.constant 0 : index
    %6 = vector.load %arg8[%c0_5, %c0_6] : memref<64x512xf32, #tpu.memory_space<vmem>>, vector<64x512xf32>
    tpu.vector_store %arg8[%c0_5, %c0_6], %5 {strides = array<i32>} : memref<64x512xf32, #tpu.memory_space<vmem>>, vector<64x512xf32>,
    %cst_7 = arith.constant 0.000000e+00 : f32
    %7 = vector.broadcast %cst_7 : f32 to vector<2x8x128xf32>
    %c0_8 = arith.constant 0 : index
    %c0_9 = arith.constant 0 : index
    %c0_10 = arith.constant 0 : index
    %8 = vector.load %arg9[%c0_8, %c0_9, %c0_10] : memref<2x8x128xf32, #tpu.memory_space<vmem>>, vector<2x8x128xf32>
    tpu.vector_store %arg9[%c0_8, %c0_9, %c0_10], %7 {strides = array<i32>} : memref<2x8x128xf32, #tpu.memory_space<vmem>>, vector<2x8x128xf32>,
    %cst_11 = arith.constant 0.000000e+00 : f32
    %9 = vector.broadcast %cst_11 : f32 to vector<2x8x128xf32>
    %c0_12 = arith.constant 0 : index
    %c0_13 = arith.constant 0 : index
    %c0_14 = arith.constant 0 : index
    %10 = vector.load %arg10[%c0_12, %c0_13, %c0_14] : memref<2x8x128xf32, #tpu.memory_space<vmem>>, vector<2x8x128xf32>
    tpu.vector_store %arg10[%c0_12, %c0_13, %c0_14], %9 {strides = array<i32>} : memref<2x8x128xf32, #tpu.memory_space<vmem>>, vector<2x8x128xf32>,
    %c0_15 = arith.constant 0 : index
    %c0_16 = arith.constant 0 : index
    %11 = vector.load %arg6[%c0_15, %c0_16] : memref<1x512xf32, #tpu.memory_space<vmem>>, vector<1x512xf32>
    %12 = vector.shape_cast %11 : vector<1x512xf32> to vector<512xf32>
    %13 = vector.shape_cast %12 : vector<512xf32> to vector<1x512xf32>
    %c0_i32 = arith.constant 0 : i32
    %c8_i32 = arith.constant 8 : i32
    %14 = arith.muli %c0_i32, %c8_i32 : i32
    %15 = tpu.assume_multiple %14, 8 : i32
    %16 = arith.index_cast %15 : i32 to index
    %c0_17 = arith.constant 0 : index
    %17 = vector.load %arg8[%16, %c0_17] : memref<64x512xf32, #tpu.memory_space<vmem>>, vector<8x512xf32>
    %c0_18 = arith.constant 0 : index
    %c0_19 = arith.constant 0 : index
    %c0_20 = arith.constant 0 : index
    %18 = vector.load %arg9[%c0_18, %c0_19, %c0_20] : memref<2x8x128xf32, #tpu.memory_space<vmem>>, vector<1x8x128xf32>
    %19 = vector.shape_cast %18 : vector<1x8x128xf32> to vector<8x128xf32>
    %c0_21 = arith.constant 0 : index
    %c0_22 = arith.constant 0 : index
    %20 = vector.load %arg5[%c0_21, %c0_22] : memref<128x512xf32, #tpu.memory_space<vmem>>, vector<128x512xf32>
    %cst_23 = arith.constant dense<0.000000e+00> : vector<8x512xf32>
    %21 = tpu.matmul %19, %20, %cst_23 {dimension_numbers = #tpu.dot_dimension_numbers<[1], [0], [0], [1], [0, 0, 1, 1], [], []>} : vector<8x128xf32>, vector<128x512xf32>, vector<8x512xf32> -> vector<8x512xf32>
    %22 = arith.addf %17, %21 : vector<8x512xf32>
    %c0_24 = arith.constant 0 : index
    %c0_25 = arith.constant 0 : index
    %c0_26 = arith.constant 0 : index
    %23 = vector.load %arg10[%c0_24, %c0_25, %c0_26] : memref<2x8x128xf32, #tpu.memory_space<vmem>>, vector<1x8x128xf32>
    %24 = vector.shape_cast %23 : vector<1x8x128xf32> to vector<8x128xf32>
    %25 = vector.extract_strided_slice %22 {offsets = [0, 0], sizes = [8, 128], strides = [1, 1]} : vector<8x512xf32> to vector<8x128xf32>
    %26 = arith.negf %25 : vector<8x128xf32>
    %27 = math.exp %26 : vector<8x128xf32>
    %cst_27 = arith.constant 1.000000e+00 : f32
    %28 = vector.broadcast %cst_27 : f32 to vector<8x128xf32>
    %29 = arith.addf %28, %27 : vector<8x128xf32>
    %30 = arith.divf %28, %29 : vector<8x128xf32>
    %31 = vector.extract_strided_slice %22 {offsets = [0, 128], sizes = [8, 128], strides = [1, 1]} : vector<8x512xf32> to vector<8x128xf32>
    %32 = arith.negf %31 : vector<8x128xf32>
    %33 = math.exp %32 : vector<8x128xf32>
    %cst_28 = arith.constant 1.000000e+00 : f32
    %34 = vector.broadcast %cst_28 : f32 to vector<8x128xf32>
    %35 = arith.addf %34, %33 : vector<8x128xf32>
    %36 = arith.divf %34, %35 : vector<8x128xf32>
    %37 = vector.extract_strided_slice %22 {offsets = [0, 256], sizes = [8, 128], strides = [1, 1]} : vector<8x512xf32> to vector<8x128xf32>
    %38 = math.tanh %37 : vector<8x128xf32>
    %39 = vector.extract_strided_slice %22 {offsets = [0, 384], sizes = [8, 128], strides = [1, 1]} : vector<8x512xf32> to vector<8x128xf32>
    %40 = arith.negf %39 : vector<8x128xf32>
    %41 = math.exp %40 : vector<8x128xf32>
    %cst_29 = arith.constant 1.000000e+00 : f32
    %42 = vector.broadcast %cst_29 : f32 to vector<8x128xf32>
    %43 = arith.addf %42, %41 : vector<8x128xf32>
    %44 = arith.divf %42, %43 : vector<8x128xf32>
    %45 = arith.mulf %36, %24 : vector<8x128xf32>
    %46 = arith.mulf %30, %38 : vector<8x128xf32>
    %47 = arith.addf %45, %46 : vector<8x128xf32>
    %48 = math.tanh %47 : vector<8x128xf32>
    %49 = arith.mulf %44, %48 : vector<8x128xf32>
    %c0_30 = arith.constant 0 : index
    %c0_31 = arith.constant 0 : index
    %c0_32 = arith.constant 0 : index
    %50 = vector.load %arg9[%c0_30, %c0_31, %c0_32] : memref<2x8x128xf32, #tpu.memory_space<vmem>>, vector<1x8x128xf32>
    %51 = vector.shape_cast %50 : vector<1x8x128xf32> to vector<8x128xf32>
    %52 = vector.shape_cast %49 : vector<8x128xf32> to vector<1x8x128xf32>
    tpu.vector_store %arg9[%c0_30, %c0_31, %c0_32], %52 {strides = array<i32>} : memref<2x8x128xf32, #tpu.memory_space<vmem>>, vector<1x8x128xf32>,
    %c0_33 = arith.constant 0 : index
    %c0_34 = arith.constant 0 : index
    %c0_35 = arith.constant 0 : index
    %53 = vector.load %arg10[%c0_33, %c0_34, %c0_35] : memref<2x8x128xf32, #tpu.memory_space<vmem>>, vector<1x8x128xf32>
    %54 = vector.shape_cast %53 : vector<1x8x128xf32> to vector<8x128xf32>
    %55 = vector.shape_cast %47 : vector<8x128xf32> to vector<1x8x128xf32>
    tpu.vector_store %arg10[%c0_33, %c0_34, %c0_35], %55 {strides = array<i32>} : memref<2x8x128xf32, #tpu.memory_space<vmem>>, vector<1x8x128xf32>,
    %c1 = arith.constant 1 : index
    %c0_36 = arith.constant 0 : index
    %c0_37 = arith.constant 0 : index
    %56 = vector.load %arg9[%c1, %c0_36, %c0_37] : memref<2x8x128xf32, #tpu.memory_space<vmem>>, vector<1x8x128xf32>
    %57 = vector.shape_cast %56 : vector<1x8x128xf32> to vector<8x128xf32>
    %58 = tpu.concatenate %49, %57 in 1 : vector<8x128xf32>, vector<8x128xf32> -> vector<8x256xf32>
    %c0_38 = arith.constant 0 : index
    %c0_39 = arith.constant 0 : index
    %c0_40 = arith.constant 0 : index
    %59 = vector.load %arg4[%c0_38, %c0_39, %c0_40] : memref<1x256x512xf32, #tpu.memory_space<vmem>>, vector<1x256x512xf32>
    %60 = vector.shape_cast %59 : vector<1x256x512xf32> to vector<256x512xf32>
    %cst_41 = arith.constant dense<0.000000e+00> : vector<8x512xf32>
    %61 = tpu.matmul %58, %60, %cst_41 {dimension_numbers = #tpu.dot_dimension_numbers<[1], [0], [0], [1], [0, 0, 1, 1], [], []>} : vector<8x256xf32>, vector<256x512xf32>, vector<8x512xf32> -> vector<8x512xf32>
    %62 = vector.broadcast %13 : vector<1x512xf32> to vector<8x512xf32>
    %63 = arith.addf %61, %62 : vector<8x512xf32>
    %c1_42 = arith.constant 1 : index
    %c0_43 = arith.constant 0 : index
    %c0_44 = arith.constant 0 : index
    %64 = vector.load %arg10[%c1_42, %c0_43, %c0_44] : memref<2x8x128xf32, #tpu.memory_space<vmem>>, vector<1x8x128xf32>
    %65 = vector.shape_cast %64 : vector<1x8x128xf32> to vector<8x128xf32>
    %66 = vector.extract_strided_slice %63 {offsets = [0, 0], sizes = [8, 128], strides = [1, 1]} : vector<8x512xf32> to vector<8x128xf32>
    %67 = arith.negf %66 : vector<8x128xf32>
    %68 = math.exp %67 : vector<8x128xf32>
    %cst_45 = arith.constant 1.000000e+00 : f32
    %69 = vector.broadcast %cst_45 : f32 to vector<8x128xf32>
    %70 = arith.addf %69, %68 : vector<8x128xf32>
    %71 = arith.divf %69, %70 : vector<8x128xf32>
    %72 = vector.extract_strided_slice %63 {offsets = [0, 128], sizes = [8, 128], strides = [1, 1]} : vector<8x512xf32> to vector<8x128xf32>
    %73 = arith.negf %72 : vector<8x128xf32>
    %74 = math.exp %73 : vector<8x128xf32>
    %cst_46 = arith.constant 1.000000e+00 : f32
    %75 = vector.broadcast %cst_46 : f32 to vector<8x128xf32>
    %76 = arith.addf %75, %74 : vector<8x128xf32>
    %77 = arith.divf %75, %76 : vector<8x128xf32>
    %78 = vector.extract_strided_slice %63 {offsets = [0, 256], sizes = [8, 128], strides = [1, 1]} : vector<8x512xf32> to vector<8x128xf32>
    %79 = math.tanh %78 : vector<8x128xf32>
    %80 = vector.extract_strided_slice %63 {offsets = [0, 384], sizes = [8, 128], strides = [1, 1]} : vector<8x512xf32> to vector<8x128xf32>
    %81 = arith.negf %80 : vector<8x128xf32>
    %82 = math.exp %81 : vector<8x128xf32>
    %cst_47 = arith.constant 1.000000e+00 : f32
    %83 = vector.broadcast %cst_47 : f32 to vector<8x128xf32>
    %84 = arith.addf %83, %82 : vector<8x128xf32>
    %85 = arith.divf %83, %84 : vector<8x128xf32>
    %86 = arith.mulf %77, %65 : vector<8x128xf32>
    %87 = arith.mulf %71, %79 : vector<8x128xf32>
    %88 = arith.addf %86, %87 : vector<8x128xf32>
    %89 = math.tanh %88 : vector<8x128xf32>
    %90 = arith.mulf %85, %89 : vector<8x128xf32>
    %c1_48 = arith.constant 1 : index
    %c0_49 = arith.constant 0 : index
    %c0_50 = arith.constant 0 : index
    %91 = vector.load %arg9[%c1_48, %c0_49, %c0_50] : memref<2x8x128xf32, #tpu.memory_space<vmem>>, vector<1x8x128xf32>
    %92 = vector.shape_cast %91 : vector<1x8x128xf32> to vector<8x128xf32>
    %93 = vector.shape_cast %90 : vector<8x128xf32> to vector<1x8x128xf32>
    tpu.vector_store %arg9[%c1_48, %c0_49, %c0_50], %93 {strides = array<i32>} : memref<2x8x128xf32, #tpu.memory_space<vmem>>, vector<1x8x128xf32>,
    %c1_51 = arith.constant 1 : index
    %c0_52 = arith.constant 0 : index
    %c0_53 = arith.constant 0 : index
    %94 = vector.load %arg10[%c1_51, %c0_52, %c0_53] : memref<2x8x128xf32, #tpu.memory_space<vmem>>, vector<1x8x128xf32>
    %95 = vector.shape_cast %94 : vector<1x8x128xf32> to vector<8x128xf32>
    %96 = vector.shape_cast %88 : vector<8x128xf32> to vector<1x8x128xf32>
    tpu.vector_store %arg10[%c1_51, %c0_52, %c0_53], %96 {strides = array<i32>} : memref<2x8x128xf32, #tpu.memory_space<vmem>>, vector<1x8x128xf32>,
    %97 = arith.index_cast %15 : i32 to index
    %c0_54 = arith.constant 0 : index
    %98 = vector.load %arg7[%97, %c0_54] : memref<64x128xf32, #tpu.memory_space<vmem>>, vector<8x128xf32>
    tpu.vector_store %arg7[%97, %c0_54], %90 {strides = array<i32>} : memref<64x128xf32, #tpu.memory_space<vmem>>, vector<8x128xf32>,
    %c1_i32 = arith.constant 1 : i32
    %c8_i32_55 = arith.constant 8 : i32
    %99 = arith.muli %c1_i32, %c8_i32_55 : i32
    %100 = tpu.assume_multiple %99, 8 : i32
    %101 = arith.index_cast %100 : i32 to index
    %c0_56 = arith.constant 0 : index
    %102 = vector.load %arg8[%101, %c0_56] : memref<64x512xf32, #tpu.memory_space<vmem>>, vector<8x512xf32>
    %c0_57 = arith.constant 0 : index
    %c0_58 = arith.constant 0 : index
    %c0_59 = arith.constant 0 : index
    %103 = vector.load %arg9[%c0_57, %c0_58, %c0_59] : memref<2x8x128xf32, #tpu.memory_space<vmem>>, vector<1x8x128xf32>
    %104 = vector.shape_cast %103 : vector<1x8x128xf32> to vector<8x128xf32>
    %c0_60 = arith.constant 0 : index
    %c0_61 = arith.constant 0 : index
    %105 = vector.load %arg5[%c0_60, %c0_61] : memref<128x512xf32, #tpu.memory_space<vmem>>, vector<128x512xf32>
    %cst_62 = arith.constant dense<0.000000e+00> : vector<8x512xf32>
    %106 = tpu.matmul %104, %105, %cst_62 {dimension_numbers = #tpu.dot_dimension_numbers<[1], [0], [0], [1], [0, 0, 1, 1], [], []>} : vector<8x128xf32>, vector<128x512xf32>, vector<8x512xf32> -> vector<8x512xf32>
    %107 = arith.addf %102, %106 : vector<8x512xf32>
    %c0_63 = arith.constant 0 : index
    %c0_64 = arith.constant 0 : index
    %c0_65 = arith.constant 0 : index
    %108 = vector.load %arg10[%c0_63, %c0_64, %c0_65] : memref<2x8x128xf32, #tpu.memory_space<vmem>>, vector<1x8x128xf32>
    %109 = vector.shape_cast %108 : vector<1x8x128xf32> to vector<8x128xf32>
    %110 = vector.extract_strided_slice %107 {offsets = [0, 0], sizes = [8, 128], strides = [1, 1]} : vector<8x512xf32> to vector<8x128xf32>
    %111 = arith.negf %110 : vector<8x128xf32>
    %112 = math.exp %111 : vector<8x128xf32>
    %cst_66 = arith.constant 1.000000e+00 : f32
    %113 = vector.broadcast %cst_66 : f32 to vector<8x128xf32>
    %114 = arith.addf %113, %112 : vector<8x128xf32>
    %115 = arith.divf %113, %114 : vector<8x128xf32>
    %116 = vector.extract_strided_slice %107 {offsets = [0, 128], sizes = [8, 128], strides = [1, 1]} : vector<8x512xf32> to vector<8x128xf32>
    %117 = arith.negf %116 : vector<8x128xf32>
    %118 = math.exp %117 : vector<8x128xf32>
    %cst_67 = arith.constant 1.000000e+00 : f32
    %119 = vector.broadcast %cst_67 : f32 to vector<8x128xf32>
    %120 = arith.addf %119, %118 : vector<8x128xf32>
    %121 = arith.divf %119, %120 : vector<8x128xf32>
    %122 = vector.extract_strided_slice %107 {offsets = [0, 256], sizes = [8, 128], strides = [1, 1]} : vector<8x512xf32> to vector<8x128xf32>
    %123 = math.tanh %122 : vector<8x128xf32>
    %124 = vector.extract_strided_slice %107 {offsets = [0, 384], sizes = [8, 128], strides = [1, 1]} : vector<8x512xf32> to vector<8x128xf32>
    %125 = arith.negf %124 : vector<8x128xf32>
    %126 = math.exp %125 : vector<8x128xf32>
    %cst_68 = arith.constant 1.000000e+00 : f32
    %127 = vector.broadcast %cst_68 : f32 to vector<8x128xf32>
    %128 = arith.addf %127, %126 : vector<8x128xf32>
    %129 = arith.divf %127, %128 : vector<8x128xf32>
    %130 = arith.mulf %121, %109 : vector<8x128xf32>
    %131 = arith.mulf %115, %123 : vector<8x128xf32>
    %132 = arith.addf %130, %131 : vector<8x128xf32>
    %133 = math.tanh %132 : vector<8x128xf32>
    %134 = arith.mulf %129, %133 : vector<8x128xf32>
    %c0_69 = arith.constant 0 : index
    %c0_70 = arith.constant 0 : index
    %c0_71 = arith.constant 0 : index
    %135 = vector.load %arg9[%c0_69, %c0_70, %c0_71] : memref<2x8x128xf32, #tpu.memory_space<vmem>>, vector<1x8x128xf32>
    %136 = vector.shape_cast %135 : vector<1x8x128xf32> to vector<8x128xf32>
    %137 = vector.shape_cast %134 : vector<8x128xf32> to vector<1x8x128xf32>
    tpu.vector_store %arg9[%c0_69, %c0_70, %c0_71], %137 {strides = array<i32>} : memref<2x8x128xf32, #tpu.memory_space<vmem>>, vector<1x8x128xf32>,
    %c0_72 = arith.constant 0 : index
    %c0_73 = arith.constant 0 : index
    %c0_74 = arith.constant 0 : index
    %138 = vector.load %arg10[%c0_72, %c0_73, %c0_74] : memref<2x8x128xf32, #tpu.memory_space<vmem>>, vector<1x8x128xf32>
    %139 = vector.shape_cast %138 : vector<1x8x128xf32> to vector<8x128xf32>
    %140 = vector.shape_cast %132 : vector<8x128xf32> to vector<1x8x128xf32>
    tpu.vector_store %arg10[%c0_72, %c0_73, %c0_74], %140 {strides = array<i32>} : memref<2x8x128xf32, #tpu.memory_space<vmem>>, vector<1x8x128xf32>,
    %c1_75 = arith.constant 1 : index
    %c0_76 = arith.constant 0 : index
    %c0_77 = arith.constant 0 : index
    %141 = vector.load %arg9[%c1_75, %c0_76, %c0_77] : memref<2x8x128xf32, #tpu.memory_space<vmem>>, vector<1x8x128xf32>
    %142 = vector.shape_cast %141 : vector<1x8x128xf32> to vector<8x128xf32>
    %143 = tpu.concatenate %134, %142 in 1 : vector<8x128xf32>, vector<8x128xf32> -> vector<8x256xf32>
    %c0_78 = arith.constant 0 : index
    %c0_79 = arith.constant 0 : index
    %c0_80 = arith.constant 0 : index
    %144 = vector.load %arg4[%c0_78, %c0_79, %c0_80] : memref<1x256x512xf32, #tpu.memory_space<vmem>>, vector<1x256x512xf32>
    %145 = vector.shape_cast %144 : vector<1x256x512xf32> to vector<256x512xf32>
    %cst_81 = arith.constant dense<0.000000e+00> : vector<8x512xf32>
    %146 = tpu.matmul %143, %145, %cst_81 {dimension_numbers = #tpu.dot_dimension_numbers<[1], [0], [0], [1], [0, 0, 1, 1], [], []>} : vector<8x256xf32>, vector<256x512xf32>, vector<8x512xf32> -> vector<8x512xf32>
    %147 = vector.broadcast %13 : vector<1x512xf32> to vector<8x512xf32>
    %148 = arith.addf %146, %147 : vector<8x512xf32>
    %c1_82 = arith.constant 1 : index
    %c0_83 = arith.constant 0 : index
    %c0_84 = arith.constant 0 : index
    %149 = vector.load %arg10[%c1_82, %c0_83, %c0_84] : memref<2x8x128xf32, #tpu.memory_space<vmem>>, vector<1x8x128xf32>
    %150 = vector.shape_cast %149 : vector<1x8x128xf32> to vector<8x128xf32>
    %151 = vector.extract_strided_slice %148 {offsets = [0, 0], sizes = [8, 128], strides = [1, 1]} : vector<8x512xf32> to vector<8x128xf32>
    %152 = arith.negf %151 : vector<8x128xf32>
    %153 = math.exp %152 : vector<8x128xf32>
    %cst_85 = arith.constant 1.000000e+00 : f32
    %154 = vector.broadcast %cst_85 : f32 to vector<8x128xf32>
    %155 = arith.addf %154, %153 : vector<8x128xf32>
    %156 = arith.divf %154, %155 : vector<8x128xf32>
    %157 = vector.extract_strided_slice %148 {offsets = [0, 128], sizes = [8, 128], strides = [1, 1]} : vector<8x512xf32> to vector<8x128xf32>
    %158 = arith.negf %157 : vector<8x128xf32>
    %159 = math.exp %158 : vector<8x128xf32>
    %cst_86 = arith.constant 1.000000e+00 : f32
    %160 = vector.broadcast %cst_86 : f32 to vector<8x128xf32>
    %161 = arith.addf %160, %159 : vector<8x128xf32>
    %162 = arith.divf %160, %161 : vector<8x128xf32>
    %163 = vector.extract_strided_slice %148 {offsets = [0, 256], sizes = [8, 128], strides = [1, 1]} : vector<8x512xf32> to vector<8x128xf32>
    %164 = math.tanh %163 : vector<8x128xf32>
    %165 = vector.extract_strided_slice %148 {offsets = [0, 384], sizes = [8, 128], strides = [1, 1]} : vector<8x512xf32> to vector<8x128xf32>
    %166 = arith.negf %165 : vector<8x128xf32>
    %167 = math.exp %166 : vector<8x128xf32>
    %cst_87 = arith.constant 1.000000e+00 : f32
    %168 = vector.broadcast %cst_87 : f32 to vector<8x128xf32>
    %169 = arith.addf %168, %167 : vector<8x128xf32>
    %170 = arith.divf %168, %169 : vector<8x128xf32>
    %171 = arith.mulf %162, %150 : vector<8x128xf32>
    %172 = arith.mulf %156, %164 : vector<8x128xf32>
    %173 = arith.addf %171, %172 : vector<8x128xf32>
    %174 = math.tanh %173 : vector<8x128xf32>
    %175 = arith.mulf %170, %174 : vector<8x128xf32>
    %c1_88 = arith.constant 1 : index
    %c0_89 = arith.constant 0 : index
    %c0_90 = arith.constant 0 : index
    %176 = vector.load %arg9[%c1_88, %c0_89, %c0_90] : memref<2x8x128xf32, #tpu.memory_space<vmem>>, vector<1x8x128xf32>
    %177 = vector.shape_cast %176 : vector<1x8x128xf32> to vector<8x128xf32>
    %178 = vector.shape_cast %175 : vector<8x128xf32> to vector<1x8x128xf32>
    tpu.vector_store %arg9[%c1_88, %c0_89, %c0_90], %178 {strides = array<i32>} : memref<2x8x128xf32, #tpu.memory_space<vmem>>, vector<1x8x128xf32>,
    %c1_91 = arith.constant 1 : index
    %c0_92 = arith.constant 0 : index
    %c0_93 = arith.constant 0 : index
    %179 = vector.load %arg10[%c1_91, %c0_92, %c0_93] : memref<2x8x128xf32, #tpu.memory_space<vmem>>, vector<1x8x128xf32>
    %180 = vector.shape_cast %179 : vector<1x8x128xf32> to vector<8x128xf32>
    %181 = vector.shape_cast %173 : vector<8x128xf32> to vector<1x8x128xf32>
    tpu.vector_store %arg10[%c1_91, %c0_92, %c0_93], %181 {strides = array<i32>} : memref<2x8x128xf32, #tpu.memory_space<vmem>>, vector<1x8x128xf32>,
    %182 = arith.index_cast %100 : i32 to index
    %c0_94 = arith.constant 0 : index
    %183 = vector.load %arg7[%182, %c0_94] : memref<64x128xf32, #tpu.memory_space<vmem>>, vector<8x128xf32>
    tpu.vector_store %arg7[%182, %c0_94], %175 {strides = array<i32>} : memref<64x128xf32, #tpu.memory_space<vmem>>, vector<8x128xf32>,
    %c2_i32 = arith.constant 2 : i32
    %c8_i32_95 = arith.constant 8 : i32
    %184 = arith.muli %c2_i32, %c8_i32_95 : i32
    %185 = tpu.assume_multiple %184, 8 : i32
    %186 = arith.index_cast %185 : i32 to index
    %c0_96 = arith.constant 0 : index
    %187 = vector.load %arg8[%186, %c0_96] : memref<64x512xf32, #tpu.memory_space<vmem>>, vector<8x512xf32>
    %c0_97 = arith.constant 0 : index
    %c0_98 = arith.constant 0 : index
    %c0_99 = arith.constant 0 : index
    %188 = vector.load %arg9[%c0_97, %c0_98, %c0_99] : memref<2x8x128xf32, #tpu.memory_space<vmem>>, vector<1x8x128xf32>
    %189 = vector.shape_cast %188 : vector<1x8x128xf32> to vector<8x128xf32>
    %c0_100 = arith.constant 0 : index
    %c0_101 = arith.constant 0 : index
    %190 = vector.load %arg5[%c0_100, %c0_101] : memref<128x512xf32, #tpu.memory_space<vmem>>, vector<128x512xf32>
    %cst_102 = arith.constant dense<0.000000e+00> : vector<8x512xf32>
    %191 = tpu.matmul %189, %190, %cst_102 {dimension_numbers = #tpu.dot_dimension_numbers<[1], [0], [0], [1], [0, 0, 1, 1], [], []>} : vector<8x128xf32>, vector<128x512xf32>, vector<8x512xf32> -> vector<8x512xf32>
    %192 = arith.addf %187, %191 : vector<8x512xf32>
    %c0_103 = arith.constant 0 : index
    %c0_104 = arith.constant 0 : index
    %c0_105 = arith.constant 0 : index
    %193 = vector.load %arg10[%c0_103, %c0_104, %c0_105] : memref<2x8x128xf32, #tpu.memory_space<vmem>>, vector<1x8x128xf32>
    %194 = vector.shape_cast %193 : vector<1x8x128xf32> to vector<8x128xf32>
    %195 = vector.extract_strided_slice %192 {offsets = [0, 0], sizes = [8, 128], strides = [1, 1]} : vector<8x512xf32> to vector<8x128xf32>
    %196 = arith.negf %195 : vector<8x128xf32>
    %197 = math.exp %196 : vector<8x128xf32>
    %cst_106 = arith.constant 1.000000e+00 : f32
    %198 = vector.broadcast %cst_106 : f32 to vector<8x128xf32>
    %199 = arith.addf %198, %197 : vector<8x128xf32>
    %200 = arith.divf %198, %199 : vector<8x128xf32>
    %201 = vector.extract_strided_slice %192 {offsets = [0, 128], sizes = [8, 128], strides = [1, 1]} : vector<8x512xf32> to vector<8x128xf32>
    %202 = arith.negf %201 : vector<8x128xf32>
    %203 = math.exp %202 : vector<8x128xf32>
    %cst_107 = arith.constant 1.000000e+00 : f32
    %204 = vector.broadcast %cst_107 : f32 to vector<8x128xf32>
    %205 = arith.addf %204, %203 : vector<8x128xf32>
    %206 = arith.divf %204, %205 : vector<8x128xf32>
    %207 = vector.extract_strided_slice %192 {offsets = [0, 256], sizes = [8, 128], strides = [1, 1]} : vector<8x512xf32> to vector<8x128xf32>
    %208 = math.tanh %207 : vector<8x128xf32>
    %209 = vector.extract_strided_slice %192 {offsets = [0, 384], sizes = [8, 128], strides = [1, 1]} : vector<8x512xf32> to vector<8x128xf32>
    %210 = arith.negf %209 : vector<8x128xf32>
    %211 = math.exp %210 : vector<8x128xf32>
    %cst_108 = arith.constant 1.000000e+00 : f32
    %212 = vector.broadcast %cst_108 : f32 to vector<8x128xf32>
    %213 = arith.addf %212, %211 : vector<8x128xf32>
    %214 = arith.divf %212, %213 : vector<8x128xf32>
    %215 = arith.mulf %206, %194 : vector<8x128xf32>
    %216 = arith.mulf %200, %208 : vector<8x128xf32>
    %217 = arith.addf %215, %216 : vector<8x128xf32>
    %218 = math.tanh %217 : vector<8x128xf32>
    %219 = arith.mulf %214, %218 : vector<8x128xf32>
    %c0_109 = arith.constant 0 : index
    %c0_110 = arith.constant 0 : index
    %c0_111 = arith.constant 0 : index
    %220 = vector.load %arg9[%c0_109, %c0_110, %c0_111] : memref<2x8x128xf32, #tpu.memory_space<vmem>>, vector<1x8x128xf32>
    %221 = vector.shape_cast %220 : vector<1x8x128xf32> to vector<8x128xf32>
    %222 = vector.shape_cast %219 : vector<8x128xf32> to vector<1x8x128xf32>
    tpu.vector_store %arg9[%c0_109, %c0_110, %c0_111], %222 {strides = array<i32>} : memref<2x8x128xf32, #tpu.memory_space<vmem>>, vector<1x8x128xf32>,
    %c0_112 = arith.constant 0 : index
    %c0_113 = arith.constant 0 : index
    %c0_114 = arith.constant 0 : index
    %223 = vector.load %arg10[%c0_112, %c0_113, %c0_114] : memref<2x8x128xf32, #tpu.memory_space<vmem>>, vector<1x8x128xf32>
    %224 = vector.shape_cast %223 : vector<1x8x128xf32> to vector<8x128xf32>
    %225 = vector.shape_cast %217 : vector<8x128xf32> to vector<1x8x128xf32>
    tpu.vector_store %arg10[%c0_112, %c0_113, %c0_114], %225 {strides = array<i32>} : memref<2x8x128xf32, #tpu.memory_space<vmem>>, vector<1x8x128xf32>,
    %c1_115 = arith.constant 1 : index
    %c0_116 = arith.constant 0 : index
    %c0_117 = arith.constant 0 : index
    %226 = vector.load %arg9[%c1_115, %c0_116, %c0_117] : memref<2x8x128xf32, #tpu.memory_space<vmem>>, vector<1x8x128xf32>
    %227 = vector.shape_cast %226 : vector<1x8x128xf32> to vector<8x128xf32>
    %228 = tpu.concatenate %219, %227 in 1 : vector<8x128xf32>, vector<8x128xf32> -> vector<8x256xf32>
    %c0_118 = arith.constant 0 : index
    %c0_119 = arith.constant 0 : index
    %c0_120 = arith.constant 0 : index
    %229 = vector.load %arg4[%c0_118, %c0_119, %c0_120] : memref<1x256x512xf32, #tpu.memory_space<vmem>>, vector<1x256x512xf32>
    %230 = vector.shape_cast %229 : vector<1x256x512xf32> to vector<256x512xf32>
    %cst_121 = arith.constant dense<0.000000e+00> : vector<8x512xf32>
    %231 = tpu.matmul %228, %230, %cst_121 {dimension_numbers = #tpu.dot_dimension_numbers<[1], [0], [0], [1], [0, 0, 1, 1], [], []>} : vector<8x256xf32>, vector<256x512xf32>, vector<8x512xf32> -> vector<8x512xf32>
    %232 = vector.broadcast %13 : vector<1x512xf32> to vector<8x512xf32>
    %233 = arith.addf %231, %232 : vector<8x512xf32>
    %c1_122 = arith.constant 1 : index
    %c0_123 = arith.constant 0 : index
    %c0_124 = arith.constant 0 : index
    %234 = vector.load %arg10[%c1_122, %c0_123, %c0_124] : memref<2x8x128xf32, #tpu.memory_space<vmem>>, vector<1x8x128xf32>
    %235 = vector.shape_cast %234 : vector<1x8x128xf32> to vector<8x128xf32>
    %236 = vector.extract_strided_slice %233 {offsets = [0, 0], sizes = [8, 128], strides = [1, 1]} : vector<8x512xf32> to vector<8x128xf32>
    %237 = arith.negf %236 : vector<8x128xf32>
    %238 = math.exp %237 : vector<8x128xf32>
    %cst_125 = arith.constant 1.000000e+00 : f32
    %239 = vector.broadcast %cst_125 : f32 to vector<8x128xf32>
    %240 = arith.addf %239, %238 : vector<8x128xf32>
    %241 = arith.divf %239, %240 : vector<8x128xf32>
    %242 = vector.extract_strided_slice %233 {offsets = [0, 128], sizes = [8, 128], strides = [1, 1]} : vector<8x512xf32> to vector<8x128xf32>
    %243 = arith.negf %242 : vector<8x128xf32>
    %244 = math.exp %243 : vector<8x128xf32>
    %cst_126 = arith.constant 1.000000e+00 : f32
    %245 = vector.broadcast %cst_126 : f32 to vector<8x128xf32>
    %246 = arith.addf %245, %244 : vector<8x128xf32>
    %247 = arith.divf %245, %246 : vector<8x128xf32>
    %248 = vector.extract_strided_slice %233 {offsets = [0, 256], sizes = [8, 128], strides = [1, 1]} : vector<8x512xf32> to vector<8x128xf32>
    %249 = math.tanh %248 : vector<8x128xf32>
    %250 = vector.extract_strided_slice %233 {offsets = [0, 384], sizes = [8, 128], strides = [1, 1]} : vector<8x512xf32> to vector<8x128xf32>
    %251 = arith.negf %250 : vector<8x128xf32>
    %252 = math.exp %251 : vector<8x128xf32>
    %cst_127 = arith.constant 1.000000e+00 : f32
    %253 = vector.broadcast %cst_127 : f32 to vector<8x128xf32>
    %254 = arith.addf %253, %252 : vector<8x128xf32>
    %255 = arith.divf %253, %254 : vector<8x128xf32>
    %256 = arith.mulf %247, %235 : vector<8x128xf32>
    %257 = arith.mulf %241, %249 : vector<8x128xf32>
    %258 = arith.addf %256, %257 : vector<8x128xf32>
    %259 = math.tanh %258 : vector<8x128xf32>
    %260 = arith.mulf %255, %259 : vector<8x128xf32>
    %c1_128 = arith.constant 1 : index
    %c0_129 = arith.constant 0 : index
    %c0_130 = arith.constant 0 : index
    %261 = vector.load %arg9[%c1_128, %c0_129, %c0_130] : memref<2x8x128xf32, #tpu.memory_space<vmem>>, vector<1x8x128xf32>
    %262 = vector.shape_cast %261 : vector<1x8x128xf32> to vector<8x128xf32>
    %263 = vector.shape_cast %260 : vector<8x128xf32> to vector<1x8x128xf32>
    tpu.vector_store %arg9[%c1_128, %c0_129, %c0_130], %263 {strides = array<i32>} : memref<2x8x128xf32, #tpu.memory_space<vmem>>, vector<1x8x128xf32>,
    %c1_131 = arith.constant 1 : index
    %c0_132 = arith.constant 0 : index
    %c0_133 = arith.constant 0 : index
    %264 = vector.load %arg10[%c1_131, %c0_132, %c0_133] : memref<2x8x128xf32, #tpu.memory_space<vmem>>, vector<1x8x128xf32>
    %265 = vector.shape_cast %264 : vector<1x8x128xf32> to vector<8x128xf32>
    %266 = vector.shape_cast %258 : vector<8x128xf32> to vector<1x8x128xf32>
    tpu.vector_store %arg10[%c1_131, %c0_132, %c0_133], %266 {strides = array<i32>} : memref<2x8x128xf32, #tpu.memory_space<vmem>>, vector<1x8x128xf32>,
    %267 = arith.index_cast %185 : i32 to index
    %c0_134 = arith.constant 0 : index
    %268 = vector.load %arg7[%267, %c0_134] : memref<64x128xf32, #tpu.memory_space<vmem>>, vector<8x128xf32>
    tpu.vector_store %arg7[%267, %c0_134], %260 {strides = array<i32>} : memref<64x128xf32, #tpu.memory_space<vmem>>, vector<8x128xf32>,
    %c3_i32 = arith.constant 3 : i32
    %c8_i32_135 = arith.constant 8 : i32
    %269 = arith.muli %c3_i32, %c8_i32_135 : i32
    %270 = tpu.assume_multiple %269, 8 : i32
    %271 = arith.index_cast %270 : i32 to index
    %c0_136 = arith.constant 0 : index
    %272 = vector.load %arg8[%271, %c0_136] : memref<64x512xf32, #tpu.memory_space<vmem>>, vector<8x512xf32>
    %c0_137 = arith.constant 0 : index
    %c0_138 = arith.constant 0 : index
    %c0_139 = arith.constant 0 : index
    %273 = vector.load %arg9[%c0_137, %c0_138, %c0_139] : memref<2x8x128xf32, #tpu.memory_space<vmem>>, vector<1x8x128xf32>
    %274 = vector.shape_cast %273 : vector<1x8x128xf32> to vector<8x128xf32>
    %c0_140 = arith.constant 0 : index
    %c0_141 = arith.constant 0 : index
    %275 = vector.load %arg5[%c0_140, %c0_141] : memref<128x512xf32, #tpu.memory_space<vmem>>, vector<128x512xf32>
    %cst_142 = arith.constant dense<0.000000e+00> : vector<8x512xf32>
    %276 = tpu.matmul %274, %275, %cst_142 {dimension_numbers = #tpu.dot_dimension_numbers<[1], [0], [0], [1], [0, 0, 1, 1], [], []>} : vector<8x128xf32>, vector<128x512xf32>, vector<8x512xf32> -> vector<8x512xf32>
    %277 = arith.addf %272, %276 : vector<8x512xf32>
    %c0_143 = arith.constant 0 : index
    %c0_144 = arith.constant 0 : index
    %c0_145 = arith.constant 0 : index
    %278 = vector.load %arg10[%c0_143, %c0_144, %c0_145] : memref<2x8x128xf32, #tpu.memory_space<vmem>>, vector<1x8x128xf32>
    %279 = vector.shape_cast %278 : vector<1x8x128xf32> to vector<8x128xf32>
    %280 = vector.extract_strided_slice %277 {offsets = [0, 0], sizes = [8, 128], strides = [1, 1]} : vector<8x512xf32> to vector<8x128xf32>
    %281 = arith.negf %280 : vector<8x128xf32>
    %282 = math.exp %281 : vector<8x128xf32>
    %cst_146 = arith.constant 1.000000e+00 : f32
    %283 = vector.broadcast %cst_146 : f32 to vector<8x128xf32>
    %284 = arith.addf %283, %282 : vector<8x128xf32>
    %285 = arith.divf %283, %284 : vector<8x128xf32>
    %286 = vector.extract_strided_slice %277 {offsets = [0, 128], sizes = [8, 128], strides = [1, 1]} : vector<8x512xf32> to vector<8x128xf32>
    %287 = arith.negf %286 : vector<8x128xf32>
    %288 = math.exp %287 : vector<8x128xf32>
    %cst_147 = arith.constant 1.000000e+00 : f32
    %289 = vector.broadcast %cst_147 : f32 to vector<8x128xf32>
    %290 = arith.addf %289, %288 : vector<8x128xf32>
    %291 = arith.divf %289, %290 : vector<8x128xf32>
    %292 = vector.extract_strided_slice %277 {offsets = [0, 256], sizes = [8, 128], strides = [1, 1]} : vector<8x512xf32> to vector<8x128xf32>
    %293 = math.tanh %292 : vector<8x128xf32>
    %294 = vector.extract_strided_slice %277 {offsets = [0, 384], sizes = [8, 128], strides = [1, 1]} : vector<8x512xf32> to vector<8x128xf32>
    %295 = arith.negf %294 : vector<8x128xf32>
    %296 = math.exp %295 : vector<8x128xf32>
    %cst_148 = arith.constant 1.000000e+00 : f32
    %297 = vector.broadcast %cst_148 : f32 to vector<8x128xf32>
    %298 = arith.addf %297, %296 : vector<8x128xf32>
    %299 = arith.divf %297, %298 : vector<8x128xf32>
    %300 = arith.mulf %291, %279 : vector<8x128xf32>
    %301 = arith.mulf %285, %293 : vector<8x128xf32>
    %302 = arith.addf %300, %301 : vector<8x128xf32>
    %303 = math.tanh %302 : vector<8x128xf32>
    %304 = arith.mulf %299, %303 : vector<8x128xf32>
    %c0_149 = arith.constant 0 : index
    %c0_150 = arith.constant 0 : index
    %c0_151 = arith.constant 0 : index
    %305 = vector.load %arg9[%c0_149, %c0_150, %c0_151] : memref<2x8x128xf32, #tpu.memory_space<vmem>>, vector<1x8x128xf32>
    %306 = vector.shape_cast %305 : vector<1x8x128xf32> to vector<8x128xf32>
    %307 = vector.shape_cast %304 : vector<8x128xf32> to vector<1x8x128xf32>
    tpu.vector_store %arg9[%c0_149, %c0_150, %c0_151], %307 {strides = array<i32>} : memref<2x8x128xf32, #tpu.memory_space<vmem>>, vector<1x8x128xf32>,
    %c0_152 = arith.constant 0 : index
    %c0_153 = arith.constant 0 : index
    %c0_154 = arith.constant 0 : index
    %308 = vector.load %arg10[%c0_152, %c0_153, %c0_154] : memref<2x8x128xf32, #tpu.memory_space<vmem>>, vector<1x8x128xf32>
    %309 = vector.shape_cast %308 : vector<1x8x128xf32> to vector<8x128xf32>
    %310 = vector.shape_cast %302 : vector<8x128xf32> to vector<1x8x128xf32>
    tpu.vector_store %arg10[%c0_152, %c0_153, %c0_154], %310 {strides = array<i32>} : memref<2x8x128xf32, #tpu.memory_space<vmem>>, vector<1x8x128xf32>,
    %c1_155 = arith.constant 1 : index
    %c0_156 = arith.constant 0 : index
    %c0_157 = arith.constant 0 : index
    %311 = vector.load %arg9[%c1_155, %c0_156, %c0_157] : memref<2x8x128xf32, #tpu.memory_space<vmem>>, vector<1x8x128xf32>
    %312 = vector.shape_cast %311 : vector<1x8x128xf32> to vector<8x128xf32>
    %313 = tpu.concatenate %304, %312 in 1 : vector<8x128xf32>, vector<8x128xf32> -> vector<8x256xf32>
    %c0_158 = arith.constant 0 : index
    %c0_159 = arith.constant 0 : index
    %c0_160 = arith.constant 0 : index
    %314 = vector.load %arg4[%c0_158, %c0_159, %c0_160] : memref<1x256x512xf32, #tpu.memory_space<vmem>>, vector<1x256x512xf32>
    %315 = vector.shape_cast %314 : vector<1x256x512xf32> to vector<256x512xf32>
    %cst_161 = arith.constant dense<0.000000e+00> : vector<8x512xf32>
    %316 = tpu.matmul %313, %315, %cst_161 {dimension_numbers = #tpu.dot_dimension_numbers<[1], [0], [0], [1], [0, 0, 1, 1], [], []>} : vector<8x256xf32>, vector<256x512xf32>, vector<8x512xf32> -> vector<8x512xf32>
    %317 = vector.broadcast %13 : vector<1x512xf32> to vector<8x512xf32>
    %318 = arith.addf %316, %317 : vector<8x512xf32>
    %c1_162 = arith.constant 1 : index
    %c0_163 = arith.constant 0 : index
    %c0_164 = arith.constant 0 : index
    %319 = vector.load %arg10[%c1_162, %c0_163, %c0_164] : memref<2x8x128xf32, #tpu.memory_space<vmem>>, vector<1x8x128xf32>
    %320 = vector.shape_cast %319 : vector<1x8x128xf32> to vector<8x128xf32>
    %321 = vector.extract_strided_slice %318 {offsets = [0, 0], sizes = [8, 128], strides = [1, 1]} : vector<8x512xf32> to vector<8x128xf32>
    %322 = arith.negf %321 : vector<8x128xf32>
    %323 = math.exp %322 : vector<8x128xf32>
    %cst_165 = arith.constant 1.000000e+00 : f32
    %324 = vector.broadcast %cst_165 : f32 to vector<8x128xf32>
    %325 = arith.addf %324, %323 : vector<8x128xf32>
    %326 = arith.divf %324, %325 : vector<8x128xf32>
    %327 = vector.extract_strided_slice %318 {offsets = [0, 128], sizes = [8, 128], strides = [1, 1]} : vector<8x512xf32> to vector<8x128xf32>
    %328 = arith.negf %327 : vector<8x128xf32>
    %329 = math.exp %328 : vector<8x128xf32>
    %cst_166 = arith.constant 1.000000e+00 : f32
    %330 = vector.broadcast %cst_166 : f32 to vector<8x128xf32>
    %331 = arith.addf %330, %329 : vector<8x128xf32>
    %332 = arith.divf %330, %331 : vector<8x128xf32>
    %333 = vector.extract_strided_slice %318 {offsets = [0, 256], sizes = [8, 128], strides = [1, 1]} : vector<8x512xf32> to vector<8x128xf32>
    %334 = math.tanh %333 : vector<8x128xf32>
    %335 = vector.extract_strided_slice %318 {offsets = [0, 384], sizes = [8, 128], strides = [1, 1]} : vector<8x512xf32> to vector<8x128xf32>
    %336 = arith.negf %335 : vector<8x128xf32>
    %337 = math.exp %336 : vector<8x128xf32>
    %cst_167 = arith.constant 1.000000e+00 : f32
    %338 = vector.broadcast %cst_167 : f32 to vector<8x128xf32>
    %339 = arith.addf %338, %337 : vector<8x128xf32>
    %340 = arith.divf %338, %339 : vector<8x128xf32>
    %341 = arith.mulf %332, %320 : vector<8x128xf32>
    %342 = arith.mulf %326, %334 : vector<8x128xf32>
    %343 = arith.addf %341, %342 : vector<8x128xf32>
    %344 = math.tanh %343 : vector<8x128xf32>
    %345 = arith.mulf %340, %344 : vector<8x128xf32>
    %c1_168 = arith.constant 1 : index
    %c0_169 = arith.constant 0 : index
    %c0_170 = arith.constant 0 : index
    %346 = vector.load %arg9[%c1_168, %c0_169, %c0_170] : memref<2x8x128xf32, #tpu.memory_space<vmem>>, vector<1x8x128xf32>
    %347 = vector.shape_cast %346 : vector<1x8x128xf32> to vector<8x128xf32>
    %348 = vector.shape_cast %345 : vector<8x128xf32> to vector<1x8x128xf32>
    tpu.vector_store %arg9[%c1_168, %c0_169, %c0_170], %348 {strides = array<i32>} : memref<2x8x128xf32, #tpu.memory_space<vmem>>, vector<1x8x128xf32>,
    %c1_171 = arith.constant 1 : index
    %c0_172 = arith.constant 0 : index
    %c0_173 = arith.constant 0 : index
    %349 = vector.load %arg10[%c1_171, %c0_172, %c0_173] : memref<2x8x128xf32, #tpu.memory_space<vmem>>, vector<1x8x128xf32>
    %350 = vector.shape_cast %349 : vector<1x8x128xf32> to vector<8x128xf32>
    %351 = vector.shape_cast %343 : vector<8x128xf32> to vector<1x8x128xf32>
    tpu.vector_store %arg10[%c1_171, %c0_172, %c0_173], %351 {strides = array<i32>} : memref<2x8x128xf32, #tpu.memory_space<vmem>>, vector<1x8x128xf32>,
    %352 = arith.index_cast %270 : i32 to index
    %c0_174 = arith.constant 0 : index
    %353 = vector.load %arg7[%352, %c0_174] : memref<64x128xf32, #tpu.memory_space<vmem>>, vector<8x128xf32>
    tpu.vector_store %arg7[%352, %c0_174], %345 {strides = array<i32>} : memref<64x128xf32, #tpu.memory_space<vmem>>, vector<8x128xf32>,
    %c4_i32 = arith.constant 4 : i32
    %c8_i32_175 = arith.constant 8 : i32
    %354 = arith.muli %c4_i32, %c8_i32_175 : i32
    %355 = tpu.assume_multiple %354, 8 : i32
    %356 = arith.index_cast %355 : i32 to index
    %c0_176 = arith.constant 0 : index
    %357 = vector.load %arg8[%356, %c0_176] : memref<64x512xf32, #tpu.memory_space<vmem>>, vector<8x512xf32>
    %c0_177 = arith.constant 0 : index
    %c0_178 = arith.constant 0 : index
    %c0_179 = arith.constant 0 : index
    %358 = vector.load %arg9[%c0_177, %c0_178, %c0_179] : memref<2x8x128xf32, #tpu.memory_space<vmem>>, vector<1x8x128xf32>
    %359 = vector.shape_cast %358 : vector<1x8x128xf32> to vector<8x128xf32>
    %c0_180 = arith.constant 0 : index
    %c0_181 = arith.constant 0 : index
    %360 = vector.load %arg5[%c0_180, %c0_181] : memref<128x512xf32, #tpu.memory_space<vmem>>, vector<128x512xf32>
    %cst_182 = arith.constant dense<0.000000e+00> : vector<8x512xf32>
    %361 = tpu.matmul %359, %360, %cst_182 {dimension_numbers = #tpu.dot_dimension_numbers<[1], [0], [0], [1], [0, 0, 1, 1], [], []>} : vector<8x128xf32>, vector<128x512xf32>, vector<8x512xf32> -> vector<8x512xf32>
    %362 = arith.addf %357, %361 : vector<8x512xf32>
    %c0_183 = arith.constant 0 : index
    %c0_184 = arith.constant 0 : index
    %c0_185 = arith.constant 0 : index
    %363 = vector.load %arg10[%c0_183, %c0_184, %c0_185] : memref<2x8x128xf32, #tpu.memory_space<vmem>>, vector<1x8x128xf32>
    %364 = vector.shape_cast %363 : vector<1x8x128xf32> to vector<8x128xf32>
    %365 = vector.extract_strided_slice %362 {offsets = [0, 0], sizes = [8, 128], strides = [1, 1]} : vector<8x512xf32> to vector<8x128xf32>
    %366 = arith.negf %365 : vector<8x128xf32>
    %367 = math.exp %366 : vector<8x128xf32>
    %cst_186 = arith.constant 1.000000e+00 : f32
    %368 = vector.broadcast %cst_186 : f32 to vector<8x128xf32>
    %369 = arith.addf %368, %367 : vector<8x128xf32>
    %370 = arith.divf %368, %369 : vector<8x128xf32>
    %371 = vector.extract_strided_slice %362 {offsets = [0, 128], sizes = [8, 128], strides = [1, 1]} : vector<8x512xf32> to vector<8x128xf32>
    %372 = arith.negf %371 : vector<8x128xf32>
    %373 = math.exp %372 : vector<8x128xf32>
    %cst_187 = arith.constant 1.000000e+00 : f32
    %374 = vector.broadcast %cst_187 : f32 to vector<8x128xf32>
    %375 = arith.addf %374, %373 : vector<8x128xf32>
    %376 = arith.divf %374, %375 : vector<8x128xf32>
    %377 = vector.extract_strided_slice %362 {offsets = [0, 256], sizes = [8, 128], strides = [1, 1]} : vector<8x512xf32> to vector<8x128xf32>
    %378 = math.tanh %377 : vector<8x128xf32>
    %379 = vector.extract_strided_slice %362 {offsets = [0, 384], sizes = [8, 128], strides = [1, 1]} : vector<8x512xf32> to vector<8x128xf32>
    %380 = arith.negf %379 : vector<8x128xf32>
    %381 = math.exp %380 : vector<8x128xf32>
    %cst_188 = arith.constant 1.000000e+00 : f32
    %382 = vector.broadcast %cst_188 : f32 to vector<8x128xf32>
    %383 = arith.addf %382, %381 : vector<8x128xf32>
    %384 = arith.divf %382, %383 : vector<8x128xf32>
    %385 = arith.mulf %376, %364 : vector<8x128xf32>
    %386 = arith.mulf %370, %378 : vector<8x128xf32>
    %387 = arith.addf %385, %386 : vector<8x128xf32>
    %388 = math.tanh %387 : vector<8x128xf32>
    %389 = arith.mulf %384, %388 : vector<8x128xf32>
    %c0_189 = arith.constant 0 : index
    %c0_190 = arith.constant 0 : index
    %c0_191 = arith.constant 0 : index
    %390 = vector.load %arg9[%c0_189, %c0_190, %c0_191] : memref<2x8x128xf32, #tpu.memory_space<vmem>>, vector<1x8x128xf32>
    %391 = vector.shape_cast %390 : vector<1x8x128xf32> to vector<8x128xf32>
    %392 = vector.shape_cast %389 : vector<8x128xf32> to vector<1x8x128xf32>
    tpu.vector_store %arg9[%c0_189, %c0_190, %c0_191], %392 {strides = array<i32>} : memref<2x8x128xf32, #tpu.memory_space<vmem>>, vector<1x8x128xf32>,
    %c0_192 = arith.constant 0 : index
    %c0_193 = arith.constant 0 : index
    %c0_194 = arith.constant 0 : index
    %393 = vector.load %arg10[%c0_192, %c0_193, %c0_194] : memref<2x8x128xf32, #tpu.memory_space<vmem>>, vector<1x8x128xf32>
    %394 = vector.shape_cast %393 : vector<1x8x128xf32> to vector<8x128xf32>
    %395 = vector.shape_cast %387 : vector<8x128xf32> to vector<1x8x128xf32>
    tpu.vector_store %arg10[%c0_192, %c0_193, %c0_194], %395 {strides = array<i32>} : memref<2x8x128xf32, #tpu.memory_space<vmem>>, vector<1x8x128xf32>,
    %c1_195 = arith.constant 1 : index
    %c0_196 = arith.constant 0 : index
    %c0_197 = arith.constant 0 : index
    %396 = vector.load %arg9[%c1_195, %c0_196, %c0_197] : memref<2x8x128xf32, #tpu.memory_space<vmem>>, vector<1x8x128xf32>
    %397 = vector.shape_cast %396 : vector<1x8x128xf32> to vector<8x128xf32>
    %398 = tpu.concatenate %389, %397 in 1 : vector<8x128xf32>, vector<8x128xf32> -> vector<8x256xf32>
    %c0_198 = arith.constant 0 : index
    %c0_199 = arith.constant 0 : index
    %c0_200 = arith.constant 0 : index
    %399 = vector.load %arg4[%c0_198, %c0_199, %c0_200] : memref<1x256x512xf32, #tpu.memory_space<vmem>>, vector<1x256x512xf32>
    %400 = vector.shape_cast %399 : vector<1x256x512xf32> to vector<256x512xf32>
    %cst_201 = arith.constant dense<0.000000e+00> : vector<8x512xf32>
    %401 = tpu.matmul %398, %400, %cst_201 {dimension_numbers = #tpu.dot_dimension_numbers<[1], [0], [0], [1], [0, 0, 1, 1], [], []>} : vector<8x256xf32>, vector<256x512xf32>, vector<8x512xf32> -> vector<8x512xf32>
    %402 = vector.broadcast %13 : vector<1x512xf32> to vector<8x512xf32>
    %403 = arith.addf %401, %402 : vector<8x512xf32>
    %c1_202 = arith.constant 1 : index
    %c0_203 = arith.constant 0 : index
    %c0_204 = arith.constant 0 : index
    %404 = vector.load %arg10[%c1_202, %c0_203, %c0_204] : memref<2x8x128xf32, #tpu.memory_space<vmem>>, vector<1x8x128xf32>
    %405 = vector.shape_cast %404 : vector<1x8x128xf32> to vector<8x128xf32>
    %406 = vector.extract_strided_slice %403 {offsets = [0, 0], sizes = [8, 128], strides = [1, 1]} : vector<8x512xf32> to vector<8x128xf32>
    %407 = arith.negf %406 : vector<8x128xf32>
    %408 = math.exp %407 : vector<8x128xf32>
    %cst_205 = arith.constant 1.000000e+00 : f32
    %409 = vector.broadcast %cst_205 : f32 to vector<8x128xf32>
    %410 = arith.addf %409, %408 : vector<8x128xf32>
    %411 = arith.divf %409, %410 : vector<8x128xf32>
    %412 = vector.extract_strided_slice %403 {offsets = [0, 128], sizes = [8, 128], strides = [1, 1]} : vector<8x512xf32> to vector<8x128xf32>
    %413 = arith.negf %412 : vector<8x128xf32>
    %414 = math.exp %413 : vector<8x128xf32>
    %cst_206 = arith.constant 1.000000e+00 : f32
    %415 = vector.broadcast %cst_206 : f32 to vector<8x128xf32>
    %416 = arith.addf %415, %414 : vector<8x128xf32>
    %417 = arith.divf %415, %416 : vector<8x128xf32>
    %418 = vector.extract_strided_slice %403 {offsets = [0, 256], sizes = [8, 128], strides = [1, 1]} : vector<8x512xf32> to vector<8x128xf32>
    %419 = math.tanh %418 : vector<8x128xf32>
    %420 = vector.extract_strided_slice %403 {offsets = [0, 384], sizes = [8, 128], strides = [1, 1]} : vector<8x512xf32> to vector<8x128xf32>
    %421 = arith.negf %420 : vector<8x128xf32>
    %422 = math.exp %421 : vector<8x128xf32>
    %cst_207 = arith.constant 1.000000e+00 : f32
    %423 = vector.broadcast %cst_207 : f32 to vector<8x128xf32>
    %424 = arith.addf %423, %422 : vector<8x128xf32>
    %425 = arith.divf %423, %424 : vector<8x128xf32>
    %426 = arith.mulf %417, %405 : vector<8x128xf32>
    %427 = arith.mulf %411, %419 : vector<8x128xf32>
    %428 = arith.addf %426, %427 : vector<8x128xf32>
    %429 = math.tanh %428 : vector<8x128xf32>
    %430 = arith.mulf %425, %429 : vector<8x128xf32>
    %c1_208 = arith.constant 1 : index
    %c0_209 = arith.constant 0 : index
    %c0_210 = arith.constant 0 : index
    %431 = vector.load %arg9[%c1_208, %c0_209, %c0_210] : memref<2x8x128xf32, #tpu.memory_space<vmem>>, vector<1x8x128xf32>
    %432 = vector.shape_cast %431 : vector<1x8x128xf32> to vector<8x128xf32>
    %433 = vector.shape_cast %430 : vector<8x128xf32> to vector<1x8x128xf32>
    tpu.vector_store %arg9[%c1_208, %c0_209, %c0_210], %433 {strides = array<i32>} : memref<2x8x128xf32, #tpu.memory_space<vmem>>, vector<1x8x128xf32>,
    %c1_211 = arith.constant 1 : index
    %c0_212 = arith.constant 0 : index
    %c0_213 = arith.constant 0 : index
    %434 = vector.load %arg10[%c1_211, %c0_212, %c0_213] : memref<2x8x128xf32, #tpu.memory_space<vmem>>, vector<1x8x128xf32>
    %435 = vector.shape_cast %434 : vector<1x8x128xf32> to vector<8x128xf32>
    %436 = vector.shape_cast %428 : vector<8x128xf32> to vector<1x8x128xf32>
    tpu.vector_store %arg10[%c1_211, %c0_212, %c0_213], %436 {strides = array<i32>} : memref<2x8x128xf32, #tpu.memory_space<vmem>>, vector<1x8x128xf32>,
    %437 = arith.index_cast %355 : i32 to index
    %c0_214 = arith.constant 0 : index
    %438 = vector.load %arg7[%437, %c0_214] : memref<64x128xf32, #tpu.memory_space<vmem>>, vector<8x128xf32>
    tpu.vector_store %arg7[%437, %c0_214], %430 {strides = array<i32>} : memref<64x128xf32, #tpu.memory_space<vmem>>, vector<8x128xf32>,
    %c5_i32 = arith.constant 5 : i32
    %c8_i32_215 = arith.constant 8 : i32
    %439 = arith.muli %c5_i32, %c8_i32_215 : i32
    %440 = tpu.assume_multiple %439, 8 : i32
    %441 = arith.index_cast %440 : i32 to index
    %c0_216 = arith.constant 0 : index
    %442 = vector.load %arg8[%441, %c0_216] : memref<64x512xf32, #tpu.memory_space<vmem>>, vector<8x512xf32>
    %c0_217 = arith.constant 0 : index
    %c0_218 = arith.constant 0 : index
    %c0_219 = arith.constant 0 : index
    %443 = vector.load %arg9[%c0_217, %c0_218, %c0_219] : memref<2x8x128xf32, #tpu.memory_space<vmem>>, vector<1x8x128xf32>
    %444 = vector.shape_cast %443 : vector<1x8x128xf32> to vector<8x128xf32>
    %c0_220 = arith.constant 0 : index
    %c0_221 = arith.constant 0 : index
    %445 = vector.load %arg5[%c0_220, %c0_221] : memref<128x512xf32, #tpu.memory_space<vmem>>, vector<128x512xf32>
    %cst_222 = arith.constant dense<0.000000e+00> : vector<8x512xf32>
    %446 = tpu.matmul %444, %445, %cst_222 {dimension_numbers = #tpu.dot_dimension_numbers<[1], [0], [0], [1], [0, 0, 1, 1], [], []>} : vector<8x128xf32>, vector<128x512xf32>, vector<8x512xf32> -> vector<8x512xf32>
    %447 = arith.addf %442, %446 : vector<8x512xf32>
    %c0_223 = arith.constant 0 : index
    %c0_224 = arith.constant 0 : index
    %c0_225 = arith.constant 0 : index
    %448 = vector.load %arg10[%c0_223, %c0_224, %c0_225] : memref<2x8x128xf32, #tpu.memory_space<vmem>>, vector<1x8x128xf32>
    %449 = vector.shape_cast %448 : vector<1x8x128xf32> to vector<8x128xf32>
    %450 = vector.extract_strided_slice %447 {offsets = [0, 0], sizes = [8, 128], strides = [1, 1]} : vector<8x512xf32> to vector<8x128xf32>
    %451 = arith.negf %450 : vector<8x128xf32>
    %452 = math.exp %451 : vector<8x128xf32>
    %cst_226 = arith.constant 1.000000e+00 : f32
    %453 = vector.broadcast %cst_226 : f32 to vector<8x128xf32>
    %454 = arith.addf %453, %452 : vector<8x128xf32>
    %455 = arith.divf %453, %454 : vector<8x128xf32>
    %456 = vector.extract_strided_slice %447 {offsets = [0, 128], sizes = [8, 128], strides = [1, 1]} : vector<8x512xf32> to vector<8x128xf32>
    %457 = arith.negf %456 : vector<8x128xf32>
    %458 = math.exp %457 : vector<8x128xf32>
    %cst_227 = arith.constant 1.000000e+00 : f32
    %459 = vector.broadcast %cst_227 : f32 to vector<8x128xf32>
    %460 = arith.addf %459, %458 : vector<8x128xf32>
    %461 = arith.divf %459, %460 : vector<8x128xf32>
    %462 = vector.extract_strided_slice %447 {offsets = [0, 256], sizes = [8, 128], strides = [1, 1]} : vector<8x512xf32> to vector<8x128xf32>
    %463 = math.tanh %462 : vector<8x128xf32>
    %464 = vector.extract_strided_slice %447 {offsets = [0, 384], sizes = [8, 128], strides = [1, 1]} : vector<8x512xf32> to vector<8x128xf32>
    %465 = arith.negf %464 : vector<8x128xf32>
    %466 = math.exp %465 : vector<8x128xf32>
    %cst_228 = arith.constant 1.000000e+00 : f32
    %467 = vector.broadcast %cst_228 : f32 to vector<8x128xf32>
    %468 = arith.addf %467, %466 : vector<8x128xf32>
    %469 = arith.divf %467, %468 : vector<8x128xf32>
    %470 = arith.mulf %461, %449 : vector<8x128xf32>
    %471 = arith.mulf %455, %463 : vector<8x128xf32>
    %472 = arith.addf %470, %471 : vector<8x128xf32>
    %473 = math.tanh %472 : vector<8x128xf32>
    %474 = arith.mulf %469, %473 : vector<8x128xf32>
    %c0_229 = arith.constant 0 : index
    %c0_230 = arith.constant 0 : index
    %c0_231 = arith.constant 0 : index
    %475 = vector.load %arg9[%c0_229, %c0_230, %c0_231] : memref<2x8x128xf32, #tpu.memory_space<vmem>>, vector<1x8x128xf32>
    %476 = vector.shape_cast %475 : vector<1x8x128xf32> to vector<8x128xf32>
    %477 = vector.shape_cast %474 : vector<8x128xf32> to vector<1x8x128xf32>
    tpu.vector_store %arg9[%c0_229, %c0_230, %c0_231], %477 {strides = array<i32>} : memref<2x8x128xf32, #tpu.memory_space<vmem>>, vector<1x8x128xf32>,
    %c0_232 = arith.constant 0 : index
    %c0_233 = arith.constant 0 : index
    %c0_234 = arith.constant 0 : index
    %478 = vector.load %arg10[%c0_232, %c0_233, %c0_234] : memref<2x8x128xf32, #tpu.memory_space<vmem>>, vector<1x8x128xf32>
    %479 = vector.shape_cast %478 : vector<1x8x128xf32> to vector<8x128xf32>
    %480 = vector.shape_cast %472 : vector<8x128xf32> to vector<1x8x128xf32>
    tpu.vector_store %arg10[%c0_232, %c0_233, %c0_234], %480 {strides = array<i32>} : memref<2x8x128xf32, #tpu.memory_space<vmem>>, vector<1x8x128xf32>,
    %c1_235 = arith.constant 1 : index
    %c0_236 = arith.constant 0 : index
    %c0_237 = arith.constant 0 : index
    %481 = vector.load %arg9[%c1_235, %c0_236, %c0_237] : memref<2x8x128xf32, #tpu.memory_space<vmem>>, vector<1x8x128xf32>
    %482 = vector.shape_cast %481 : vector<1x8x128xf32> to vector<8x128xf32>
    %483 = tpu.concatenate %474, %482 in 1 : vector<8x128xf32>, vector<8x128xf32> -> vector<8x256xf32>
    %c0_238 = arith.constant 0 : index
    %c0_239 = arith.constant 0 : index
    %c0_240 = arith.constant 0 : index
    %484 = vector.load %arg4[%c0_238, %c0_239, %c0_240] : memref<1x256x512xf32, #tpu.memory_space<vmem>>, vector<1x256x512xf32>
    %485 = vector.shape_cast %484 : vector<1x256x512xf32> to vector<256x512xf32>
    %cst_241 = arith.constant dense<0.000000e+00> : vector<8x512xf32>
    %486 = tpu.matmul %483, %485, %cst_241 {dimension_numbers = #tpu.dot_dimension_numbers<[1], [0], [0], [1], [0, 0, 1, 1], [], []>} : vector<8x256xf32>, vector<256x512xf32>, vector<8x512xf32> -> vector<8x512xf32>
    %487 = vector.broadcast %13 : vector<1x512xf32> to vector<8x512xf32>
    %488 = arith.addf %486, %487 : vector<8x512xf32>
    %c1_242 = arith.constant 1 : index
    %c0_243 = arith.constant 0 : index
    %c0_244 = arith.constant 0 : index
    %489 = vector.load %arg10[%c1_242, %c0_243, %c0_244] : memref<2x8x128xf32, #tpu.memory_space<vmem>>, vector<1x8x128xf32>
    %490 = vector.shape_cast %489 : vector<1x8x128xf32> to vector<8x128xf32>
    %491 = vector.extract_strided_slice %488 {offsets = [0, 0], sizes = [8, 128], strides = [1, 1]} : vector<8x512xf32> to vector<8x128xf32>
    %492 = arith.negf %491 : vector<8x128xf32>
    %493 = math.exp %492 : vector<8x128xf32>
    %cst_245 = arith.constant 1.000000e+00 : f32
    %494 = vector.broadcast %cst_245 : f32 to vector<8x128xf32>
    %495 = arith.addf %494, %493 : vector<8x128xf32>
    %496 = arith.divf %494, %495 : vector<8x128xf32>
    %497 = vector.extract_strided_slice %488 {offsets = [0, 128], sizes = [8, 128], strides = [1, 1]} : vector<8x512xf32> to vector<8x128xf32>
    %498 = arith.negf %497 : vector<8x128xf32>
    %499 = math.exp %498 : vector<8x128xf32>
    %cst_246 = arith.constant 1.000000e+00 : f32
    %500 = vector.broadcast %cst_246 : f32 to vector<8x128xf32>
    %501 = arith.addf %500, %499 : vector<8x128xf32>
    %502 = arith.divf %500, %501 : vector<8x128xf32>
    %503 = vector.extract_strided_slice %488 {offsets = [0, 256], sizes = [8, 128], strides = [1, 1]} : vector<8x512xf32> to vector<8x128xf32>
    %504 = math.tanh %503 : vector<8x128xf32>
    %505 = vector.extract_strided_slice %488 {offsets = [0, 384], sizes = [8, 128], strides = [1, 1]} : vector<8x512xf32> to vector<8x128xf32>
    %506 = arith.negf %505 : vector<8x128xf32>
    %507 = math.exp %506 : vector<8x128xf32>
    %cst_247 = arith.constant 1.000000e+00 : f32
    %508 = vector.broadcast %cst_247 : f32 to vector<8x128xf32>
    %509 = arith.addf %508, %507 : vector<8x128xf32>
    %510 = arith.divf %508, %509 : vector<8x128xf32>
    %511 = arith.mulf %502, %490 : vector<8x128xf32>
    %512 = arith.mulf %496, %504 : vector<8x128xf32>
    %513 = arith.addf %511, %512 : vector<8x128xf32>
    %514 = math.tanh %513 : vector<8x128xf32>
    %515 = arith.mulf %510, %514 : vector<8x128xf32>
    %c1_248 = arith.constant 1 : index
    %c0_249 = arith.constant 0 : index
    %c0_250 = arith.constant 0 : index
    %516 = vector.load %arg9[%c1_248, %c0_249, %c0_250] : memref<2x8x128xf32, #tpu.memory_space<vmem>>, vector<1x8x128xf32>
    %517 = vector.shape_cast %516 : vector<1x8x128xf32> to vector<8x128xf32>
    %518 = vector.shape_cast %515 : vector<8x128xf32> to vector<1x8x128xf32>
    tpu.vector_store %arg9[%c1_248, %c0_249, %c0_250], %518 {strides = array<i32>} : memref<2x8x128xf32, #tpu.memory_space<vmem>>, vector<1x8x128xf32>,
    %c1_251 = arith.constant 1 : index
    %c0_252 = arith.constant 0 : index
    %c0_253 = arith.constant 0 : index
    %519 = vector.load %arg10[%c1_251, %c0_252, %c0_253] : memref<2x8x128xf32, #tpu.memory_space<vmem>>, vector<1x8x128xf32>
    %520 = vector.shape_cast %519 : vector<1x8x128xf32> to vector<8x128xf32>
    %521 = vector.shape_cast %513 : vector<8x128xf32> to vector<1x8x128xf32>
    tpu.vector_store %arg10[%c1_251, %c0_252, %c0_253], %521 {strides = array<i32>} : memref<2x8x128xf32, #tpu.memory_space<vmem>>, vector<1x8x128xf32>,
    %522 = arith.index_cast %440 : i32 to index
    %c0_254 = arith.constant 0 : index
    %523 = vector.load %arg7[%522, %c0_254] : memref<64x128xf32, #tpu.memory_space<vmem>>, vector<8x128xf32>
    tpu.vector_store %arg7[%522, %c0_254], %515 {strides = array<i32>} : memref<64x128xf32, #tpu.memory_space<vmem>>, vector<8x128xf32>,
    %c6_i32 = arith.constant 6 : i32
    %c8_i32_255 = arith.constant 8 : i32
    %524 = arith.muli %c6_i32, %c8_i32_255 : i32
    %525 = tpu.assume_multiple %524, 8 : i32
    %526 = arith.index_cast %525 : i32 to index
    %c0_256 = arith.constant 0 : index
    %527 = vector.load %arg8[%526, %c0_256] : memref<64x512xf32, #tpu.memory_space<vmem>>, vector<8x512xf32>
    %c0_257 = arith.constant 0 : index
    %c0_258 = arith.constant 0 : index
    %c0_259 = arith.constant 0 : index
    %528 = vector.load %arg9[%c0_257, %c0_258, %c0_259] : memref<2x8x128xf32, #tpu.memory_space<vmem>>, vector<1x8x128xf32>
    %529 = vector.shape_cast %528 : vector<1x8x128xf32> to vector<8x128xf32>
    %c0_260 = arith.constant 0 : index
    %c0_261 = arith.constant 0 : index
    %530 = vector.load %arg5[%c0_260, %c0_261] : memref<128x512xf32, #tpu.memory_space<vmem>>, vector<128x512xf32>
    %cst_262 = arith.constant dense<0.000000e+00> : vector<8x512xf32>
    %531 = tpu.matmul %529, %530, %cst_262 {dimension_numbers = #tpu.dot_dimension_numbers<[1], [0], [0], [1], [0, 0, 1, 1], [], []>} : vector<8x128xf32>, vector<128x512xf32>, vector<8x512xf32> -> vector<8x512xf32>
    %532 = arith.addf %527, %531 : vector<8x512xf32>
    %c0_263 = arith.constant 0 : index
    %c0_264 = arith.constant 0 : index
    %c0_265 = arith.constant 0 : index
    %533 = vector.load %arg10[%c0_263, %c0_264, %c0_265] : memref<2x8x128xf32, #tpu.memory_space<vmem>>, vector<1x8x128xf32>
    %534 = vector.shape_cast %533 : vector<1x8x128xf32> to vector<8x128xf32>
    %535 = vector.extract_strided_slice %532 {offsets = [0, 0], sizes = [8, 128], strides = [1, 1]} : vector<8x512xf32> to vector<8x128xf32>
    %536 = arith.negf %535 : vector<8x128xf32>
    %537 = math.exp %536 : vector<8x128xf32>
    %cst_266 = arith.constant 1.000000e+00 : f32
    %538 = vector.broadcast %cst_266 : f32 to vector<8x128xf32>
    %539 = arith.addf %538, %537 : vector<8x128xf32>
    %540 = arith.divf %538, %539 : vector<8x128xf32>
    %541 = vector.extract_strided_slice %532 {offsets = [0, 128], sizes = [8, 128], strides = [1, 1]} : vector<8x512xf32> to vector<8x128xf32>
    %542 = arith.negf %541 : vector<8x128xf32>
    %543 = math.exp %542 : vector<8x128xf32>
    %cst_267 = arith.constant 1.000000e+00 : f32
    %544 = vector.broadcast %cst_267 : f32 to vector<8x128xf32>
    %545 = arith.addf %544, %543 : vector<8x128xf32>
    %546 = arith.divf %544, %545 : vector<8x128xf32>
    %547 = vector.extract_strided_slice %532 {offsets = [0, 256], sizes = [8, 128], strides = [1, 1]} : vector<8x512xf32> to vector<8x128xf32>
    %548 = math.tanh %547 : vector<8x128xf32>
    %549 = vector.extract_strided_slice %532 {offsets = [0, 384], sizes = [8, 128], strides = [1, 1]} : vector<8x512xf32> to vector<8x128xf32>
    %550 = arith.negf %549 : vector<8x128xf32>
    %551 = math.exp %550 : vector<8x128xf32>
    %cst_268 = arith.constant 1.000000e+00 : f32
    %552 = vector.broadcast %cst_268 : f32 to vector<8x128xf32>
    %553 = arith.addf %552, %551 : vector<8x128xf32>
    %554 = arith.divf %552, %553 : vector<8x128xf32>
    %555 = arith.mulf %546, %534 : vector<8x128xf32>
    %556 = arith.mulf %540, %548 : vector<8x128xf32>
    %557 = arith.addf %555, %556 : vector<8x128xf32>
    %558 = math.tanh %557 : vector<8x128xf32>
    %559 = arith.mulf %554, %558 : vector<8x128xf32>
    %c0_269 = arith.constant 0 : index
    %c0_270 = arith.constant 0 : index
    %c0_271 = arith.constant 0 : index
    %560 = vector.load %arg9[%c0_269, %c0_270, %c0_271] : memref<2x8x128xf32, #tpu.memory_space<vmem>>, vector<1x8x128xf32>
    %561 = vector.shape_cast %560 : vector<1x8x128xf32> to vector<8x128xf32>
    %562 = vector.shape_cast %559 : vector<8x128xf32> to vector<1x8x128xf32>
    tpu.vector_store %arg9[%c0_269, %c0_270, %c0_271], %562 {strides = array<i32>} : memref<2x8x128xf32, #tpu.memory_space<vmem>>, vector<1x8x128xf32>,
    %c0_272 = arith.constant 0 : index
    %c0_273 = arith.constant 0 : index
    %c0_274 = arith.constant 0 : index
    %563 = vector.load %arg10[%c0_272, %c0_273, %c0_274] : memref<2x8x128xf32, #tpu.memory_space<vmem>>, vector<1x8x128xf32>
    %564 = vector.shape_cast %563 : vector<1x8x128xf32> to vector<8x128xf32>
    %565 = vector.shape_cast %557 : vector<8x128xf32> to vector<1x8x128xf32>
    tpu.vector_store %arg10[%c0_272, %c0_273, %c0_274], %565 {strides = array<i32>} : memref<2x8x128xf32, #tpu.memory_space<vmem>>, vector<1x8x128xf32>,
    %c1_275 = arith.constant 1 : index
    %c0_276 = arith.constant 0 : index
    %c0_277 = arith.constant 0 : index
    %566 = vector.load %arg9[%c1_275, %c0_276, %c0_277] : memref<2x8x128xf32, #tpu.memory_space<vmem>>, vector<1x8x128xf32>
    %567 = vector.shape_cast %566 : vector<1x8x128xf32> to vector<8x128xf32>
    %568 = tpu.concatenate %559, %567 in 1 : vector<8x128xf32>, vector<8x128xf32> -> vector<8x256xf32>
    %c0_278 = arith.constant 0 : index
    %c0_279 = arith.constant 0 : index
    %c0_280 = arith.constant 0 : index
    %569 = vector.load %arg4[%c0_278, %c0_279, %c0_280] : memref<1x256x512xf32, #tpu.memory_space<vmem>>, vector<1x256x512xf32>
    %570 = vector.shape_cast %569 : vector<1x256x512xf32> to vector<256x512xf32>
    %cst_281 = arith.constant dense<0.000000e+00> : vector<8x512xf32>
    %571 = tpu.matmul %568, %570, %cst_281 {dimension_numbers = #tpu.dot_dimension_numbers<[1], [0], [0], [1], [0, 0, 1, 1], [], []>} : vector<8x256xf32>, vector<256x512xf32>, vector<8x512xf32> -> vector<8x512xf32>
    %572 = vector.broadcast %13 : vector<1x512xf32> to vector<8x512xf32>
    %573 = arith.addf %571, %572 : vector<8x512xf32>
    %c1_282 = arith.constant 1 : index
    %c0_283 = arith.constant 0 : index
    %c0_284 = arith.constant 0 : index
    %574 = vector.load %arg10[%c1_282, %c0_283, %c0_284] : memref<2x8x128xf32, #tpu.memory_space<vmem>>, vector<1x8x128xf32>
    %575 = vector.shape_cast %574 : vector<1x8x128xf32> to vector<8x128xf32>
    %576 = vector.extract_strided_slice %573 {offsets = [0, 0], sizes = [8, 128], strides = [1, 1]} : vector<8x512xf32> to vector<8x128xf32>
    %577 = arith.negf %576 : vector<8x128xf32>
    %578 = math.exp %577 : vector<8x128xf32>
    %cst_285 = arith.constant 1.000000e+00 : f32
    %579 = vector.broadcast %cst_285 : f32 to vector<8x128xf32>
    %580 = arith.addf %579, %578 : vector<8x128xf32>
    %581 = arith.divf %579, %580 : vector<8x128xf32>
    %582 = vector.extract_strided_slice %573 {offsets = [0, 128], sizes = [8, 128], strides = [1, 1]} : vector<8x512xf32> to vector<8x128xf32>
    %583 = arith.negf %582 : vector<8x128xf32>
    %584 = math.exp %583 : vector<8x128xf32>
    %cst_286 = arith.constant 1.000000e+00 : f32
    %585 = vector.broadcast %cst_286 : f32 to vector<8x128xf32>
    %586 = arith.addf %585, %584 : vector<8x128xf32>
    %587 = arith.divf %585, %586 : vector<8x128xf32>
    %588 = vector.extract_strided_slice %573 {offsets = [0, 256], sizes = [8, 128], strides = [1, 1]} : vector<8x512xf32> to vector<8x128xf32>
    %589 = math.tanh %588 : vector<8x128xf32>
    %590 = vector.extract_strided_slice %573 {offsets = [0, 384], sizes = [8, 128], strides = [1, 1]} : vector<8x512xf32> to vector<8x128xf32>
    %591 = arith.negf %590 : vector<8x128xf32>
    %592 = math.exp %591 : vector<8x128xf32>
    %cst_287 = arith.constant 1.000000e+00 : f32
    %593 = vector.broadcast %cst_287 : f32 to vector<8x128xf32>
    %594 = arith.addf %593, %592 : vector<8x128xf32>
    %595 = arith.divf %593, %594 : vector<8x128xf32>
    %596 = arith.mulf %587, %575 : vector<8x128xf32>
    %597 = arith.mulf %581, %589 : vector<8x128xf32>
    %598 = arith.addf %596, %597 : vector<8x128xf32>
    %599 = math.tanh %598 : vector<8x128xf32>
    %600 = arith.mulf %595, %599 : vector<8x128xf32>
    %c1_288 = arith.constant 1 : index
    %c0_289 = arith.constant 0 : index
    %c0_290 = arith.constant 0 : index
    %601 = vector.load %arg9[%c1_288, %c0_289, %c0_290] : memref<2x8x128xf32, #tpu.memory_space<vmem>>, vector<1x8x128xf32>
    %602 = vector.shape_cast %601 : vector<1x8x128xf32> to vector<8x128xf32>
    %603 = vector.shape_cast %600 : vector<8x128xf32> to vector<1x8x128xf32>
    tpu.vector_store %arg9[%c1_288, %c0_289, %c0_290], %603 {strides = array<i32>} : memref<2x8x128xf32, #tpu.memory_space<vmem>>, vector<1x8x128xf32>,
    %c1_291 = arith.constant 1 : index
    %c0_292 = arith.constant 0 : index
    %c0_293 = arith.constant 0 : index
    %604 = vector.load %arg10[%c1_291, %c0_292, %c0_293] : memref<2x8x128xf32, #tpu.memory_space<vmem>>, vector<1x8x128xf32>
    %605 = vector.shape_cast %604 : vector<1x8x128xf32> to vector<8x128xf32>
    %606 = vector.shape_cast %598 : vector<8x128xf32> to vector<1x8x128xf32>
    tpu.vector_store %arg10[%c1_291, %c0_292, %c0_293], %606 {strides = array<i32>} : memref<2x8x128xf32, #tpu.memory_space<vmem>>, vector<1x8x128xf32>,
    %607 = arith.index_cast %525 : i32 to index
    %c0_294 = arith.constant 0 : index
    %608 = vector.load %arg7[%607, %c0_294] : memref<64x128xf32, #tpu.memory_space<vmem>>, vector<8x128xf32>
    tpu.vector_store %arg7[%607, %c0_294], %600 {strides = array<i32>} : memref<64x128xf32, #tpu.memory_space<vmem>>, vector<8x128xf32>,
    %c7_i32 = arith.constant 7 : i32
    %c8_i32_295 = arith.constant 8 : i32
    %609 = arith.muli %c7_i32, %c8_i32_295 : i32
    %610 = tpu.assume_multiple %609, 8 : i32
    %611 = arith.index_cast %610 : i32 to index
    %c0_296 = arith.constant 0 : index
    %612 = vector.load %arg8[%611, %c0_296] : memref<64x512xf32, #tpu.memory_space<vmem>>, vector<8x512xf32>
    %c0_297 = arith.constant 0 : index
    %c0_298 = arith.constant 0 : index
    %c0_299 = arith.constant 0 : index
    %613 = vector.load %arg9[%c0_297, %c0_298, %c0_299] : memref<2x8x128xf32, #tpu.memory_space<vmem>>, vector<1x8x128xf32>
    %614 = vector.shape_cast %613 : vector<1x8x128xf32> to vector<8x128xf32>
    %c0_300 = arith.constant 0 : index
    %c0_301 = arith.constant 0 : index
    %615 = vector.load %arg5[%c0_300, %c0_301] : memref<128x512xf32, #tpu.memory_space<vmem>>, vector<128x512xf32>
    %cst_302 = arith.constant dense<0.000000e+00> : vector<8x512xf32>
    %616 = tpu.matmul %614, %615, %cst_302 {dimension_numbers = #tpu.dot_dimension_numbers<[1], [0], [0], [1], [0, 0, 1, 1], [], []>} : vector<8x128xf32>, vector<128x512xf32>, vector<8x512xf32> -> vector<8x512xf32>
    %617 = arith.addf %612, %616 : vector<8x512xf32>
    %c0_303 = arith.constant 0 : index
    %c0_304 = arith.constant 0 : index
    %c0_305 = arith.constant 0 : index
    %618 = vector.load %arg10[%c0_303, %c0_304, %c0_305] : memref<2x8x128xf32, #tpu.memory_space<vmem>>, vector<1x8x128xf32>
    %619 = vector.shape_cast %618 : vector<1x8x128xf32> to vector<8x128xf32>
    %620 = vector.extract_strided_slice %617 {offsets = [0, 0], sizes = [8, 128], strides = [1, 1]} : vector<8x512xf32> to vector<8x128xf32>
    %621 = arith.negf %620 : vector<8x128xf32>
    %622 = math.exp %621 : vector<8x128xf32>
    %cst_306 = arith.constant 1.000000e+00 : f32
    %623 = vector.broadcast %cst_306 : f32 to vector<8x128xf32>
    %624 = arith.addf %623, %622 : vector<8x128xf32>
    %625 = arith.divf %623, %624 : vector<8x128xf32>
    %626 = vector.extract_strided_slice %617 {offsets = [0, 128], sizes = [8, 128], strides = [1, 1]} : vector<8x512xf32> to vector<8x128xf32>
    %627 = arith.negf %626 : vector<8x128xf32>
    %628 = math.exp %627 : vector<8x128xf32>
    %cst_307 = arith.constant 1.000000e+00 : f32
    %629 = vector.broadcast %cst_307 : f32 to vector<8x128xf32>
    %630 = arith.addf %629, %628 : vector<8x128xf32>
    %631 = arith.divf %629, %630 : vector<8x128xf32>
    %632 = vector.extract_strided_slice %617 {offsets = [0, 256], sizes = [8, 128], strides = [1, 1]} : vector<8x512xf32> to vector<8x128xf32>
    %633 = math.tanh %632 : vector<8x128xf32>
    %634 = vector.extract_strided_slice %617 {offsets = [0, 384], sizes = [8, 128], strides = [1, 1]} : vector<8x512xf32> to vector<8x128xf32>
    %635 = arith.negf %634 : vector<8x128xf32>
    %636 = math.exp %635 : vector<8x128xf32>
    %cst_308 = arith.constant 1.000000e+00 : f32
    %637 = vector.broadcast %cst_308 : f32 to vector<8x128xf32>
    %638 = arith.addf %637, %636 : vector<8x128xf32>
    %639 = arith.divf %637, %638 : vector<8x128xf32>
    %640 = arith.mulf %631, %619 : vector<8x128xf32>
    %641 = arith.mulf %625, %633 : vector<8x128xf32>
    %642 = arith.addf %640, %641 : vector<8x128xf32>
    %643 = math.tanh %642 : vector<8x128xf32>
    %644 = arith.mulf %639, %643 : vector<8x128xf32>
    %c0_309 = arith.constant 0 : index
    %c0_310 = arith.constant 0 : index
    %c0_311 = arith.constant 0 : index
    %645 = vector.load %arg9[%c0_309, %c0_310, %c0_311] : memref<2x8x128xf32, #tpu.memory_space<vmem>>, vector<1x8x128xf32>
    %646 = vector.shape_cast %645 : vector<1x8x128xf32> to vector<8x128xf32>
    %647 = vector.shape_cast %644 : vector<8x128xf32> to vector<1x8x128xf32>
    tpu.vector_store %arg9[%c0_309, %c0_310, %c0_311], %647 {strides = array<i32>} : memref<2x8x128xf32, #tpu.memory_space<vmem>>, vector<1x8x128xf32>,
    %c0_312 = arith.constant 0 : index
    %c0_313 = arith.constant 0 : index
    %c0_314 = arith.constant 0 : index
    %648 = vector.load %arg10[%c0_312, %c0_313, %c0_314] : memref<2x8x128xf32, #tpu.memory_space<vmem>>, vector<1x8x128xf32>
    %649 = vector.shape_cast %648 : vector<1x8x128xf32> to vector<8x128xf32>
    %650 = vector.shape_cast %642 : vector<8x128xf32> to vector<1x8x128xf32>
    tpu.vector_store %arg10[%c0_312, %c0_313, %c0_314], %650 {strides = array<i32>} : memref<2x8x128xf32, #tpu.memory_space<vmem>>, vector<1x8x128xf32>,
    %c1_315 = arith.constant 1 : index
    %c0_316 = arith.constant 0 : index
    %c0_317 = arith.constant 0 : index
    %651 = vector.load %arg9[%c1_315, %c0_316, %c0_317] : memref<2x8x128xf32, #tpu.memory_space<vmem>>, vector<1x8x128xf32>
    %652 = vector.shape_cast %651 : vector<1x8x128xf32> to vector<8x128xf32>
    %653 = tpu.concatenate %644, %652 in 1 : vector<8x128xf32>, vector<8x128xf32> -> vector<8x256xf32>
    %c0_318 = arith.constant 0 : index
    %c0_319 = arith.constant 0 : index
    %c0_320 = arith.constant 0 : index
    %654 = vector.load %arg4[%c0_318, %c0_319, %c0_320] : memref<1x256x512xf32, #tpu.memory_space<vmem>>, vector<1x256x512xf32>
    %655 = vector.shape_cast %654 : vector<1x256x512xf32> to vector<256x512xf32>
    %cst_321 = arith.constant dense<0.000000e+00> : vector<8x512xf32>
    %656 = tpu.matmul %653, %655, %cst_321 {dimension_numbers = #tpu.dot_dimension_numbers<[1], [0], [0], [1], [0, 0, 1, 1], [], []>} : vector<8x256xf32>, vector<256x512xf32>, vector<8x512xf32> -> vector<8x512xf32>
    %657 = vector.broadcast %13 : vector<1x512xf32> to vector<8x512xf32>
    %658 = arith.addf %656, %657 : vector<8x512xf32>
    %c1_322 = arith.constant 1 : index
    %c0_323 = arith.constant 0 : index
    %c0_324 = arith.constant 0 : index
    %659 = vector.load %arg10[%c1_322, %c0_323, %c0_324] : memref<2x8x128xf32, #tpu.memory_space<vmem>>, vector<1x8x128xf32>
    %660 = vector.shape_cast %659 : vector<1x8x128xf32> to vector<8x128xf32>
    %661 = vector.extract_strided_slice %658 {offsets = [0, 0], sizes = [8, 128], strides = [1, 1]} : vector<8x512xf32> to vector<8x128xf32>
    %662 = arith.negf %661 : vector<8x128xf32>
    %663 = math.exp %662 : vector<8x128xf32>
    %cst_325 = arith.constant 1.000000e+00 : f32
    %664 = vector.broadcast %cst_325 : f32 to vector<8x128xf32>
    %665 = arith.addf %664, %663 : vector<8x128xf32>
    %666 = arith.divf %664, %665 : vector<8x128xf32>
    %667 = vector.extract_strided_slice %658 {offsets = [0, 128], sizes = [8, 128], strides = [1, 1]} : vector<8x512xf32> to vector<8x128xf32>
    %668 = arith.negf %667 : vector<8x128xf32>
    %669 = math.exp %668 : vector<8x128xf32>
    %cst_326 = arith.constant 1.000000e+00 : f32
    %670 = vector.broadcast %cst_326 : f32 to vector<8x128xf32>
    %671 = arith.addf %670, %669 : vector<8x128xf32>
    %672 = arith.divf %670, %671 : vector<8x128xf32>
    %673 = vector.extract_strided_slice %658 {offsets = [0, 256], sizes = [8, 128], strides = [1, 1]} : vector<8x512xf32> to vector<8x128xf32>
    %674 = math.tanh %673 : vector<8x128xf32>
    %675 = vector.extract_strided_slice %658 {offsets = [0, 384], sizes = [8, 128], strides = [1, 1]} : vector<8x512xf32> to vector<8x128xf32>
    %676 = arith.negf %675 : vector<8x128xf32>
    %677 = math.exp %676 : vector<8x128xf32>
    %cst_327 = arith.constant 1.000000e+00 : f32
    %678 = vector.broadcast %cst_327 : f32 to vector<8x128xf32>
    %679 = arith.addf %678, %677 : vector<8x128xf32>
    %680 = arith.divf %678, %679 : vector<8x128xf32>
    %681 = arith.mulf %672, %660 : vector<8x128xf32>
    %682 = arith.mulf %666, %674 : vector<8x128xf32>
    %683 = arith.addf %681, %682 : vector<8x128xf32>
    %684 = math.tanh %683 : vector<8x128xf32>
    %685 = arith.mulf %680, %684 : vector<8x128xf32>
    %c1_328 = arith.constant 1 : index
    %c0_329 = arith.constant 0 : index
    %c0_330 = arith.constant 0 : index
    %686 = vector.load %arg9[%c1_328, %c0_329, %c0_330] : memref<2x8x128xf32, #tpu.memory_space<vmem>>, vector<1x8x128xf32>
    %687 = vector.shape_cast %686 : vector<1x8x128xf32> to vector<8x128xf32>
    %688 = vector.shape_cast %685 : vector<8x128xf32> to vector<1x8x128xf32>
    tpu.vector_store %arg9[%c1_328, %c0_329, %c0_330], %688 {strides = array<i32>} : memref<2x8x128xf32, #tpu.memory_space<vmem>>, vector<1x8x128xf32>,
    %c1_331 = arith.constant 1 : index
    %c0_332 = arith.constant 0 : index
    %c0_333 = arith.constant 0 : index
    %689 = vector.load %arg10[%c1_331, %c0_332, %c0_333] : memref<2x8x128xf32, #tpu.memory_space<vmem>>, vector<1x8x128xf32>
    %690 = vector.shape_cast %689 : vector<1x8x128xf32> to vector<8x128xf32>
    %691 = vector.shape_cast %683 : vector<8x128xf32> to vector<1x8x128xf32>
    tpu.vector_store %arg10[%c1_331, %c0_332, %c0_333], %691 {strides = array<i32>} : memref<2x8x128xf32, #tpu.memory_space<vmem>>, vector<1x8x128xf32>,
    %692 = arith.index_cast %610 : i32 to index
    %c0_334 = arith.constant 0 : index
    %693 = vector.load %arg7[%692, %c0_334] : memref<64x128xf32, #tpu.memory_space<vmem>>, vector<8x128xf32>
    tpu.vector_store %arg7[%692, %c0_334], %685 {strides = array<i32>} : memref<64x128xf32, #tpu.memory_space<vmem>>, vector<8x128xf32>,
    %c8_i32_335 = arith.constant 8 : i32
    return
  }
  func.func @transform_0(%arg0: i32) -> (i32, i32) {
    %c0_i32 = arith.constant 0 : i32
    %c0_i32_0 = arith.constant 0 : i32
    %c0_i32_1 = arith.constant 0 : i32
    return %c0_i32, %c0_i32_0 : i32, i32
  }
  func.func @transform_1(%arg0: i32) -> (i32, i32) {
    %c0_i32 = arith.constant 0 : i32
    %c0_i32_0 = arith.constant 0 : i32
    %c0_i32_1 = arith.constant 0 : i32
    return %c0_i32, %c0_i32_0 : i32, i32
  }
  func.func @transform_2(%arg0: i32) -> (i32, i32) {
    %c0_i32 = arith.constant 0 : i32
    %c0_i32_0 = arith.constant 0 : i32
    %c0_i32_1 = arith.constant 0 : i32
    return %c0_i32, %c0_i32_0 : i32, i32
  }
  func.func @transform_3(%arg0: i32) -> (i32, i32, i32) {
    %c0_i32 = arith.constant 0 : i32
    %c0_i32_0 = arith.constant 0 : i32
    %c0_i32_1 = arith.constant 0 : i32
    %c0_i32_2 = arith.constant 0 : i32
    return %c0_i32, %c0_i32_0, %c0_i32_1 : i32, i32, i32
  }
  func.func @transform_4(%arg0: i32) -> (i32, i32) {
    %c0_i32 = arith.constant 0 : i32
    %c0_i32_0 = arith.constant 0 : i32
    %c0_i32_1 = arith.constant 0 : i32
    return %c0_i32, %c0_i32_0 : i32, i32
  }
  func.func @transform_5(%arg0: i32) -> (i32, i32) {
    %c0_i32 = arith.constant 0 : i32
    %c0_i32_0 = arith.constant 0 : i32
    %c0_i32_1 = arith.constant 0 : i32
    return %c0_i32, %c0_i32_0 : i32, i32
  }
  func.func @transform_6(%arg0: i32) -> (i32, i32) {
    %c0_i32 = arith.constant 0 : i32
    %c0_i32_0 = arith.constant 0 : i32
    %c0_i32_1 = arith.constant 0 : i32
    return %c0_i32, %c0_i32_0 : i32, i32
  }
}

</mosaic_0001>

<bundles_post_ra>
// kernel: tpu_custom_call.1
= control target key start
LH: loop header
LB: loop body
LE: loop exit
PB: predicated region body
PF: predicated region fallthrough
CT: control target
= control target key end

     0   :  { %11 = vsyncpa [#allocation6], 0  ;;  %s8747_s0 = inlined_call_operand.vmem [shape: f32[64,32], index: 0, kind: input, shape index: {}]   ;;  %s8748_s1 = inlined_call_operand.hbm [shape: f32[32,512], index: 1, kind: input, shape index: {}]   ;;  %s8749_s2 = inlined_call_operand.vmem [shape: f32[1,512], index: 2, kind: input, shape index: {}]   ;;  %s8750_s3 = inlined_call_operand.hbm [shape: f32[1,256,512], index: 3, kind: input, shape index: {}]   ;;  %s8751_s4 = inlined_call_operand.hbm [shape: f32[128,512], index: 4, kind: input, shape index: {}]   ;;  %s8752_s5 = inlined_call_operand.vmem [shape: f32[1,512], index: 5, kind: input, shape index: {}]   ;;  %s8753_s6 = inlined_call_operand.hbm [shape: f32[64,128], index: 6, kind: output, shape index: {}]  }
   0x1   :  { %12 = vsyncpa [#allocation9], 0 }
   0x2   :  { %13 = vsyncpa [#allocation7], 0  ;;  %s6845_s21 = smov [#allocation8]   ;;  %s6846_s23 = smov [#allocation5]  }
   0x3   :  { %s35_s22 = sshll.u32 %s6845_s21, 4  ;;  %s21_s24 = sshll.u32 %s6846_s23, 4  ;;  %s36_s22 = int_to_ptr.vmem [resolvable:$true] %s35_s22  ;;  %s6889_s24 = int_to_ptr.vmem [resolvable:$true] %s21_s24 }
   0x4   :  { %s6751_s27 = scalar_lea.hbm %s8750_s3, 16384 }
   0x5   :  { %p6752_p0 = scmp.ne.s32.totalorder %s8750_s3, %s6751_s27  ;;  %p6755_p1 = scmp.lt.u32.totalorder %s6751_s27, %s8750_s3 }
   0x7   :  { %p6757_p2 = pnand %p6755_p1, %p6752_p0 }
   0x9   :  { %6760 = shalt.err (!%p6757_p2)
}
   0xa   :  { %s6761_s8 = scalar_lea.vmem %s36_s22, 16384  ;;  %p6766_p4 = scmp.lt.s32.totalorder %s36_s22, %s36_s22 }
   0xb   :  { %p6762_p3 = scmp.ne.s32.totalorder %s36_s22, %s6761_s8  ;;  %p6767_p5 = scmp.lt.s32.totalorder %s6761_s8, %s6761_s8 }
   0xd   :  { %p6768_p6 = por %p6767_p5, %p6766_p4 }
   0xf   :  { %p6769_p7 = pnand %p6768_p6, %p6762_p3 }
  0x11   :  { %6772 = shalt.err (!%p6769_p7)
}
  0x12   :  { %s6847_s9 = smov 512   ;;  %s6848_s10 = smov 32  }
  0x13   :  { %41 = dma.hbm_to_vmem [thread:$0]  %s8750_s3, 16384, %s36_s22, [#allocation9], %s6847_s9, %s6847_s9, %s6848_s10  }
  0x14   :  { %s6773_s15 = scalar_lea.hbm %s8748_s1, 2048 }
  0x15   :  { %p6774_p8 = scmp.ne.s32.totalorder %s8748_s1, %s6773_s15  ;;  %p6777_p9 = scmp.lt.u32.totalorder %s6773_s15, %s8748_s1 }
  0x17   :  { %p6779_p10 = pnand %p6777_p9, %p6774_p8 }
  0x19   :  { %6782 = shalt.err (!%p6779_p10)
}
  0x1a   :  { %s6783_s20 = scalar_lea.vmem %s6889_s24, 2048  ;;  %p6788_p12 = scmp.lt.s32.totalorder %s6889_s24, %s6889_s24 }
  0x1b   :  { %p6784_p11 = scmp.ne.s32.totalorder %s6889_s24, %s6783_s20  ;;  %p6789_p13 = scmp.lt.s32.totalorder %s6783_s20, %s6783_s20 }
  0x1d   :  { %p6790_p0 = por %p6789_p13, %p6788_p12 }
  0x1f   :  { %p6791_p1 = pnand %p6790_p0, %p6784_p11 }
  0x21   :  { %6794 = shalt.err (!%p6791_p1)
}
  0x22   :  { %27 = dma.hbm_to_vmem [thread:$0]  %s8748_s1, 2048, %s6889_s24, [#allocation6], %s6847_s9, %s6847_s9, %s6848_s10  }
  0x23   :  { %s6849_s22 = smov [#allocation10]   ;;  %s6795_s27 = scalar_lea.hbm %s8751_s4, 8192 }
  0x24   :  { %s47_s23 = sshll.u32 %s6849_s22, 4  ;;  %p6796_p2 = scmp.ne.s32.totalorder %s8751_s4, %s6795_s27  ;;  %s48_s23 = int_to_ptr.vmem [resolvable:$true] %s47_s23 }
  0x25   :  { %p6799_p3 = scmp.lt.u32.totalorder %s6795_s27, %s8751_s4 }
  0x27   :  { %p6801_p4 = pnand %p6799_p3, %p6796_p2 }
  0x29   :  { %6804 = shalt.err (!%p6801_p4)
}
  0x2a   :  { %s6805_s8 = scalar_lea.vmem %s48_s23, 8192  ;;  %p6810_p6 = scmp.lt.s32.totalorder %s48_s23, %s48_s23 }
  0x2b   :  { %p6806_p5 = scmp.ne.s32.totalorder %s48_s23, %s6805_s8  ;;  %p6811_p7 = scmp.lt.s32.totalorder %s6805_s8, %s6805_s8 }
  0x2d   :  { %p6812_p8 = por %p6811_p7, %p6810_p6 }
  0x2f   :  { %p6813_p9 = pnand %p6812_p8, %p6806_p5 }
  0x31   :  { %6816 = shalt.err (!%p6813_p9)
}
  0x32   :  { %53 = dma.hbm_to_vmem [thread:$0]  %s8751_s4, 8192, %s48_s23, [#allocation9], %s6847_s9, %s6847_s9, %s6848_s10  }
  0x33   :  { %6839 = dma.done.wait [#allocation6], 2048  }
  0x34   :  { %6840 = vsyncadd [#allocation6], 4294965248 }
  0x35   :  { %6841 = dma.done.wait [#allocation9], 24576  }
  0x36   :  { %6842 = vsyncadd [#allocation9], 4294942720  ;;  %v8754_v0 = vmov 0.0   ;;  %v74_v1 = vld [vmem:[#allocation5 + $0x8] sm:$0xff]  ;;  %v76_v3 = vld [vmem:[#allocation5 + $0x18] sm:$0xff]  ;;  %vm111_vm0 = vcmask 261120  }
  0x37   :  { %200 = vmatprep.mubr.f32.mxu0 %v8754_v0  ;;  %313 = vmatprep.mubr.f32.mxu1 %v8754_v0  ;;  %v78_v2 = vld [vmem:[#allocation5 + $0x28] sm:$0xff]  ;;  %v80_v5 = vld [vmem:[#allocation5 + $0x38] sm:$0xff]  ;;  %v73_v6 = vld [vmem:[#allocation5] sm:$0xff] }
  0x38   :  { %v4870_v4 = vpack.c.bf16 %v78_v2, %v74_v1  ;;  %v77_v7 = vld [vmem:[#allocation5 + $0x20] sm:$0xff]  ;;  %v4878_v8 = vpack.c.bf16 %v80_v5, %v76_v3  ;;  %v75_v10 = vld [vmem:[#allocation5 + $0x10] sm:$0xff]  ;;  %v82_v12 = vld [vmem:[#allocation5 + $0x48] sm:$0xff] }
  0x39   :  { %v4872_v9 = vpack.c.bf16 %v77_v7, %v73_v6  ;;  %v79_v11 = vld [vmem:[#allocation5 + $0x30] sm:$0xff]  ;;  %v86_v14 = vld [vmem:[#allocation5 + $0x68] sm:$0xff]  ;;  %v84_v15 = vld [vmem:[#allocation5 + $0x58] sm:$0xff] }
  0x3a   :  { %4871 = vmatprep.subr.bf16.mxu0 %v4870_v4  ;;  %v4880_v13 = vpack.c.bf16 %v79_v11, %v75_v10  ;;  %v88_v16 = vld [vmem:[#allocation5 + $0x78] sm:$0xff]  ;;  %4879 = vmatprep.subr.bf16.mxu1 %v4878_v8  ;;  %v4874_v17 = vpack.c.bf16 %v86_v14, %v82_v12  ;;  %v81_v19 = vld [vmem:[#allocation5 + $0x40] sm:$0xff]  ;;  %v83_v21 = vld [vmem:[#allocation5 + $0x50] sm:$0xff] }
  0x3b   :  { %4873 = vmatpush1.bf16.msra.mxu0 %v4872_v9  ;;  %v4882_v18 = vpack.c.bf16 %v88_v16, %v84_v15  ;;  %v85_v20 = vld [vmem:[#allocation5 + $0x60] sm:$0xff]  ;;  %v87_v23 = vld [vmem:[#allocation5 + $0x70] sm:$0xff]  ;;  %v408_v24 = vld [vmem:[#allocation10 + $0x8] sm:$0xff] }
  0x3c   :  { %4881 = vmatpush1.bf16.msra.mxu1 %v4880_v13  ;;  %v4876_v22 = vpack.c.bf16 %v85_v20, %v81_v19  ;;  %4875 = vmatprep.subr.bf16.mxu0 %v4874_v17  ;;  %v4884_v25 = vpack.c.bf16 %v87_v23, %v83_v21  ;;  %v412_v26 = vld [vmem:[#allocation10 + $0x28] sm:$0xff]  ;;  %v410_v27 = vld [vmem:[#allocation10 + $0x18] sm:$0xff]  ;;  %v407_v31 = vld [vmem:[#allocation10] sm:$0xff] }
  0x3d   :  { %4883 = vmatprep.subr.bf16.mxu1 %v4882_v18  ;;  %v414_v28 = vld [vmem:[#allocation10 + $0x38] sm:$0xff]  ;;  %v6943_v29 = vpack.c.bf16 %v412_v26, %v408_v24  ;;  %v411_v32 = vld [vmem:[#allocation10 + $0x20] sm:$0xff]  ;;  %v409_v33 = vld [vmem:[#allocation10 + $0x10] sm:$0xff] }
  0x3e   :  { %v6945_v30 = vpack.c.bf16 %v414_v28, %v410_v27  ;;  %v65_v34 = vld [vmem:[%s8747_s0] sm:$0xff]  ;;  %v6950_v35 = vpack.c.bf16 %v411_v32, %v407_v31  ;;  %v413_v36 = vld [vmem:[#allocation10 + $0x30] sm:$0xff]  ;;  %v416_v37 = vld [vmem:[#allocation10 + $0x48] sm:$0xff] }
  0x3f   :  { %4877 = vmatpush1.bf16.msra.mxu0 %v4876_v22  ;;  %v6953_v38 = vpack.c.bf16 %v413_v36, %v409_v33  ;;  %v420_v39 = vld [vmem:[#allocation10 + $0x68] sm:$0xff]  ;;  %v418_v40 = vld [vmem:[#allocation10 + $0x58] sm:$0xff]  ;;  %v415_v43 = vld [vmem:[#allocation10 + $0x40] sm:$0xff] }
  0x40   :  { %4885 = vmatpush1.bf16.msra.mxu1 %v4884_v25  ;;  %4887 = vmatprep.subr.bf16.mxu0 %v6943_v29  ;;  %v422_v41 = vld [vmem:[#allocation10 + $0x78] sm:$0xff]  ;;  %v6956_v42 = vpack.c.bf16 %v420_v39, %v416_v37  ;;  %v419_v44 = vld [vmem:[#allocation10 + $0x60] sm:$0xff]  ;;  %v417_v45 = vld [vmem:[#allocation10 + $0x50] sm:$0xff] }
  0x41   :  { %4919 = vmatprep.subr.bf16.mxu1 %v6945_v30  ;;  %v66_v46 = vld [vmem:[%s8747_s0 + $0x8] sm:$0xff]  ;;  %v6962_v47 = vpack.c.bf16 %v422_v41, %v418_v40  ;;  %v421_v48 = vld [vmem:[#allocation10 + $0x70] sm:$0xff]  ;;  %v6966_v50 = vpack.c.bf16 %v419_v44, %v415_v43  ;;  %v426_v52 = vld [vmem:[#allocation10 + $0x98] sm:$0xff] }
  0x42   :  { %4806 = vmatmul.mubr.msk.f32.vlgmr.msra.gmra.mrb[0].mxu0 %vm111_vm0, %v65_v34  ;;  %v424_v49 = vld [vmem:[#allocation10 + $0x88] sm:$0xff]  ;;  %v430_v53 = vld [vmem:[#allocation10 + $0xb8] sm:$0xff]  ;;  %v6970_v54 = vpack.c.bf16 %v421_v48, %v417_v45  ;;  %v423_v55 = vld [vmem:[#allocation10 + $0x80] sm:$0xff] }
  0x43   :  { %4814 = vmatmul.mubr.msk.f32.vlgmr.msra.gmra.mrb[0].mxu1 %vm111_vm0, %v65_v34  ;;  %4889 = vmatpush1.bf16.msra.mxu0 %v6950_v35  ;;  %v428_v51 = vld [vmem:[#allocation10 + $0xa8] sm:$0xff]  ;;  %v427_v56 = vld [vmem:[#allocation10 + $0xa0] sm:$0xff]  ;;  %v425_v58 = vld [vmem:[#allocation10 + $0x90] sm:$0xff]  ;;  %v6978_v60 = vpack.c.bf16 %v430_v53, %v426_v52 }
  0x44   :  { %4921 = vmatpush1.bf16.msra.mxu1 %v6953_v38  ;;  %206 = vmatprep.mubr.f32.mxu0 %v8754_v0  ;;  %v6974_v57 = vpack.c.bf16 %v428_v51, %v424_v49  ;;  %v429_v59 = vld [vmem:[#allocation10 + $0xb0] sm:$0xff]  ;;  %v432_v61 = vld [vmem:[#allocation10 + $0xc8] sm:$0xff]  ;;  %v6985_v1 = vpack.c.bf16 %v427_v56, %v423_v55  ;;  %v434_v2 = vld [vmem:[#allocation10 + $0xd8] sm:$0xff] }
  0x45   :  { %319 = vmatprep.mubr.f32.mxu1 %v8754_v0  ;;  %4891 = vmatprep.subr.bf16.mxu0 %v6956_v42  ;;  %v436_v62 = vld [vmem:[#allocation10 + $0xe8] sm:$0xff]  ;;  %v67_v63 = vld [vmem:[%s8747_s0 + $0x10] sm:$0xff]  ;;  %v438_v3 = vld [vmem:[#allocation10 + $0xf8] sm:$0xff]  ;;  %v6989_v4 = vpack.c.bf16 %v429_v59, %v425_v58 }
  0x46   :  { %4807 = vmatmul.mubr.msk.f32.gmra.mrb[2].mxu0 %vm111_vm0, %v66_v46  ;;  %4923 = vmatprep.subr.bf16.mxu1 %v6962_v47  ;;  %v431_v5 = vld [vmem:[#allocation10 + $0xc0] sm:$0xff]  ;;  %v6993_v7 = vpack.c.bf16 %v436_v62, %v432_v61  ;;  %v433_v8 = vld [vmem:[#allocation10 + $0xd0] sm:$0xff]  ;;  %v6997_v10 = vpack.c.bf16 %v438_v3, %v434_v2  ;;  %v440_v11 = vld [vmem:[#allocation10 + $0x108] sm:$0xff] }
  0x47   :  { %4815 = vmatmul.mubr.msk.f32.gmra.mrb[2].mxu1 %vm111_vm0, %v66_v46  ;;  %4893 = vmatpush1.bf16.msra.mxu0 %v6966_v50  ;;  %v435_v6 = vld [vmem:[#allocation10 + $0xe0] sm:$0xff]  ;;  %v437_v9 = vld [vmem:[#allocation10 + $0xf0] sm:$0xff]  ;;  %v444_v12 = vld [vmem:[#allocation10 + $0x128] sm:$0xff] }
  0x48   :  { %4925 = vmatpush1.bf16.msra.mxu1 %v6970_v54  ;;  %212 = vmatprep.mubr.f32.mxu0 %v8754_v0  ;;  %v68_v13 = vld [vmem:[%s8747_s0 + $0x18] sm:$0xff]  ;;  %v7004_v14 = vpack.c.bf16 %v435_v6, %v431_v5  ;;  %v7008_v17 = vpack.c.bf16 %v437_v9, %v433_v8  ;;  %v439_v18 = vld [vmem:[#allocation10 + $0x100] sm:$0xff]  ;;  %v7012_v20 = vpack.c.bf16 %v444_v12, %v440_v11  ;;  %v441_v21 = vld [vmem:[#allocation10 + $0x110] sm:$0xff] }
  0x49   :  { %325 = vmatprep.mubr.f32.mxu1 %v8754_v0  ;;  %4895 = vmatprep.subr.bf16.mxu0 %v6974_v57  ;;  %v442_v15 = vld [vmem:[#allocation10 + $0x118] sm:$0xff]  ;;  %v443_v19 = vld [vmem:[#allocation10 + $0x120] sm:$0xff]  ;;  %v445_v22 = vld [vmem:[#allocation10 + $0x130] sm:$0xff] }
  0x4a   :  { %4808 = vmatmul.mubr.msk.f32.gmra.mrb[4].mxu0 %vm111_vm0, %v67_v63  ;;  %4927 = vmatprep.subr.bf16.mxu1 %v6978_v60  ;;  %v446_v16 = vld [vmem:[#allocation10 + $0x138] sm:$0xff]  ;;  %v448_v24 = vld [vmem:[#allocation10 + $0x148] sm:$0xff]  ;;  %v69_v26 = vld [vmem:[%s8747_s0 + $0x20] sm:$0xff]  ;;  %v7023_v27 = vpack.c.bf16 %v443_v19, %v439_v18  ;;  %v7027_v32 = vpack.c.bf16 %v445_v22, %v441_v21 }
  0x4b   :  { %4816 = vmatmul.mubr.msk.f32.gmra.mrb[4].mxu1 %vm111_vm0, %v67_v63  ;;  %4897 = vmatpush1.bf16.msra.mxu0 %v6985_v1  ;;  %v7016_v23 = vpack.c.bf16 %v446_v16, %v442_v15  ;;  %v452_v25 = vld [vmem:[#allocation10 + $0x168] sm:$0xff]  ;;  %v450_v28 = vld [vmem:[#allocation10 + $0x158] sm:$0xff]  ;;  %v447_v33 = vld [vmem:[#allocation10 + $0x140] sm:$0xff] }
  0x4c   :  { %4929 = vmatpush1.bf16.msra.mxu1 %v6989_v4  ;;  %218 = vmatprep.mubr.f32.mxu0 %v8754_v0  ;;  %v454_v31 = vld [vmem:[#allocation10 + $0x178] sm:$0xff]  ;;  %v451_v34 = vld [vmem:[#allocation10 + $0x160] sm:$0xff]  ;;  %v7031_v36 = vpack.c.bf16 %v452_v25, %v448_v24  ;;  %v449_v37 = vld [vmem:[#allocation10 + $0x150] sm:$0xff] }
  0x4d   :  { %331 = vmatprep.mubr.f32.mxu1 %v8754_v0  ;;  %4899 = vmatprep.subr.bf16.mxu0 %v6993_v7  ;;  %v453_v39 = vld [vmem:[#allocation10 + $0x170] sm:$0xff]  ;;  %v7035_v40 = vpack.c.bf16 %v454_v31, %v450_v28  ;;  %v456_v41 = vld [vmem:[#allocation10 + $0x188] sm:$0xff]  ;;  %v7042_v45 = vpack.c.bf16 %v451_v34, %v447_v33  ;;  %v458_v46 = vld [vmem:[#allocation10 + $0x198] sm:$0xff] }
  0x4e   :  { %4809 = vmatmul.mubr.msk.f32.gmra.mrb[6].mxu0 %vm111_vm0, %v68_v13  ;;  %4931 = vmatprep.subr.bf16.mxu1 %v6997_v10  ;;  %v460_v43 = vld [vmem:[#allocation10 + $0x1a8] sm:$0xff]  ;;  %v462_v48 = vld [vmem:[#allocation10 + $0x1b8] sm:$0xff]  ;;  %v7046_v49 = vpack.c.bf16 %v453_v39, %v449_v37  ;;  %v455_v51 = vld [vmem:[#allocation10 + $0x180] sm:$0xff] }
  0x4f   :  { %4817 = vmatmul.mubr.msk.f32.gmra.mrb[6].mxu1 %vm111_vm0, %v68_v13  ;;  %4901 = vmatpush1.bf16.msra.mxu0 %v7004_v14  ;;  %v70_v44 = vld [vmem:[%s8747_s0 + $0x28] sm:$0xff]  ;;  %v459_v52 = vld [vmem:[#allocation10 + $0x1a0] sm:$0xff]  ;;  %v7050_v53 = vpack.c.bf16 %v460_v43, %v456_v41  ;;  %v457_v55 = vld [vmem:[#allocation10 + $0x190] sm:$0xff]  ;;  %v7054_v58 = vpack.c.bf16 %v462_v48, %v458_v46 }
  0x50   :  { %4933 = vmatpush1.bf16.msra.mxu1 %v7008_v17  ;;  %224 = vmatprep.mubr.f32.mxu0 %v8754_v0  ;;  %v461_v56 = vld [vmem:[#allocation10 + $0x1b0] sm:$0xff]  ;;  %v464_v59 = vld [vmem:[#allocation10 + $0x1c8] sm:$0xff]  ;;  %v7061_v63 = vpack.c.bf16 %v459_v52, %v455_v51  ;;  %v466_v2 = vld [vmem:[#allocation10 + $0x1d8] sm:$0xff] }
  0x51   :  { %337 = vmatprep.mubr.f32.mxu1 %v8754_v0  ;;  %4903 = vmatprep.subr.bf16.mxu0 %v7012_v20  ;;  %v468_v61 = vld [vmem:[#allocation10 + $0x1e8] sm:$0xff]  ;;  %v71_v62 = vld [vmem:[%s8747_s0 + $0x30] sm:$0xff]  ;;  %v470_v3 = vld [vmem:[#allocation10 + $0x1f8] sm:$0xff]  ;;  %v7065_v5 = vpack.c.bf16 %v461_v56, %v457_v55 }
  0x52   :  { %4810 = vmatmul.mubr.msk.f32.gmra.mrb[8].mxu0 %vm111_vm0, %v69_v26  ;;  %4935 = vmatprep.subr.bf16.mxu1 %v7016_v23  ;;  %v463_v6 = vld [vmem:[#allocation10 + $0x1c0] sm:$0xff]  ;;  %v7069_v9 = vpack.c.bf16 %v468_v61, %v464_v59  ;;  %v465_v11 = vld [vmem:[#allocation10 + $0x1d0] sm:$0xff]  ;;  %v7073_v13 = vpack.c.bf16 %v470_v3, %v466_v2  ;;  %v647_v15 = vld [vmem:[#allocation8 + $0x8] sm:$0xff] }
  0x53   :  { %4818 = vmatmul.mubr.msk.f32.gmra.mrb[8].mxu1 %vm111_vm0, %v69_v26  ;;  %4905 = vmatpush1.bf16.msra.mxu0 %v7023_v27  ;;  %v467_v8 = vld [vmem:[#allocation10 + $0x1e0] sm:$0xff]  ;;  %v469_v12 = vld [vmem:[#allocation10 + $0x1f0] sm:$0xff]  ;;  %v651_v16 = vld [vmem:[#allocation8 + $0x28] sm:$0xff] }
  0x54   :  { %4937 = vmatpush1.bf16.msra.mxu1 %v7027_v32  ;;  %230 = vmatprep.mubr.f32.mxu0 %v8754_v0  ;;  %v72_v18 = vld [vmem:[%s8747_s0 + $0x38] sm:$0xff]  ;;  %v7080_v19 = vpack.c.bf16 %v467_v8, %v463_v6  ;;  %v7084_v24 = vpack.c.bf16 %v469_v12, %v465_v11  ;;  %v646_v25 = vld [vmem:[#allocation8] sm:$0xff]  ;;  %v648_v28 = vld [vmem:[#allocation8 + $0x10] sm:$0xff]  ;;  %v7088_v31 = vpack.c.bf16 %v651_v16, %v647_v15 }
  0x55   :  { %343 = vmatprep.mubr.f32.mxu1 %v8754_v0  ;;  %4907 = vmatprep.subr.bf16.mxu0 %v7031_v36  ;;  %v649_v21 = vld [vmem:[#allocation8 + $0x18] sm:$0xff]  ;;  %v650_v26 = vld [vmem:[#allocation8 + $0x20] sm:$0xff]  ;;  %v652_v33 = vld [vmem:[#allocation8 + $0x30] sm:$0xff] }
  0x56   :  { %4811 = vmatmul.mubr.msk.f32.gmra.mrb[10].mxu0 %vm111_vm0, %v70_v44  ;;  %4939 = vmatprep.subr.bf16.mxu1 %v7035_v40  ;;  %v653_v22 = vld [vmem:[#allocation8 + $0x38] sm:$0xff]  ;;  %v655_v34 = vld [vmem:[#allocation8 + $0x48] sm:$0xff]  ;;  %v7100_v46 = vpack.c.bf16 %v652_v33, %v648_v28  ;;  %v654_v51 = vld [vmem:[#allocation8 + $0x40] sm:$0xff] }
  0x57   :  { %4819 = vmatmul.mubr.msk.f32.gmra.mrb[10].mxu1 %vm111_vm0, %v70_v44  ;;  %4909 = vmatpush1.bf16.msra.mxu0 %v7042_v45  ;;  %v659_v37 = vld [vmem:[#allocation8 + $0x68] sm:$0xff]  ;;  %v7092_v39 = vpack.c.bf16 %v653_v22, %v649_v21  ;;  %v657_v41 = vld [vmem:[#allocation8 + $0x58] sm:$0xff]  ;;  %v7096_v44 = vpack.c.bf16 %v650_v26, %v646_v25  ;;  %v658_v52 = vld [vmem:[#allocation8 + $0x60] sm:$0xff] }
  0x58   :  { %4941 = vmatpush1.bf16.msra.mxu1 %v7046_v49  ;;  %236 = vmatprep.mubr.f32.mxu0 %v8754_v0  ;;  %v661_v43 = vld [vmem:[#allocation8 + $0x78] sm:$0xff]  ;;  %v7102_v48 = vpack.c.bf16 %v659_v37, %v655_v34  ;;  %v656_v55 = vld [vmem:[#allocation8 + $0x50] sm:$0xff]  ;;  %v663_v61 = vld [vmem:[#allocation8 + $0x88] sm:$0xff]  ;;  %v7112_v6 = vpack.c.bf16 %v658_v52, %v654_v51 }
  0x59   :  { %349 = vmatprep.mubr.f32.mxu1 %v8754_v0  ;;  %4911 = vmatprep.subr.bf16.mxu0 %v7050_v53  ;;  %v7106_v56 = vpack.c.bf16 %v661_v43, %v657_v41  ;;  %v660_v59 = vld [vmem:[#allocation8 + $0x70] sm:$0xff]  ;;  %v665_v2 = vld [vmem:[#allocation8 + $0x98] sm:$0xff]  ;;  %v662_v12 = vld [vmem:[#allocation8 + $0x80] sm:$0xff] }
  0x5a   :  { %4812 = vmatmul.mubr.msk.f32.gmra.mrb[12].mxu0 %vm111_vm0, %v71_v62  ;;  %4943 = vmatprep.subr.bf16.mxu1 %v7054_v58  ;;  %v669_v3 = vld [vmem:[#allocation8 + $0xb8] sm:$0xff]  ;;  %v7116_v8 = vpack.c.bf16 %v660_v59, %v656_v55  ;;  %v666_v15 = vld [vmem:[#allocation8 + $0xa0] sm:$0xff]  ;;  %v664_v16 = vld [vmem:[#allocation8 + $0x90] sm:$0xff] }
  0x5b   :  { %4820 = vmatmul.mubr.msk.f32.gmra.mrb[12].mxu1 %vm111_vm0, %v71_v62  ;;  %4913 = vmatpush1.bf16.msra.mxu0 %v7061_v63  ;;  %v667_v62 = vld [vmem:[#allocation8 + $0xa8] sm:$0xff]  ;;  %v668_v21 = vld [vmem:[#allocation8 + $0xb0] sm:$0xff]  ;;  %v673_v26 = vld [vmem:[#allocation8 + $0xd8] sm:$0xff]  ;;  %v7126_v33 = vpack.c.bf16 %v666_v15, %v662_v12 }
  0x5c   :  { %4945 = vmatpush1.bf16.msra.mxu1 %v7065_v5  ;;  %242 = vmatprep.mubr.f32.mxu0 %v8754_v0  ;;  %v7118_v11 = vpack.c.bf16 %v667_v62, %v663_v61  ;;  %v671_v22 = vld [vmem:[#allocation8 + $0xc8] sm:$0xff]  ;;  %v677_v28 = vld [vmem:[#allocation8 + $0xf8] sm:$0xff]  ;;  %v7130_v34 = vpack.c.bf16 %v668_v21, %v664_v16  ;;  %v670_v41 = vld [vmem:[#allocation8 + $0xc0] sm:$0xff] }
  0x5d   :  { %355 = vmatprep.mubr.f32.mxu1 %v8754_v0  ;;  %4915 = vmatprep.subr.bf16.mxu0 %v7069_v9  ;;  %v675_v25 = vld [vmem:[#allocation8 + $0xe8] sm:$0xff]  ;;  %v674_v43 = vld [vmem:[#allocation8 + $0xe0] sm:$0xff]  ;;  %v672_v51 = vld [vmem:[#allocation8 + $0xd0] sm:$0xff]  ;;  %v7135_v52 = vpack.c.bf16 %v677_v28, %v673_v26 }
  0x5e   :  { %4813 = vmatmul.mubr.msk.f32.gmra.mrb[14].mxu0 %vm111_vm0, %v72_v18  ;;  %4947 = vmatprep.subr.bf16.mxu1 %v7073_v13  ;;  %v7132_v37 = vpack.c.bf16 %v675_v25, %v671_v22  ;;  %v676_v55 = vld [vmem:[#allocation8 + $0xf0] sm:$0xff]  ;;  %v679_v59 = vld [vmem:[#allocation8 + $0x108] sm:$0xff]  ;;  %v681_v62 = vld [vmem:[#allocation8 + $0x118] sm:$0xff] }
  0x5f   :  { %4821 = vmatmul.mubr.msk.f32.gmra.mrb[14].mxu1 %vm111_vm0, %v72_v18  ;;  %4917 = vmatpush1.bf16.msra.mxu0 %v7080_v19  ;;  %v7121_v18 = vpack.c.bf16 %v669_v3, %v665_v2  ;;  %v683_v61 = vld [vmem:[#allocation8 + $0x128] sm:$0xff]  ;;  %v685_v2 = vld [vmem:[#allocation8 + $0x138] sm:$0xff]  ;;  %v7138_v3 = vpack.c.bf16 %v674_v43, %v670_v41  ;;  %v7142_v12 = vpack.c.bf16 %v676_v55, %v672_v51  ;;  %v678_v16 = vld [vmem:[#allocation8 + $0x100] sm:$0xff] }
  0x60   :  { %4949 = vmatpush1.bf16.msra.mxu1 %v7084_v24  ;;  %535 = vmatprep.mubr.f32.mxu0 %v8754_v0  ;;  %v7144_v15 = vpack.c.bf16 %v683_v61, %v679_v59  ;;  %v682_v21 = vld [vmem:[#allocation8 + $0x120] sm:$0xff]  ;;  %v7147_v22 = vpack.c.bf16 %v685_v2, %v681_v62  ;;  %v680_v25 = vld [vmem:[#allocation8 + $0x110] sm:$0xff]  ;;  %v687_v43 = vld [vmem:[#allocation8 + $0x148] sm:$0xff] }
  0x61   :  { %606 = vmatprep.mubr.f32.mxu1 %v8754_v0  ;;  %4951 = vmatprep.subr.bf16.mxu0 %v7088_v31  ;;  %8991 = vst [vmem:[#allocation15_spill] sm:$0xff] %v7142_v12  ;;  %v684_v26 = vld [vmem:[#allocation8 + $0x130] sm:$0xff]  ;;  %v7150_v28 = vpack.c.bf16 %v682_v21, %v678_v16  ;;  %v691_v51 = vld [vmem:[#allocation8 + $0x168] sm:$0xff]  ;;  %v689_v55 = vld [vmem:[#allocation8 + $0x158] sm:$0xff] }
  0x62   :  { %536 = vmatmul.mubr.f32.vlgmr.msra.gmra.mrb[0].mxu0 %v8754_v0  ;;  %5015 = vmatprep.subr.bf16.mxu1 %v7092_v39  ;;  %8992 = vst [vmem:[#allocation16_spill] sm:$0xff] %v7144_v15  ;;  %8993 = vst [vmem:[#allocation17_spill] sm:$0xff] %v7147_v22  ;;  %v7154_v41 = vpack.c.bf16 %v684_v26, %v680_v25  ;;  %v7159_v59 = vpack.c.bf16 %v691_v51, %v687_v43  ;;  %v693_v61 = vld [vmem:[#allocation8 + $0x178] sm:$0xff]  ;;  %v686_v62 = vld [vmem:[#allocation8 + $0x140] sm:$0xff] }
  0x63   :  { %607 = vmatmul.mubr.f32.vlgmr.msra.gmra.mrb[0].mxu1 %v8754_v0  ;;  %4953 = vmatpush1.bf16.msra.mxu0 %v7096_v44  ;;  %8994 = vst [vmem:[#allocation18_spill] sm:$0xff] %v7150_v28  ;;  %v690_v2 = vld [vmem:[#allocation8 + $0x160] sm:$0xff]  ;;  %v7161_v16 = vpack.c.bf16 %v693_v61, %v689_v55  ;;  %v688_v25 = vld [vmem:[#allocation8 + $0x150] sm:$0xff]  ;;  %v699_v43 = vld [vmem:[#allocation8 + $0x1a8] sm:$0xff] }
  0x64   :  { %5017 = vmatpush1.bf16.msra.mxu1 %v7100_v46  ;;  %4955 = vmatprep.subr.bf16.mxu0 %v7102_v48  ;;  %8995 = vst [vmem:[#allocation19_spill] sm:$0xff] %v7154_v41  ;;  %8996 = vst [vmem:[#allocation20_spill] sm:$0xff] %v7159_v59  ;;  %v7163_v21 = vpack.c.bf16 %v690_v2, %v686_v62  ;;  %v692_v26 = vld [vmem:[#allocation8 + $0x170] sm:$0xff]  ;;  %v697_v51 = vld [vmem:[#allocation8 + $0x198] sm:$0xff] }
  0x65   :  { %5019 = vmatprep.subr.bf16.mxu1 %v7106_v56  ;;  %859 = vmatprep.mubr.f32.mxu0 %v8754_v0  ;;  %8997 = vst [vmem:[#allocation21_spill] sm:$0xff] %v7161_v16  ;;  %v701_v55 = vld [vmem:[#allocation8 + $0x1b8] sm:$0xff]  ;;  %v694_v61 = vld [vmem:[#allocation8 + $0x180] sm:$0xff] }
  0x66   :  { %930 = vmatprep.mubr.f32.mxu1 %v8754_v0  ;;  %8998 = vst [vmem:[#allocation22_spill] sm:$0xff] %v7163_v21  ;;  %v7166_v0 = vpack.c.bf16 %v692_v26, %v688_v25  ;;  %v698_v62 = vld [vmem:[#allocation8 + $0x1a0] sm:$0xff]  ;;  %v7173_v2 = vpack.c.bf16 %v701_v55, %v697_v51  ;;  %v696_v25 = vld [vmem:[#allocation8 + $0x190] sm:$0xff]  ;;  %v709_v51 = vld [vmem:[#allocation8 + $0x1f8] sm:$0xff] }
  0x67   :  { %4957 = vmatpush1.bf16.msra.mxu0 %v7112_v6  ;;  %v700_v26 = vld [vmem:[#allocation8 + $0x1b0] sm:$0xff]  ;;  %v702_v55 = vld [vmem:[#allocation8 + $0x1c0] sm:$0xff] }
  0x68   :  { %5021 = vmatpush1.bf16.msra.mxu1 %v7116_v8  ;;  %4959 = vmatprep.subr.bf16.mxu0 %v7118_v11  ;;  %8999 = vst [vmem:[#allocation23_spill] sm:$0xff] %v7166_v0  ;;  %9001 = vst [vmem:[#allocation25_spill] sm:$0xff] %v7173_v2 }
  0x69   :  { %5023 = vmatprep.subr.bf16.mxu1 %v7121_v18 }
  0x6b   :  { %4961 = vmatpush1.bf16.msra.mxu0 %v7126_v33 }
  0x6c   :  { %5025 = vmatpush1.bf16.msra.mxu1 %v7130_v34  ;;  %4963 = vmatprep.subr.bf16.mxu0 %v7132_v37 }
  0x6d   :  { %5027 = vmatprep.subr.bf16.mxu1 %v7135_v52 }
  0x6f   :  { %4965 = vmatpush1.bf16.msra.mxu0 %v7138_v3 }
  0x70   :  { %5029 = vmatpush1.bf16.msra.mxu1 %v7142_v12  ;;  %4967 = vmatprep.subr.bf16.mxu0 %v7144_v15  ;;  %v761_v15 = vld [vmem:[#allocation8 + $0x398] sm:$0xff] }
  0x71   :  { %5031 = vmatprep.subr.bf16.mxu1 %v7147_v22  ;;  %v7175_v22 = vpack.c.bf16 %v698_v62, %v694_v61  ;;  %v706_v61 = vld [vmem:[#allocation8 + $0x1e0] sm:$0xff]  ;;  %v765_v12 = vld [vmem:[#allocation8 + $0x3b8] sm:$0xff] }
  0x73   :  { %4969 = vmatpush1.bf16.msra.mxu0 %v7150_v28  ;;  %9002 = vst [vmem:[#allocation26_spill] sm:$0xff] %v7175_v22 }
  0x74   :  { %5033 = vmatpush1.bf16.msra.mxu1 %v7154_v41  ;;  %4971 = vmatprep.subr.bf16.mxu0 %v7159_v59  ;;  %v695_v41 = vld [vmem:[#allocation8 + $0x188] sm:$0xff]  ;;  %v7187_v59 = vpack.c.bf16 %v706_v61, %v702_v55  ;;  %v714_v55 = vld [vmem:[#allocation8 + $0x220] sm:$0xff] }
  0x75   :  { %5035 = vmatprep.subr.bf16.mxu1 %v7161_v16  ;;  %v7171_v28 = vpack.c.bf16 %v699_v43, %v695_v41  ;;  %v7178_v16 = vpack.c.bf16 %v700_v26, %v696_v25  ;;  %v707_v41 = vld [vmem:[#allocation8 + $0x1e8] sm:$0xff]  ;;  %v705_v43 = vld [vmem:[#allocation8 + $0x1d8] sm:$0xff]  ;;  %v704_v25 = vld [vmem:[#allocation8 + $0x1d0] sm:$0xff] }
  0x76   :  { %v7185_v62 = vpack.c.bf16 %v709_v51, %v705_v43  ;;  %9006 = vst [vmem:[#allocation30_spill] sm:$0xff] %v7187_v59  ;;  %v708_v26 = vld [vmem:[#allocation8 + $0x1f0] sm:$0xff]  ;;  %v717_v43 = vld [vmem:[#allocation8 + $0x238] sm:$0xff]  ;;  %v710_v51 = vld [vmem:[#allocation8 + $0x200] sm:$0xff] }
  0x77   :  { %4973 = vmatpush1.bf16.msra.mxu0 %v7163_v21  ;;  %9000 = vst [vmem:[#allocation24_spill] sm:$0xff] %v7171_v28  ;;  %9003 = vst [vmem:[#allocation27_spill] sm:$0xff] %v7178_v16 }
  0x78   :  { %5037 = vmatpush1.bf16.msra.mxu1 %v7166_v0  ;;  %4975 = vmatprep.subr.bf16.mxu0 %v7171_v28  ;;  %v703_v0 = vld [vmem:[#allocation8 + $0x1c8] sm:$0xff]  ;;  %9005 = vst [vmem:[#allocation29_spill] sm:$0xff] %v7185_v62  ;;  %v7199_v28 = vpack.c.bf16 %v714_v55, %v710_v51  ;;  %v722_v51 = vld [vmem:[#allocation8 + $0x260] sm:$0xff] }
  0x79   :  { %5039 = vmatprep.subr.bf16.mxu1 %v7173_v2  ;;  %v7183_v21 = vpack.c.bf16 %v707_v41, %v703_v0  ;;  %v7190_v2 = vpack.c.bf16 %v708_v26, %v704_v25  ;;  %v715_v0 = vld [vmem:[#allocation8 + $0x228] sm:$0xff]  ;;  %v713_v41 = vld [vmem:[#allocation8 + $0x218] sm:$0xff]  ;;  %v712_v25 = vld [vmem:[#allocation8 + $0x210] sm:$0xff] }
  0x7a   :  { %v7197_v61 = vpack.c.bf16 %v717_v43, %v713_v41  ;;  %9010 = vst [vmem:[#allocation34_spill] sm:$0xff] %v7199_v28  ;;  %v716_v26 = vld [vmem:[#allocation8 + $0x230] sm:$0xff]  ;;  %v725_v41 = vld [vmem:[#allocation8 + $0x278] sm:$0xff]  ;;  %v718_v43 = vld [vmem:[#allocation8 + $0x240] sm:$0xff] }
  0x7b   :  { %4977 = vmatpush1.bf16.msra.mxu0 %v7175_v22  ;;  %9004 = vst [vmem:[#allocation28_spill] sm:$0xff] %v7183_v21  ;;  %9007 = vst [vmem:[#allocation31_spill] sm:$0xff] %v7190_v2 }
  0x7c   :  { %5041 = vmatpush1.bf16.msra.mxu1 %v7178_v16  ;;  %4979 = vmatprep.subr.bf16.mxu0 %v7183_v21  ;;  %v711_v16 = vld [vmem:[#allocation8 + $0x208] sm:$0xff]  ;;  %9009 = vst [vmem:[#allocation33_spill] sm:$0xff] %v7197_v61  ;;  %v7211_v21 = vpack.c.bf16 %v722_v51, %v718_v43  ;;  %v730_v43 = vld [vmem:[#allocation8 + $0x2a0] sm:$0xff] }
  0x7d   :  { %5043 = vmatprep.subr.bf16.mxu1 %v7185_v62  ;;  %v7195_v22 = vpack.c.bf16 %v715_v0, %v711_v16  ;;  %v7202_v62 = vpack.c.bf16 %v716_v26, %v712_v25  ;;  %v723_v16 = vld [vmem:[#allocation8 + $0x268] sm:$0xff]  ;;  %v721_v0 = vld [vmem:[#allocation8 + $0x258] sm:$0xff]  ;;  %v720_v25 = vld [vmem:[#allocation8 + $0x250] sm:$0xff] }
  0x7e   :  { %v7209_v55 = vpack.c.bf16 %v725_v41, %v721_v0  ;;  %9014 = vst [vmem:[#allocation38_spill] sm:$0xff] %v7211_v21  ;;  %v724_v26 = vld [vmem:[#allocation8 + $0x270] sm:$0xff]  ;;  %v733_v0 = vld [vmem:[#allocation8 + $0x2b8] sm:$0xff]  ;;  %v726_v41 = vld [vmem:[#allocation8 + $0x280] sm:$0xff] }
  0x7f   :  { %4981 = vmatpush1.bf16.msra.mxu0 %v7187_v59  ;;  %9008 = vst [vmem:[#allocation32_spill] sm:$0xff] %v7195_v22  ;;  %9011 = vst [vmem:[#allocation35_spill] sm:$0xff] %v7202_v62 }
  0x80   :  { %5045 = vmatpush1.bf16.msra.mxu1 %v7190_v2  ;;  %4983 = vmatprep.subr.bf16.mxu0 %v7195_v22  ;;  %v719_v2 = vld [vmem:[#allocation8 + $0x248] sm:$0xff]  ;;  %9013 = vst [vmem:[#allocation37_spill] sm:$0xff] %v7209_v55  ;;  %v7223_v22 = vpack.c.bf16 %v730_v43, %v726_v41  ;;  %v738_v41 = vld [vmem:[#allocation8 + $0x2e0] sm:$0xff] }
  0x81   :  { %5047 = vmatprep.subr.bf16.mxu1 %v7197_v61  ;;  %v7207_v59 = vpack.c.bf16 %v723_v16, %v719_v2  ;;  %v7214_v61 = vpack.c.bf16 %v724_v26, %v720_v25  ;;  %v731_v2 = vld [vmem:[#allocation8 + $0x2a8] sm:$0xff]  ;;  %v729_v16 = vld [vmem:[#allocation8 + $0x298] sm:$0xff]  ;;  %v728_v25 = vld [vmem:[#allocation8 + $0x290] sm:$0xff] }
  0x82   :  { %v7221_v51 = vpack.c.bf16 %v733_v0, %v729_v16  ;;  %9018 = vst [vmem:[#allocation42_spill] sm:$0xff] %v7223_v22  ;;  %v732_v26 = vld [vmem:[#allocation8 + $0x2b0] sm:$0xff]  ;;  %v741_v16 = vld [vmem:[#allocation8 + $0x2f8] sm:$0xff]  ;;  %v734_v0 = vld [vmem:[#allocation8 + $0x2c0] sm:$0xff] }
  0x83   :  { %4985 = vmatpush1.bf16.msra.mxu0 %v7199_v28  ;;  %9012 = vst [vmem:[#allocation36_spill] sm:$0xff] %v7207_v59  ;;  %9015 = vst [vmem:[#allocation39_spill] sm:$0xff] %v7214_v61 }
  0x84   :  { %5049 = vmatpush1.bf16.msra.mxu1 %v7202_v62  ;;  %4987 = vmatprep.subr.bf16.mxu0 %v7207_v59  ;;  %v727_v62 = vld [vmem:[#allocation8 + $0x288] sm:$0xff]  ;;  %9017 = vst [vmem:[#allocation41_spill] sm:$0xff] %v7221_v51  ;;  %v7235_v59 = vpack.c.bf16 %v738_v41, %v734_v0  ;;  %v746_v0 = vld [vmem:[#allocation8 + $0x320] sm:$0xff] }
  0x85   :  { %5051 = vmatprep.subr.bf16.mxu1 %v7209_v55  ;;  %v7219_v28 = vpack.c.bf16 %v731_v2, %v727_v62  ;;  %v7226_v55 = vpack.c.bf16 %v732_v26, %v728_v25  ;;  %v739_v62 = vld [vmem:[#allocation8 + $0x2e8] sm:$0xff]  ;;  %v737_v2 = vld [vmem:[#allocation8 + $0x2d8] sm:$0xff]  ;;  %v736_v25 = vld [vmem:[#allocation8 + $0x2d0] sm:$0xff] }
  0x86   :  { %v7233_v43 = vpack.c.bf16 %v741_v16, %v737_v2  ;;  %9022 = vst [vmem:[#allocation46_spill] sm:$0xff] %v7235_v59  ;;  %v740_v26 = vld [vmem:[#allocation8 + $0x2f0] sm:$0xff]  ;;  %v749_v2 = vld [vmem:[#allocation8 + $0x338] sm:$0xff]  ;;  %v742_v16 = vld [vmem:[#allocation8 + $0x300] sm:$0xff] }
  0x87   :  { %4989 = vmatpush1.bf16.msra.mxu0 %v7211_v21  ;;  %9016 = vst [vmem:[#allocation40_spill] sm:$0xff] %v7219_v28  ;;  %9019 = vst [vmem:[#allocation43_spill] sm:$0xff] %v7226_v55 }
  0x88   :  { %5053 = vmatpush1.bf16.msra.mxu1 %v7214_v61  ;;  %4991 = vmatprep.subr.bf16.mxu0 %v7219_v28  ;;  %v735_v61 = vld [vmem:[#allocation8 + $0x2c8] sm:$0xff]  ;;  %9021 = vst [vmem:[#allocation45_spill] sm:$0xff] %v7233_v43  ;;  %v7247_v28 = vpack.c.bf16 %v746_v0, %v742_v16  ;;  %v754_v16 = vld [vmem:[#allocation8 + $0x360] sm:$0xff] }
  0x89   :  { %5055 = vmatprep.subr.bf16.mxu1 %v7221_v51  ;;  %v7231_v21 = vpack.c.bf16 %v739_v62, %v735_v61  ;;  %v7238_v51 = vpack.c.bf16 %v740_v26, %v736_v25  ;;  %v747_v61 = vld [vmem:[#allocation8 + $0x328] sm:$0xff]  ;;  %v745_v62 = vld [vmem:[#allocation8 + $0x318] sm:$0xff]  ;;  %v744_v25 = vld [vmem:[#allocation8 + $0x310] sm:$0xff] }
  0x8a   :  { %v7245_v41 = vpack.c.bf16 %v749_v2, %v745_v62  ;;  %9026 = vst [vmem:[#allocation50_spill] sm:$0xff] %v7247_v28  ;;  %v748_v26 = vld [vmem:[#allocation8 + $0x330] sm:$0xff]  ;;  %v757_v62 = vld [vmem:[#allocation8 + $0x378] sm:$0xff]  ;;  %v750_v2 = vld [vmem:[#allocation8 + $0x340] sm:$0xff] }
  0x8b   :  { %4993 = vmatpush1.bf16.msra.mxu0 %v7223_v22  ;;  %9020 = vst [vmem:[#allocation44_spill] sm:$0xff] %v7231_v21  ;;  %9023 = vst [vmem:[#allocation47_spill] sm:$0xff] %v7238_v51 }
  0x8c   :  { %5057 = vmatpush1.bf16.msra.mxu1 %v7226_v55  ;;  %4995 = vmatprep.subr.bf16.mxu0 %v7231_v21  ;;  %v743_v55 = vld [vmem:[#allocation8 + $0x308] sm:$0xff]  ;;  %9025 = vst [vmem:[#allocation49_spill] sm:$0xff] %v7245_v41  ;;  %v7259_v21 = vpack.c.bf16 %v754_v16, %v750_v2  ;;  %v760_v2 = vld [vmem:[#allocation8 + $0x390] sm:$0xff] }
  0x8d   :  { %5059 = vmatprep.subr.bf16.mxu1 %v7233_v43  ;;  %v7243_v22 = vpack.c.bf16 %v747_v61, %v743_v55  ;;  %v7250_v43 = vpack.c.bf16 %v748_v26, %v744_v25  ;;  %v755_v55 = vld [vmem:[#allocation8 + $0x368] sm:$0xff]  ;;  %v753_v61 = vld [vmem:[#allocation8 + $0x358] sm:$0xff]  ;;  %v752_v25 = vld [vmem:[#allocation8 + $0x350] sm:$0xff] }
  0x8e   :  { %v7257_v0 = vpack.c.bf16 %v757_v62, %v753_v61  ;;  %9030 = vst [vmem:[#allocation54_spill] sm:$0xff] %v7259_v21  ;;  %v756_v26 = vld [vmem:[#allocation8 + $0x370] sm:$0xff]  ;;  %v758_v61 = vld [vmem:[#allocation8 + $0x380] sm:$0xff] }
  0x8f   :  { %4997 = vmatpush1.bf16.msra.mxu0 %v7235_v59  ;;  %9024 = vst [vmem:[#allocation48_spill] sm:$0xff] %v7243_v22  ;;  %9027 = vst [vmem:[#allocation51_spill] sm:$0xff] %v7250_v43  ;;  %v762_v62 = vld [vmem:[#allocation8 + $0x3a0] sm:$0xff] }
  0x90   :  { %5061 = vmatpush1.bf16.msra.mxu1 %v7238_v51  ;;  %4999 = vmatprep.subr.bf16.mxu0 %v7243_v22  ;;  %v751_v51 = vld [vmem:[#allocation8 + $0x348] sm:$0xff]  ;;  %9029 = vst [vmem:[#allocation53_spill] sm:$0xff] %v7257_v0  ;;  %v7271_v16 = vpack.c.bf16 %v762_v62, %v758_v61  ;;  %v772_v61 = vld [vmem:[#allocation8 + $0x3f0] sm:$0xff] }
  0x91   :  { %5063 = vmatprep.subr.bf16.mxu1 %v7245_v41  ;;  %v7255_v59 = vpack.c.bf16 %v755_v55, %v751_v51  ;;  %v759_v22 = vld [vmem:[#allocation8 + $0x388] sm:$0xff]  ;;  %v7268_v55 = vpack.c.bf16 %v765_v12, %v761_v15  ;;  %v769_v12 = vld [vmem:[#allocation8 + $0x3d8] sm:$0xff] }
  0x92   :  { %v763_v41 = vld [vmem:[#allocation8 + $0x3a8] sm:$0xff]  ;;  %9033 = vst [vmem:[#allocation57_spill] sm:$0xff] %v7271_v16  ;;  %v773_v15 = vld [vmem:[#allocation8 + $0x3f8] sm:$0xff] }
  0x93   :  { %5001 = vmatpush1.bf16.msra.mxu0 %v7247_v28  ;;  %9028 = vst [vmem:[#allocation52_spill] sm:$0xff] %v7255_v59  ;;  %v7262_v28 = vpack.c.bf16 %v756_v26, %v752_v25  ;;  %v7266_v51 = vpack.c.bf16 %v763_v41, %v759_v22  ;;  %9032 = vst [vmem:[#allocation56_spill] sm:$0xff] %v7268_v55  ;;  %v764_v25 = vld [vmem:[#allocation8 + $0x3b0] sm:$0xff]  ;;  %v767_v26 = vld [vmem:[#allocation8 + $0x3c8] sm:$0xff] }
  0x94   :  { %5065 = vmatpush1.bf16.msra.mxu1 %v7250_v43  ;;  %5003 = vmatprep.subr.bf16.mxu0 %v7255_v59  ;;  %v771_v59 = vld [vmem:[#allocation8 + $0x3e8] sm:$0xff]  ;;  %v766_v41 = vld [vmem:[#allocation8 + $0x3c0] sm:$0xff] }
  0x95   :  { %9031 = vst [vmem:[#allocation55_spill] sm:$0xff] %v7262_v28  ;;  %5067 = vmatprep.subr.bf16.mxu1 %v7257_v0  ;;  %v7275_v0 = vpack.c.bf16 %v764_v25, %v760_v2  ;;  %v7277_v22 = vpack.c.bf16 %v771_v59, %v767_v26  ;;  %v770_v43 = vld [vmem:[#allocation8 + $0x3e0] sm:$0xff]  ;;  %v91_v59 = vlaneseq }
  0x96   :  { %v7282_v62 = vpack.c.bf16 %v770_v43, %v766_v41 }
  0x97   :  { %5005 = vmatpush1.bf16.msra.mxu0 %v7259_v21  ;;  %9034 = vst [vmem:[#allocation58_spill] sm:$0xff] %v7275_v0  ;;  %9035 = vst [vmem:[#allocation59_spill] sm:$0xff] %v7277_v22  ;;  %v7279_v21 = vpack.c.bf16 %v773_v15, %v769_v12  ;;  %v7293_v25 = vshrl.u32 %v91_v59, 7 }
  0x98   :  { %5069 = vmatpush1.bf16.msra.mxu1 %v7262_v28  ;;  %5007 = vmatprep.subr.bf16.mxu0 %v7266_v51  ;;  %v768_v28 = vld [vmem:[#allocation8 + $0x3d0] sm:$0xff]  ;;  %9037 = vst [vmem:[#allocation61_spill] sm:$0xff] %v7282_v62 }
  0x99   :  { %5071 = vmatprep.subr.bf16.mxu1 %v7268_v55  ;;  %9036 = vst [vmem:[#allocation60_spill] sm:$0xff] %v7279_v21  ;;  %v7286_v2 = vpack.c.bf16 %v772_v61, %v768_v28  ;;  %9039 = vst [vmem:[#allocation63_spill] sm:$0xff] %v7293_v25  ;;  %v8801_v43 = vsub.s32 0, %v7293_v25  ;;  %v89_v28 = vld [vmem:[%s8749_s2] sm:$0xf]  ;;  %v8802_v26 = vsub.s32 1, %v7293_v25 }
  0x9a   :  { %v8808_v15 = vsub.s32 3, %v7293_v25 }
  0x9b   :  { %5009 = vmatpush1.bf16.msra.mxu0 %v7271_v16  ;;  %9038 = vst [vmem:[#allocation62_spill] sm:$0xff] %v7286_v2  ;;  %v7302_v12 = vrot.slane %v89_v28, %v8801_v43 }
  0x9c   :  { %5073 = vmatpush1.bf16.msra.mxu1 %v7275_v0  ;;  %5011 = vmatprep.subr.bf16.mxu0 %v7277_v22  ;;  %v7313_v43 = vrot.slane %v89_v28, %v8808_v15 }
  0x9d   :  { %5075 = vmatprep.subr.bf16.mxu1 %v7279_v21  ;;  %9040 = vst [vmem:[#allocation64_spill] sm:$0xff] %v7302_v12 }
  0x9e   :  { %9042 = vst [vmem:[#allocation66_spill] sm:$0xff] %v7313_v43 }
  0x9f   :  { %5013 = vmatpush1.bf16.msra.mxu0 %v7282_v62 }
  0xa0   :  { %5077 = vmatpush1.bf16.msra.mxu1 %v7286_v2  ;;  %5079 = vmatprep.subr.bf16.mxu0 %v6943_v29  ;;  %v7306_v29 = vrot.slane %v89_v28, %v8802_v26  ;;  %v101_v26 = vsub.s32 2, %v7293_v25 }
  0xa1   :  { %5111 = vmatprep.subr.bf16.mxu1 %v6945_v30 }
  0xa2   :  { %9041 = vst [vmem:[#allocation65_spill] sm:$0xff] %v7306_v29 }
 0x135   :  { %v537_v30 = vpop.f32.mrb[0].mxu0 }
 0x136   :  { %v6422_v41 = vadd.f32 %v537_v30, %v7302_v12  ;;  %v608_v61 = vpop.f32.mrb[0].mxu1  ;;  %v539_v59 = vpop.f32.mrb[1].mxu0  ;;  %v7319_v30 = vrot.slane %v89_v28, %v101_v26 }
 0x137   :  { %v6423_v2 = vadd.f32 %v539_v59, %v7306_v29  ;;  %v610_v62 = vpop.f32.mrb[1].mxu1 }
 0x138   :  { %v4822_v21 = vmul.f32 -1.442695, %v6422_v41  ;;  %v6439_v0 = vadd.f32 %v610_v62, %v7313_v43  ;;  %v6438_v59 = vadd.f32 %v608_v61, %v7319_v30 }
 0x139   :  { %v4823_v22 = vmul.f32 -1.442695, %v6423_v2 }
 0x13a   :  { %6495 = vpow2.f32 %v4822_v21  ;;  %v4824_v12 = vmul.f32 -1.442695, %v6439_v0 }
 0x13b   :  { %6497 = vpow2.f32 %v4823_v22 }
 0x13c   :  { %6499 = vpow2.f32 %v4824_v12  ;;  %v1520_v12 = vld [vmem:[#allocation10 + $0x8] sm:$0xff] }
 0x13d   :  { %6501 = vtanh.f32 %v6438_v59  ;;  %v1522_v59 = vld [vmem:[#allocation10 + $0x18] sm:$0xff] }
 0x144   :  { %v6496_v29 = vpop.eup %6495 }
 0x145   :  { %v6498_v41 = vpop.eup %6497  ;;  %v621_v2 = vadd.f32 1.0, %v6496_v29 }
 0x146   :  { %v627_v15 = vadd.f32 1.0, %v6498_v41  ;;  %v6500_v21 = vpop.eup %6499 }
 0x147   :  { %6503 = vrcp.f32 %v621_v2  ;;  %v6502_v16 = vpop.eup %6501  ;;  %v634_v43 = vadd.f32 1.0, %v6500_v21  ;;  %v398_v21 = vld [vmem:[%s8752_s5] sm:$0xf]  ;;  %s6851_s5 = smov [#allocation11]  }
 0x148   :  { %6505 = vrcp.f32 %v627_v15  ;;  %v1524_v15 = vld [vmem:[#allocation10 + $0x28] sm:$0xff]  ;;  %s4786_s26 = sshll.u32 %s6851_s5, 4  ;;  %s4787_s26 = int_to_ptr.vmem [resolvable:$true] %s4786_s26 }
 0x149   :  { %6507 = vrcp.f32 %v634_v43  ;;  %v9091_v43 = vld [vmem:[#allocation62_spill] sm:$0xff]  ;;  %v7421_v41 = vpack.c.bf16 %v1524_v15, %v1520_v12  ;;  %s6817_s27 = scalar_lea.vmem %s4787_s26, 1024  ;;  %p6822_p11 = scmp.lt.s32.totalorder %s4787_s26, %s4787_s26 }
 0x14a   :  { %p6818_p10 = scmp.ne.s32.totalorder %s4787_s26, %s6817_s27  ;;  %p6823_p12 = scmp.lt.s32.totalorder %s6817_s27, %s6817_s27 }
 0x14c   :  { %p6824_p13 = por %p6823_p12, %p6822_p11 }
 0x14e   :  { %p6825_p0 = pnand %p6824_p13, %p6818_p10 }
 0x151   :  { %v6504_v22 = vpop.eup %6503 }
 0x152   :  { %v6506_v55 = vpop.eup %6505  ;;  %v638_v62 = vmul.f32 %v6504_v22, %v6502_v16  ;;  %v9043_v16 = vmov 0.0   ;;  %v9092_v22 = vld [vmem:[#allocation63_spill] sm:$0xff] }
 0x153   :  { %v637_v25 = vmul.f32 0.0, %v6506_v55  ;;  %v6508_v0 = vpop.eup %6507  ;;  %v9089_v55 = vld [vmem:[#allocation60_spill] sm:$0xff] }
 0x155   :  { %v7322_v28 = vadd.f32 %v638_v62, %v637_v25  ;;  %v9090_v25 = vld [vmem:[#allocation61_spill] sm:$0xff]  ;;  %v9093_v62 = vsub.s32 0, %v9092_v22 }
 0x157   :  { %6509 = vtanh.f32 %v7322_v28 }
 0x161   :  { %v6510_v61 = vpop.eup %6509 }
 0x162   :  { %v641_v29 = vmul.f32 %v6510_v61, %v6508_v0  ;;  %v7432_v0 = vrot.slane %v398_v21, %v9093_v62  ;;  %v9095_v61 = vsub.s32 1, %v9092_v22  ;;  %v1519_v62 = vld [vmem:[#allocation10] sm:$0xff] }
 0x164   :  { %860 = vmatmul.mubr.f32.vlgmr.msra.gmra.mrb[16].mxu0 %v641_v29  ;;  %931 = vmatmul.mubr.f32.vlgmr.msra.gmra.mrb[16].mxu1 %v641_v29 }
 0x165   :  { %5081 = vmatpush1.bf16.msra.mxu0 %v6950_v35  ;;  %5113 = vmatpush1.bf16.msra.mxu1 %v6953_v38  ;;  %v9044_v35 = vld [vmem:[#allocation15_spill] sm:$0xff]  ;;  %v9045_v38 = vld [vmem:[#allocation16_spill] sm:$0xff] }
 0x166   :  { %5083 = vmatprep.subr.bf16.mxu0 %v6956_v42  ;;  %5115 = vmatprep.subr.bf16.mxu1 %v6962_v47  ;;  %v9046_v42 = vld [vmem:[#allocation17_spill] sm:$0xff]  ;;  %v9047_v47 = vld [vmem:[#allocation18_spill] sm:$0xff]  ;;  %9094 = vst [vmem:[#allocation15_spill] sm:$0xff] %v7432_v0 }
 0x167   :  { %1102 = vmatprep.mubr.f32.mxu0 %v9043_v16  ;;  %1173 = vmatprep.mubr.f32.mxu1 %v9043_v16 }
 0x169   :  { %5085 = vmatpush1.bf16.msra.mxu0 %v6966_v50  ;;  %5117 = vmatpush1.bf16.msra.mxu1 %v6970_v54  ;;  %v9048_v50 = vld [vmem:[#allocation19_spill] sm:$0xff]  ;;  %v9049_v54 = vld [vmem:[#allocation20_spill] sm:$0xff] }
 0x16a   :  { %5087 = vmatprep.subr.bf16.mxu0 %v6974_v57  ;;  %5119 = vmatprep.subr.bf16.mxu1 %v6978_v60  ;;  %v9050_v57 = vld [vmem:[#allocation21_spill] sm:$0xff]  ;;  %v9051_v60 = vld [vmem:[#allocation22_spill] sm:$0xff] }
 0x16d   :  { %5089 = vmatpush1.bf16.msra.mxu0 %v6985_v1  ;;  %5121 = vmatpush1.bf16.msra.mxu1 %v6989_v4  ;;  %v9052_v1 = vld [vmem:[#allocation23_spill] sm:$0xff]  ;;  %v9053_v4 = vld [vmem:[#allocation24_spill] sm:$0xff] }
 0x16e   :  { %5091 = vmatprep.subr.bf16.mxu0 %v6993_v7  ;;  %5123 = vmatprep.subr.bf16.mxu1 %v6997_v10  ;;  %v9054_v7 = vld [vmem:[#allocation25_spill] sm:$0xff]  ;;  %v9055_v10 = vld [vmem:[#allocation26_spill] sm:$0xff] }
 0x171   :  { %5093 = vmatpush1.bf16.msra.mxu0 %v7004_v14  ;;  %5125 = vmatpush1.bf16.msra.mxu1 %v7008_v17  ;;  %v9056_v14 = vld [vmem:[#allocation27_spill] sm:$0xff]  ;;  %v9057_v17 = vld [vmem:[#allocation28_spill] sm:$0xff] }
 0x172   :  { %5095 = vmatprep.subr.bf16.mxu0 %v7012_v20  ;;  %5127 = vmatprep.subr.bf16.mxu1 %v7016_v23  ;;  %v9058_v20 = vld [vmem:[#allocation29_spill] sm:$0xff]  ;;  %v9059_v23 = vld [vmem:[#allocation30_spill] sm:$0xff] }
 0x175   :  { %5097 = vmatpush1.bf16.msra.mxu0 %v7023_v27  ;;  %5129 = vmatpush1.bf16.msra.mxu1 %v7027_v32  ;;  %v9060_v27 = vld [vmem:[#allocation31_spill] sm:$0xff]  ;;  %v9061_v32 = vld [vmem:[#allocation32_spill] sm:$0xff] }
 0x176   :  { %5099 = vmatprep.subr.bf16.mxu0 %v7031_v36  ;;  %5131 = vmatprep.subr.bf16.mxu1 %v7035_v40  ;;  %v9062_v36 = vld [vmem:[#allocation33_spill] sm:$0xff]  ;;  %v9063_v40 = vld [vmem:[#allocation34_spill] sm:$0xff] }
 0x179   :  { %5101 = vmatpush1.bf16.msra.mxu0 %v7042_v45  ;;  %5133 = vmatpush1.bf16.msra.mxu1 %v7046_v49  ;;  %v9064_v45 = vld [vmem:[#allocation35_spill] sm:$0xff]  ;;  %v9065_v49 = vld [vmem:[#allocation36_spill] sm:$0xff] }
 0x17a   :  { %5103 = vmatprep.subr.bf16.mxu0 %v7050_v53  ;;  %5135 = vmatprep.subr.bf16.mxu1 %v7054_v58  ;;  %v9066_v53 = vld [vmem:[#allocation37_spill] sm:$0xff]  ;;  %v9067_v58 = vld [vmem:[#allocation38_spill] sm:$0xff] }
 0x17d   :  { %5105 = vmatpush1.bf16.msra.mxu0 %v7061_v63  ;;  %5137 = vmatpush1.bf16.msra.mxu1 %v7065_v5  ;;  %v9068_v63 = vld [vmem:[#allocation39_spill] sm:$0xff]  ;;  %v9069_v5 = vld [vmem:[#allocation40_spill] sm:$0xff] }
 0x17e   :  { %5107 = vmatprep.subr.bf16.mxu0 %v7069_v9  ;;  %5139 = vmatprep.subr.bf16.mxu1 %v7073_v13  ;;  %v9070_v9 = vld [vmem:[#allocation41_spill] sm:$0xff]  ;;  %v9071_v13 = vld [vmem:[#allocation42_spill] sm:$0xff] }
 0x181   :  { %5109 = vmatpush1.bf16.msra.mxu0 %v7080_v19  ;;  %5141 = vmatpush1.bf16.msra.mxu1 %v7084_v24  ;;  %v9072_v19 = vld [vmem:[#allocation43_spill] sm:$0xff]  ;;  %v9073_v24 = vld [vmem:[#allocation44_spill] sm:$0xff] }
 0x182   :  { %5143 = vmatprep.subr.bf16.mxu0 %v7088_v31  ;;  %5207 = vmatprep.subr.bf16.mxu1 %v7092_v39  ;;  %v9074_v31 = vld [vmem:[#allocation45_spill] sm:$0xff]  ;;  %v9075_v39 = vld [vmem:[#allocation46_spill] sm:$0xff] }
 0x184   :  { %1103 = vmatmul.mubr.f32.vlgmr.msra.gmra.mrb[2].mxu0 %v641_v29  ;;  %1174 = vmatmul.mubr.f32.vlgmr.msra.gmra.mrb[2].mxu1 %v641_v29  ;;  %v7436_v29 = vrot.slane %v398_v21, %v9095_v61  ;;  %v1523_v61 = vld [vmem:[#allocation10 + $0x20] sm:$0xff] }
 0x185   :  { %5145 = vmatpush1.bf16.msra.mxu0 %v7096_v44  ;;  %5209 = vmatpush1.bf16.msra.mxu1 %v7100_v46  ;;  %v9076_v44 = vld [vmem:[#allocation47_spill] sm:$0xff]  ;;  %v9077_v46 = vld [vmem:[#allocation48_spill] sm:$0xff] }
 0x186   :  { %5147 = vmatprep.subr.bf16.mxu0 %v7102_v48  ;;  %5211 = vmatprep.subr.bf16.mxu1 %v7106_v56  ;;  %v9078_v48 = vld [vmem:[#allocation49_spill] sm:$0xff]  ;;  %v9079_v56 = vld [vmem:[#allocation50_spill] sm:$0xff] }
 0x189   :  { %5149 = vmatpush1.bf16.msra.mxu0 %v7112_v6  ;;  %5213 = vmatpush1.bf16.msra.mxu1 %v7116_v8  ;;  %v9080_v6 = vld [vmem:[#allocation51_spill] sm:$0xff]  ;;  %v9081_v8 = vld [vmem:[#allocation52_spill] sm:$0xff] }
 0x18a   :  { %5151 = vmatprep.subr.bf16.mxu0 %v7118_v11  ;;  %5215 = vmatprep.subr.bf16.mxu1 %v7121_v18  ;;  %v9082_v11 = vld [vmem:[#allocation53_spill] sm:$0xff]  ;;  %v9083_v18 = vld [vmem:[#allocation54_spill] sm:$0xff] }
 0x18d   :  { %5153 = vmatpush1.bf16.msra.mxu0 %v7126_v33  ;;  %5217 = vmatpush1.bf16.msra.mxu1 %v7130_v34  ;;  %v9084_v33 = vld [vmem:[#allocation55_spill] sm:$0xff]  ;;  %v9085_v34 = vld [vmem:[#allocation56_spill] sm:$0xff] }
 0x18e   :  { %5155 = vmatprep.subr.bf16.mxu0 %v7132_v37  ;;  %5219 = vmatprep.subr.bf16.mxu1 %v7135_v52  ;;  %v9086_v37 = vld [vmem:[#allocation57_spill] sm:$0xff]  ;;  %v9087_v52 = vld [vmem:[#allocation58_spill] sm:$0xff] }
 0x191   :  { %5157 = vmatpush1.bf16.msra.mxu0 %v7138_v3  ;;  %5221 = vmatpush1.bf16.msra.mxu1 %v9044_v35  ;;  %v9088_v3 = vld [vmem:[#allocation59_spill] sm:$0xff] }
 0x192   :  { %5159 = vmatprep.subr.bf16.mxu0 %v9045_v38  ;;  %5223 = vmatprep.subr.bf16.mxu1 %v9046_v42 }
 0x195   :  { %5161 = vmatpush1.bf16.msra.mxu0 %v9047_v47  ;;  %5225 = vmatpush1.bf16.msra.mxu1 %v9048_v50 }
 0x196   :  { %5163 = vmatprep.subr.bf16.mxu0 %v9049_v54  ;;  %5227 = vmatprep.subr.bf16.mxu1 %v9050_v57 }
 0x199   :  { %5165 = vmatpush1.bf16.msra.mxu0 %v9051_v60  ;;  %5229 = vmatpush1.bf16.msra.mxu1 %v9052_v1  ;;  %v9096_v1 = vsub.s32 3, %v9092_v22 }
 0x19a   :  { %5167 = vmatprep.subr.bf16.mxu0 %v9053_v4  ;;  %5231 = vmatprep.subr.bf16.mxu1 %v9054_v7 }
 0x19b   :  { %v7442_v4 = vrot.slane %v398_v21, %v9096_v1  ;;  %v7461_v1 = vpack.c.bf16 %v1523_v61, %v1519_v62 }
 0x19d   :  { %5169 = vmatpush1.bf16.msra.mxu0 %v9055_v10  ;;  %5233 = vmatpush1.bf16.msra.mxu1 %v9056_v14  ;;  %9097 = vst [vmem:[#allocation16_spill] sm:$0xff] %v7442_v4  ;;  %v7447_v10 = vrot.slane %v398_v21, %v101_v26 }
 0x19e   :  { %5171 = vmatprep.subr.bf16.mxu0 %v9057_v17  ;;  %5235 = vmatprep.subr.bf16.mxu1 %v9058_v20 }
 0x1a1   :  { %5173 = vmatpush1.bf16.msra.mxu0 %v9059_v23  ;;  %5237 = vmatpush1.bf16.msra.mxu1 %v9060_v27 }
 0x1a2   :  { %5175 = vmatprep.subr.bf16.mxu0 %v9061_v32  ;;  %5239 = vmatprep.subr.bf16.mxu1 %v9062_v36 }
 0x1a5   :  { %5177 = vmatpush1.bf16.msra.mxu0 %v9063_v40  ;;  %5241 = vmatpush1.bf16.msra.mxu1 %v9064_v45 }
 0x1a6   :  { %5179 = vmatprep.subr.bf16.mxu0 %v9065_v49  ;;  %5243 = vmatprep.subr.bf16.mxu1 %v9066_v53 }
 0x1a9   :  { %5181 = vmatpush1.bf16.msra.mxu0 %v9067_v58  ;;  %5245 = vmatpush1.bf16.msra.mxu1 %v9068_v63 }
 0x1aa   :  { %5183 = vmatprep.subr.bf16.mxu0 %v9069_v5  ;;  %5247 = vmatprep.subr.bf16.mxu1 %v9070_v9 }
 0x1ad   :  { %5185 = vmatpush1.bf16.msra.mxu0 %v9071_v13  ;;  %5249 = vmatpush1.bf16.msra.mxu1 %v9072_v19  ;;  %v9098_v13 = vld [vmem:[#allocation64_spill] sm:$0xff] }
 0x1ae   :  { %5187 = vmatprep.subr.bf16.mxu0 %v9073_v24  ;;  %5251 = vmatprep.subr.bf16.mxu1 %v9074_v31 }
 0x1b1   :  { %5189 = vmatpush1.bf16.msra.mxu0 %v9075_v39  ;;  %5253 = vmatpush1.bf16.msra.mxu1 %v9076_v44  ;;  %v9099_v39 = vld [vmem:[#allocation65_spill] sm:$0xff] }
 0x1b2   :  { %5191 = vmatprep.subr.bf16.mxu0 %v9077_v46  ;;  %5255 = vmatprep.subr.bf16.mxu1 %v9078_v48 }
 0x1b5   :  { %5193 = vmatpush1.bf16.msra.mxu0 %v9079_v56  ;;  %5257 = vmatpush1.bf16.msra.mxu1 %v9080_v6  ;;  %v9100_v56 = vld [vmem:[#allocation66_spill] sm:$0xff] }
 0x1b6   :  { %5195 = vmatprep.subr.bf16.mxu0 %v9081_v8  ;;  %5259 = vmatprep.subr.bf16.mxu1 %v9082_v11 }
 0x1b9   :  { %5197 = vmatpush1.bf16.msra.mxu0 %v9083_v18  ;;  %5261 = vmatpush1.bf16.msra.mxu1 %v9084_v33 }
 0x1ba   :  { %5199 = vmatprep.subr.bf16.mxu0 %v7266_v51  ;;  %5263 = vmatprep.subr.bf16.mxu1 %v9085_v34  ;;  %v1526_v51 = vld [vmem:[#allocation10 + $0x38] sm:$0xff] }
 0x1bb   :  { %v7423_v2 = vpack.c.bf16 %v1526_v51, %v1522_v59 }
 0x1bd   :  { %5201 = vmatpush1.bf16.msra.mxu0 %v9086_v37  ;;  %5265 = vmatpush1.bf16.msra.mxu1 %v9087_v52 }
 0x1be   :  { %5203 = vmatprep.subr.bf16.mxu0 %v9088_v3  ;;  %5267 = vmatprep.subr.bf16.mxu1 %v9089_v55 }
 0x1c1   :  { %5205 = vmatpush1.bf16.msra.mxu0 %v9090_v25  ;;  %5269 = vmatpush1.bf16.msra.mxu1 %v9091_v43 }
 0x1c2   :  { %5271 = vmatprep.subr.bf16.mxu0 %v7421_v41  ;;  %5303 = vmatprep.subr.bf16.mxu1 %v7423_v2 }
 0x237   :  { %v861_v35 = vpop.f32.mrb[16].mxu0  ;;  %v932_v38 = vpop.f32.mrb[16].mxu1 }
 0x238   :  { %v862_v42 = vadd.f32 %v861_v35, %v7432_v0  ;;  %v863_v47 = vpop.f32.mrb[17].mxu0  ;;  %v934_v50 = vpop.f32.mrb[17].mxu1  ;;  %v933_v17 = vadd.f32 %v932_v38, %v7447_v10  ;;  %v1521_v35 = vld [vmem:[#allocation10 + $0x10] sm:$0xff] }
 0x239   :  { %v864_v54 = vadd.f32 %v863_v47, %v7436_v29  ;;  %v935_v7 = vadd.f32 %v934_v50, %v7442_v4  ;;  %v1525_v38 = vld [vmem:[#allocation10 + $0x30] sm:$0xff]  ;;  %v1532_v47 = vld [vmem:[#allocation10 + $0x68] sm:$0xff]  ;;  %v1530_v50 = vld [vmem:[#allocation10 + $0x58] sm:$0xff] }
 0x23a   :  { %v4825_v57 = vmul.f32 -1.442695, %v862_v42  ;;  %v1528_v42 = vld [vmem:[#allocation10 + $0x48] sm:$0xff] }
 0x23b   :  { %v4826_v60 = vmul.f32 -1.442695, %v864_v54  ;;  %v4827_v14 = vmul.f32 -1.442695, %v935_v7  ;;  %v1534_v54 = vld [vmem:[#allocation10 + $0x78] sm:$0xff]  ;;  %v7463_v7 = vpack.c.bf16 %v1525_v38, %v1521_v35  ;;  %v1553_v35 = vld [vmem:[#allocation10 + $0x110] sm:$0xff] }
 0x23c   :  { %6511 = vpow2.f32 %v4825_v57  ;;  %v1557_v38 = vld [vmem:[#allocation10 + $0x130] sm:$0xff] }
 0x23d   :  { %6513 = vpow2.f32 %v4826_v60 }
 0x23e   :  { %6515 = vpow2.f32 %v4827_v14  ;;  %v1531_v14 = vld [vmem:[#allocation10 + $0x60] sm:$0xff] }
 0x23f   :  { %6517 = vtanh.f32 %v933_v17 }
 0x246   :  { %v6512_v20 = vpop.eup %6511 }
 0x247   :  { %v6514_v23 = vpop.eup %6513  ;;  %v942_v27 = vadd.f32 1.0, %v6512_v20  ;;  %v7467_v20 = vpack.c.bf16 %v1532_v47, %v1528_v42  ;;  %v1560_v42 = vld [vmem:[#allocation10 + $0x148] sm:$0xff] }
 0x248   :  { %v948_v32 = vadd.f32 1.0, %v6514_v23  ;;  %v6516_v36 = vpop.eup %6515  ;;  %v7469_v23 = vpack.c.bf16 %v1534_v54, %v1530_v50  ;;  %v1564_v47 = vld [vmem:[#allocation10 + $0x168] sm:$0xff]  ;;  %v1562_v50 = vld [vmem:[#allocation10 + $0x158] sm:$0xff] }
 0x249   :  { %6519 = vrcp.f32 %v942_v27  ;;  %v6518_v40 = vpop.eup %6517  ;;  %v955_v58 = vadd.f32 1.0, %v6516_v36  ;;  %v1529_v27 = vld [vmem:[#allocation10 + $0x50] sm:$0xff]  ;;  %v1536_v36 = vld [vmem:[#allocation10 + $0x88] sm:$0xff]  ;;  %v1566_v54 = vld [vmem:[#allocation10 + $0x178] sm:$0xff] }
 0x24a   :  { %6521 = vrcp.f32 %v948_v32  ;;  %v1533_v32 = vld [vmem:[#allocation10 + $0x70] sm:$0xff] }
 0x24b   :  { %6523 = vrcp.f32 %v955_v58  ;;  %v7477_v58 = vpack.c.bf16 %v1533_v32, %v1529_v27  ;;  %v7519_v27 = vpack.c.bf16 %v1564_v47, %v1560_v42  ;;  %v7521_v32 = vpack.c.bf16 %v1566_v54, %v1562_v50  ;;  %v1577_v42 = vld [vmem:[#allocation10 + $0x1d0] sm:$0xff] }
 0x24c   :  { %v1581_v47 = vld [vmem:[#allocation10 + $0x1f0] sm:$0xff] }
 0x24d   :  { %v7551_v54 = vpack.c.bf16 %v1581_v47, %v1577_v42 }
 0x253   :  { %v6520_v45 = vpop.eup %6519 }
 0x254   :  { %v6522_v49 = vpop.eup %6521  ;;  %v959_v53 = vmul.f32 %v6520_v45, %v6518_v40  ;;  %v1540_v40 = vld [vmem:[#allocation10 + $0xa8] sm:$0xff]  ;;  %v1538_v45 = vld [vmem:[#allocation10 + $0x98] sm:$0xff] }
 0x255   :  { %v958_v63 = vmul.f32 0.0, %v6522_v49  ;;  %v6524_v8 = vpop.eup %6523  ;;  %v1542_v49 = vld [vmem:[#allocation10 + $0xb8] sm:$0xff] }
 0x257   :  { %v7450_v26 = vadd.f32 %v959_v53, %v958_v63  ;;  %v1104_v5 = vpop.f32.mrb[2].mxu0  ;;  %v1175_v9 = vpop.f32.mrb[2].mxu1  ;;  %v1535_v63 = vld [vmem:[#allocation10 + $0x80] sm:$0xff] }
 0x258   :  { %v6424_v19 = vadd.f32 %v1104_v5, %v9098_v13  ;;  %v1106_v24 = vpop.f32.mrb[3].mxu0  ;;  %v1177_v31 = vpop.f32.mrb[3].mxu1  ;;  %v6440_v33 = vadd.f32 %v1175_v9, %v7319_v30  ;;  %v1539_v5 = vld [vmem:[#allocation10 + $0xa0] sm:$0xff]  ;;  %v7481_v9 = vpack.c.bf16 %v1540_v40, %v1536_v36  ;;  %v1561_v36 = vld [vmem:[#allocation10 + $0x150] sm:$0xff] }
 0x259   :  { %6525 = vtanh.f32 %v7450_v26  ;;  %v6425_v44 = vadd.f32 %v1106_v24, %v9099_v39  ;;  %v6441_v6 = vadd.f32 %v1177_v31, %v9100_v56  ;;  %v1537_v24 = vld [vmem:[#allocation10 + $0x90] sm:$0xff] }
 0x25a   :  { %v4828_v46 = vmul.f32 -1.442695, %v6424_v19  ;;  %v7483_v19 = vpack.c.bf16 %v1542_v49, %v1538_v45  ;;  %v1541_v31 = vld [vmem:[#allocation10 + $0xb0] sm:$0xff]  ;;  %v1568_v45 = vld [vmem:[#allocation10 + $0x188] sm:$0xff] }
 0x25b   :  { %v4829_v48 = vmul.f32 -1.442695, %v6425_v44  ;;  %v4830_v18 = vmul.f32 -1.442695, %v6441_v6  ;;  %v1544_v44 = vld [vmem:[#allocation10 + $0xc8] sm:$0xff]  ;;  %v1550_v6 = vld [vmem:[#allocation10 + $0xf8] sm:$0xff] }
 0x25c   :  { %6527 = vpow2.f32 %v4828_v46  ;;  %v1548_v46 = vld [vmem:[#allocation10 + $0xe8] sm:$0xff]  ;;  %v1565_v40 = vld [vmem:[#allocation10 + $0x170] sm:$0xff] }
 0x25d   :  { %6529 = vpow2.f32 %v4829_v48  ;;  %v1546_v48 = vld [vmem:[#allocation10 + $0xd8] sm:$0xff]  ;;  %v1572_v49 = vld [vmem:[#allocation10 + $0x1a8] sm:$0xff] }
 0x25e   :  { %6531 = vpow2.f32 %v4830_v18  ;;  %v1543_v18 = vld [vmem:[#allocation10 + $0xc0] sm:$0xff] }
 0x25f   :  { %6533 = vtanh.f32 %v6440_v33  ;;  %v1547_v33 = vld [vmem:[#allocation10 + $0xe0] sm:$0xff] }
 0x263   :  { %v6526_v11 = vpop.eup %6525 }
 0x264   :  { %v962_v34 = vmul.f32 %v6526_v11, %v6524_v8  ;;  %v7489_v8 = vpack.c.bf16 %v1539_v5, %v1535_v63  ;;  %v7491_v11 = vpack.c.bf16 %v1541_v31, %v1537_v24  ;;  %v1570_v63 = vld [vmem:[#allocation10 + $0x198] sm:$0xff]  ;;  %v7527_v31 = vpack.c.bf16 %v1565_v40, %v1561_v36 }
 0x265   :  { %v1574_v5 = vld [vmem:[#allocation10 + $0x1b8] sm:$0xff] }
 0x266   :  { %v6528_v37 = vpop.eup %6527  ;;  %965 = vst [vmem:[#allocation11] sm:$0xff] %v962_v34  ;;  %1404 = vmatprep.mubr.f32.mxu0 %v962_v34  ;;  %1475 = vmatprep.mubr.f32.mxu1 %v962_v34  ;;  %v7495_v34 = vpack.c.bf16 %v1548_v46, %v1544_v44  ;;  %v1567_v44 = vld [vmem:[#allocation10 + $0x180] sm:$0xff]  ;;  %v1760_v36 = vld [vmem:[#allocation8 + $0x18] sm:$0xff] }
 0x267   :  { %v6530_v52 = vpop.eup %6529  ;;  %v1188_v3 = vadd.f32 1.0, %v6528_v37  ;;  %v7497_v37 = vpack.c.bf16 %v1550_v6, %v1546_v48  ;;  %v1571_v46 = vld [vmem:[#allocation10 + $0x1a0] sm:$0xff]  ;;  %v7531_v48 = vpack.c.bf16 %v1572_v49, %v1568_v45  ;;  %v7533_v6 = vpack.c.bf16 %v1574_v5, %v1570_v63  ;;  %v1764_v45 = vld [vmem:[#allocation8 + $0x38] sm:$0xff] }
 0x268   :  { %v1194_v55 = vadd.f32 1.0, %v6530_v52  ;;  %v6532_v25 = vpop.eup %6531  ;;  %v1545_v52 = vld [vmem:[#allocation10 + $0xd0] sm:$0xff]  ;;  %v1757_v49 = vld [vmem:[#allocation8] sm:$0xff]  ;;  %v7561_v5 = vpack.c.bf16 %v1764_v45, %v1760_v36  ;;  %v1774_v45 = vld [vmem:[#allocation8 + $0x88] sm:$0xff] }
 0x269   :  { %6535 = vrcp.f32 %v1188_v3  ;;  %v6534_v43 = vpop.eup %6533  ;;  %v1201_v51 = vadd.f32 1.0, %v6532_v25  ;;  %v1549_v3 = vld [vmem:[#allocation10 + $0xf0] sm:$0xff]  ;;  %v1556_v25 = vld [vmem:[#allocation10 + $0x128] sm:$0xff]  ;;  %v1761_v63 = vld [vmem:[#allocation8 + $0x20] sm:$0xff] }
 0x26a   :  { %6537 = vrcp.f32 %v1194_v55  ;;  %v1552_v55 = vld [vmem:[#allocation10 + $0x108] sm:$0xff] }
 0x26b   :  { %6539 = vrcp.f32 %v1201_v51  ;;  %v1551_v51 = vld [vmem:[#allocation10 + $0x100] sm:$0xff]  ;;  %v7507_v62 = vpack.c.bf16 %v1556_v25, %v1552_v55  ;;  %v1578_v55 = vld [vmem:[#allocation10 + $0x1d8] sm:$0xff] }
 0x26c   :  { %v1582_v25 = vld [vmem:[#allocation10 + $0x1f8] sm:$0xff] }
 0x273   :  { %v6536_v12 = vpop.eup %6535 }
 0x274   :  { %v6538_v15 = vpop.eup %6537  ;;  %v1205_v59 = vmul.f32 %v6536_v12, %v6534_v43  ;;  %v1554_v43 = vld [vmem:[#allocation10 + $0x118] sm:$0xff] }
 0x275   :  { %v1204_v21 = vmul.f32 %v6538_v15, %v7322_v28  ;;  %v6540_v57 = vpop.eup %6539  ;;  %v1527_v28 = vld [vmem:[#allocation10 + $0x40] sm:$0xff]  ;;  %v1558_v12 = vld [vmem:[#allocation10 + $0x138] sm:$0xff]  ;;  %v7501_v15 = vpack.c.bf16 %v1547_v33, %v1543_v18  ;;  %v1569_v18 = vld [vmem:[#allocation10 + $0x190] sm:$0xff] }
 0x276   :  { %v7475_v53 = vpack.c.bf16 %v1531_v14, %v1527_v28  ;;  %v7509_v61 = vpack.c.bf16 %v1558_v12, %v1554_v43  ;;  %v1559_v28 = vld [vmem:[#allocation10 + $0x140] sm:$0xff]  ;;  %v1573_v33 = vld [vmem:[#allocation10 + $0x1b0] sm:$0xff]  ;;  %v7537_v43 = vpack.c.bf16 %v1571_v46, %v1567_v44  ;;  %v7563_v44 = vpack.c.bf16 %v1761_v63, %v1757_v49  ;;  %v1778_v49 = vld [vmem:[#allocation8 + $0xa8] sm:$0xff] }
 0x277   :  { %v7458_v22 = vadd.f32 %v1205_v59, %v1204_v21  ;;  %v7503_v59 = vpack.c.bf16 %v1549_v3, %v1545_v52  ;;  %v1555_v21 = vld [vmem:[#allocation10 + $0x120] sm:$0xff]  ;;  %v1576_v52 = vld [vmem:[#allocation10 + $0x1c8] sm:$0xff]  ;;  %v7539_v12 = vpack.c.bf16 %v1573_v33, %v1569_v18  ;;  %v1759_v46 = vld [vmem:[#allocation8 + $0x10] sm:$0xff] }
 0x278   :  { %v1563_v14 = vld [vmem:[#allocation10 + $0x160] sm:$0xff]  ;;  %v1580_v3 = vld [vmem:[#allocation10 + $0x1e8] sm:$0xff]  ;;  %v1763_v18 = vld [vmem:[#allocation8 + $0x30] sm:$0xff] }
 0x279   :  { %6541 = vtanh.f32 %v7458_v22  ;;  %v7525_v24 = vpack.c.bf16 %v1563_v14, %v1559_v28  ;;  %v1758_v28 = vld [vmem:[#allocation8 + $0x8] sm:$0xff]  ;;  %v7566_v33 = vpack.c.bf16 %v1763_v18, %v1759_v46  ;;  %v1776_v63 = vld [vmem:[#allocation8 + $0x98] sm:$0xff]  ;;  %v7583_v46 = vpack.c.bf16 %v1778_v49, %v1774_v45 }
 0x27a   :  { %v1762_v14 = vld [vmem:[#allocation8 + $0x28] sm:$0xff]  ;;  %v1780_v18 = vld [vmem:[#allocation8 + $0xb8] sm:$0xff] }
 0x27b   :  { %v7559_v40 = vpack.c.bf16 %v1762_v14, %v1758_v28  ;;  %v1767_v28 = vld [vmem:[#allocation8 + $0x50] sm:$0xff]  ;;  %9105 = vst [vmem:[#allocation21_spill] sm:$0xff] %v7583_v46  ;;  %v1786_v45 = vld [vmem:[#allocation8 + $0xe8] sm:$0xff]  ;;  %v1784_v49 = vld [vmem:[#allocation8 + $0xd8] sm:$0xff] }
 0x27c   :  { %v1771_v14 = vld [vmem:[#allocation8 + $0x70] sm:$0xff] }
 0x27d   :  { %v7578_v36 = vpack.c.bf16 %v1771_v14, %v1767_v28  ;;  %v1782_v14 = vld [vmem:[#allocation8 + $0xc8] sm:$0xff] }
 0x27f   :  { %9104 = vst [vmem:[#allocation20_spill] sm:$0xff] %v7578_v36 }
 0x283   :  { %v6542_v60 = vpop.eup %6541 }
 0x284   :  { %v7465_v17 = vmul.f32 %v6542_v60, %v6540_v57  ;;  %v7513_v57 = vpack.c.bf16 %v1555_v21, %v1551_v51  ;;  %v7515_v60 = vpack.c.bf16 %v1557_v38, %v1553_v35  ;;  %v1575_v51 = vld [vmem:[#allocation10 + $0x1c0] sm:$0xff]  ;;  %v7543_v21 = vpack.c.bf16 %v1580_v3, %v1576_v52  ;;  %v1770_v52 = vld [vmem:[#allocation8 + $0x68] sm:$0xff]  ;;  %v1768_v3 = vld [vmem:[#allocation8 + $0x58] sm:$0xff] }
 0x285   :  { %v7545_v35 = vpack.c.bf16 %v1582_v25, %v1578_v55  ;;  %v1579_v38 = vld [vmem:[#allocation10 + $0x1e0] sm:$0xff]  ;;  %v1772_v25 = vld [vmem:[#allocation8 + $0x78] sm:$0xff] }
 0x286   :  { %1405 = vmatmul.mubr.f32.vlgmr.msra.gmra.mrb[18].mxu0 %v7465_v17  ;;  %1476 = vmatmul.mubr.f32.vlgmr.msra.gmra.mrb[18].mxu1 %v7465_v17  ;;  %v7549_v50 = vpack.c.bf16 %v1579_v38, %v1575_v51  ;;  %v1765_v51 = vld [vmem:[#allocation8 + $0x40] sm:$0xff]  ;;  %v7573_v42 = vpack.c.bf16 %v1772_v25, %v1768_v3  ;;  %v7585_v3 = vpack.c.bf16 %v1780_v18, %v1776_v63  ;;  %v1788_v63 = vld [vmem:[#allocation8 + $0xf8] sm:$0xff] }
 0x287   :  { %5273 = vmatpush1.bf16.msra.mxu0 %v7461_v1  ;;  %5305 = vmatpush1.bf16.msra.mxu1 %v7463_v7  ;;  %v1769_v38 = vld [vmem:[#allocation8 + $0x60] sm:$0xff] }
 0x288   :  { %5275 = vmatprep.subr.bf16.mxu0 %v7467_v20  ;;  %5307 = vmatprep.subr.bf16.mxu1 %v7469_v23  ;;  %9102 = vst [vmem:[#allocation18_spill] sm:$0xff] %v7573_v42  ;;  %v7575_v47 = vpack.c.bf16 %v1769_v38, %v1765_v51  ;;  %9106 = vst [vmem:[#allocation22_spill] sm:$0xff] %v7585_v3  ;;  %v1775_v51 = vld [vmem:[#allocation8 + $0x90] sm:$0xff]  ;;  %v1781_v18 = vld [vmem:[#allocation8 + $0xc0] sm:$0xff] }
 0x289   :  { %1647 = vmatprep.mubr.f32.mxu0 %v9043_v16  ;;  %1718 = vmatprep.mubr.f32.mxu1 %v9043_v16  ;;  %v1779_v38 = vld [vmem:[#allocation8 + $0xb0] sm:$0xff] }
 0x28a   :  { %9103 = vst [vmem:[#allocation19_spill] sm:$0xff] %v7575_v47  ;;  %v7590_v28 = vpack.c.bf16 %v1779_v38, %v1775_v51  ;;  %v1783_v51 = vld [vmem:[#allocation8 + $0xd0] sm:$0xff] }
 0x28b   :  { %5277 = vmatpush1.bf16.msra.mxu0 %v7475_v53  ;;  %5309 = vmatpush1.bf16.msra.mxu1 %v7477_v58  ;;  %v1787_v38 = vld [vmem:[#allocation8 + $0xf0] sm:$0xff] }
 0x28c   :  { %5279 = vmatprep.subr.bf16.mxu0 %v7481_v9  ;;  %5311 = vmatprep.subr.bf16.mxu1 %v7483_v19  ;;  %9108 = vst [vmem:[#allocation24_spill] sm:$0xff] %v7590_v28 }
 0x28f   :  { %5281 = vmatpush1.bf16.msra.mxu0 %v7489_v8  ;;  %5313 = vmatpush1.bf16.msra.mxu1 %v7491_v11 }
 0x290   :  { %5283 = vmatprep.subr.bf16.mxu0 %v7495_v34  ;;  %5315 = vmatprep.subr.bf16.mxu1 %v7497_v37 }
 0x293   :  { %5285 = vmatpush1.bf16.msra.mxu0 %v7501_v15  ;;  %5317 = vmatpush1.bf16.msra.mxu1 %v7503_v59 }
 0x294   :  { %5287 = vmatprep.subr.bf16.mxu0 %v7507_v62  ;;  %5319 = vmatprep.subr.bf16.mxu1 %v7509_v61 }
 0x297   :  { %5289 = vmatpush1.bf16.msra.mxu0 %v7513_v57  ;;  %5321 = vmatpush1.bf16.msra.mxu1 %v7515_v60 }
 0x298   :  { %5291 = vmatprep.subr.bf16.mxu0 %v7519_v27  ;;  %5323 = vmatprep.subr.bf16.mxu1 %v7521_v32 }
 0x29b   :  { %5293 = vmatpush1.bf16.msra.mxu0 %v7525_v24  ;;  %5325 = vmatpush1.bf16.msra.mxu1 %v7527_v31 }
 0x29c   :  { %5295 = vmatprep.subr.bf16.mxu0 %v7531_v48  ;;  %5327 = vmatprep.subr.bf16.mxu1 %v7533_v6 }
 0x29f   :  { %5297 = vmatpush1.bf16.msra.mxu0 %v7537_v43  ;;  %5329 = vmatpush1.bf16.msra.mxu1 %v7539_v12 }
 0x2a0   :  { %5299 = vmatprep.subr.bf16.mxu0 %v7543_v21  ;;  %5331 = vmatprep.subr.bf16.mxu1 %v7545_v35 }
 0x2a3   :  { %5301 = vmatpush1.bf16.msra.mxu0 %v7549_v50  ;;  %5333 = vmatpush1.bf16.msra.mxu1 %v7551_v54 }
 0x2a4   :  { %5335 = vmatprep.subr.bf16.mxu0 %v7559_v40  ;;  %5399 = vmatprep.subr.bf16.mxu1 %v7561_v5 }
 0x2a6   :  { %1648 = vmatmul.mubr.f32.vlgmr.msra.gmra.mrb[4].mxu0 %v7465_v17  ;;  %1719 = vmatmul.mubr.f32.vlgmr.msra.gmra.mrb[4].mxu1 %v7465_v17  ;;  %v1766_v17 = vld [vmem:[#allocation8 + $0x48] sm:$0xff] }
 0x2a7   :  { %5337 = vmatpush1.bf16.msra.mxu0 %v7563_v44  ;;  %5401 = vmatpush1.bf16.msra.mxu1 %v7566_v33  ;;  %v7571_v55 = vpack.c.bf16 %v1770_v52, %v1766_v17  ;;  %v1773_v17 = vld [vmem:[#allocation8 + $0x80] sm:$0xff] }
 0x2a8   :  { %5403 = vmatprep.subr.bf16.mxu1 %v7573_v42  ;;  %v1777_v52 = vld [vmem:[#allocation8 + $0xa0] sm:$0xff]  ;;  %v1872_v42 = vld [vmem:[#allocation8 + $0x398] sm:$0xff] }
 0x2a9   :  { %9101 = vst [vmem:[#allocation17_spill] sm:$0xff] %v7571_v55  ;;  %5339 = vmatprep.subr.bf16.mxu0 %v7571_v55  ;;  %v7587_v25 = vpack.c.bf16 %v1777_v52, %v1773_v17  ;;  %v1785_v17 = vld [vmem:[#allocation8 + $0xe0] sm:$0xff]  ;;  %v7597_v52 = vpack.c.bf16 %v1788_v63, %v1784_v49  ;;  %v1796_v49 = vld [vmem:[#allocation8 + $0x138] sm:$0xff] }
 0x2aa   :  { %v1789_v63 = vld [vmem:[#allocation8 + $0x100] sm:$0xff]  ;;  %v1876_v55 = vld [vmem:[#allocation8 + $0x3b8] sm:$0xff] }
 0x2ab   :  { %5341 = vmatpush1.bf16.msra.mxu0 %v7575_v47  ;;  %5405 = vmatpush1.bf16.msra.mxu1 %v7578_v36  ;;  %9107 = vst [vmem:[#allocation23_spill] sm:$0xff] %v7587_v25  ;;  %v7595_v36 = vpack.c.bf16 %v1786_v45, %v1782_v14  ;;  %9110 = vst [vmem:[#allocation26_spill] sm:$0xff] %v7597_v52  ;;  %v7599_v47 = vpack.c.bf16 %v1785_v17, %v1781_v18  ;;  %v1794_v14 = vld [vmem:[#allocation8 + $0x128] sm:$0xff]  ;;  %v1792_v45 = vld [vmem:[#allocation8 + $0x118] sm:$0xff] }
 0x2ac   :  { %5343 = vmatprep.subr.bf16.mxu0 %v7583_v46  ;;  %5407 = vmatprep.subr.bf16.mxu1 %v7585_v3  ;;  %v7602_v3 = vpack.c.bf16 %v1787_v38, %v1783_v51  ;;  %v1793_v18 = vld [vmem:[#allocation8 + $0x120] sm:$0xff]  ;;  %v7609_v17 = vpack.c.bf16 %v1796_v49, %v1792_v45  ;;  %v1791_v51 = vld [vmem:[#allocation8 + $0x110] sm:$0xff]  ;;  %v1804_v45 = vld [vmem:[#allocation8 + $0x178] sm:$0xff] }
 0x2ad   :  { %9109 = vst [vmem:[#allocation25_spill] sm:$0xff] %v7595_v36  ;;  %9111 = vst [vmem:[#allocation27_spill] sm:$0xff] %v7599_v47  ;;  %v7611_v46 = vpack.c.bf16 %v1793_v18, %v1789_v63  ;;  %v1795_v38 = vld [vmem:[#allocation8 + $0x130] sm:$0xff]  ;;  %v1797_v49 = vld [vmem:[#allocation8 + $0x140] sm:$0xff] }
 0x2ae   :  { %9112 = vst [vmem:[#allocation28_spill] sm:$0xff] %v7602_v3  ;;  %9114 = vst [vmem:[#allocation30_spill] sm:$0xff] %v7609_v17  ;;  %v1801_v63 = vld [vmem:[#allocation8 + $0x160] sm:$0xff] }
 0x2af   :  { %5345 = vmatpush1.bf16.msra.mxu0 %v7587_v25  ;;  %5409 = vmatpush1.bf16.msra.mxu1 %v7590_v28  ;;  %v1790_v28 = vld [vmem:[#allocation8 + $0x108] sm:$0xff]  ;;  %9115 = vst [vmem:[#allocation31_spill] sm:$0xff] %v7611_v46 }
 0x2b0   :  { %5347 = vmatprep.subr.bf16.mxu0 %v7595_v36  ;;  %5411 = vmatprep.subr.bf16.mxu1 %v7597_v52  ;;  %v7607_v25 = vpack.c.bf16 %v1794_v14, %v1790_v28  ;;  %v7614_v52 = vpack.c.bf16 %v1795_v38, %v1791_v51  ;;  %v1798_v28 = vld [vmem:[#allocation8 + $0x148] sm:$0xff]  ;;  %v7623_v36 = vpack.c.bf16 %v1801_v63, %v1797_v49  ;;  %v1799_v51 = vld [vmem:[#allocation8 + $0x150] sm:$0xff]  ;;  %v1809_v49 = vld [vmem:[#allocation8 + $0x1a0] sm:$0xff] }
 0x2b1   :  { %v1802_v14 = vld [vmem:[#allocation8 + $0x168] sm:$0xff]  ;;  %v1803_v38 = vld [vmem:[#allocation8 + $0x170] sm:$0xff] }
 0x2b2   :  { %9113 = vst [vmem:[#allocation29_spill] sm:$0xff] %v7607_v25  ;;  %9116 = vst [vmem:[#allocation32_spill] sm:$0xff] %v7614_v52 }
 0x2b3   :  { %5349 = vmatpush1.bf16.msra.mxu0 %v7599_v47  ;;  %5413 = vmatpush1.bf16.msra.mxu1 %v7602_v3  ;;  %v1800_v3 = vld [vmem:[#allocation8 + $0x158] sm:$0xff]  ;;  %v7619_v47 = vpack.c.bf16 %v1802_v14, %v1798_v28  ;;  %9119 = vst [vmem:[#allocation35_spill] sm:$0xff] %v7623_v36  ;;  %v1810_v28 = vld [vmem:[#allocation8 + $0x1a8] sm:$0xff] }
 0x2b4   :  { %5351 = vmatprep.subr.bf16.mxu0 %v7607_v25  ;;  %5415 = vmatprep.subr.bf16.mxu1 %v7609_v17  ;;  %v7621_v18 = vpack.c.bf16 %v1804_v45, %v1800_v3  ;;  %v7626_v17 = vpack.c.bf16 %v1803_v38, %v1799_v51  ;;  %v1808_v14 = vld [vmem:[#allocation8 + $0x198] sm:$0xff]  ;;  %v1805_v45 = vld [vmem:[#allocation8 + $0x180] sm:$0xff]  ;;  %v1807_v51 = vld [vmem:[#allocation8 + $0x190] sm:$0xff] }
 0x2b5   :  { %9117 = vst [vmem:[#allocation33_spill] sm:$0xff] %v7619_v47  ;;  %v1812_v3 = vld [vmem:[#allocation8 + $0x1b8] sm:$0xff]  ;;  %v7635_v25 = vpack.c.bf16 %v1809_v49, %v1805_v45  ;;  %v1811_v38 = vld [vmem:[#allocation8 + $0x1b0] sm:$0xff]  ;;  %v1817_v45 = vld [vmem:[#allocation8 + $0x1e0] sm:$0xff] }
 0x2b6   :  { %9118 = vst [vmem:[#allocation34_spill] sm:$0xff] %v7621_v18  ;;  %9120 = vst [vmem:[#allocation36_spill] sm:$0xff] %v7626_v17  ;;  %v7633_v63 = vpack.c.bf16 %v1812_v3, %v1808_v14  ;;  %v1820_v14 = vld [vmem:[#allocation8 + $0x1f8] sm:$0xff]  ;;  %v1813_v3 = vld [vmem:[#allocation8 + $0x1c0] sm:$0xff] }
 0x2b7   :  { %5353 = vmatpush1.bf16.msra.mxu0 %v7611_v46  ;;  %5417 = vmatpush1.bf16.msra.mxu1 %v7614_v52  ;;  %v1806_v52 = vld [vmem:[#allocation8 + $0x188] sm:$0xff]  ;;  %9123 = vst [vmem:[#allocation39_spill] sm:$0xff] %v7635_v25 }
 0x2b8   :  { %5355 = vmatprep.subr.bf16.mxu0 %v7619_v47  ;;  %5419 = vmatprep.subr.bf16.mxu1 %v7621_v18  ;;  %v7631_v46 = vpack.c.bf16 %v1810_v28, %v1806_v52  ;;  %9122 = vst [vmem:[#allocation38_spill] sm:$0xff] %v7633_v63  ;;  %v7638_v18 = vpack.c.bf16 %v1811_v38, %v1807_v51  ;;  %v1818_v52 = vld [vmem:[#allocation8 + $0x1e8] sm:$0xff]  ;;  %v1816_v28 = vld [vmem:[#allocation8 + $0x1d8] sm:$0xff]  ;;  %v1815_v51 = vld [vmem:[#allocation8 + $0x1d0] sm:$0xff] }
 0x2b9   :  { %v7645_v49 = vpack.c.bf16 %v1820_v14, %v1816_v28  ;;  %v7647_v47 = vpack.c.bf16 %v1817_v45, %v1813_v3  ;;  %v1819_v38 = vld [vmem:[#allocation8 + $0x1f0] sm:$0xff]  ;;  %v1828_v28 = vld [vmem:[#allocation8 + $0x238] sm:$0xff]  ;;  %v1821_v14 = vld [vmem:[#allocation8 + $0x200] sm:$0xff] }
 0x2ba   :  { %9121 = vst [vmem:[#allocation37_spill] sm:$0xff] %v7631_v46  ;;  %9124 = vst [vmem:[#allocation40_spill] sm:$0xff] %v7638_v18  ;;  %v1825_v3 = vld [vmem:[#allocation8 + $0x220] sm:$0xff] }
 0x2bb   :  { %5357 = vmatpush1.bf16.msra.mxu0 %v7623_v36  ;;  %5421 = vmatpush1.bf16.msra.mxu1 %v7626_v17  ;;  %v1814_v17 = vld [vmem:[#allocation8 + $0x1c8] sm:$0xff]  ;;  %9126 = vst [vmem:[#allocation42_spill] sm:$0xff] %v7645_v49  ;;  %9127 = vst [vmem:[#allocation43_spill] sm:$0xff] %v7647_v47 }
 0x2bc   :  { %5359 = vmatprep.subr.bf16.mxu0 %v7631_v46  ;;  %5423 = vmatprep.subr.bf16.mxu1 %v7633_v63  ;;  %v7643_v36 = vpack.c.bf16 %v1818_v52, %v1814_v17  ;;  %v7650_v63 = vpack.c.bf16 %v1819_v38, %v1815_v51  ;;  %v1826_v17 = vld [vmem:[#allocation8 + $0x228] sm:$0xff]  ;;  %v1824_v52 = vld [vmem:[#allocation8 + $0x218] sm:$0xff]  ;;  %v7659_v46 = vpack.c.bf16 %v1825_v3, %v1821_v14  ;;  %v1823_v51 = vld [vmem:[#allocation8 + $0x210] sm:$0xff] }
 0x2bd   :  { %v7657_v45 = vpack.c.bf16 %v1828_v28, %v1824_v52  ;;  %v1827_v38 = vld [vmem:[#allocation8 + $0x230] sm:$0xff]  ;;  %v1836_v52 = vld [vmem:[#allocation8 + $0x278] sm:$0xff]  ;;  %v1829_v28 = vld [vmem:[#allocation8 + $0x240] sm:$0xff] }
 0x2be   :  { %9125 = vst [vmem:[#allocation41_spill] sm:$0xff] %v7643_v36  ;;  %9128 = vst [vmem:[#allocation44_spill] sm:$0xff] %v7650_v63  ;;  %v1833_v14 = vld [vmem:[#allocation8 + $0x260] sm:$0xff] }
 0x2bf   :  { %5361 = vmatpush1.bf16.msra.mxu0 %v7635_v25  ;;  %5425 = vmatpush1.bf16.msra.mxu1 %v7638_v18  ;;  %v1822_v18 = vld [vmem:[#allocation8 + $0x208] sm:$0xff]  ;;  %9130 = vst [vmem:[#allocation46_spill] sm:$0xff] %v7657_v45  ;;  %9131 = vst [vmem:[#allocation47_spill] sm:$0xff] %v7659_v46 }
 0x2c0   :  { %5363 = vmatprep.subr.bf16.mxu0 %v7643_v36  ;;  %5427 = vmatprep.subr.bf16.mxu1 %v7645_v49  ;;  %v7655_v25 = vpack.c.bf16 %v1826_v17, %v1822_v18  ;;  %v7662_v49 = vpack.c.bf16 %v1827_v38, %v1823_v51  ;;  %v1834_v18 = vld [vmem:[#allocation8 + $0x268] sm:$0xff]  ;;  %v1832_v17 = vld [vmem:[#allocation8 + $0x258] sm:$0xff]  ;;  %v7671_v36 = vpack.c.bf16 %v1833_v14, %v1829_v28  ;;  %v1831_v51 = vld [vmem:[#allocation8 + $0x250] sm:$0xff] }
 0x2c1   :  { %v7669_v3 = vpack.c.bf16 %v1836_v52, %v1832_v17  ;;  %v1835_v38 = vld [vmem:[#allocation8 + $0x270] sm:$0xff]  ;;  %v1844_v17 = vld [vmem:[#allocation8 + $0x2b8] sm:$0xff]  ;;  %v1837_v52 = vld [vmem:[#allocation8 + $0x280] sm:$0xff] }
 0x2c2   :  { %9129 = vst [vmem:[#allocation45_spill] sm:$0xff] %v7655_v25  ;;  %9132 = vst [vmem:[#allocation48_spill] sm:$0xff] %v7662_v49  ;;  %v1841_v28 = vld [vmem:[#allocation8 + $0x2a0] sm:$0xff] }
 0x2c3   :  { %5365 = vmatpush1.bf16.msra.mxu0 %v7647_v47  ;;  %5429 = vmatpush1.bf16.msra.mxu1 %v7650_v63  ;;  %v1830_v63 = vld [vmem:[#allocation8 + $0x248] sm:$0xff]  ;;  %9134 = vst [vmem:[#allocation50_spill] sm:$0xff] %v7669_v3  ;;  %9135 = vst [vmem:[#allocation51_spill] sm:$0xff] %v7671_v36 }
 0x2c4   :  { %5367 = vmatprep.subr.bf16.mxu0 %v7655_v25  ;;  %5431 = vmatprep.subr.bf16.mxu1 %v7657_v45  ;;  %v7667_v47 = vpack.c.bf16 %v1834_v18, %v1830_v63  ;;  %v7674_v45 = vpack.c.bf16 %v1835_v38, %v1831_v51  ;;  %v1842_v63 = vld [vmem:[#allocation8 + $0x2a8] sm:$0xff]  ;;  %v1840_v18 = vld [vmem:[#allocation8 + $0x298] sm:$0xff]  ;;  %v7683_v25 = vpack.c.bf16 %v1841_v28, %v1837_v52  ;;  %v1839_v51 = vld [vmem:[#allocation8 + $0x290] sm:$0xff] }
 0x2c5   :  { %v7681_v14 = vpack.c.bf16 %v1844_v17, %v1840_v18  ;;  %v1843_v38 = vld [vmem:[#allocation8 + $0x2b0] sm:$0xff]  ;;  %v1852_v18 = vld [vmem:[#allocation8 + $0x2f8] sm:$0xff]  ;;  %v1845_v17 = vld [vmem:[#allocation8 + $0x2c0] sm:$0xff] }
 0x2c6   :  { %9133 = vst [vmem:[#allocation49_spill] sm:$0xff] %v7667_v47  ;;  %9136 = vst [vmem:[#allocation52_spill] sm:$0xff] %v7674_v45  ;;  %v1849_v52 = vld [vmem:[#allocation8 + $0x2e0] sm:$0xff] }
 0x2c7   :  { %5369 = vmatpush1.bf16.msra.mxu0 %v7659_v46  ;;  %5433 = vmatpush1.bf16.msra.mxu1 %v7662_v49  ;;  %v1838_v49 = vld [vmem:[#allocation8 + $0x288] sm:$0xff]  ;;  %9138 = vst [vmem:[#allocation54_spill] sm:$0xff] %v7681_v14  ;;  %9139 = vst [vmem:[#allocation55_spill] sm:$0xff] %v7683_v25 }
 0x2c8   :  { %5371 = vmatprep.subr.bf16.mxu0 %v7667_v47  ;;  %5435 = vmatprep.subr.bf16.mxu1 %v7669_v3  ;;  %v7679_v46 = vpack.c.bf16 %v1842_v63, %v1838_v49  ;;  %v7686_v3 = vpack.c.bf16 %v1843_v38, %v1839_v51  ;;  %v1850_v49 = vld [vmem:[#allocation8 + $0x2e8] sm:$0xff]  ;;  %v1848_v63 = vld [vmem:[#allocation8 + $0x2d8] sm:$0xff]  ;;  %v7695_v47 = vpack.c.bf16 %v1849_v52, %v1845_v17  ;;  %v1847_v51 = vld [vmem:[#allocation8 + $0x2d0] sm:$0xff] }
 0x2c9   :  { %v7693_v28 = vpack.c.bf16 %v1852_v18, %v1848_v63  ;;  %v1851_v38 = vld [vmem:[#allocation8 + $0x2f0] sm:$0xff]  ;;  %v1860_v63 = vld [vmem:[#allocation8 + $0x338] sm:$0xff]  ;;  %v1853_v18 = vld [vmem:[#allocation8 + $0x300] sm:$0xff] }
 0x2ca   :  { %9137 = vst [vmem:[#allocation53_spill] sm:$0xff] %v7679_v46  ;;  %9140 = vst [vmem:[#allocation56_spill] sm:$0xff] %v7686_v3  ;;  %v1857_v17 = vld [vmem:[#allocation8 + $0x320] sm:$0xff] }
 0x2cb   :  { %5373 = vmatpush1.bf16.msra.mxu0 %v7671_v36  ;;  %5437 = vmatpush1.bf16.msra.mxu1 %v7674_v45  ;;  %v1846_v45 = vld [vmem:[#allocation8 + $0x2c8] sm:$0xff]  ;;  %9142 = vst [vmem:[#allocation58_spill] sm:$0xff] %v7693_v28  ;;  %9143 = vst [vmem:[#allocation59_spill] sm:$0xff] %v7695_v47 }
 0x2cc   :  { %5375 = vmatprep.subr.bf16.mxu0 %v7679_v46  ;;  %5439 = vmatprep.subr.bf16.mxu1 %v7681_v14  ;;  %v7691_v36 = vpack.c.bf16 %v1850_v49, %v1846_v45  ;;  %v7698_v14 = vpack.c.bf16 %v1851_v38, %v1847_v51  ;;  %v1858_v45 = vld [vmem:[#allocation8 + $0x328] sm:$0xff]  ;;  %v1856_v49 = vld [vmem:[#allocation8 + $0x318] sm:$0xff]  ;;  %v7707_v46 = vpack.c.bf16 %v1857_v17, %v1853_v18  ;;  %v1855_v51 = vld [vmem:[#allocation8 + $0x310] sm:$0xff] }
 0x2cd   :  { %v7705_v52 = vpack.c.bf16 %v1860_v63, %v1856_v49  ;;  %v1859_v38 = vld [vmem:[#allocation8 + $0x330] sm:$0xff]  ;;  %v1868_v49 = vld [vmem:[#allocation8 + $0x378] sm:$0xff]  ;;  %v1861_v63 = vld [vmem:[#allocation8 + $0x340] sm:$0xff] }
 0x2ce   :  { %9141 = vst [vmem:[#allocation57_spill] sm:$0xff] %v7691_v36  ;;  %9144 = vst [vmem:[#allocation60_spill] sm:$0xff] %v7698_v14  ;;  %v1865_v18 = vld [vmem:[#allocation8 + $0x360] sm:$0xff] }
 0x2cf   :  { %5377 = vmatpush1.bf16.msra.mxu0 %v7683_v25  ;;  %5441 = vmatpush1.bf16.msra.mxu1 %v7686_v3  ;;  %v1854_v3 = vld [vmem:[#allocation8 + $0x308] sm:$0xff]  ;;  %9146 = vst [vmem:[#allocation62_spill] sm:$0xff] %v7705_v52  ;;  %9147 = vst [vmem:[#allocation63_spill] sm:$0xff] %v7707_v46 }
 0x2d0   :  { %5379 = vmatprep.subr.bf16.mxu0 %v7691_v36  ;;  %5443 = vmatprep.subr.bf16.mxu1 %v7693_v28  ;;  %v7703_v25 = vpack.c.bf16 %v1858_v45, %v1854_v3  ;;  %v7710_v28 = vpack.c.bf16 %v1859_v38, %v1855_v51  ;;  %v1866_v3 = vld [vmem:[#allocation8 + $0x368] sm:$0xff]  ;;  %v1864_v45 = vld [vmem:[#allocation8 + $0x358] sm:$0xff]  ;;  %v7719_v36 = vpack.c.bf16 %v1865_v18, %v1861_v63  ;;  %v1863_v51 = vld [vmem:[#allocation8 + $0x350] sm:$0xff] }
 0x2d1   :  { %v7717_v17 = vpack.c.bf16 %v1868_v49, %v1864_v45  ;;  %v1867_v38 = vld [vmem:[#allocation8 + $0x370] sm:$0xff]  ;;  %v1869_v45 = vld [vmem:[#allocation8 + $0x380] sm:$0xff] }
 0x2d2   :  { %9145 = vst [vmem:[#allocation61_spill] sm:$0xff] %v7703_v25  ;;  %9148 = vst [vmem:[#allocation64_spill] sm:$0xff] %v7710_v28  ;;  %v1873_v49 = vld [vmem:[#allocation8 + $0x3a0] sm:$0xff]  ;;  %v1871_v63 = vld [vmem:[#allocation8 + $0x390] sm:$0xff] }
 0x2d3   :  { %5381 = vmatpush1.bf16.msra.mxu0 %v7695_v47  ;;  %5445 = vmatpush1.bf16.msra.mxu1 %v7698_v14  ;;  %v1862_v14 = vld [vmem:[#allocation8 + $0x348] sm:$0xff]  ;;  %9150 = vst [vmem:[#allocation66_spill] sm:$0xff] %v7717_v17  ;;  %9151 = vst [vmem:[#allocation67_spill] sm:$0xff] %v7719_v36  ;;  %v7731_v18 = vpack.c.bf16 %v1873_v49, %v1869_v45  ;;  %v1883_v45 = vld [vmem:[#allocation8 + $0x3f0] sm:$0xff] }
 0x2d4   :  { %5383 = vmatprep.subr.bf16.mxu0 %v7703_v25  ;;  %5447 = vmatprep.subr.bf16.mxu1 %v7705_v52  ;;  %v7715_v47 = vpack.c.bf16 %v1866_v3, %v1862_v14  ;;  %v1870_v25 = vld [vmem:[#allocation8 + $0x388] sm:$0xff]  ;;  %v7728_v3 = vpack.c.bf16 %v1876_v55, %v1872_v42  ;;  %v1880_v55 = vld [vmem:[#allocation8 + $0x3d8] sm:$0xff] }
 0x2d5   :  { %v1874_v52 = vld [vmem:[#allocation8 + $0x3a8] sm:$0xff]  ;;  %v1884_v42 = vld [vmem:[#allocation8 + $0x3f8] sm:$0xff] }
 0x2d6   :  { %9149 = vst [vmem:[#allocation65_spill] sm:$0xff] %v7715_v47  ;;  %v7726_v14 = vpack.c.bf16 %v1874_v52, %v1870_v25  ;;  %v1877_v52 = vld [vmem:[#allocation8 + $0x3c0] sm:$0xff] }
 0x2d7   :  { %5385 = vmatpush1.bf16.msra.mxu0 %v7707_v46  ;;  %5449 = vmatpush1.bf16.msra.mxu1 %v7710_v28  ;;  %v7722_v46 = vpack.c.bf16 %v1867_v38, %v1863_v51  ;;  %v1875_v51 = vld [vmem:[#allocation8 + $0x3b0] sm:$0xff]  ;;  %v1878_v38 = vld [vmem:[#allocation8 + $0x3c8] sm:$0xff]  ;;  %v1881_v28 = vld [vmem:[#allocation8 + $0x3e0] sm:$0xff] }
 0x2d8   :  { %5387 = vmatprep.subr.bf16.mxu0 %v7715_v47  ;;  %5451 = vmatprep.subr.bf16.mxu1 %v7717_v17  ;;  %v1882_v47 = vld [vmem:[#allocation8 + $0x3e8] sm:$0xff]  ;;  %v7735_v17 = vpack.c.bf16 %v1875_v51, %v1871_v63  ;;  %v7742_v49 = vpack.c.bf16 %v1881_v28, %v1877_v52 }
 0x2d9   :  { %9152 = vst [vmem:[#allocation68_spill] sm:$0xff] %v7722_v46  ;;  %v7737_v25 = vpack.c.bf16 %v1882_v47, %v1878_v38 }
 0x2da   :  { %9155 = vst [vmem:[#allocation71_spill] sm:$0xff] %v7742_v49 }
 0x2db   :  { %5389 = vmatpush1.bf16.msra.mxu0 %v7719_v36  ;;  %5453 = vmatpush1.bf16.msra.mxu1 %v7722_v46  ;;  %9153 = vst [vmem:[#allocation69_spill] sm:$0xff] %v7737_v25  ;;  %v7739_v36 = vpack.c.bf16 %v1884_v42, %v1880_v55  ;;  %v1879_v46 = vld [vmem:[#allocation8 + $0x3d0] sm:$0xff] }
 0x2dc   :  { %5391 = vmatprep.subr.bf16.mxu0 %v7726_v14  ;;  %5455 = vmatprep.subr.bf16.mxu1 %v7728_v3  ;;  %v7746_v63 = vpack.c.bf16 %v1883_v45, %v1879_v46 }
 0x2dd   :  { %9154 = vst [vmem:[#allocation70_spill] sm:$0xff] %v7739_v36 }
 0x2de   :  { %9156 = vst [vmem:[#allocation72_spill] sm:$0xff] %v7746_v63 }
 0x2df   :  { %5393 = vmatpush1.bf16.msra.mxu0 %v7731_v18  ;;  %5457 = vmatpush1.bf16.msra.mxu1 %v7735_v17 }
 0x2e0   :  { %5395 = vmatprep.subr.bf16.mxu0 %v7737_v25  ;;  %5459 = vmatprep.subr.bf16.mxu1 %v7739_v36 }
 0x2e3   :  { %5397 = vmatpush1.bf16.msra.mxu0 %v7742_v49  ;;  %5461 = vmatpush1.bf16.msra.mxu1 %v7746_v63 }
 0x2e4   :  { %5463 = vmatprep.subr.bf16.mxu0 %v7421_v41  ;;  %5495 = vmatprep.subr.bf16.mxu1 %v7423_v2 }
 0x359   :  { %v1406_v47 = vpop.f32.mrb[18].mxu0  ;;  %v1477_v51 = vpop.f32.mrb[18].mxu1 }
 0x35a   :  { %v1407_v28 = vadd.f32 %v1406_v47, %v7432_v0  ;;  %v1408_v38 = vpop.f32.mrb[19].mxu0  ;;  %v1479_v55 = vpop.f32.mrb[19].mxu1  ;;  %v1478_v63 = vadd.f32 %v1477_v51, %v7447_v10 }
 0x35b   :  { %v1409_v42 = vadd.f32 %v1408_v38, %v7436_v29  ;;  %v1480_v45 = vadd.f32 %v1479_v55, %v7442_v4 }
 0x35c   :  { %v4831_v46 = vmul.f32 -1.442695, %v1407_v28 }
 0x35d   :  { %v4832_v52 = vmul.f32 -1.442695, %v1409_v42  ;;  %v4833_v49 = vmul.f32 -1.442695, %v1480_v45 }
 0x35e   :  { %6543 = vpow2.f32 %v4831_v46 }
 0x35f   :  { %6545 = vpow2.f32 %v4832_v52 }
 0x360   :  { %6547 = vpow2.f32 %v4833_v49 }
 0x361   :  { %6549 = vtanh.f32 %v1478_v63 }
 0x368   :  { %v6544_v41 = vpop.eup %6543 }
 0x369   :  { %v6546_v36 = vpop.eup %6545  ;;  %v1486_v2 = vadd.f32 1.0, %v6544_v41 }
 0x36a   :  { %v1492_v25 = vadd.f32 1.0, %v6546_v36  ;;  %v6548_v47 = vpop.eup %6547 }
 0x36b   :  { %6551 = vrcp.f32 %v1486_v2  ;;  %v6550_v0 = vpop.eup %6549  ;;  %v1499_v46 = vadd.f32 1.0, %v6548_v47 }
 0x36c   :  { %6553 = vrcp.f32 %v1492_v25 }
 0x36d   :  { %6555 = vrcp.f32 %v1499_v46 }
 0x375   :  { %v6552_v38 = vpop.eup %6551 }
 0x376   :  { %v6554_v28 = vpop.eup %6553  ;;  %v1503_v42 = vmul.f32 %v6552_v38, %v6550_v0 }
 0x377   :  { %v1502_v52 = vmul.f32 %v6554_v28, %v7450_v26  ;;  %v6556_v26 = vpop.eup %6555 }
 0x379   :  { %v1649_v55 = vpop.f32.mrb[4].mxu0  ;;  %v1720_v45 = vpop.f32.mrb[4].mxu1  ;;  %v7758_v4 = vadd.f32 %v1503_v42, %v1502_v52 }
 0x37a   :  { %v6426_v51 = vadd.f32 %v1649_v55, %v9098_v13  ;;  %v1651_v49 = vpop.f32.mrb[5].mxu0  ;;  %v1722_v63 = vpop.f32.mrb[5].mxu1  ;;  %v6442_v38 = vadd.f32 %v1720_v45, %v7319_v30 }
 0x37b   :  { %v6427_v36 = vadd.f32 %v1651_v49, %v9099_v39  ;;  %6557 = vtanh.f32 %v7758_v4  ;;  %v6443_v0 = vadd.f32 %v1722_v63, %v9100_v56 }
 0x37c   :  { %v4834_v25 = vmul.f32 -1.442695, %v6426_v51 }
 0x37d   :  { %v4835_v41 = vmul.f32 -1.442695, %v6427_v36  ;;  %v4836_v47 = vmul.f32 -1.442695, %v6443_v0 }
 0x37e   :  { %6559 = vpow2.f32 %v4834_v25 }
 0x37f   :  { %6561 = vpow2.f32 %v4835_v41 }
 0x380   :  { %6563 = vpow2.f32 %v4836_v47 }
 0x381   :  { %6565 = vtanh.f32 %v6442_v38  ;;  %v9192_v38 = vld [vmem:[#allocation52_spill] sm:$0xff] }
 0x385   :  { %v6558_v2 = vpop.eup %6557 }
 0x386   :  { %v1506_v28 = vmul.f32 %v6558_v2, %v6556_v26 }
 0x388   :  { %v6560_v42 = vpop.eup %6559  ;;  %1510 = vst [vmem:[#allocation11 + $0x8] sm:$0xff] %v1506_v28  ;;  %1949 = vmatprep.mubr.f32.mxu0 %v1506_v28  ;;  %2020 = vmatprep.mubr.f32.mxu1 %v1506_v28  ;;  %v9193_v28 = vld [vmem:[#allocation53_spill] sm:$0xff] }
 0x389   :  { %v6562_v46 = vpop.eup %6561  ;;  %v1733_v52 = vadd.f32 1.0, %v6560_v42  ;;  %v9194_v42 = vld [vmem:[#allocation54_spill] sm:$0xff] }
 0x38a   :  { %v1739_v55 = vadd.f32 1.0, %v6562_v46  ;;  %v6564_v51 = vpop.eup %6563  ;;  %v9195_v46 = vld [vmem:[#allocation55_spill] sm:$0xff] }
 0x38b   :  { %6567 = vrcp.f32 %v1733_v52  ;;  %v6566_v49 = vpop.eup %6565  ;;  %v1746_v41 = vadd.f32 1.0, %v6564_v51  ;;  %v9196_v52 = vld [vmem:[#allocation56_spill] sm:$0xff]  ;;  %v9198_v51 = vld [vmem:[#allocation58_spill] sm:$0xff] }
 0x38c   :  { %6569 = vrcp.f32 %v1739_v55  ;;  %v9197_v55 = vld [vmem:[#allocation57_spill] sm:$0xff] }
 0x38d   :  { %6571 = vrcp.f32 %v1746_v41  ;;  %v9203_v41 = vld [vmem:[#allocation63_spill] sm:$0xff] }
 0x395   :  { %v6568_v63 = vpop.eup %6567 }
 0x396   :  { %v6570_v36 = vpop.eup %6569  ;;  %v1750_v25 = vmul.f32 %v6568_v63, %v6566_v49  ;;  %v9199_v49 = vld [vmem:[#allocation59_spill] sm:$0xff]  ;;  %v9200_v63 = vld [vmem:[#allocation60_spill] sm:$0xff] }
 0x397   :  { %v1749_v45 = vmul.f32 %v6570_v36, %v7458_v22  ;;  %v6572_v26 = vpop.eup %6571  ;;  %v9157_v22 = vld [vmem:[#allocation17_spill] sm:$0xff] }
 0x398   :  { %v9201_v36 = vld [vmem:[#allocation61_spill] sm:$0xff] }
 0x399   :  { %v7766_v0 = vadd.f32 %v1750_v25, %v1749_v45  ;;  %v9202_v25 = vld [vmem:[#allocation62_spill] sm:$0xff]  ;;  %v9204_v45 = vld [vmem:[#allocation64_spill] sm:$0xff] }
 0x39b   :  { %6573 = vtanh.f32 %v7766_v0 }
 0x3a5   :  { %v6574_v2 = vpop.eup %6573 }
 0x3a6   :  { %v1753_v47 = vmul.f32 %v6574_v2, %v6572_v26  ;;  %v9205_v26 = vld [vmem:[#allocation65_spill] sm:$0xff]  ;;  %v9206_v2 = vld [vmem:[#allocation66_spill] sm:$0xff] }
 0x3a8   :  { %1950 = vmatmul.mubr.f32.vlgmr.msra.gmra.mrb[20].mxu0 %v1753_v47  ;;  %2021 = vmatmul.mubr.f32.vlgmr.msra.gmra.mrb[20].mxu1 %v1753_v47 }
 0x3a9   :  { %5465 = vmatpush1.bf16.msra.mxu0 %v7461_v1  ;;  %5497 = vmatpush1.bf16.msra.mxu1 %v7463_v7  ;;  %v9158_v1 = vld [vmem:[#allocation18_spill] sm:$0xff]  ;;  %v9159_v7 = vld [vmem:[#allocation19_spill] sm:$0xff] }
 0x3aa   :  { %5467 = vmatprep.subr.bf16.mxu0 %v7467_v20  ;;  %5499 = vmatprep.subr.bf16.mxu1 %v7469_v23  ;;  %v9160_v20 = vld [vmem:[#allocation20_spill] sm:$0xff]  ;;  %v9161_v23 = vld [vmem:[#allocation21_spill] sm:$0xff] }
 0x3ab   :  { %2192 = vmatprep.mubr.f32.mxu0 %v9043_v16  ;;  %2263 = vmatprep.mubr.f32.mxu1 %v9043_v16 }
 0x3ad   :  { %5469 = vmatpush1.bf16.msra.mxu0 %v7475_v53  ;;  %5501 = vmatpush1.bf16.msra.mxu1 %v7477_v58  ;;  %v9162_v53 = vld [vmem:[#allocation22_spill] sm:$0xff]  ;;  %v9163_v58 = vld [vmem:[#allocation23_spill] sm:$0xff] }
 0x3ae   :  { %5471 = vmatprep.subr.bf16.mxu0 %v7481_v9  ;;  %5503 = vmatprep.subr.bf16.mxu1 %v7483_v19  ;;  %v9164_v9 = vld [vmem:[#allocation24_spill] sm:$0xff]  ;;  %v9165_v19 = vld [vmem:[#allocation25_spill] sm:$0xff] }
 0x3b1   :  { %5473 = vmatpush1.bf16.msra.mxu0 %v7489_v8  ;;  %5505 = vmatpush1.bf16.msra.mxu1 %v7491_v11  ;;  %v9166_v8 = vld [vmem:[#allocation26_spill] sm:$0xff]  ;;  %v9167_v11 = vld [vmem:[#allocation27_spill] sm:$0xff] }
 0x3b2   :  { %5475 = vmatprep.subr.bf16.mxu0 %v7495_v34  ;;  %5507 = vmatprep.subr.bf16.mxu1 %v7497_v37  ;;  %v9168_v34 = vld [vmem:[#allocation28_spill] sm:$0xff]  ;;  %v9169_v37 = vld [vmem:[#allocation29_spill] sm:$0xff] }
 0x3b5   :  { %5477 = vmatpush1.bf16.msra.mxu0 %v7501_v15  ;;  %5509 = vmatpush1.bf16.msra.mxu1 %v7503_v59  ;;  %v9170_v15 = vld [vmem:[#allocation30_spill] sm:$0xff]  ;;  %v9171_v59 = vld [vmem:[#allocation31_spill] sm:$0xff] }
 0x3b6   :  { %5479 = vmatprep.subr.bf16.mxu0 %v7507_v62  ;;  %5511 = vmatprep.subr.bf16.mxu1 %v7509_v61  ;;  %v9172_v62 = vld [vmem:[#allocation32_spill] sm:$0xff]  ;;  %v9173_v61 = vld [vmem:[#allocation33_spill] sm:$0xff] }
 0x3b9   :  { %5481 = vmatpush1.bf16.msra.mxu0 %v7513_v57  ;;  %5513 = vmatpush1.bf16.msra.mxu1 %v7515_v60  ;;  %v9174_v57 = vld [vmem:[#allocation34_spill] sm:$0xff]  ;;  %v9175_v60 = vld [vmem:[#allocation35_spill] sm:$0xff] }
 0x3ba   :  { %5483 = vmatprep.subr.bf16.mxu0 %v7519_v27  ;;  %5515 = vmatprep.subr.bf16.mxu1 %v7521_v32  ;;  %v9176_v27 = vld [vmem:[#allocation36_spill] sm:$0xff]  ;;  %v9177_v32 = vld [vmem:[#allocation37_spill] sm:$0xff] }
 0x3bd   :  { %5485 = vmatpush1.bf16.msra.mxu0 %v7525_v24  ;;  %5517 = vmatpush1.bf16.msra.mxu1 %v7527_v31  ;;  %v9178_v24 = vld [vmem:[#allocation38_spill] sm:$0xff]  ;;  %v9179_v31 = vld [vmem:[#allocation39_spill] sm:$0xff] }
 0x3be   :  { %5487 = vmatprep.subr.bf16.mxu0 %v7531_v48  ;;  %5519 = vmatprep.subr.bf16.mxu1 %v7533_v6  ;;  %v9180_v48 = vld [vmem:[#allocation40_spill] sm:$0xff]  ;;  %v9181_v6 = vld [vmem:[#allocation41_spill] sm:$0xff] }
 0x3c1   :  { %5489 = vmatpush1.bf16.msra.mxu0 %v7537_v43  ;;  %5521 = vmatpush1.bf16.msra.mxu1 %v7539_v12  ;;  %v9182_v43 = vld [vmem:[#allocation42_spill] sm:$0xff]  ;;  %v9183_v12 = vld [vmem:[#allocation43_spill] sm:$0xff] }
 0x3c2   :  { %5491 = vmatprep.subr.bf16.mxu0 %v7543_v21  ;;  %5523 = vmatprep.subr.bf16.mxu1 %v7545_v35  ;;  %v9184_v21 = vld [vmem:[#allocation44_spill] sm:$0xff]  ;;  %v9185_v35 = vld [vmem:[#allocation45_spill] sm:$0xff] }
 0x3c5   :  { %5493 = vmatpush1.bf16.msra.mxu0 %v7549_v50  ;;  %5525 = vmatpush1.bf16.msra.mxu1 %v7551_v54  ;;  %v9186_v50 = vld [vmem:[#allocation46_spill] sm:$0xff]  ;;  %v9187_v54 = vld [vmem:[#allocation47_spill] sm:$0xff] }
 0x3c6   :  { %5527 = vmatprep.subr.bf16.mxu0 %v7559_v40  ;;  %5591 = vmatprep.subr.bf16.mxu1 %v7561_v5  ;;  %v9188_v40 = vld [vmem:[#allocation48_spill] sm:$0xff]  ;;  %v9189_v5 = vld [vmem:[#allocation49_spill] sm:$0xff] }
 0x3c8   :  { %2193 = vmatmul.mubr.f32.vlgmr.msra.gmra.mrb[6].mxu0 %v1753_v47  ;;  %2264 = vmatmul.mubr.f32.vlgmr.msra.gmra.mrb[6].mxu1 %v1753_v47  ;;  %v9207_v47 = vld [vmem:[#allocation67_spill] sm:$0xff] }
 0x3c9   :  { %5529 = vmatpush1.bf16.msra.mxu0 %v7563_v44  ;;  %5593 = vmatpush1.bf16.msra.mxu1 %v7566_v33  ;;  %v9190_v44 = vld [vmem:[#allocation50_spill] sm:$0xff]  ;;  %v9191_v33 = vld [vmem:[#allocation51_spill] sm:$0xff] }
 0x3ca   :  { %5531 = vmatprep.subr.bf16.mxu0 %v9157_v22  ;;  %5595 = vmatprep.subr.bf16.mxu1 %v9158_v1  ;;  %v9208_v22 = vld [vmem:[#allocation68_spill] sm:$0xff]  ;;  %v9209_v1 = vld [vmem:[#allocation69_spill] sm:$0xff] }
 0x3cd   :  { %5533 = vmatpush1.bf16.msra.mxu0 %v9159_v7  ;;  %5597 = vmatpush1.bf16.msra.mxu1 %v9160_v20  ;;  %v9210_v7 = vld [vmem:[#allocation70_spill] sm:$0xff]  ;;  %v9211_v20 = vld [vmem:[#allocation71_spill] sm:$0xff] }
 0x3ce   :  { %5535 = vmatprep.subr.bf16.mxu0 %v9161_v23  ;;  %5599 = vmatprep.subr.bf16.mxu1 %v9162_v53  ;;  %v9212_v23 = vld [vmem:[#allocation72_spill] sm:$0xff] }
 0x3cf   :  { %v2610_v53 = vld [vmem:[#allocation10 + $0x8] sm:$0xff] }
 0x3d1   :  { %5537 = vmatpush1.bf16.msra.mxu0 %v9163_v58  ;;  %5601 = vmatpush1.bf16.msra.mxu1 %v9164_v9  ;;  %v2614_v58 = vld [vmem:[#allocation10 + $0x28] sm:$0xff]  ;;  %v2612_v9 = vld [vmem:[#allocation10 + $0x18] sm:$0xff] }
 0x3d2   :  { %5539 = vmatprep.subr.bf16.mxu0 %v9165_v19  ;;  %5603 = vmatprep.subr.bf16.mxu1 %v9166_v8  ;;  %v7865_v19 = vpack.c.bf16 %v2614_v58, %v2610_v53  ;;  %v2609_v58 = vld [vmem:[#allocation10] sm:$0xff] }
 0x3d5   :  { %5541 = vmatpush1.bf16.msra.mxu0 %v9167_v11  ;;  %5605 = vmatpush1.bf16.msra.mxu1 %v9168_v34 }
 0x3d6   :  { %5543 = vmatprep.subr.bf16.mxu0 %v9169_v37  ;;  %5607 = vmatprep.subr.bf16.mxu1 %v9170_v15 }
 0x3d9   :  { %5545 = vmatpush1.bf16.msra.mxu0 %v9171_v59  ;;  %5609 = vmatpush1.bf16.msra.mxu1 %v9172_v62 }
 0x3da   :  { %5547 = vmatprep.subr.bf16.mxu0 %v9173_v61  ;;  %5611 = vmatprep.subr.bf16.mxu1 %v9174_v57  ;;  %v9214_v61 = vld [vmem:[#allocation16_spill] sm:$0xff] }
 0x3dd   :  { %5549 = vmatpush1.bf16.msra.mxu0 %v9175_v60  ;;  %5613 = vmatpush1.bf16.msra.mxu1 %v9176_v27 }
 0x3de   :  { %5551 = vmatprep.subr.bf16.mxu0 %v9177_v32  ;;  %5615 = vmatprep.subr.bf16.mxu1 %v9178_v24 }
 0x3e1   :  { %5553 = vmatpush1.bf16.msra.mxu0 %v9179_v31  ;;  %5617 = vmatpush1.bf16.msra.mxu1 %v9180_v48 }
 0x3e2   :  { %5555 = vmatprep.subr.bf16.mxu0 %v9181_v6  ;;  %5619 = vmatprep.subr.bf16.mxu1 %v9182_v43 }
 0x3e5   :  { %5557 = vmatpush1.bf16.msra.mxu0 %v9183_v12  ;;  %5621 = vmatpush1.bf16.msra.mxu1 %v9184_v21 }
 0x3e6   :  { %5559 = vmatprep.subr.bf16.mxu0 %v9185_v35  ;;  %5623 = vmatprep.subr.bf16.mxu1 %v9186_v50 }
 0x3e9   :  { %5561 = vmatpush1.bf16.msra.mxu0 %v9187_v54  ;;  %5625 = vmatpush1.bf16.msra.mxu1 %v9188_v40 }
 0x3ea   :  { %5563 = vmatprep.subr.bf16.mxu0 %v9189_v5  ;;  %5627 = vmatprep.subr.bf16.mxu1 %v9190_v44 }
 0x3ed   :  { %5565 = vmatpush1.bf16.msra.mxu0 %v9191_v33  ;;  %5629 = vmatpush1.bf16.msra.mxu1 %v9192_v38 }
 0x3ee   :  { %5567 = vmatprep.subr.bf16.mxu0 %v9193_v28  ;;  %5631 = vmatprep.subr.bf16.mxu1 %v9194_v42 }
 0x3f1   :  { %5569 = vmatpush1.bf16.msra.mxu0 %v9195_v46  ;;  %5633 = vmatpush1.bf16.msra.mxu1 %v9196_v52 }
 0x3f2   :  { %5571 = vmatprep.subr.bf16.mxu0 %v9197_v55  ;;  %5635 = vmatprep.subr.bf16.mxu1 %v9198_v51 }
 0x3f5   :  { %5573 = vmatpush1.bf16.msra.mxu0 %v9199_v49  ;;  %5637 = vmatpush1.bf16.msra.mxu1 %v9200_v63 }
 0x3f6   :  { %5575 = vmatprep.subr.bf16.mxu0 %v9201_v36  ;;  %5639 = vmatprep.subr.bf16.mxu1 %v9202_v25 }
 0x3f9   :  { %5577 = vmatpush1.bf16.msra.mxu0 %v9203_v41  ;;  %5641 = vmatpush1.bf16.msra.mxu1 %v9204_v45 }
 0x3fa   :  { %5579 = vmatprep.subr.bf16.mxu0 %v9205_v26  ;;  %5643 = vmatprep.subr.bf16.mxu1 %v9206_v2 }
 0x3fd   :  { %5581 = vmatpush1.bf16.msra.mxu0 %v9207_v47  ;;  %5645 = vmatpush1.bf16.msra.mxu1 %v9208_v22 }
 0x3fe   :  { %5583 = vmatprep.subr.bf16.mxu0 %v7726_v14  ;;  %5647 = vmatprep.subr.bf16.mxu1 %v7728_v3  ;;  %v2616_v14 = vld [vmem:[#allocation10 + $0x38] sm:$0xff] }
 0x3ff   :  { %v7867_v8 = vpack.c.bf16 %v2616_v14, %v2612_v9  ;;  %v2613_v9 = vld [vmem:[#allocation10 + $0x20] sm:$0xff]  ;;  %v2611_v14 = vld [vmem:[#allocation10 + $0x10] sm:$0xff] }
 0x401   :  { %5585 = vmatpush1.bf16.msra.mxu0 %v7731_v18  ;;  %5649 = vmatpush1.bf16.msra.mxu1 %v7735_v17  ;;  %v9213_v18 = vld [vmem:[#allocation15_spill] sm:$0xff] }
 0x402   :  { %5587 = vmatprep.subr.bf16.mxu0 %v9209_v1  ;;  %5651 = vmatprep.subr.bf16.mxu1 %v9210_v7 }
 0x405   :  { %5589 = vmatpush1.bf16.msra.mxu0 %v9211_v20  ;;  %5653 = vmatpush1.bf16.msra.mxu1 %v9212_v23 }
 0x406   :  { %5655 = vmatprep.subr.bf16.mxu0 %v7865_v19  ;;  %5687 = vmatprep.subr.bf16.mxu1 %v7867_v8 }
 0x47b   :  { %v1951_v17 = vpop.f32.mrb[20].mxu0  ;;  %v2022_v3 = vpop.f32.mrb[20].mxu1 }
 0x47c   :  { %v1952_v11 = vadd.f32 %v1951_v17, %v9213_v18  ;;  %v1953_v34 = vpop.f32.mrb[21].mxu0  ;;  %v2024_v37 = vpop.f32.mrb[21].mxu1  ;;  %v2023_v27 = vadd.f32 %v2022_v3, %v7447_v10  ;;  %v2615_v17 = vld [vmem:[#allocation10 + $0x30] sm:$0xff]  ;;  %v2618_v3 = vld [vmem:[#allocation10 + $0x48] sm:$0xff] }
 0x47d   :  { %v1954_v15 = vadd.f32 %v1953_v34, %v7436_v29  ;;  %v2025_v57 = vadd.f32 %v2024_v37, %v9214_v61  ;;  %v2620_v34 = vld [vmem:[#allocation10 + $0x58] sm:$0xff] }
 0x47e   :  { %v4837_v59 = vmul.f32 -1.442695, %v1952_v11  ;;  %v2622_v11 = vld [vmem:[#allocation10 + $0x68] sm:$0xff]  ;;  %v2624_v37 = vld [vmem:[#allocation10 + $0x78] sm:$0xff] }
 0x47f   :  { %v4838_v62 = vmul.f32 -1.442695, %v1954_v15  ;;  %v4839_v60 = vmul.f32 -1.442695, %v2025_v57  ;;  %v7889_v57 = vpack.c.bf16 %v2615_v17, %v2611_v14  ;;  %v2643_v14 = vld [vmem:[#allocation10 + $0x110] sm:$0xff] }
 0x480   :  { %6575 = vpow2.f32 %v4837_v59  ;;  %v2647_v17 = vld [vmem:[#allocation10 + $0x130] sm:$0xff] }
 0x481   :  { %6577 = vpow2.f32 %v4838_v62  ;;  %v7887_v62 = vpack.c.bf16 %v2613_v9, %v2609_v58 }
 0x482   :  { %6579 = vpow2.f32 %v4839_v60  ;;  %v2621_v60 = vld [vmem:[#allocation10 + $0x60] sm:$0xff] }
 0x483   :  { %6581 = vtanh.f32 %v2023_v27 }
 0x48a   :  { %v6576_v32 = vpop.eup %6575 }
 0x48b   :  { %v6578_v24 = vpop.eup %6577  ;;  %v2031_v31 = vadd.f32 1.0, %v6576_v32  ;;  %v7893_v32 = vpack.c.bf16 %v2622_v11, %v2618_v3  ;;  %v2650_v3 = vld [vmem:[#allocation10 + $0x148] sm:$0xff] }
 0x48c   :  { %v2037_v48 = vadd.f32 1.0, %v6578_v24  ;;  %v6580_v6 = vpop.eup %6579  ;;  %v7895_v24 = vpack.c.bf16 %v2624_v37, %v2620_v34  ;;  %v2654_v11 = vld [vmem:[#allocation10 + $0x168] sm:$0xff]  ;;  %v2652_v34 = vld [vmem:[#allocation10 + $0x158] sm:$0xff] }
 0x48d   :  { %6583 = vrcp.f32 %v2031_v31  ;;  %v6582_v43 = vpop.eup %6581  ;;  %v2044_v50 = vadd.f32 1.0, %v6580_v6  ;;  %v2619_v31 = vld [vmem:[#allocation10 + $0x50] sm:$0xff]  ;;  %v2626_v6 = vld [vmem:[#allocation10 + $0x88] sm:$0xff]  ;;  %v2656_v37 = vld [vmem:[#allocation10 + $0x178] sm:$0xff] }
 0x48e   :  { %6585 = vrcp.f32 %v2037_v48  ;;  %v2623_v48 = vld [vmem:[#allocation10 + $0x70] sm:$0xff] }
 0x48f   :  { %6587 = vrcp.f32 %v2044_v50  ;;  %v7903_v50 = vpack.c.bf16 %v2623_v48, %v2619_v31  ;;  %v7945_v31 = vpack.c.bf16 %v2654_v11, %v2650_v3  ;;  %v7947_v48 = vpack.c.bf16 %v2656_v37, %v2652_v34  ;;  %v2667_v3 = vld [vmem:[#allocation10 + $0x1d0] sm:$0xff] }
 0x490   :  { %v2671_v11 = vld [vmem:[#allocation10 + $0x1f0] sm:$0xff] }
 0x491   :  { %v7977_v37 = vpack.c.bf16 %v2671_v11, %v2667_v3 }
 0x497   :  { %v6584_v12 = vpop.eup %6583 }
 0x498   :  { %v6586_v21 = vpop.eup %6585  ;;  %v2048_v35 = vmul.f32 %v6584_v12, %v6582_v43  ;;  %v2630_v43 = vld [vmem:[#allocation10 + $0xa8] sm:$0xff]  ;;  %v2628_v12 = vld [vmem:[#allocation10 + $0x98] sm:$0xff] }
 0x499   :  { %v2047_v54 = vmul.f32 %v6586_v21, %v7758_v4  ;;  %v6588_v4 = vpop.eup %6587  ;;  %v2632_v21 = vld [vmem:[#allocation10 + $0xb8] sm:$0xff] }
 0x49b   :  { %v2194_v40 = vpop.f32.mrb[6].mxu0  ;;  %v2265_v5 = vpop.f32.mrb[6].mxu1  ;;  %v7876_v44 = vadd.f32 %v2048_v35, %v2047_v54  ;;  %v2625_v54 = vld [vmem:[#allocation10 + $0x80] sm:$0xff] }
 0x49c   :  { %v6428_v33 = vadd.f32 %v2194_v40, %v9098_v13  ;;  %v2196_v38 = vpop.f32.mrb[7].mxu0  ;;  %v2267_v28 = vpop.f32.mrb[7].mxu1  ;;  %v6444_v63 = vadd.f32 %v2265_v5, %v7319_v30  ;;  %v2629_v40 = vld [vmem:[#allocation10 + $0xa0] sm:$0xff]  ;;  %v7907_v5 = vpack.c.bf16 %v2630_v43, %v2626_v6  ;;  %v2651_v6 = vld [vmem:[#allocation10 + $0x150] sm:$0xff] }
 0x49d   :  { %v6429_v42 = vadd.f32 %v2196_v38, %v9099_v39  ;;  %6589 = vtanh.f32 %v7876_v44  ;;  %v6445_v55 = vadd.f32 %v2267_v28, %v9100_v56  ;;  %v2627_v38 = vld [vmem:[#allocation10 + $0x90] sm:$0xff] }
 0x49e   :  { %v4840_v46 = vmul.f32 -1.442695, %v6428_v33  ;;  %v7909_v33 = vpack.c.bf16 %v2632_v21, %v2628_v12  ;;  %v2631_v28 = vld [vmem:[#allocation10 + $0xb0] sm:$0xff]  ;;  %v2658_v12 = vld [vmem:[#allocation10 + $0x188] sm:$0xff] }
 0x49f   :  { %v4841_v52 = vmul.f32 -1.442695, %v6429_v42  ;;  %v4842_v49 = vmul.f32 -1.442695, %v6445_v55  ;;  %v2634_v42 = vld [vmem:[#allocation10 + $0xc8] sm:$0xff]  ;;  %v2640_v55 = vld [vmem:[#allocation10 + $0xf8] sm:$0xff] }
 0x4a0   :  { %6591 = vpow2.f32 %v4840_v46  ;;  %v2638_v46 = vld [vmem:[#allocation10 + $0xe8] sm:$0xff]  ;;  %v2655_v43 = vld [vmem:[#allocation10 + $0x170] sm:$0xff] }
 0x4a1   :  { %6593 = vpow2.f32 %v4841_v52  ;;  %v2636_v52 = vld [vmem:[#allocation10 + $0xd8] sm:$0xff]  ;;  %v2662_v21 = vld [vmem:[#allocation10 + $0x1a8] sm:$0xff] }
 0x4a2   :  { %6595 = vpow2.f32 %v4842_v49  ;;  %v2633_v49 = vld [vmem:[#allocation10 + $0xc0] sm:$0xff] }
 0x4a3   :  { %6597 = vtanh.f32 %v6444_v63  ;;  %v2637_v63 = vld [vmem:[#allocation10 + $0xe0] sm:$0xff] }
 0x4a7   :  { %v6590_v51 = vpop.eup %6589 }
 0x4a8   :  { %v2051_v36 = vmul.f32 %v6590_v51, %v6588_v4  ;;  %v7915_v4 = vpack.c.bf16 %v2629_v40, %v2625_v54  ;;  %v7917_v51 = vpack.c.bf16 %v2631_v28, %v2627_v38  ;;  %v2660_v54 = vld [vmem:[#allocation10 + $0x198] sm:$0xff]  ;;  %v7953_v28 = vpack.c.bf16 %v2655_v43, %v2651_v6 }
 0x4a9   :  { %v2664_v40 = vld [vmem:[#allocation10 + $0x1b8] sm:$0xff] }
 0x4aa   :  { %v6592_v25 = vpop.eup %6591  ;;  %2055 = vst [vmem:[#allocation11 + $0x10] sm:$0xff] %v2051_v36  ;;  %2494 = vmatprep.mubr.f32.mxu0 %v2051_v36  ;;  %2565 = vmatprep.mubr.f32.mxu1 %v2051_v36  ;;  %v7921_v36 = vpack.c.bf16 %v2638_v46, %v2634_v42  ;;  %v2657_v42 = vld [vmem:[#allocation10 + $0x180] sm:$0xff]  ;;  %v2850_v6 = vld [vmem:[#allocation8 + $0x18] sm:$0xff] }
 0x4ab   :  { %v6594_v41 = vpop.eup %6593  ;;  %v2278_v45 = vadd.f32 1.0, %v6592_v25  ;;  %v7923_v25 = vpack.c.bf16 %v2640_v55, %v2636_v52  ;;  %v2661_v46 = vld [vmem:[#allocation10 + $0x1a0] sm:$0xff]  ;;  %v7957_v52 = vpack.c.bf16 %v2662_v21, %v2658_v12  ;;  %v7959_v55 = vpack.c.bf16 %v2664_v40, %v2660_v54  ;;  %v2854_v12 = vld [vmem:[#allocation8 + $0x38] sm:$0xff] }
 0x4ac   :  { %v2284_v26 = vadd.f32 1.0, %v6594_v41  ;;  %v6596_v2 = vpop.eup %6595  ;;  %v2635_v41 = vld [vmem:[#allocation10 + $0xd0] sm:$0xff]  ;;  %v2847_v21 = vld [vmem:[#allocation8] sm:$0xff]  ;;  %v7987_v40 = vpack.c.bf16 %v2854_v12, %v2850_v6  ;;  %v2864_v12 = vld [vmem:[#allocation8 + $0x88] sm:$0xff] }
 0x4ad   :  { %6599 = vrcp.f32 %v2278_v45  ;;  %v6598_v47 = vpop.eup %6597  ;;  %v2291_v20 = vadd.f32 1.0, %v6596_v2  ;;  %v2639_v45 = vld [vmem:[#allocation10 + $0xf0] sm:$0xff]  ;;  %v2646_v2 = vld [vmem:[#allocation10 + $0x128] sm:$0xff]  ;;  %v2851_v54 = vld [vmem:[#allocation8 + $0x20] sm:$0xff] }
 0x4ae   :  { %6601 = vrcp.f32 %v2284_v26  ;;  %v2642_v26 = vld [vmem:[#allocation10 + $0x108] sm:$0xff] }
 0x4af   :  { %6603 = vrcp.f32 %v2291_v20  ;;  %v2641_v20 = vld [vmem:[#allocation10 + $0x100] sm:$0xff]  ;;  %v7933_v58 = vpack.c.bf16 %v2646_v2, %v2642_v26  ;;  %v2668_v26 = vld [vmem:[#allocation10 + $0x1d8] sm:$0xff] }
 0x4b0   :  { %v2672_v2 = vld [vmem:[#allocation10 + $0x1f8] sm:$0xff] }
 0x4b7   :  { %v6600_v22 = vpop.eup %6599 }
 0x4b8   :  { %v6602_v1 = vpop.eup %6601  ;;  %v2295_v7 = vmul.f32 %v6600_v22, %v6598_v47  ;;  %v2644_v47 = vld [vmem:[#allocation10 + $0x118] sm:$0xff] }
 0x4b9   :  { %v2294_v23 = vmul.f32 %v6602_v1, %v7766_v0  ;;  %v6604_v15 = vpop.eup %6603  ;;  %v2617_v0 = vld [vmem:[#allocation10 + $0x40] sm:$0xff]  ;;  %v2648_v22 = vld [vmem:[#allocation10 + $0x138] sm:$0xff]  ;;  %v7927_v1 = vpack.c.bf16 %v2637_v63, %v2633_v49  ;;  %v2659_v49 = vld [vmem:[#allocation10 + $0x190] sm:$0xff] }
 0x4ba   :  { %v7901_v35 = vpack.c.bf16 %v2621_v60, %v2617_v0  ;;  %v7935_v9 = vpack.c.bf16 %v2648_v22, %v2644_v47  ;;  %v2649_v0 = vld [vmem:[#allocation10 + $0x140] sm:$0xff]  ;;  %v2663_v63 = vld [vmem:[#allocation10 + $0x1b0] sm:$0xff]  ;;  %v7963_v47 = vpack.c.bf16 %v2661_v46, %v2657_v42  ;;  %v7989_v42 = vpack.c.bf16 %v2851_v54, %v2847_v21  ;;  %v2868_v21 = vld [vmem:[#allocation8 + $0xa8] sm:$0xff] }
 0x4bb   :  { %v7884_v53 = vadd.f32 %v2295_v7, %v2294_v23  ;;  %v7929_v7 = vpack.c.bf16 %v2639_v45, %v2635_v41  ;;  %v2645_v23 = vld [vmem:[#allocation10 + $0x120] sm:$0xff]  ;;  %v2666_v41 = vld [vmem:[#allocation10 + $0x1c8] sm:$0xff]  ;;  %v7965_v22 = vpack.c.bf16 %v2663_v63, %v2659_v49  ;;  %v2849_v46 = vld [vmem:[#allocation8 + $0x10] sm:$0xff] }
 0x4bc   :  { %v2653_v60 = vld [vmem:[#allocation10 + $0x160] sm:$0xff]  ;;  %v2670_v45 = vld [vmem:[#allocation10 + $0x1e8] sm:$0xff]  ;;  %v2853_v49 = vld [vmem:[#allocation8 + $0x30] sm:$0xff] }
 0x4bd   :  { %6605 = vtanh.f32 %v7884_v53  ;;  %v7951_v38 = vpack.c.bf16 %v2653_v60, %v2649_v0  ;;  %v2848_v0 = vld [vmem:[#allocation8 + $0x8] sm:$0xff]  ;;  %v7992_v63 = vpack.c.bf16 %v2853_v49, %v2849_v46  ;;  %v2866_v54 = vld [vmem:[#allocation8 + $0x98] sm:$0xff]  ;;  %v8009_v46 = vpack.c.bf16 %v2868_v21, %v2864_v12 }
 0x4be   :  { %v2852_v60 = vld [vmem:[#allocation8 + $0x28] sm:$0xff]  ;;  %v2870_v49 = vld [vmem:[#allocation8 + $0xb8] sm:$0xff] }
 0x4bf   :  { %v7985_v43 = vpack.c.bf16 %v2852_v60, %v2848_v0  ;;  %v2857_v0 = vld [vmem:[#allocation8 + $0x50] sm:$0xff]  ;;  %9219 = vst [vmem:[#allocation21_spill] sm:$0xff] %v8009_v46  ;;  %v2876_v12 = vld [vmem:[#allocation8 + $0xe8] sm:$0xff]  ;;  %v2874_v21 = vld [vmem:[#allocation8 + $0xd8] sm:$0xff] }
 0x4c0   :  { %v2861_v60 = vld [vmem:[#allocation8 + $0x70] sm:$0xff] }
 0x4c1   :  { %v8004_v6 = vpack.c.bf16 %v2861_v60, %v2857_v0  ;;  %v2872_v60 = vld [vmem:[#allocation8 + $0xc8] sm:$0xff] }
 0x4c3   :  { %9218 = vst [vmem:[#allocation20_spill] sm:$0xff] %v8004_v6 }
 0x4c7   :  { %v6606_v59 = vpop.eup %6605 }
 0x4c8   :  { %v7891_v27 = vmul.f32 %v6606_v59, %v6604_v15  ;;  %v7939_v15 = vpack.c.bf16 %v2645_v23, %v2641_v20  ;;  %v7941_v59 = vpack.c.bf16 %v2647_v17, %v2643_v14  ;;  %v2665_v20 = vld [vmem:[#allocation10 + $0x1c0] sm:$0xff]  ;;  %v7969_v23 = vpack.c.bf16 %v2670_v45, %v2666_v41  ;;  %v2860_v41 = vld [vmem:[#allocation8 + $0x68] sm:$0xff]  ;;  %v2858_v45 = vld [vmem:[#allocation8 + $0x58] sm:$0xff] }
 0x4c9   :  { %v7971_v14 = vpack.c.bf16 %v2672_v2, %v2668_v26  ;;  %v2669_v17 = vld [vmem:[#allocation10 + $0x1e0] sm:$0xff]  ;;  %v2862_v2 = vld [vmem:[#allocation8 + $0x78] sm:$0xff] }
 0x4ca   :  { %2495 = vmatmul.mubr.f32.vlgmr.msra.gmra.mrb[22].mxu0 %v7891_v27  ;;  %2566 = vmatmul.mubr.f32.vlgmr.msra.gmra.mrb[22].mxu1 %v7891_v27  ;;  %v7975_v34 = vpack.c.bf16 %v2669_v17, %v2665_v20  ;;  %v2855_v20 = vld [vmem:[#allocation8 + $0x40] sm:$0xff]  ;;  %v7999_v3 = vpack.c.bf16 %v2862_v2, %v2858_v45  ;;  %v8011_v45 = vpack.c.bf16 %v2870_v49, %v2866_v54  ;;  %v2878_v54 = vld [vmem:[#allocation8 + $0xf8] sm:$0xff] }
 0x4cb   :  { %5657 = vmatpush1.bf16.msra.mxu0 %v7887_v62  ;;  %5689 = vmatpush1.bf16.msra.mxu1 %v7889_v57  ;;  %v2859_v17 = vld [vmem:[#allocation8 + $0x60] sm:$0xff] }
 0x4cc   :  { %5659 = vmatprep.subr.bf16.mxu0 %v7893_v32  ;;  %5691 = vmatprep.subr.bf16.mxu1 %v7895_v24  ;;  %9216 = vst [vmem:[#allocation18_spill] sm:$0xff] %v7999_v3  ;;  %v8001_v11 = vpack.c.bf16 %v2859_v17, %v2855_v20  ;;  %9220 = vst [vmem:[#allocation22_spill] sm:$0xff] %v8011_v45  ;;  %v2865_v20 = vld [vmem:[#allocation8 + $0x90] sm:$0xff]  ;;  %v2871_v49 = vld [vmem:[#allocation8 + $0xc0] sm:$0xff] }
 0x4cd   :  { %2737 = vmatprep.mubr.f32.mxu0 %v9043_v16  ;;  %2808 = vmatprep.mubr.f32.mxu1 %v9043_v16  ;;  %v2869_v17 = vld [vmem:[#allocation8 + $0xb0] sm:$0xff] }
 0x4ce   :  { %9217 = vst [vmem:[#allocation19_spill] sm:$0xff] %v8001_v11  ;;  %v8016_v0 = vpack.c.bf16 %v2869_v17, %v2865_v20  ;;  %v2873_v20 = vld [vmem:[#allocation8 + $0xd0] sm:$0xff] }
 0x4cf   :  { %5661 = vmatpush1.bf16.msra.mxu0 %v7901_v35  ;;  %5693 = vmatpush1.bf16.msra.mxu1 %v7903_v50  ;;  %v2877_v17 = vld [vmem:[#allocation8 + $0xf0] sm:$0xff] }
 0x4d0   :  { %5663 = vmatprep.subr.bf16.mxu0 %v7907_v5  ;;  %5695 = vmatprep.subr.bf16.mxu1 %v7909_v33  ;;  %9222 = vst [vmem:[#allocation24_spill] sm:$0xff] %v8016_v0 }
 0x4d3   :  { %5665 = vmatpush1.bf16.msra.mxu0 %v7915_v4  ;;  %5697 = vmatpush1.bf16.msra.mxu1 %v7917_v51 }
 0x4d4   :  { %5667 = vmatprep.subr.bf16.mxu0 %v7921_v36  ;;  %5699 = vmatprep.subr.bf16.mxu1 %v7923_v25 }
 0x4d7   :  { %5669 = vmatpush1.bf16.msra.mxu0 %v7927_v1  ;;  %5701 = vmatpush1.bf16.msra.mxu1 %v7929_v7 }
 0x4d8   :  { %5671 = vmatprep.subr.bf16.mxu0 %v7933_v58  ;;  %5703 = vmatprep.subr.bf16.mxu1 %v7935_v9 }
 0x4db   :  { %5673 = vmatpush1.bf16.msra.mxu0 %v7939_v15  ;;  %5705 = vmatpush1.bf16.msra.mxu1 %v7941_v59 }
 0x4dc   :  { %5675 = vmatprep.subr.bf16.mxu0 %v7945_v31  ;;  %5707 = vmatprep.subr.bf16.mxu1 %v7947_v48 }
 0x4df   :  { %5677 = vmatpush1.bf16.msra.mxu0 %v7951_v38  ;;  %5709 = vmatpush1.bf16.msra.mxu1 %v7953_v28 }
 0x4e0   :  { %5679 = vmatprep.subr.bf16.mxu0 %v7957_v52  ;;  %5711 = vmatprep.subr.bf16.mxu1 %v7959_v55 }
 0x4e3   :  { %5681 = vmatpush1.bf16.msra.mxu0 %v7963_v47  ;;  %5713 = vmatpush1.bf16.msra.mxu1 %v7965_v22 }
 0x4e4   :  { %5683 = vmatprep.subr.bf16.mxu0 %v7969_v23  ;;  %5715 = vmatprep.subr.bf16.mxu1 %v7971_v14 }
 0x4e7   :  { %5685 = vmatpush1.bf16.msra.mxu0 %v7975_v34  ;;  %5717 = vmatpush1.bf16.msra.mxu1 %v7977_v37 }
 0x4e8   :  { %5719 = vmatprep.subr.bf16.mxu0 %v7985_v43  ;;  %5783 = vmatprep.subr.bf16.mxu1 %v7987_v40 }
 0x4ea   :  { %2738 = vmatmul.mubr.f32.vlgmr.msra.gmra.mrb[8].mxu0 %v7891_v27  ;;  %2809 = vmatmul.mubr.f32.vlgmr.msra.gmra.mrb[8].mxu1 %v7891_v27  ;;  %v2856_v27 = vld [vmem:[#allocation8 + $0x48] sm:$0xff] }
 0x4eb   :  { %5721 = vmatpush1.bf16.msra.mxu0 %v7989_v42  ;;  %5785 = vmatpush1.bf16.msra.mxu1 %v7992_v63  ;;  %v7997_v26 = vpack.c.bf16 %v2860_v41, %v2856_v27  ;;  %v2863_v27 = vld [vmem:[#allocation8 + $0x80] sm:$0xff] }
 0x4ec   :  { %5787 = vmatprep.subr.bf16.mxu1 %v7999_v3  ;;  %v2867_v41 = vld [vmem:[#allocation8 + $0xa0] sm:$0xff]  ;;  %v2962_v3 = vld [vmem:[#allocation8 + $0x398] sm:$0xff] }
 0x4ed   :  { %9215 = vst [vmem:[#allocation17_spill] sm:$0xff] %v7997_v26  ;;  %5723 = vmatprep.subr.bf16.mxu0 %v7997_v26  ;;  %v8013_v2 = vpack.c.bf16 %v2867_v41, %v2863_v27  ;;  %v2875_v27 = vld [vmem:[#allocation8 + $0xe0] sm:$0xff]  ;;  %v8023_v41 = vpack.c.bf16 %v2878_v54, %v2874_v21  ;;  %v2886_v21 = vld [vmem:[#allocation8 + $0x138] sm:$0xff] }
 0x4ee   :  { %v2879_v54 = vld [vmem:[#allocation8 + $0x100] sm:$0xff]  ;;  %v2966_v26 = vld [vmem:[#allocation8 + $0x3b8] sm:$0xff] }
 0x4ef   :  { %5725 = vmatpush1.bf16.msra.mxu0 %v8001_v11  ;;  %5789 = vmatpush1.bf16.msra.mxu1 %v8004_v6  ;;  %9221 = vst [vmem:[#allocation23_spill] sm:$0xff] %v8013_v2  ;;  %v8021_v6 = vpack.c.bf16 %v2876_v12, %v2872_v60  ;;  %9224 = vst [vmem:[#allocation26_spill] sm:$0xff] %v8023_v41  ;;  %v8025_v11 = vpack.c.bf16 %v2875_v27, %v2871_v49  ;;  %v2884_v60 = vld [vmem:[#allocation8 + $0x128] sm:$0xff]  ;;  %v2882_v12 = vld [vmem:[#allocation8 + $0x118] sm:$0xff] }
 0x4f0   :  { %5727 = vmatprep.subr.bf16.mxu0 %v8009_v46  ;;  %5791 = vmatprep.subr.bf16.mxu1 %v8011_v45  ;;  %v8028_v45 = vpack.c.bf16 %v2877_v17, %v2873_v20  ;;  %v2883_v49 = vld [vmem:[#allocation8 + $0x120] sm:$0xff]  ;;  %v8035_v27 = vpack.c.bf16 %v2886_v21, %v2882_v12  ;;  %v2881_v20 = vld [vmem:[#allocation8 + $0x110] sm:$0xff]  ;;  %v2894_v12 = vld [vmem:[#allocation8 + $0x178] sm:$0xff] }
 0x4f1   :  { %9223 = vst [vmem:[#allocation25_spill] sm:$0xff] %v8021_v6  ;;  %9225 = vst [vmem:[#allocation27_spill] sm:$0xff] %v8025_v11  ;;  %v8037_v46 = vpack.c.bf16 %v2883_v49, %v2879_v54  ;;  %v2885_v17 = vld [vmem:[#allocation8 + $0x130] sm:$0xff]  ;;  %v2887_v21 = vld [vmem:[#allocation8 + $0x140] sm:$0xff] }
 0x4f2   :  { %9226 = vst [vmem:[#allocation28_spill] sm:$0xff] %v8028_v45  ;;  %9228 = vst [vmem:[#allocation30_spill] sm:$0xff] %v8035_v27  ;;  %v2891_v54 = vld [vmem:[#allocation8 + $0x160] sm:$0xff] }
 0x4f3   :  { %5729 = vmatpush1.bf16.msra.mxu0 %v8013_v2  ;;  %5793 = vmatpush1.bf16.msra.mxu1 %v8016_v0  ;;  %v2880_v0 = vld [vmem:[#allocation8 + $0x108] sm:$0xff]  ;;  %9229 = vst [vmem:[#allocation31_spill] sm:$0xff] %v8037_v46 }
 0x4f4   :  { %5731 = vmatprep.subr.bf16.mxu0 %v8021_v6  ;;  %5795 = vmatprep.subr.bf16.mxu1 %v8023_v41  ;;  %v8033_v2 = vpack.c.bf16 %v2884_v60, %v2880_v0  ;;  %v8040_v41 = vpack.c.bf16 %v2885_v17, %v2881_v20  ;;  %v2888_v0 = vld [vmem:[#allocation8 + $0x148] sm:$0xff]  ;;  %v8049_v6 = vpack.c.bf16 %v2891_v54, %v2887_v21  ;;  %v2889_v20 = vld [vmem:[#allocation8 + $0x150] sm:$0xff]  ;;  %v2899_v21 = vld [vmem:[#allocation8 + $0x1a0] sm:$0xff] }
 0x4f5   :  { %v2892_v60 = vld [vmem:[#allocation8 + $0x168] sm:$0xff]  ;;  %v2893_v17 = vld [vmem:[#allocation8 + $0x170] sm:$0xff] }
 0x4f6   :  { %9227 = vst [vmem:[#allocation29_spill] sm:$0xff] %v8033_v2  ;;  %9230 = vst [vmem:[#allocation32_spill] sm:$0xff] %v8040_v41 }
 0x4f7   :  { %5733 = vmatpush1.bf16.msra.mxu0 %v8025_v11  ;;  %5797 = vmatpush1.bf16.msra.mxu1 %v8028_v45  ;;  %v2890_v45 = vld [vmem:[#allocation8 + $0x158] sm:$0xff]  ;;  %v8045_v11 = vpack.c.bf16 %v2892_v60, %v2888_v0  ;;  %9233 = vst [vmem:[#allocation35_spill] sm:$0xff] %v8049_v6  ;;  %v2900_v0 = vld [vmem:[#allocation8 + $0x1a8] sm:$0xff] }
 0x4f8   :  { %5735 = vmatprep.subr.bf16.mxu0 %v8033_v2  ;;  %5799 = vmatprep.subr.bf16.mxu1 %v8035_v27  ;;  %v8047_v49 = vpack.c.bf16 %v2894_v12, %v2890_v45  ;;  %v8052_v27 = vpack.c.bf16 %v2893_v17, %v2889_v20  ;;  %v2898_v60 = vld [vmem:[#allocation8 + $0x198] sm:$0xff]  ;;  %v2895_v12 = vld [vmem:[#allocation8 + $0x180] sm:$0xff]  ;;  %v2897_v20 = vld [vmem:[#allocation8 + $0x190] sm:$0xff] }
 0x4f9   :  { %9231 = vst [vmem:[#allocation33_spill] sm:$0xff] %v8045_v11  ;;  %v2902_v45 = vld [vmem:[#allocation8 + $0x1b8] sm:$0xff]  ;;  %v8061_v2 = vpack.c.bf16 %v2899_v21, %v2895_v12  ;;  %v2901_v17 = vld [vmem:[#allocation8 + $0x1b0] sm:$0xff]  ;;  %v2907_v12 = vld [vmem:[#allocation8 + $0x1e0] sm:$0xff] }
 0x4fa   :  { %9232 = vst [vmem:[#allocation34_spill] sm:$0xff] %v8047_v49  ;;  %9234 = vst [vmem:[#allocation36_spill] sm:$0xff] %v8052_v27  ;;  %v8059_v54 = vpack.c.bf16 %v2902_v45, %v2898_v60  ;;  %v2910_v60 = vld [vmem:[#allocation8 + $0x1f8] sm:$0xff]  ;;  %v2903_v45 = vld [vmem:[#allocation8 + $0x1c0] sm:$0xff] }
 0x4fb   :  { %5737 = vmatpush1.bf16.msra.mxu0 %v8037_v46  ;;  %5801 = vmatpush1.bf16.msra.mxu1 %v8040_v41  ;;  %v2896_v41 = vld [vmem:[#allocation8 + $0x188] sm:$0xff]  ;;  %9237 = vst [vmem:[#allocation39_spill] sm:$0xff] %v8061_v2 }
 0x4fc   :  { %5739 = vmatprep.subr.bf16.mxu0 %v8045_v11  ;;  %5803 = vmatprep.subr.bf16.mxu1 %v8047_v49  ;;  %v8057_v46 = vpack.c.bf16 %v2900_v0, %v2896_v41  ;;  %9236 = vst [vmem:[#allocation38_spill] sm:$0xff] %v8059_v54  ;;  %v8064_v49 = vpack.c.bf16 %v2901_v17, %v2897_v20  ;;  %v2908_v41 = vld [vmem:[#allocation8 + $0x1e8] sm:$0xff]  ;;  %v2906_v0 = vld [vmem:[#allocation8 + $0x1d8] sm:$0xff]  ;;  %v2905_v20 = vld [vmem:[#allocation8 + $0x1d0] sm:$0xff] }
 0x4fd   :  { %v8071_v21 = vpack.c.bf16 %v2910_v60, %v2906_v0  ;;  %v8073_v11 = vpack.c.bf16 %v2907_v12, %v2903_v45  ;;  %v2909_v17 = vld [vmem:[#allocation8 + $0x1f0] sm:$0xff]  ;;  %v2918_v0 = vld [vmem:[#allocation8 + $0x238] sm:$0xff]  ;;  %v2911_v60 = vld [vmem:[#allocation8 + $0x200] sm:$0xff] }
 0x4fe   :  { %9235 = vst [vmem:[#allocation37_spill] sm:$0xff] %v8057_v46  ;;  %9238 = vst [vmem:[#allocation40_spill] sm:$0xff] %v8064_v49  ;;  %v2915_v45 = vld [vmem:[#allocation8 + $0x220] sm:$0xff] }
 0x4ff   :  { %5741 = vmatpush1.bf16.msra.mxu0 %v8049_v6  ;;  %5805 = vmatpush1.bf16.msra.mxu1 %v8052_v27  ;;  %v2904_v27 = vld [vmem:[#allocation8 + $0x1c8] sm:$0xff]  ;;  %9240 = vst [vmem:[#allocation42_spill] sm:$0xff] %v8071_v21  ;;  %9241 = vst [vmem:[#allocation43_spill] sm:$0xff] %v8073_v11 }
 0x500   :  { %5743 = vmatprep.subr.bf16.mxu0 %v8057_v46  ;;  %5807 = vmatprep.subr.bf16.mxu1 %v8059_v54  ;;  %v8069_v6 = vpack.c.bf16 %v2908_v41, %v2904_v27  ;;  %v8076_v54 = vpack.c.bf16 %v2909_v17, %v2905_v20  ;;  %v2916_v27 = vld [vmem:[#allocation8 + $0x228] sm:$0xff]  ;;  %v2914_v41 = vld [vmem:[#allocation8 + $0x218] sm:$0xff]  ;;  %v8085_v46 = vpack.c.bf16 %v2915_v45, %v2911_v60  ;;  %v2913_v20 = vld [vmem:[#allocation8 + $0x210] sm:$0xff] }
 0x501   :  { %v8083_v12 = vpack.c.bf16 %v2918_v0, %v2914_v41  ;;  %v2917_v17 = vld [vmem:[#allocation8 + $0x230] sm:$0xff]  ;;  %v2926_v41 = vld [vmem:[#allocation8 + $0x278] sm:$0xff]  ;;  %v2919_v0 = vld [vmem:[#allocation8 + $0x240] sm:$0xff] }
 0x502   :  { %9239 = vst [vmem:[#allocation41_spill] sm:$0xff] %v8069_v6  ;;  %9242 = vst [vmem:[#allocation44_spill] sm:$0xff] %v8076_v54  ;;  %v2923_v60 = vld [vmem:[#allocation8 + $0x260] sm:$0xff] }
 0x503   :  { %5745 = vmatpush1.bf16.msra.mxu0 %v8061_v2  ;;  %5809 = vmatpush1.bf16.msra.mxu1 %v8064_v49  ;;  %v2912_v49 = vld [vmem:[#allocation8 + $0x208] sm:$0xff]  ;;  %9244 = vst [vmem:[#allocation46_spill] sm:$0xff] %v8083_v12  ;;  %9245 = vst [vmem:[#allocation47_spill] sm:$0xff] %v8085_v46 }
 0x504   :  { %5747 = vmatprep.subr.bf16.mxu0 %v8069_v6  ;;  %5811 = vmatprep.subr.bf16.mxu1 %v8071_v21  ;;  %v8081_v2 = vpack.c.bf16 %v2916_v27, %v2912_v49  ;;  %v8088_v21 = vpack.c.bf16 %v2917_v17, %v2913_v20  ;;  %v2924_v49 = vld [vmem:[#allocation8 + $0x268] sm:$0xff]  ;;  %v2922_v27 = vld [vmem:[#allocation8 + $0x258] sm:$0xff]  ;;  %v8097_v6 = vpack.c.bf16 %v2923_v60, %v2919_v0  ;;  %v2921_v20 = vld [vmem:[#allocation8 + $0x250] sm:$0xff] }
 0x505   :  { %v8095_v45 = vpack.c.bf16 %v2926_v41, %v2922_v27  ;;  %v2925_v17 = vld [vmem:[#allocation8 + $0x270] sm:$0xff]  ;;  %v2934_v27 = vld [vmem:[#allocation8 + $0x2b8] sm:$0xff]  ;;  %v2927_v41 = vld [vmem:[#allocation8 + $0x280] sm:$0xff] }
 0x506   :  { %9243 = vst [vmem:[#allocation45_spill] sm:$0xff] %v8081_v2  ;;  %9246 = vst [vmem:[#allocation48_spill] sm:$0xff] %v8088_v21  ;;  %v2931_v0 = vld [vmem:[#allocation8 + $0x2a0] sm:$0xff] }
 0x507   :  { %5749 = vmatpush1.bf16.msra.mxu0 %v8073_v11  ;;  %5813 = vmatpush1.bf16.msra.mxu1 %v8076_v54  ;;  %v2920_v54 = vld [vmem:[#allocation8 + $0x248] sm:$0xff]  ;;  %9248 = vst [vmem:[#allocation50_spill] sm:$0xff] %v8095_v45  ;;  %9249 = vst [vmem:[#allocation51_spill] sm:$0xff] %v8097_v6 }
 0x508   :  { %5751 = vmatprep.subr.bf16.mxu0 %v8081_v2  ;;  %5815 = vmatprep.subr.bf16.mxu1 %v8083_v12  ;;  %v8093_v11 = vpack.c.bf16 %v2924_v49, %v2920_v54  ;;  %v8100_v12 = vpack.c.bf16 %v2925_v17, %v2921_v20  ;;  %v2932_v54 = vld [vmem:[#allocation8 + $0x2a8] sm:$0xff]  ;;  %v2930_v49 = vld [vmem:[#allocation8 + $0x298] sm:$0xff]  ;;  %v8109_v2 = vpack.c.bf16 %v2931_v0, %v2927_v41  ;;  %v2929_v20 = vld [vmem:[#allocation8 + $0x290] sm:$0xff] }
 0x509   :  { %v8107_v60 = vpack.c.bf16 %v2934_v27, %v2930_v49  ;;  %v2933_v17 = vld [vmem:[#allocation8 + $0x2b0] sm:$0xff]  ;;  %v2942_v49 = vld [vmem:[#allocation8 + $0x2f8] sm:$0xff]  ;;  %v2935_v27 = vld [vmem:[#allocation8 + $0x2c0] sm:$0xff] }
 0x50a   :  { %9247 = vst [vmem:[#allocation49_spill] sm:$0xff] %v8093_v11  ;;  %9250 = vst [vmem:[#allocation52_spill] sm:$0xff] %v8100_v12  ;;  %v2939_v41 = vld [vmem:[#allocation8 + $0x2e0] sm:$0xff] }
 0x50b   :  { %5753 = vmatpush1.bf16.msra.mxu0 %v8085_v46  ;;  %5817 = vmatpush1.bf16.msra.mxu1 %v8088_v21  ;;  %v2928_v21 = vld [vmem:[#allocation8 + $0x288] sm:$0xff]  ;;  %9252 = vst [vmem:[#allocation54_spill] sm:$0xff] %v8107_v60  ;;  %9253 = vst [vmem:[#allocation55_spill] sm:$0xff] %v8109_v2 }
 0x50c   :  { %5755 = vmatprep.subr.bf16.mxu0 %v8093_v11  ;;  %5819 = vmatprep.subr.bf16.mxu1 %v8095_v45  ;;  %v8105_v46 = vpack.c.bf16 %v2932_v54, %v2928_v21  ;;  %v8112_v45 = vpack.c.bf16 %v2933_v17, %v2929_v20  ;;  %v2940_v21 = vld [vmem:[#allocation8 + $0x2e8] sm:$0xff]  ;;  %v2938_v54 = vld [vmem:[#allocation8 + $0x2d8] sm:$0xff]  ;;  %v8121_v11 = vpack.c.bf16 %v2939_v41, %v2935_v27  ;;  %v2937_v20 = vld [vmem:[#allocation8 + $0x2d0] sm:$0xff] }
 0x50d   :  { %v8119_v0 = vpack.c.bf16 %v2942_v49, %v2938_v54  ;;  %v2941_v17 = vld [vmem:[#allocation8 + $0x2f0] sm:$0xff]  ;;  %v2950_v54 = vld [vmem:[#allocation8 + $0x338] sm:$0xff]  ;;  %v2943_v49 = vld [vmem:[#allocation8 + $0x300] sm:$0xff] }
 0x50e   :  { %9251 = vst [vmem:[#allocation53_spill] sm:$0xff] %v8105_v46  ;;  %9254 = vst [vmem:[#allocation56_spill] sm:$0xff] %v8112_v45  ;;  %v2947_v27 = vld [vmem:[#allocation8 + $0x320] sm:$0xff] }
 0x50f   :  { %5757 = vmatpush1.bf16.msra.mxu0 %v8097_v6  ;;  %5821 = vmatpush1.bf16.msra.mxu1 %v8100_v12  ;;  %v2936_v12 = vld [vmem:[#allocation8 + $0x2c8] sm:$0xff]  ;;  %9256 = vst [vmem:[#allocation58_spill] sm:$0xff] %v8119_v0  ;;  %9257 = vst [vmem:[#allocation59_spill] sm:$0xff] %v8121_v11 }
 0x510   :  { %5759 = vmatprep.subr.bf16.mxu0 %v8105_v46  ;;  %5823 = vmatprep.subr.bf16.mxu1 %v8107_v60  ;;  %v8117_v6 = vpack.c.bf16 %v2940_v21, %v2936_v12  ;;  %v8124_v60 = vpack.c.bf16 %v2941_v17, %v2937_v20  ;;  %v2948_v12 = vld [vmem:[#allocation8 + $0x328] sm:$0xff]  ;;  %v2946_v21 = vld [vmem:[#allocation8 + $0x318] sm:$0xff]  ;;  %v8133_v46 = vpack.c.bf16 %v2947_v27, %v2943_v49  ;;  %v2945_v20 = vld [vmem:[#allocation8 + $0x310] sm:$0xff] }
 0x511   :  { %v8131_v41 = vpack.c.bf16 %v2950_v54, %v2946_v21  ;;  %v2949_v17 = vld [vmem:[#allocation8 + $0x330] sm:$0xff]  ;;  %v2958_v21 = vld [vmem:[#allocation8 + $0x378] sm:$0xff]  ;;  %v2951_v54 = vld [vmem:[#allocation8 + $0x340] sm:$0xff] }
 0x512   :  { %9255 = vst [vmem:[#allocation57_spill] sm:$0xff] %v8117_v6  ;;  %9258 = vst [vmem:[#allocation60_spill] sm:$0xff] %v8124_v60  ;;  %v2955_v49 = vld [vmem:[#allocation8 + $0x360] sm:$0xff] }
 0x513   :  { %5761 = vmatpush1.bf16.msra.mxu0 %v8109_v2  ;;  %5825 = vmatpush1.bf16.msra.mxu1 %v8112_v45  ;;  %v2944_v45 = vld [vmem:[#allocation8 + $0x308] sm:$0xff]  ;;  %9260 = vst [vmem:[#allocation62_spill] sm:$0xff] %v8131_v41  ;;  %9261 = vst [vmem:[#allocation63_spill] sm:$0xff] %v8133_v46 }
 0x514   :  { %5763 = vmatprep.subr.bf16.mxu0 %v8117_v6  ;;  %5827 = vmatprep.subr.bf16.mxu1 %v8119_v0  ;;  %v8129_v2 = vpack.c.bf16 %v2948_v12, %v2944_v45  ;;  %v8136_v0 = vpack.c.bf16 %v2949_v17, %v2945_v20  ;;  %v2956_v45 = vld [vmem:[#allocation8 + $0x368] sm:$0xff]  ;;  %v2954_v12 = vld [vmem:[#allocation8 + $0x358] sm:$0xff]  ;;  %v8145_v6 = vpack.c.bf16 %v2955_v49, %v2951_v54  ;;  %v2953_v20 = vld [vmem:[#allocation8 + $0x350] sm:$0xff] }
 0x515   :  { %v8143_v27 = vpack.c.bf16 %v2958_v21, %v2954_v12  ;;  %v2957_v17 = vld [vmem:[#allocation8 + $0x370] sm:$0xff]  ;;  %v2959_v12 = vld [vmem:[#allocation8 + $0x380] sm:$0xff] }
 0x516   :  { %9259 = vst [vmem:[#allocation61_spill] sm:$0xff] %v8129_v2  ;;  %9262 = vst [vmem:[#allocation64_spill] sm:$0xff] %v8136_v0  ;;  %v2963_v21 = vld [vmem:[#allocation8 + $0x3a0] sm:$0xff]  ;;  %v2961_v54 = vld [vmem:[#allocation8 + $0x390] sm:$0xff] }
 0x517   :  { %5765 = vmatpush1.bf16.msra.mxu0 %v8121_v11  ;;  %5829 = vmatpush1.bf16.msra.mxu1 %v8124_v60  ;;  %v2952_v60 = vld [vmem:[#allocation8 + $0x348] sm:$0xff]  ;;  %9264 = vst [vmem:[#allocation66_spill] sm:$0xff] %v8143_v27  ;;  %9265 = vst [vmem:[#allocation67_spill] sm:$0xff] %v8145_v6  ;;  %v8157_v49 = vpack.c.bf16 %v2963_v21, %v2959_v12  ;;  %v2973_v12 = vld [vmem:[#allocation8 + $0x3f0] sm:$0xff] }
 0x518   :  { %5767 = vmatprep.subr.bf16.mxu0 %v8129_v2  ;;  %5831 = vmatprep.subr.bf16.mxu1 %v8131_v41  ;;  %v8141_v11 = vpack.c.bf16 %v2956_v45, %v2952_v60  ;;  %v2960_v2 = vld [vmem:[#allocation8 + $0x388] sm:$0xff]  ;;  %v8154_v45 = vpack.c.bf16 %v2966_v26, %v2962_v3  ;;  %v2970_v26 = vld [vmem:[#allocation8 + $0x3d8] sm:$0xff] }
 0x519   :  { %v2964_v41 = vld [vmem:[#allocation8 + $0x3a8] sm:$0xff]  ;;  %v2974_v3 = vld [vmem:[#allocation8 + $0x3f8] sm:$0xff] }
 0x51a   :  { %9263 = vst [vmem:[#allocation65_spill] sm:$0xff] %v8141_v11  ;;  %v8152_v60 = vpack.c.bf16 %v2964_v41, %v2960_v2  ;;  %v2967_v41 = vld [vmem:[#allocation8 + $0x3c0] sm:$0xff] }
 0x51b   :  { %5769 = vmatpush1.bf16.msra.mxu0 %v8133_v46  ;;  %5833 = vmatpush1.bf16.msra.mxu1 %v8136_v0  ;;  %v8148_v46 = vpack.c.bf16 %v2957_v17, %v2953_v20  ;;  %v2965_v20 = vld [vmem:[#allocation8 + $0x3b0] sm:$0xff]  ;;  %v2968_v17 = vld [vmem:[#allocation8 + $0x3c8] sm:$0xff]  ;;  %v2971_v0 = vld [vmem:[#allocation8 + $0x3e0] sm:$0xff] }
 0x51c   :  { %5771 = vmatprep.subr.bf16.mxu0 %v8141_v11  ;;  %5835 = vmatprep.subr.bf16.mxu1 %v8143_v27  ;;  %v2972_v11 = vld [vmem:[#allocation8 + $0x3e8] sm:$0xff]  ;;  %v8161_v27 = vpack.c.bf16 %v2965_v20, %v2961_v54  ;;  %v8168_v21 = vpack.c.bf16 %v2971_v0, %v2967_v41 }
 0x51d   :  { %9266 = vst [vmem:[#allocation68_spill] sm:$0xff] %v8148_v46  ;;  %v8163_v2 = vpack.c.bf16 %v2972_v11, %v2968_v17 }
 0x51e   :  { %9269 = vst [vmem:[#allocation71_spill] sm:$0xff] %v8168_v21 }
 0x51f   :  { %5773 = vmatpush1.bf16.msra.mxu0 %v8145_v6  ;;  %5837 = vmatpush1.bf16.msra.mxu1 %v8148_v46  ;;  %9267 = vst [vmem:[#allocation69_spill] sm:$0xff] %v8163_v2  ;;  %v8165_v6 = vpack.c.bf16 %v2974_v3, %v2970_v26  ;;  %v2969_v46 = vld [vmem:[#allocation8 + $0x3d0] sm:$0xff] }
 0x520   :  { %5775 = vmatprep.subr.bf16.mxu0 %v8152_v60  ;;  %5839 = vmatprep.subr.bf16.mxu1 %v8154_v45  ;;  %v8172_v54 = vpack.c.bf16 %v2973_v12, %v2969_v46 }
 0x521   :  { %9268 = vst [vmem:[#allocation70_spill] sm:$0xff] %v8165_v6 }
 0x522   :  { %9270 = vst [vmem:[#allocation72_spill] sm:$0xff] %v8172_v54 }
 0x523   :  { %5777 = vmatpush1.bf16.msra.mxu0 %v8157_v49  ;;  %5841 = vmatpush1.bf16.msra.mxu1 %v8161_v27 }
 0x524   :  { %5779 = vmatprep.subr.bf16.mxu0 %v8163_v2  ;;  %5843 = vmatprep.subr.bf16.mxu1 %v8165_v6 }
 0x527   :  { %5781 = vmatpush1.bf16.msra.mxu0 %v8168_v21  ;;  %5845 = vmatpush1.bf16.msra.mxu1 %v8172_v54 }
 0x528   :  { %5847 = vmatprep.subr.bf16.mxu0 %v7865_v19  ;;  %5879 = vmatprep.subr.bf16.mxu1 %v7867_v8 }
 0x59d   :  { %v2496_v11 = vpop.f32.mrb[22].mxu0  ;;  %v2567_v20 = vpop.f32.mrb[22].mxu1 }
 0x59e   :  { %v2497_v0 = vadd.f32 %v2496_v11, %v9213_v18  ;;  %v2498_v17 = vpop.f32.mrb[23].mxu0  ;;  %v2569_v26 = vpop.f32.mrb[23].mxu1  ;;  %v2568_v54 = vadd.f32 %v2567_v20, %v7447_v10 }
 0x59f   :  { %v2499_v3 = vadd.f32 %v2498_v17, %v7436_v29  ;;  %v2570_v12 = vadd.f32 %v2569_v26, %v9214_v61 }
 0x5a0   :  { %v4843_v46 = vmul.f32 -1.442695, %v2497_v0 }
 0x5a1   :  { %v4844_v41 = vmul.f32 -1.442695, %v2499_v3  ;;  %v4845_v21 = vmul.f32 -1.442695, %v2570_v12 }
 0x5a2   :  { %6607 = vpow2.f32 %v4843_v46 }
 0x5a3   :  { %6609 = vpow2.f32 %v4844_v41 }
 0x5a4   :  { %6611 = vpow2.f32 %v4845_v21 }
 0x5a5   :  { %6613 = vtanh.f32 %v2568_v54 }
 0x5ac   :  { %v6608_v19 = vpop.eup %6607 }
 0x5ad   :  { %v6610_v6 = vpop.eup %6609  ;;  %v2576_v8 = vadd.f32 1.0, %v6608_v19 }
 0x5ae   :  { %v2582_v2 = vadd.f32 1.0, %v6610_v6  ;;  %v6612_v11 = vpop.eup %6611 }
 0x5af   :  { %6615 = vrcp.f32 %v2576_v8  ;;  %v6614_v18 = vpop.eup %6613  ;;  %v2589_v46 = vadd.f32 1.0, %v6612_v11 }
 0x5b0   :  { %6617 = vrcp.f32 %v2582_v2 }
 0x5b1   :  { %6619 = vrcp.f32 %v2589_v46 }
 0x5b9   :  { %v6616_v17 = vpop.eup %6615 }
 0x5ba   :  { %v6618_v0 = vpop.eup %6617  ;;  %v2593_v3 = vmul.f32 %v6616_v17, %v6614_v18 }
 0x5bb   :  { %v2592_v41 = vmul.f32 %v6618_v0, %v7876_v44  ;;  %v6620_v44 = vpop.eup %6619 }
 0x5bd   :  { %v2739_v26 = vpop.f32.mrb[8].mxu0  ;;  %v2810_v12 = vpop.f32.mrb[8].mxu1  ;;  %v8184_v61 = vadd.f32 %v2593_v3, %v2592_v41 }
 0x5be   :  { %v6430_v20 = vadd.f32 %v2739_v26, %v9098_v13  ;;  %v2741_v21 = vpop.f32.mrb[9].mxu0  ;;  %v2812_v54 = vpop.f32.mrb[9].mxu1  ;;  %v6446_v17 = vadd.f32 %v2810_v12, %v7319_v30 }
 0x5bf   :  { %v6431_v6 = vadd.f32 %v2741_v21, %v9099_v39  ;;  %6621 = vtanh.f32 %v8184_v61  ;;  %v6447_v18 = vadd.f32 %v2812_v54, %v9100_v56 }
 0x5c0   :  { %v4846_v2 = vmul.f32 -1.442695, %v6430_v20 }
 0x5c1   :  { %v4847_v19 = vmul.f32 -1.442695, %v6431_v6  ;;  %v4848_v11 = vmul.f32 -1.442695, %v6447_v18 }
 0x5c2   :  { %6623 = vpow2.f32 %v4846_v2 }
 0x5c3   :  { %6625 = vpow2.f32 %v4847_v19 }
 0x5c4   :  { %6627 = vpow2.f32 %v4848_v11 }
 0x5c5   :  { %6629 = vtanh.f32 %v6446_v17  ;;  %v9306_v17 = vld [vmem:[#allocation52_spill] sm:$0xff] }
 0x5c9   :  { %v6622_v8 = vpop.eup %6621 }
 0x5ca   :  { %v2596_v0 = vmul.f32 %v6622_v8, %v6620_v44 }
 0x5cc   :  { %v6624_v3 = vpop.eup %6623  ;;  %2600 = vst [vmem:[#allocation11 + $0x18] sm:$0xff] %v2596_v0  ;;  %3039 = vmatprep.mubr.f32.mxu0 %v2596_v0  ;;  %3110 = vmatprep.mubr.f32.mxu1 %v2596_v0  ;;  %v9307_v0 = vld [vmem:[#allocation53_spill] sm:$0xff] }
 0x5cd   :  { %v6626_v46 = vpop.eup %6625  ;;  %v2823_v41 = vadd.f32 1.0, %v6624_v3  ;;  %v9308_v3 = vld [vmem:[#allocation54_spill] sm:$0xff] }
 0x5ce   :  { %v2829_v26 = vadd.f32 1.0, %v6626_v46  ;;  %v6628_v20 = vpop.eup %6627  ;;  %v9309_v46 = vld [vmem:[#allocation55_spill] sm:$0xff] }
 0x5cf   :  { %6631 = vrcp.f32 %v2823_v41  ;;  %v6630_v21 = vpop.eup %6629  ;;  %v2836_v19 = vadd.f32 1.0, %v6628_v20  ;;  %v9310_v41 = vld [vmem:[#allocation56_spill] sm:$0xff]  ;;  %v9312_v20 = vld [vmem:[#allocation58_spill] sm:$0xff] }
 0x5d0   :  { %6633 = vrcp.f32 %v2829_v26  ;;  %v9311_v26 = vld [vmem:[#allocation57_spill] sm:$0xff] }
 0x5d1   :  { %6635 = vrcp.f32 %v2836_v19  ;;  %v9317_v19 = vld [vmem:[#allocation63_spill] sm:$0xff] }
 0x5d9   :  { %v6632_v54 = vpop.eup %6631 }
 0x5da   :  { %v6634_v6 = vpop.eup %6633  ;;  %v2840_v2 = vmul.f32 %v6632_v54, %v6630_v21  ;;  %v9313_v21 = vld [vmem:[#allocation59_spill] sm:$0xff]  ;;  %v9314_v54 = vld [vmem:[#allocation60_spill] sm:$0xff] }
 0x5db   :  { %v2839_v12 = vmul.f32 %v6634_v6, %v7884_v53  ;;  %v6636_v44 = vpop.eup %6635  ;;  %v9271_v53 = vld [vmem:[#allocation17_spill] sm:$0xff] }
 0x5dc   :  { %v9315_v6 = vld [vmem:[#allocation61_spill] sm:$0xff] }
 0x5dd   :  { %v8192_v18 = vadd.f32 %v2840_v2, %v2839_v12  ;;  %v9316_v2 = vld [vmem:[#allocation62_spill] sm:$0xff]  ;;  %v9318_v12 = vld [vmem:[#allocation64_spill] sm:$0xff] }
 0x5df   :  { %6637 = vtanh.f32 %v8192_v18 }
 0x5e9   :  { %v6638_v8 = vpop.eup %6637 }
 0x5ea   :  { %v2843_v11 = vmul.f32 %v6638_v8, %v6636_v44  ;;  %v9319_v44 = vld [vmem:[#allocation65_spill] sm:$0xff]  ;;  %v9320_v8 = vld [vmem:[#allocation66_spill] sm:$0xff] }
 0x5ec   :  { %3040 = vmatmul.mubr.f32.vlgmr.msra.gmra.mrb[24].mxu0 %v2843_v11  ;;  %3111 = vmatmul.mubr.f32.vlgmr.msra.gmra.mrb[24].mxu1 %v2843_v11 }
 0x5ed   :  { %5849 = vmatpush1.bf16.msra.mxu0 %v7887_v62  ;;  %5881 = vmatpush1.bf16.msra.mxu1 %v7889_v57  ;;  %v9272_v62 = vld [vmem:[#allocation18_spill] sm:$0xff]  ;;  %v9273_v57 = vld [vmem:[#allocation19_spill] sm:$0xff] }
 0x5ee   :  { %5851 = vmatprep.subr.bf16.mxu0 %v7893_v32  ;;  %5883 = vmatprep.subr.bf16.mxu1 %v7895_v24  ;;  %v9274_v32 = vld [vmem:[#allocation20_spill] sm:$0xff]  ;;  %v9275_v24 = vld [vmem:[#allocation21_spill] sm:$0xff] }
 0x5ef   :  { %3282 = vmatprep.mubr.f32.mxu0 %v9043_v16  ;;  %3353 = vmatprep.mubr.f32.mxu1 %v9043_v16 }
 0x5f1   :  { %5853 = vmatpush1.bf16.msra.mxu0 %v7901_v35  ;;  %5885 = vmatpush1.bf16.msra.mxu1 %v7903_v50  ;;  %v9276_v35 = vld [vmem:[#allocation22_spill] sm:$0xff]  ;;  %v9277_v50 = vld [vmem:[#allocation23_spill] sm:$0xff] }
 0x5f2   :  { %5855 = vmatprep.subr.bf16.mxu0 %v7907_v5  ;;  %5887 = vmatprep.subr.bf16.mxu1 %v7909_v33  ;;  %v9278_v5 = vld [vmem:[#allocation24_spill] sm:$0xff]  ;;  %v9279_v33 = vld [vmem:[#allocation25_spill] sm:$0xff] }
 0x5f5   :  { %5857 = vmatpush1.bf16.msra.mxu0 %v7915_v4  ;;  %5889 = vmatpush1.bf16.msra.mxu1 %v7917_v51  ;;  %v9280_v4 = vld [vmem:[#allocation26_spill] sm:$0xff]  ;;  %v9281_v51 = vld [vmem:[#allocation27_spill] sm:$0xff] }
 0x5f6   :  { %5859 = vmatprep.subr.bf16.mxu0 %v7921_v36  ;;  %5891 = vmatprep.subr.bf16.mxu1 %v7923_v25  ;;  %v9282_v36 = vld [vmem:[#allocation28_spill] sm:$0xff]  ;;  %v9283_v25 = vld [vmem:[#allocation29_spill] sm:$0xff] }
 0x5f9   :  { %5861 = vmatpush1.bf16.msra.mxu0 %v7927_v1  ;;  %5893 = vmatpush1.bf16.msra.mxu1 %v7929_v7  ;;  %v9284_v1 = vld [vmem:[#allocation30_spill] sm:$0xff]  ;;  %v9285_v7 = vld [vmem:[#allocation31_spill] sm:$0xff] }
 0x5fa   :  { %5863 = vmatprep.subr.bf16.mxu0 %v7933_v58  ;;  %5895 = vmatprep.subr.bf16.mxu1 %v7935_v9  ;;  %v9286_v58 = vld [vmem:[#allocation32_spill] sm:$0xff]  ;;  %v9287_v9 = vld [vmem:[#allocation33_spill] sm:$0xff] }
 0x5fd   :  { %5865 = vmatpush1.bf16.msra.mxu0 %v7939_v15  ;;  %5897 = vmatpush1.bf16.msra.mxu1 %v7941_v59  ;;  %v9288_v15 = vld [vmem:[#allocation34_spill] sm:$0xff]  ;;  %v9289_v59 = vld [vmem:[#allocation35_spill] sm:$0xff] }
 0x5fe   :  { %5867 = vmatprep.subr.bf16.mxu0 %v7945_v31  ;;  %5899 = vmatprep.subr.bf16.mxu1 %v7947_v48  ;;  %v9290_v31 = vld [vmem:[#allocation36_spill] sm:$0xff]  ;;  %v9291_v48 = vld [vmem:[#allocation37_spill] sm:$0xff] }
 0x601   :  { %5869 = vmatpush1.bf16.msra.mxu0 %v7951_v38  ;;  %5901 = vmatpush1.bf16.msra.mxu1 %v7953_v28  ;;  %v9292_v38 = vld [vmem:[#allocation38_spill] sm:$0xff]  ;;  %v9293_v28 = vld [vmem:[#allocation39_spill] sm:$0xff] }
 0x602   :  { %5871 = vmatprep.subr.bf16.mxu0 %v7957_v52  ;;  %5903 = vmatprep.subr.bf16.mxu1 %v7959_v55  ;;  %v9294_v52 = vld [vmem:[#allocation40_spill] sm:$0xff]  ;;  %v9295_v55 = vld [vmem:[#allocation41_spill] sm:$0xff] }
 0x605   :  { %5873 = vmatpush1.bf16.msra.mxu0 %v7963_v47  ;;  %5905 = vmatpush1.bf16.msra.mxu1 %v7965_v22  ;;  %v9296_v47 = vld [vmem:[#allocation42_spill] sm:$0xff]  ;;  %v9297_v22 = vld [vmem:[#allocation43_spill] sm:$0xff] }
 0x606   :  { %5875 = vmatprep.subr.bf16.mxu0 %v7969_v23  ;;  %5907 = vmatprep.subr.bf16.mxu1 %v7971_v14  ;;  %v9298_v23 = vld [vmem:[#allocation44_spill] sm:$0xff]  ;;  %v9299_v14 = vld [vmem:[#allocation45_spill] sm:$0xff] }
 0x609   :  { %5877 = vmatpush1.bf16.msra.mxu0 %v7975_v34  ;;  %5909 = vmatpush1.bf16.msra.mxu1 %v7977_v37  ;;  %v9300_v34 = vld [vmem:[#allocation46_spill] sm:$0xff]  ;;  %v9301_v37 = vld [vmem:[#allocation47_spill] sm:$0xff] }
 0x60a   :  { %5911 = vmatprep.subr.bf16.mxu0 %v7985_v43  ;;  %5975 = vmatprep.subr.bf16.mxu1 %v7987_v40  ;;  %v9302_v43 = vld [vmem:[#allocation48_spill] sm:$0xff]  ;;  %v9303_v40 = vld [vmem:[#allocation49_spill] sm:$0xff] }
 0x60c   :  { %3283 = vmatmul.mubr.f32.vlgmr.msra.gmra.mrb[10].mxu0 %v2843_v11  ;;  %3354 = vmatmul.mubr.f32.vlgmr.msra.gmra.mrb[10].mxu1 %v2843_v11  ;;  %v9321_v11 = vld [vmem:[#allocation67_spill] sm:$0xff] }
 0x60d   :  { %5913 = vmatpush1.bf16.msra.mxu0 %v7989_v42  ;;  %5977 = vmatpush1.bf16.msra.mxu1 %v7992_v63  ;;  %v9304_v42 = vld [vmem:[#allocation50_spill] sm:$0xff]  ;;  %v9305_v63 = vld [vmem:[#allocation51_spill] sm:$0xff] }
 0x60e   :  { %5915 = vmatprep.subr.bf16.mxu0 %v9271_v53  ;;  %5979 = vmatprep.subr.bf16.mxu1 %v9272_v62  ;;  %v9322_v53 = vld [vmem:[#allocation68_spill] sm:$0xff]  ;;  %v9323_v62 = vld [vmem:[#allocation69_spill] sm:$0xff] }
 0x611   :  { %5917 = vmatpush1.bf16.msra.mxu0 %v9273_v57  ;;  %5981 = vmatpush1.bf16.msra.mxu1 %v9274_v32  ;;  %v9324_v57 = vld [vmem:[#allocation70_spill] sm:$0xff]  ;;  %v9325_v32 = vld [vmem:[#allocation71_spill] sm:$0xff] }
 0x612   :  { %5919 = vmatprep.subr.bf16.mxu0 %v9275_v24  ;;  %5983 = vmatprep.subr.bf16.mxu1 %v9276_v35  ;;  %v9326_v24 = vld [vmem:[#allocation72_spill] sm:$0xff] }
 0x613   :  { %v3700_v35 = vld [vmem:[#allocation10 + $0x8] sm:$0xff] }
 0x615   :  { %5921 = vmatpush1.bf16.msra.mxu0 %v9277_v50  ;;  %5985 = vmatpush1.bf16.msra.mxu1 %v9278_v5  ;;  %v3704_v50 = vld [vmem:[#allocation10 + $0x28] sm:$0xff]  ;;  %v3702_v5 = vld [vmem:[#allocation10 + $0x18] sm:$0xff] }
 0x616   :  { %5923 = vmatprep.subr.bf16.mxu0 %v9279_v33  ;;  %5987 = vmatprep.subr.bf16.mxu1 %v9280_v4  ;;  %v8291_v33 = vpack.c.bf16 %v3704_v50, %v3700_v35  ;;  %v3699_v50 = vld [vmem:[#allocation10] sm:$0xff] }
 0x619   :  { %5925 = vmatpush1.bf16.msra.mxu0 %v9281_v51  ;;  %5989 = vmatpush1.bf16.msra.mxu1 %v9282_v36 }
 0x61a   :  { %5927 = vmatprep.subr.bf16.mxu0 %v9283_v25  ;;  %5991 = vmatprep.subr.bf16.mxu1 %v9284_v1 }
 0x61d   :  { %5929 = vmatpush1.bf16.msra.mxu0 %v9285_v7  ;;  %5993 = vmatpush1.bf16.msra.mxu1 %v9286_v58 }
 0x61e   :  { %5931 = vmatprep.subr.bf16.mxu0 %v9287_v9  ;;  %5995 = vmatprep.subr.bf16.mxu1 %v9288_v15  ;;  %v9328_v9 = vld [vmem:[#allocation16_spill] sm:$0xff] }
 0x621   :  { %5933 = vmatpush1.bf16.msra.mxu0 %v9289_v59  ;;  %5997 = vmatpush1.bf16.msra.mxu1 %v9290_v31 }
 0x622   :  { %5935 = vmatprep.subr.bf16.mxu0 %v9291_v48  ;;  %5999 = vmatprep.subr.bf16.mxu1 %v9292_v38 }
 0x625   :  { %5937 = vmatpush1.bf16.msra.mxu0 %v9293_v28  ;;  %6001 = vmatpush1.bf16.msra.mxu1 %v9294_v52 }
 0x626   :  { %5939 = vmatprep.subr.bf16.mxu0 %v9295_v55  ;;  %6003 = vmatprep.subr.bf16.mxu1 %v9296_v47 }
 0x629   :  { %5941 = vmatpush1.bf16.msra.mxu0 %v9297_v22  ;;  %6005 = vmatpush1.bf16.msra.mxu1 %v9298_v23 }
 0x62a   :  { %5943 = vmatprep.subr.bf16.mxu0 %v9299_v14  ;;  %6007 = vmatprep.subr.bf16.mxu1 %v9300_v34 }
 0x62d   :  { %5945 = vmatpush1.bf16.msra.mxu0 %v9301_v37  ;;  %6009 = vmatpush1.bf16.msra.mxu1 %v9302_v43 }
 0x62e   :  { %5947 = vmatprep.subr.bf16.mxu0 %v9303_v40  ;;  %6011 = vmatprep.subr.bf16.mxu1 %v9304_v42 }
 0x631   :  { %5949 = vmatpush1.bf16.msra.mxu0 %v9305_v63  ;;  %6013 = vmatpush1.bf16.msra.mxu1 %v9306_v17 }
 0x632   :  { %5951 = vmatprep.subr.bf16.mxu0 %v9307_v0  ;;  %6015 = vmatprep.subr.bf16.mxu1 %v9308_v3 }
 0x635   :  { %5953 = vmatpush1.bf16.msra.mxu0 %v9309_v46  ;;  %6017 = vmatpush1.bf16.msra.mxu1 %v9310_v41 }
 0x636   :  { %5955 = vmatprep.subr.bf16.mxu0 %v9311_v26  ;;  %6019 = vmatprep.subr.bf16.mxu1 %v9312_v20 }
 0x639   :  { %5957 = vmatpush1.bf16.msra.mxu0 %v9313_v21  ;;  %6021 = vmatpush1.bf16.msra.mxu1 %v9314_v54 }
 0x63a   :  { %5959 = vmatprep.subr.bf16.mxu0 %v9315_v6  ;;  %6023 = vmatprep.subr.bf16.mxu1 %v9316_v2 }
 0x63d   :  { %5961 = vmatpush1.bf16.msra.mxu0 %v9317_v19  ;;  %6025 = vmatpush1.bf16.msra.mxu1 %v9318_v12 }
 0x63e   :  { %5963 = vmatprep.subr.bf16.mxu0 %v9319_v44  ;;  %6027 = vmatprep.subr.bf16.mxu1 %v9320_v8 }
 0x641   :  { %5965 = vmatpush1.bf16.msra.mxu0 %v9321_v11  ;;  %6029 = vmatpush1.bf16.msra.mxu1 %v9322_v53 }
 0x642   :  { %5967 = vmatprep.subr.bf16.mxu0 %v8152_v60  ;;  %6031 = vmatprep.subr.bf16.mxu1 %v8154_v45  ;;  %v3706_v60 = vld [vmem:[#allocation10 + $0x38] sm:$0xff] }
 0x643   :  { %v8293_v4 = vpack.c.bf16 %v3706_v60, %v3702_v5  ;;  %v3703_v5 = vld [vmem:[#allocation10 + $0x20] sm:$0xff]  ;;  %v3701_v60 = vld [vmem:[#allocation10 + $0x10] sm:$0xff] }
 0x645   :  { %5969 = vmatpush1.bf16.msra.mxu0 %v8157_v49  ;;  %6033 = vmatpush1.bf16.msra.mxu1 %v8161_v27  ;;  %v9327_v49 = vld [vmem:[#allocation15_spill] sm:$0xff] }
 0x646   :  { %5971 = vmatprep.subr.bf16.mxu0 %v9323_v62  ;;  %6035 = vmatprep.subr.bf16.mxu1 %v9324_v57 }
 0x649   :  { %5973 = vmatpush1.bf16.msra.mxu0 %v9325_v32  ;;  %6037 = vmatpush1.bf16.msra.mxu1 %v9326_v24 }
 0x64a   :  { %6039 = vmatprep.subr.bf16.mxu0 %v8291_v33  ;;  %6071 = vmatprep.subr.bf16.mxu1 %v8293_v4 }
 0x6bf   :  { %v3041_v27 = vpop.f32.mrb[24].mxu0  ;;  %v3112_v45 = vpop.f32.mrb[24].mxu1 }
 0x6c0   :  { %v3042_v51 = vadd.f32 %v3041_v27, %v9327_v49  ;;  %v3043_v36 = vpop.f32.mrb[25].mxu0  ;;  %v3114_v25 = vpop.f32.mrb[25].mxu1  ;;  %v3113_v31 = vadd.f32 %v3112_v45, %v7447_v10  ;;  %v3705_v27 = vld [vmem:[#allocation10 + $0x30] sm:$0xff]  ;;  %v3708_v45 = vld [vmem:[#allocation10 + $0x48] sm:$0xff] }
 0x6c1   :  { %v3044_v1 = vadd.f32 %v3043_v36, %v7436_v29  ;;  %v3115_v15 = vadd.f32 %v3114_v25, %v9328_v9  ;;  %v3710_v36 = vld [vmem:[#allocation10 + $0x58] sm:$0xff] }
 0x6c2   :  { %v4849_v7 = vmul.f32 -1.442695, %v3042_v51  ;;  %v3712_v51 = vld [vmem:[#allocation10 + $0x68] sm:$0xff]  ;;  %v3714_v25 = vld [vmem:[#allocation10 + $0x78] sm:$0xff] }
 0x6c3   :  { %v4850_v58 = vmul.f32 -1.442695, %v3044_v1  ;;  %v4851_v59 = vmul.f32 -1.442695, %v3115_v15  ;;  %v8315_v15 = vpack.c.bf16 %v3705_v27, %v3701_v60  ;;  %v3733_v60 = vld [vmem:[#allocation10 + $0x110] sm:$0xff] }
 0x6c4   :  { %6639 = vpow2.f32 %v4849_v7  ;;  %v3737_v27 = vld [vmem:[#allocation10 + $0x130] sm:$0xff] }
 0x6c5   :  { %6641 = vpow2.f32 %v4850_v58  ;;  %v8313_v58 = vpack.c.bf16 %v3703_v5, %v3699_v50 }
 0x6c6   :  { %6643 = vpow2.f32 %v4851_v59  ;;  %v3711_v59 = vld [vmem:[#allocation10 + $0x60] sm:$0xff] }
 0x6c7   :  { %6645 = vtanh.f32 %v3113_v31 }
 0x6ce   :  { %v6640_v48 = vpop.eup %6639 }
 0x6cf   :  { %v6642_v38 = vpop.eup %6641  ;;  %v3121_v28 = vadd.f32 1.0, %v6640_v48  ;;  %v8319_v48 = vpack.c.bf16 %v3712_v51, %v3708_v45  ;;  %v3740_v45 = vld [vmem:[#allocation10 + $0x148] sm:$0xff] }
 0x6d0   :  { %v3127_v52 = vadd.f32 1.0, %v6642_v38  ;;  %v6644_v55 = vpop.eup %6643  ;;  %v8321_v38 = vpack.c.bf16 %v3714_v25, %v3710_v36  ;;  %v3744_v51 = vld [vmem:[#allocation10 + $0x168] sm:$0xff]  ;;  %v3742_v36 = vld [vmem:[#allocation10 + $0x158] sm:$0xff] }
 0x6d1   :  { %6647 = vrcp.f32 %v3121_v28  ;;  %v6646_v47 = vpop.eup %6645  ;;  %v3134_v34 = vadd.f32 1.0, %v6644_v55  ;;  %v3709_v28 = vld [vmem:[#allocation10 + $0x50] sm:$0xff]  ;;  %v3716_v55 = vld [vmem:[#allocation10 + $0x88] sm:$0xff]  ;;  %v3746_v25 = vld [vmem:[#allocation10 + $0x178] sm:$0xff] }
 0x6d2   :  { %6649 = vrcp.f32 %v3127_v52  ;;  %v3713_v52 = vld [vmem:[#allocation10 + $0x70] sm:$0xff] }
 0x6d3   :  { %6651 = vrcp.f32 %v3134_v34  ;;  %v8329_v34 = vpack.c.bf16 %v3713_v52, %v3709_v28  ;;  %v8371_v28 = vpack.c.bf16 %v3744_v51, %v3740_v45  ;;  %v8373_v52 = vpack.c.bf16 %v3746_v25, %v3742_v36  ;;  %v3757_v45 = vld [vmem:[#allocation10 + $0x1d0] sm:$0xff] }
 0x6d4   :  { %v3761_v51 = vld [vmem:[#allocation10 + $0x1f0] sm:$0xff] }
 0x6d5   :  { %v8403_v25 = vpack.c.bf16 %v3761_v51, %v3757_v45 }
 0x6db   :  { %v6648_v22 = vpop.eup %6647 }
 0x6dc   :  { %v6650_v23 = vpop.eup %6649  ;;  %v3138_v14 = vmul.f32 %v6648_v22, %v6646_v47  ;;  %v3720_v47 = vld [vmem:[#allocation10 + $0xa8] sm:$0xff]  ;;  %v3718_v22 = vld [vmem:[#allocation10 + $0x98] sm:$0xff] }
 0x6dd   :  { %v3137_v37 = vmul.f32 %v6650_v23, %v8184_v61  ;;  %v6652_v61 = vpop.eup %6651  ;;  %v3722_v23 = vld [vmem:[#allocation10 + $0xb8] sm:$0xff] }
 0x6df   :  { %v3284_v43 = vpop.f32.mrb[10].mxu0  ;;  %v3355_v40 = vpop.f32.mrb[10].mxu1  ;;  %v8302_v42 = vadd.f32 %v3138_v14, %v3137_v37  ;;  %v3715_v37 = vld [vmem:[#allocation10 + $0x80] sm:$0xff] }
 0x6e0   :  { %v6432_v63 = vadd.f32 %v3284_v43, %v9098_v13  ;;  %v3286_v17 = vpop.f32.mrb[11].mxu0  ;;  %v3357_v0 = vpop.f32.mrb[11].mxu1  ;;  %v6448_v54 = vadd.f32 %v3355_v40, %v7319_v30  ;;  %v3719_v43 = vld [vmem:[#allocation10 + $0xa0] sm:$0xff]  ;;  %v8333_v40 = vpack.c.bf16 %v3720_v47, %v3716_v55  ;;  %v3741_v55 = vld [vmem:[#allocation10 + $0x150] sm:$0xff] }
 0x6e1   :  { %v6433_v3 = vadd.f32 %v3286_v17, %v9099_v39  ;;  %6653 = vtanh.f32 %v8302_v42  ;;  %v6449_v26 = vadd.f32 %v3357_v0, %v9100_v56  ;;  %v3717_v17 = vld [vmem:[#allocation10 + $0x90] sm:$0xff] }
 0x6e2   :  { %v4852_v46 = vmul.f32 -1.442695, %v6432_v63  ;;  %v8335_v63 = vpack.c.bf16 %v3722_v23, %v3718_v22  ;;  %v3721_v0 = vld [vmem:[#allocation10 + $0xb0] sm:$0xff]  ;;  %v3748_v22 = vld [vmem:[#allocation10 + $0x188] sm:$0xff] }
 0x6e3   :  { %v4853_v41 = vmul.f32 -1.442695, %v6433_v3  ;;  %v4854_v21 = vmul.f32 -1.442695, %v6449_v26  ;;  %v3724_v3 = vld [vmem:[#allocation10 + $0xc8] sm:$0xff]  ;;  %v3730_v26 = vld [vmem:[#allocation10 + $0xf8] sm:$0xff] }
 0x6e4   :  { %6655 = vpow2.f32 %v4852_v46  ;;  %v3728_v46 = vld [vmem:[#allocation10 + $0xe8] sm:$0xff]  ;;  %v3745_v47 = vld [vmem:[#allocation10 + $0x170] sm:$0xff] }
 0x6e5   :  { %6657 = vpow2.f32 %v4853_v41  ;;  %v3726_v41 = vld [vmem:[#allocation10 + $0xd8] sm:$0xff]  ;;  %v3752_v23 = vld [vmem:[#allocation10 + $0x1a8] sm:$0xff] }
 0x6e6   :  { %6659 = vpow2.f32 %v4854_v21  ;;  %v3723_v21 = vld [vmem:[#allocation10 + $0xc0] sm:$0xff] }
 0x6e7   :  { %6661 = vtanh.f32 %v6448_v54  ;;  %v3727_v54 = vld [vmem:[#allocation10 + $0xe0] sm:$0xff] }
 0x6eb   :  { %v6654_v20 = vpop.eup %6653 }
 0x6ec   :  { %v3141_v6 = vmul.f32 %v6654_v20, %v6652_v61  ;;  %v8341_v61 = vpack.c.bf16 %v3719_v43, %v3715_v37  ;;  %v8343_v20 = vpack.c.bf16 %v3721_v0, %v3717_v17  ;;  %v3750_v37 = vld [vmem:[#allocation10 + $0x198] sm:$0xff]  ;;  %v8379_v0 = vpack.c.bf16 %v3745_v47, %v3741_v55 }
 0x6ed   :  { %v3754_v43 = vld [vmem:[#allocation10 + $0x1b8] sm:$0xff] }
 0x6ee   :  { %v6656_v2 = vpop.eup %6655  ;;  %3145 = vst [vmem:[#allocation11 + $0x20] sm:$0xff] %v3141_v6  ;;  %3584 = vmatprep.mubr.f32.mxu0 %v3141_v6  ;;  %3655 = vmatprep.mubr.f32.mxu1 %v3141_v6  ;;  %v8347_v6 = vpack.c.bf16 %v3728_v46, %v3724_v3  ;;  %v3747_v3 = vld [vmem:[#allocation10 + $0x180] sm:$0xff]  ;;  %v3940_v55 = vld [vmem:[#allocation8 + $0x18] sm:$0xff] }
 0x6ef   :  { %v6658_v19 = vpop.eup %6657  ;;  %v3368_v12 = vadd.f32 1.0, %v6656_v2  ;;  %v8349_v2 = vpack.c.bf16 %v3730_v26, %v3726_v41  ;;  %v3751_v46 = vld [vmem:[#allocation10 + $0x1a0] sm:$0xff]  ;;  %v8383_v41 = vpack.c.bf16 %v3752_v23, %v3748_v22  ;;  %v8385_v26 = vpack.c.bf16 %v3754_v43, %v3750_v37  ;;  %v3944_v22 = vld [vmem:[#allocation8 + $0x38] sm:$0xff] }
 0x6f0   :  { %v3374_v44 = vadd.f32 1.0, %v6658_v19  ;;  %v6660_v8 = vpop.eup %6659  ;;  %v3725_v19 = vld [vmem:[#allocation10 + $0xd0] sm:$0xff]  ;;  %v3937_v23 = vld [vmem:[#allocation8] sm:$0xff]  ;;  %v8413_v43 = vpack.c.bf16 %v3944_v22, %v3940_v55  ;;  %v3954_v22 = vld [vmem:[#allocation8 + $0x88] sm:$0xff] }
 0x6f1   :  { %6663 = vrcp.f32 %v3368_v12  ;;  %v6662_v11 = vpop.eup %6661  ;;  %v3381_v32 = vadd.f32 1.0, %v6660_v8  ;;  %v3729_v12 = vld [vmem:[#allocation10 + $0xf0] sm:$0xff]  ;;  %v3736_v8 = vld [vmem:[#allocation10 + $0x128] sm:$0xff]  ;;  %v3941_v37 = vld [vmem:[#allocation8 + $0x20] sm:$0xff] }
 0x6f2   :  { %6665 = vrcp.f32 %v3374_v44  ;;  %v3732_v44 = vld [vmem:[#allocation10 + $0x108] sm:$0xff] }
 0x6f3   :  { %6667 = vrcp.f32 %v3381_v32  ;;  %v3731_v32 = vld [vmem:[#allocation10 + $0x100] sm:$0xff]  ;;  %v8359_v50 = vpack.c.bf16 %v3736_v8, %v3732_v44  ;;  %v3758_v44 = vld [vmem:[#allocation10 + $0x1d8] sm:$0xff] }
 0x6f4   :  { %v3762_v8 = vld [vmem:[#allocation10 + $0x1f8] sm:$0xff] }
 0x6fb   :  { %v6664_v53 = vpop.eup %6663 }
 0x6fc   :  { %v6666_v62 = vpop.eup %6665  ;;  %v3385_v57 = vmul.f32 %v6664_v53, %v6662_v11  ;;  %v3734_v11 = vld [vmem:[#allocation10 + $0x118] sm:$0xff] }
 0x6fd   :  { %v3384_v24 = vmul.f32 %v6666_v62, %v8192_v18  ;;  %v6668_v1 = vpop.eup %6667  ;;  %v3707_v18 = vld [vmem:[#allocation10 + $0x40] sm:$0xff]  ;;  %v3738_v53 = vld [vmem:[#allocation10 + $0x138] sm:$0xff]  ;;  %v8353_v62 = vpack.c.bf16 %v3727_v54, %v3723_v21  ;;  %v3749_v21 = vld [vmem:[#allocation10 + $0x190] sm:$0xff] }
 0x6fe   :  { %v8327_v14 = vpack.c.bf16 %v3711_v59, %v3707_v18  ;;  %v8361_v5 = vpack.c.bf16 %v3738_v53, %v3734_v11  ;;  %v3739_v18 = vld [vmem:[#allocation10 + $0x140] sm:$0xff]  ;;  %v3753_v54 = vld [vmem:[#allocation10 + $0x1b0] sm:$0xff]  ;;  %v8389_v11 = vpack.c.bf16 %v3751_v46, %v3747_v3  ;;  %v8415_v3 = vpack.c.bf16 %v3941_v37, %v3937_v23  ;;  %v3958_v23 = vld [vmem:[#allocation8 + $0xa8] sm:$0xff] }
 0x6ff   :  { %v8310_v35 = vadd.f32 %v3385_v57, %v3384_v24  ;;  %v8355_v57 = vpack.c.bf16 %v3729_v12, %v3725_v19  ;;  %v3735_v24 = vld [vmem:[#allocation10 + $0x120] sm:$0xff]  ;;  %v3756_v19 = vld [vmem:[#allocation10 + $0x1c8] sm:$0xff]  ;;  %v8391_v53 = vpack.c.bf16 %v3753_v54, %v3749_v21  ;;  %v3939_v46 = vld [vmem:[#allocation8 + $0x10] sm:$0xff] }
 0x700   :  { %v3743_v59 = vld [vmem:[#allocation10 + $0x160] sm:$0xff]  ;;  %v3760_v12 = vld [vmem:[#allocation10 + $0x1e8] sm:$0xff]  ;;  %v3943_v21 = vld [vmem:[#allocation8 + $0x30] sm:$0xff] }
 0x701   :  { %6669 = vtanh.f32 %v8310_v35  ;;  %v8377_v17 = vpack.c.bf16 %v3743_v59, %v3739_v18  ;;  %v3938_v18 = vld [vmem:[#allocation8 + $0x8] sm:$0xff]  ;;  %v8418_v54 = vpack.c.bf16 %v3943_v21, %v3939_v46  ;;  %v3956_v37 = vld [vmem:[#allocation8 + $0x98] sm:$0xff]  ;;  %v8435_v46 = vpack.c.bf16 %v3958_v23, %v3954_v22 }
 0x702   :  { %v3942_v59 = vld [vmem:[#allocation8 + $0x28] sm:$0xff]  ;;  %v3960_v21 = vld [vmem:[#allocation8 + $0xb8] sm:$0xff] }
 0x703   :  { %v8411_v47 = vpack.c.bf16 %v3942_v59, %v3938_v18  ;;  %v3947_v18 = vld [vmem:[#allocation8 + $0x50] sm:$0xff]  ;;  %9333 = vst [vmem:[#allocation21_spill] sm:$0xff] %v8435_v46  ;;  %v3966_v22 = vld [vmem:[#allocation8 + $0xe8] sm:$0xff]  ;;  %v3964_v23 = vld [vmem:[#allocation8 + $0xd8] sm:$0xff] }
 0x704   :  { %v3951_v59 = vld [vmem:[#allocation8 + $0x70] sm:$0xff] }
 0x705   :  { %v8430_v55 = vpack.c.bf16 %v3951_v59, %v3947_v18  ;;  %v3962_v59 = vld [vmem:[#allocation8 + $0xc8] sm:$0xff] }
 0x707   :  { %9332 = vst [vmem:[#allocation20_spill] sm:$0xff] %v8430_v55 }
 0x70b   :  { %v6670_v7 = vpop.eup %6669 }
 0x70c   :  { %v8317_v31 = vmul.f32 %v6670_v7, %v6668_v1  ;;  %v8365_v1 = vpack.c.bf16 %v3735_v24, %v3731_v32  ;;  %v8367_v7 = vpack.c.bf16 %v3737_v27, %v3733_v60  ;;  %v3755_v32 = vld [vmem:[#allocation10 + $0x1c0] sm:$0xff]  ;;  %v8395_v24 = vpack.c.bf16 %v3760_v12, %v3756_v19  ;;  %v3950_v19 = vld [vmem:[#allocation8 + $0x68] sm:$0xff]  ;;  %v3948_v12 = vld [vmem:[#allocation8 + $0x58] sm:$0xff] }
 0x70d   :  { %v8397_v60 = vpack.c.bf16 %v3762_v8, %v3758_v44  ;;  %v3759_v27 = vld [vmem:[#allocation10 + $0x1e0] sm:$0xff]  ;;  %v3952_v8 = vld [vmem:[#allocation8 + $0x78] sm:$0xff] }
 0x70e   :  { %3585 = vmatmul.mubr.f32.vlgmr.msra.gmra.mrb[26].mxu0 %v8317_v31  ;;  %3656 = vmatmul.mubr.f32.vlgmr.msra.gmra.mrb[26].mxu1 %v8317_v31  ;;  %v8401_v36 = vpack.c.bf16 %v3759_v27, %v3755_v32  ;;  %v3945_v32 = vld [vmem:[#allocation8 + $0x40] sm:$0xff]  ;;  %v8425_v45 = vpack.c.bf16 %v3952_v8, %v3948_v12  ;;  %v8437_v12 = vpack.c.bf16 %v3960_v21, %v3956_v37  ;;  %v3968_v37 = vld [vmem:[#allocation8 + $0xf8] sm:$0xff] }
 0x70f   :  { %6041 = vmatpush1.bf16.msra.mxu0 %v8313_v58  ;;  %6073 = vmatpush1.bf16.msra.mxu1 %v8315_v15  ;;  %v3949_v27 = vld [vmem:[#allocation8 + $0x60] sm:$0xff] }
 0x710   :  { %6043 = vmatprep.subr.bf16.mxu0 %v8319_v48  ;;  %6075 = vmatprep.subr.bf16.mxu1 %v8321_v38  ;;  %9330 = vst [vmem:[#allocation18_spill] sm:$0xff] %v8425_v45  ;;  %v8427_v51 = vpack.c.bf16 %v3949_v27, %v3945_v32  ;;  %9334 = vst [vmem:[#allocation22_spill] sm:$0xff] %v8437_v12  ;;  %v3955_v32 = vld [vmem:[#allocation8 + $0x90] sm:$0xff]  ;;  %v3961_v21 = vld [vmem:[#allocation8 + $0xc0] sm:$0xff] }
 0x711   :  { %3827 = vmatprep.mubr.f32.mxu0 %v9043_v16  ;;  %3898 = vmatprep.mubr.f32.mxu1 %v9043_v16  ;;  %v3959_v27 = vld [vmem:[#allocation8 + $0xb0] sm:$0xff] }
 0x712   :  { %9331 = vst [vmem:[#allocation19_spill] sm:$0xff] %v8427_v51  ;;  %v8442_v18 = vpack.c.bf16 %v3959_v27, %v3955_v32  ;;  %v3963_v32 = vld [vmem:[#allocation8 + $0xd0] sm:$0xff] }
 0x713   :  { %6045 = vmatpush1.bf16.msra.mxu0 %v8327_v14  ;;  %6077 = vmatpush1.bf16.msra.mxu1 %v8329_v34  ;;  %v3967_v27 = vld [vmem:[#allocation8 + $0xf0] sm:$0xff] }
 0x714   :  { %6047 = vmatprep.subr.bf16.mxu0 %v8333_v40  ;;  %6079 = vmatprep.subr.bf16.mxu1 %v8335_v63  ;;  %9336 = vst [vmem:[#allocation24_spill] sm:$0xff] %v8442_v18 }
 0x717   :  { %6049 = vmatpush1.bf16.msra.mxu0 %v8341_v61  ;;  %6081 = vmatpush1.bf16.msra.mxu1 %v8343_v20 }
 0x718   :  { %6051 = vmatprep.subr.bf16.mxu0 %v8347_v6  ;;  %6083 = vmatprep.subr.bf16.mxu1 %v8349_v2 }
 0x71b   :  { %6053 = vmatpush1.bf16.msra.mxu0 %v8353_v62  ;;  %6085 = vmatpush1.bf16.msra.mxu1 %v8355_v57 }
 0x71c   :  { %6055 = vmatprep.subr.bf16.mxu0 %v8359_v50  ;;  %6087 = vmatprep.subr.bf16.mxu1 %v8361_v5 }
 0x71f   :  { %6057 = vmatpush1.bf16.msra.mxu0 %v8365_v1  ;;  %6089 = vmatpush1.bf16.msra.mxu1 %v8367_v7 }
 0x720   :  { %6059 = vmatprep.subr.bf16.mxu0 %v8371_v28  ;;  %6091 = vmatprep.subr.bf16.mxu1 %v8373_v52 }
 0x723   :  { %6061 = vmatpush1.bf16.msra.mxu0 %v8377_v17  ;;  %6093 = vmatpush1.bf16.msra.mxu1 %v8379_v0 }
 0x724   :  { %6063 = vmatprep.subr.bf16.mxu0 %v8383_v41  ;;  %6095 = vmatprep.subr.bf16.mxu1 %v8385_v26 }
 0x727   :  { %6065 = vmatpush1.bf16.msra.mxu0 %v8389_v11  ;;  %6097 = vmatpush1.bf16.msra.mxu1 %v8391_v53 }
 0x728   :  { %6067 = vmatprep.subr.bf16.mxu0 %v8395_v24  ;;  %6099 = vmatprep.subr.bf16.mxu1 %v8397_v60 }
 0x72b   :  { %6069 = vmatpush1.bf16.msra.mxu0 %v8401_v36  ;;  %6101 = vmatpush1.bf16.msra.mxu1 %v8403_v25 }
 0x72c   :  { %6103 = vmatprep.subr.bf16.mxu0 %v8411_v47  ;;  %6167 = vmatprep.subr.bf16.mxu1 %v8413_v43 }
 0x72e   :  { %3828 = vmatmul.mubr.f32.vlgmr.msra.gmra.mrb[12].mxu0 %v8317_v31  ;;  %3899 = vmatmul.mubr.f32.vlgmr.msra.gmra.mrb[12].mxu1 %v8317_v31  ;;  %v3946_v31 = vld [vmem:[#allocation8 + $0x48] sm:$0xff] }
 0x72f   :  { %6105 = vmatpush1.bf16.msra.mxu0 %v8415_v3  ;;  %6169 = vmatpush1.bf16.msra.mxu1 %v8418_v54  ;;  %v8423_v44 = vpack.c.bf16 %v3950_v19, %v3946_v31  ;;  %v3953_v31 = vld [vmem:[#allocation8 + $0x80] sm:$0xff] }
 0x730   :  { %6171 = vmatprep.subr.bf16.mxu1 %v8425_v45  ;;  %v3957_v19 = vld [vmem:[#allocation8 + $0xa0] sm:$0xff]  ;;  %v4052_v45 = vld [vmem:[#allocation8 + $0x398] sm:$0xff] }
 0x731   :  { %9329 = vst [vmem:[#allocation17_spill] sm:$0xff] %v8423_v44  ;;  %6107 = vmatprep.subr.bf16.mxu0 %v8423_v44  ;;  %v8439_v8 = vpack.c.bf16 %v3957_v19, %v3953_v31  ;;  %v3965_v31 = vld [vmem:[#allocation8 + $0xe0] sm:$0xff]  ;;  %v8449_v19 = vpack.c.bf16 %v3968_v37, %v3964_v23  ;;  %v3976_v23 = vld [vmem:[#allocation8 + $0x138] sm:$0xff] }
 0x732   :  { %v3969_v37 = vld [vmem:[#allocation8 + $0x100] sm:$0xff]  ;;  %v4056_v44 = vld [vmem:[#allocation8 + $0x3b8] sm:$0xff] }
 0x733   :  { %6109 = vmatpush1.bf16.msra.mxu0 %v8427_v51  ;;  %6173 = vmatpush1.bf16.msra.mxu1 %v8430_v55  ;;  %9335 = vst [vmem:[#allocation23_spill] sm:$0xff] %v8439_v8  ;;  %v8447_v55 = vpack.c.bf16 %v3966_v22, %v3962_v59  ;;  %9338 = vst [vmem:[#allocation26_spill] sm:$0xff] %v8449_v19  ;;  %v8451_v51 = vpack.c.bf16 %v3965_v31, %v3961_v21  ;;  %v3974_v59 = vld [vmem:[#allocation8 + $0x128] sm:$0xff]  ;;  %v3972_v22 = vld [vmem:[#allocation8 + $0x118] sm:$0xff] }
 0x734   :  { %6111 = vmatprep.subr.bf16.mxu0 %v8435_v46  ;;  %6175 = vmatprep.subr.bf16.mxu1 %v8437_v12  ;;  %v8454_v12 = vpack.c.bf16 %v3967_v27, %v3963_v32  ;;  %v3973_v21 = vld [vmem:[#allocation8 + $0x120] sm:$0xff]  ;;  %v8461_v31 = vpack.c.bf16 %v3976_v23, %v3972_v22  ;;  %v3971_v32 = vld [vmem:[#allocation8 + $0x110] sm:$0xff]  ;;  %v3984_v22 = vld [vmem:[#allocation8 + $0x178] sm:$0xff] }
 0x735   :  { %9337 = vst [vmem:[#allocation25_spill] sm:$0xff] %v8447_v55  ;;  %9339 = vst [vmem:[#allocation27_spill] sm:$0xff] %v8451_v51  ;;  %v8463_v46 = vpack.c.bf16 %v3973_v21, %v3969_v37  ;;  %v3975_v27 = vld [vmem:[#allocation8 + $0x130] sm:$0xff]  ;;  %v3977_v23 = vld [vmem:[#allocation8 + $0x140] sm:$0xff] }
 0x736   :  { %9340 = vst [vmem:[#allocation28_spill] sm:$0xff] %v8454_v12  ;;  %9342 = vst [vmem:[#allocation30_spill] sm:$0xff] %v8461_v31  ;;  %v3981_v37 = vld [vmem:[#allocation8 + $0x160] sm:$0xff] }
 0x737   :  { %6113 = vmatpush1.bf16.msra.mxu0 %v8439_v8  ;;  %6177 = vmatpush1.bf16.msra.mxu1 %v8442_v18  ;;  %v3970_v18 = vld [vmem:[#allocation8 + $0x108] sm:$0xff]  ;;  %9343 = vst [vmem:[#allocation31_spill] sm:$0xff] %v8463_v46 }
 0x738   :  { %6115 = vmatprep.subr.bf16.mxu0 %v8447_v55  ;;  %6179 = vmatprep.subr.bf16.mxu1 %v8449_v19  ;;  %v8459_v8 = vpack.c.bf16 %v3974_v59, %v3970_v18  ;;  %v8466_v19 = vpack.c.bf16 %v3975_v27, %v3971_v32  ;;  %v3978_v18 = vld [vmem:[#allocation8 + $0x148] sm:$0xff]  ;;  %v8475_v55 = vpack.c.bf16 %v3981_v37, %v3977_v23  ;;  %v3979_v32 = vld [vmem:[#allocation8 + $0x150] sm:$0xff]  ;;  %v3989_v23 = vld [vmem:[#allocation8 + $0x1a0] sm:$0xff] }
 0x739   :  { %v3982_v59 = vld [vmem:[#allocation8 + $0x168] sm:$0xff]  ;;  %v3983_v27 = vld [vmem:[#allocation8 + $0x170] sm:$0xff] }
 0x73a   :  { %9341 = vst [vmem:[#allocation29_spill] sm:$0xff] %v8459_v8  ;;  %9344 = vst [vmem:[#allocation32_spill] sm:$0xff] %v8466_v19 }
 0x73b   :  { %6117 = vmatpush1.bf16.msra.mxu0 %v8451_v51  ;;  %6181 = vmatpush1.bf16.msra.mxu1 %v8454_v12  ;;  %v3980_v12 = vld [vmem:[#allocation8 + $0x158] sm:$0xff]  ;;  %v8471_v51 = vpack.c.bf16 %v3982_v59, %v3978_v18  ;;  %9347 = vst [vmem:[#allocation35_spill] sm:$0xff] %v8475_v55  ;;  %v3990_v18 = vld [vmem:[#allocation8 + $0x1a8] sm:$0xff] }
 0x73c   :  { %6119 = vmatprep.subr.bf16.mxu0 %v8459_v8  ;;  %6183 = vmatprep.subr.bf16.mxu1 %v8461_v31  ;;  %v8473_v21 = vpack.c.bf16 %v3984_v22, %v3980_v12  ;;  %v8478_v31 = vpack.c.bf16 %v3983_v27, %v3979_v32  ;;  %v3988_v59 = vld [vmem:[#allocation8 + $0x198] sm:$0xff]  ;;  %v3985_v22 = vld [vmem:[#allocation8 + $0x180] sm:$0xff]  ;;  %v3987_v32 = vld [vmem:[#allocation8 + $0x190] sm:$0xff] }
 0x73d   :  { %9345 = vst [vmem:[#allocation33_spill] sm:$0xff] %v8471_v51  ;;  %v3992_v12 = vld [vmem:[#allocation8 + $0x1b8] sm:$0xff]  ;;  %v8487_v8 = vpack.c.bf16 %v3989_v23, %v3985_v22  ;;  %v3991_v27 = vld [vmem:[#allocation8 + $0x1b0] sm:$0xff]  ;;  %v3997_v22 = vld [vmem:[#allocation8 + $0x1e0] sm:$0xff] }
 0x73e   :  { %9346 = vst [vmem:[#allocation34_spill] sm:$0xff] %v8473_v21  ;;  %9348 = vst [vmem:[#allocation36_spill] sm:$0xff] %v8478_v31  ;;  %v8485_v37 = vpack.c.bf16 %v3992_v12, %v3988_v59  ;;  %v4000_v59 = vld [vmem:[#allocation8 + $0x1f8] sm:$0xff]  ;;  %v3993_v12 = vld [vmem:[#allocation8 + $0x1c0] sm:$0xff] }
 0x73f   :  { %6121 = vmatpush1.bf16.msra.mxu0 %v8463_v46  ;;  %6185 = vmatpush1.bf16.msra.mxu1 %v8466_v19  ;;  %v3986_v19 = vld [vmem:[#allocation8 + $0x188] sm:$0xff]  ;;  %9351 = vst [vmem:[#allocation39_spill] sm:$0xff] %v8487_v8 }
 0x740   :  { %6123 = vmatprep.subr.bf16.mxu0 %v8471_v51  ;;  %6187 = vmatprep.subr.bf16.mxu1 %v8473_v21  ;;  %v8483_v46 = vpack.c.bf16 %v3990_v18, %v3986_v19  ;;  %9350 = vst [vmem:[#allocation38_spill] sm:$0xff] %v8485_v37  ;;  %v8490_v21 = vpack.c.bf16 %v3991_v27, %v3987_v32  ;;  %v3998_v19 = vld [vmem:[#allocation8 + $0x1e8] sm:$0xff]  ;;  %v3996_v18 = vld [vmem:[#allocation8 + $0x1d8] sm:$0xff]  ;;  %v3995_v32 = vld [vmem:[#allocation8 + $0x1d0] sm:$0xff] }
 0x741   :  { %v8497_v23 = vpack.c.bf16 %v4000_v59, %v3996_v18  ;;  %v8499_v51 = vpack.c.bf16 %v3997_v22, %v3993_v12  ;;  %v3999_v27 = vld [vmem:[#allocation8 + $0x1f0] sm:$0xff]  ;;  %v4008_v18 = vld [vmem:[#allocation8 + $0x238] sm:$0xff]  ;;  %v4001_v59 = vld [vmem:[#allocation8 + $0x200] sm:$0xff] }
 0x742   :  { %9349 = vst [vmem:[#allocation37_spill] sm:$0xff] %v8483_v46  ;;  %9352 = vst [vmem:[#allocation40_spill] sm:$0xff] %v8490_v21  ;;  %v4005_v12 = vld [vmem:[#allocation8 + $0x220] sm:$0xff] }
 0x743   :  { %6125 = vmatpush1.bf16.msra.mxu0 %v8475_v55  ;;  %6189 = vmatpush1.bf16.msra.mxu1 %v8478_v31  ;;  %v3994_v31 = vld [vmem:[#allocation8 + $0x1c8] sm:$0xff]  ;;  %9354 = vst [vmem:[#allocation42_spill] sm:$0xff] %v8497_v23  ;;  %9355 = vst [vmem:[#allocation43_spill] sm:$0xff] %v8499_v51 }
 0x744   :  { %6127 = vmatprep.subr.bf16.mxu0 %v8483_v46  ;;  %6191 = vmatprep.subr.bf16.mxu1 %v8485_v37  ;;  %v8495_v55 = vpack.c.bf16 %v3998_v19, %v3994_v31  ;;  %v8502_v37 = vpack.c.bf16 %v3999_v27, %v3995_v32  ;;  %v4006_v31 = vld [vmem:[#allocation8 + $0x228] sm:$0xff]  ;;  %v4004_v19 = vld [vmem:[#allocation8 + $0x218] sm:$0xff]  ;;  %v8511_v46 = vpack.c.bf16 %v4005_v12, %v4001_v59  ;;  %v4003_v32 = vld [vmem:[#allocation8 + $0x210] sm:$0xff] }
 0x745   :  { %v8509_v22 = vpack.c.bf16 %v4008_v18, %v4004_v19  ;;  %v4007_v27 = vld [vmem:[#allocation8 + $0x230] sm:$0xff]  ;;  %v4016_v19 = vld [vmem:[#allocation8 + $0x278] sm:$0xff]  ;;  %v4009_v18 = vld [vmem:[#allocation8 + $0x240] sm:$0xff] }
 0x746   :  { %9353 = vst [vmem:[#allocation41_spill] sm:$0xff] %v8495_v55  ;;  %9356 = vst [vmem:[#allocation44_spill] sm:$0xff] %v8502_v37  ;;  %v4013_v59 = vld [vmem:[#allocation8 + $0x260] sm:$0xff] }
 0x747   :  { %6129 = vmatpush1.bf16.msra.mxu0 %v8487_v8  ;;  %6193 = vmatpush1.bf16.msra.mxu1 %v8490_v21  ;;  %v4002_v21 = vld [vmem:[#allocation8 + $0x208] sm:$0xff]  ;;  %9358 = vst [vmem:[#allocation46_spill] sm:$0xff] %v8509_v22  ;;  %9359 = vst [vmem:[#allocation47_spill] sm:$0xff] %v8511_v46 }
 0x748   :  { %6131 = vmatprep.subr.bf16.mxu0 %v8495_v55  ;;  %6195 = vmatprep.subr.bf16.mxu1 %v8497_v23  ;;  %v8507_v8 = vpack.c.bf16 %v4006_v31, %v4002_v21  ;;  %v8514_v23 = vpack.c.bf16 %v4007_v27, %v4003_v32  ;;  %v4014_v21 = vld [vmem:[#allocation8 + $0x268] sm:$0xff]  ;;  %v4012_v31 = vld [vmem:[#allocation8 + $0x258] sm:$0xff]  ;;  %v8523_v55 = vpack.c.bf16 %v4013_v59, %v4009_v18  ;;  %v4011_v32 = vld [vmem:[#allocation8 + $0x250] sm:$0xff] }
 0x749   :  { %v8521_v12 = vpack.c.bf16 %v4016_v19, %v4012_v31  ;;  %v4015_v27 = vld [vmem:[#allocation8 + $0x270] sm:$0xff]  ;;  %v4024_v31 = vld [vmem:[#allocation8 + $0x2b8] sm:$0xff]  ;;  %v4017_v19 = vld [vmem:[#allocation8 + $0x280] sm:$0xff] }
 0x74a   :  { %9357 = vst [vmem:[#allocation45_spill] sm:$0xff] %v8507_v8  ;;  %9360 = vst [vmem:[#allocation48_spill] sm:$0xff] %v8514_v23  ;;  %v4021_v18 = vld [vmem:[#allocation8 + $0x2a0] sm:$0xff] }
 0x74b   :  { %6133 = vmatpush1.bf16.msra.mxu0 %v8499_v51  ;;  %6197 = vmatpush1.bf16.msra.mxu1 %v8502_v37  ;;  %v4010_v37 = vld [vmem:[#allocation8 + $0x248] sm:$0xff]  ;;  %9362 = vst [vmem:[#allocation50_spill] sm:$0xff] %v8521_v12  ;;  %9363 = vst [vmem:[#allocation51_spill] sm:$0xff] %v8523_v55 }
 0x74c   :  { %6135 = vmatprep.subr.bf16.mxu0 %v8507_v8  ;;  %6199 = vmatprep.subr.bf16.mxu1 %v8509_v22  ;;  %v8519_v51 = vpack.c.bf16 %v4014_v21, %v4010_v37  ;;  %v8526_v22 = vpack.c.bf16 %v4015_v27, %v4011_v32  ;;  %v4022_v37 = vld [vmem:[#allocation8 + $0x2a8] sm:$0xff]  ;;  %v4020_v21 = vld [vmem:[#allocation8 + $0x298] sm:$0xff]  ;;  %v8535_v8 = vpack.c.bf16 %v4021_v18, %v4017_v19  ;;  %v4019_v32 = vld [vmem:[#allocation8 + $0x290] sm:$0xff] }
 0x74d   :  { %v8533_v59 = vpack.c.bf16 %v4024_v31, %v4020_v21  ;;  %v4023_v27 = vld [vmem:[#allocation8 + $0x2b0] sm:$0xff]  ;;  %v4032_v21 = vld [vmem:[#allocation8 + $0x2f8] sm:$0xff]  ;;  %v4025_v31 = vld [vmem:[#allocation8 + $0x2c0] sm:$0xff] }
 0x74e   :  { %9361 = vst [vmem:[#allocation49_spill] sm:$0xff] %v8519_v51  ;;  %9364 = vst [vmem:[#allocation52_spill] sm:$0xff] %v8526_v22  ;;  %v4029_v19 = vld [vmem:[#allocation8 + $0x2e0] sm:$0xff] }
 0x74f   :  { %6137 = vmatpush1.bf16.msra.mxu0 %v8511_v46  ;;  %6201 = vmatpush1.bf16.msra.mxu1 %v8514_v23  ;;  %v4018_v23 = vld [vmem:[#allocation8 + $0x288] sm:$0xff]  ;;  %9366 = vst [vmem:[#allocation54_spill] sm:$0xff] %v8533_v59  ;;  %9367 = vst [vmem:[#allocation55_spill] sm:$0xff] %v8535_v8 }
 0x750   :  { %6139 = vmatprep.subr.bf16.mxu0 %v8519_v51  ;;  %6203 = vmatprep.subr.bf16.mxu1 %v8521_v12  ;;  %v8531_v46 = vpack.c.bf16 %v4022_v37, %v4018_v23  ;;  %v8538_v12 = vpack.c.bf16 %v4023_v27, %v4019_v32  ;;  %v4030_v23 = vld [vmem:[#allocation8 + $0x2e8] sm:$0xff]  ;;  %v4028_v37 = vld [vmem:[#allocation8 + $0x2d8] sm:$0xff]  ;;  %v8547_v51 = vpack.c.bf16 %v4029_v19, %v4025_v31  ;;  %v4027_v32 = vld [vmem:[#allocation8 + $0x2d0] sm:$0xff] }
 0x751   :  { %v8545_v18 = vpack.c.bf16 %v4032_v21, %v4028_v37  ;;  %v4031_v27 = vld [vmem:[#allocation8 + $0x2f0] sm:$0xff]  ;;  %v4040_v37 = vld [vmem:[#allocation8 + $0x338] sm:$0xff]  ;;  %v4033_v21 = vld [vmem:[#allocation8 + $0x300] sm:$0xff] }
 0x752   :  { %9365 = vst [vmem:[#allocation53_spill] sm:$0xff] %v8531_v46  ;;  %9368 = vst [vmem:[#allocation56_spill] sm:$0xff] %v8538_v12  ;;  %v4037_v31 = vld [vmem:[#allocation8 + $0x320] sm:$0xff] }
 0x753   :  { %6141 = vmatpush1.bf16.msra.mxu0 %v8523_v55  ;;  %6205 = vmatpush1.bf16.msra.mxu1 %v8526_v22  ;;  %v4026_v22 = vld [vmem:[#allocation8 + $0x2c8] sm:$0xff]  ;;  %9370 = vst [vmem:[#allocation58_spill] sm:$0xff] %v8545_v18  ;;  %9371 = vst [vmem:[#allocation59_spill] sm:$0xff] %v8547_v51 }
 0x754   :  { %6143 = vmatprep.subr.bf16.mxu0 %v8531_v46  ;;  %6207 = vmatprep.subr.bf16.mxu1 %v8533_v59  ;;  %v8543_v55 = vpack.c.bf16 %v4030_v23, %v4026_v22  ;;  %v8550_v59 = vpack.c.bf16 %v4031_v27, %v4027_v32  ;;  %v4038_v22 = vld [vmem:[#allocation8 + $0x328] sm:$0xff]  ;;  %v4036_v23 = vld [vmem:[#allocation8 + $0x318] sm:$0xff]  ;;  %v8559_v46 = vpack.c.bf16 %v4037_v31, %v4033_v21  ;;  %v4035_v32 = vld [vmem:[#allocation8 + $0x310] sm:$0xff] }
 0x755   :  { %v8557_v19 = vpack.c.bf16 %v4040_v37, %v4036_v23  ;;  %v4039_v27 = vld [vmem:[#allocation8 + $0x330] sm:$0xff]  ;;  %v4048_v23 = vld [vmem:[#allocation8 + $0x378] sm:$0xff]  ;;  %v4041_v37 = vld [vmem:[#allocation8 + $0x340] sm:$0xff] }
 0x756   :  { %9369 = vst [vmem:[#allocation57_spill] sm:$0xff] %v8543_v55  ;;  %9372 = vst [vmem:[#allocation60_spill] sm:$0xff] %v8550_v59  ;;  %v4045_v21 = vld [vmem:[#allocation8 + $0x360] sm:$0xff] }
 0x757   :  { %6145 = vmatpush1.bf16.msra.mxu0 %v8535_v8  ;;  %6209 = vmatpush1.bf16.msra.mxu1 %v8538_v12  ;;  %v4034_v12 = vld [vmem:[#allocation8 + $0x308] sm:$0xff]  ;;  %9374 = vst [vmem:[#allocation62_spill] sm:$0xff] %v8557_v19  ;;  %9375 = vst [vmem:[#allocation63_spill] sm:$0xff] %v8559_v46 }
 0x758   :  { %6147 = vmatprep.subr.bf16.mxu0 %v8543_v55  ;;  %6211 = vmatprep.subr.bf16.mxu1 %v8545_v18  ;;  %v8555_v8 = vpack.c.bf16 %v4038_v22, %v4034_v12  ;;  %v8562_v18 = vpack.c.bf16 %v4039_v27, %v4035_v32  ;;  %v4046_v12 = vld [vmem:[#allocation8 + $0x368] sm:$0xff]  ;;  %v4044_v22 = vld [vmem:[#allocation8 + $0x358] sm:$0xff]  ;;  %v8571_v55 = vpack.c.bf16 %v4045_v21, %v4041_v37  ;;  %v4043_v32 = vld [vmem:[#allocation8 + $0x350] sm:$0xff] }
 0x759   :  { %v8569_v31 = vpack.c.bf16 %v4048_v23, %v4044_v22  ;;  %v4047_v27 = vld [vmem:[#allocation8 + $0x370] sm:$0xff]  ;;  %v4049_v22 = vld [vmem:[#allocation8 + $0x380] sm:$0xff] }
 0x75a   :  { %9373 = vst [vmem:[#allocation61_spill] sm:$0xff] %v8555_v8  ;;  %9376 = vst [vmem:[#allocation64_spill] sm:$0xff] %v8562_v18  ;;  %v4053_v23 = vld [vmem:[#allocation8 + $0x3a0] sm:$0xff]  ;;  %v4051_v37 = vld [vmem:[#allocation8 + $0x390] sm:$0xff] }
 0x75b   :  { %6149 = vmatpush1.bf16.msra.mxu0 %v8547_v51  ;;  %6213 = vmatpush1.bf16.msra.mxu1 %v8550_v59  ;;  %v4042_v59 = vld [vmem:[#allocation8 + $0x348] sm:$0xff]  ;;  %9378 = vst [vmem:[#allocation66_spill] sm:$0xff] %v8569_v31  ;;  %9379 = vst [vmem:[#allocation67_spill] sm:$0xff] %v8571_v55  ;;  %v8583_v21 = vpack.c.bf16 %v4053_v23, %v4049_v22  ;;  %v4063_v22 = vld [vmem:[#allocation8 + $0x3f0] sm:$0xff] }
 0x75c   :  { %6151 = vmatprep.subr.bf16.mxu0 %v8555_v8  ;;  %6215 = vmatprep.subr.bf16.mxu1 %v8557_v19  ;;  %v8567_v51 = vpack.c.bf16 %v4046_v12, %v4042_v59  ;;  %v4050_v8 = vld [vmem:[#allocation8 + $0x388] sm:$0xff]  ;;  %v8580_v12 = vpack.c.bf16 %v4056_v44, %v4052_v45  ;;  %v4060_v44 = vld [vmem:[#allocation8 + $0x3d8] sm:$0xff] }
 0x75d   :  { %v4054_v19 = vld [vmem:[#allocation8 + $0x3a8] sm:$0xff]  ;;  %v4064_v45 = vld [vmem:[#allocation8 + $0x3f8] sm:$0xff] }
 0x75e   :  { %9377 = vst [vmem:[#allocation65_spill] sm:$0xff] %v8567_v51  ;;  %v8578_v59 = vpack.c.bf16 %v4054_v19, %v4050_v8  ;;  %v4057_v19 = vld [vmem:[#allocation8 + $0x3c0] sm:$0xff] }
 0x75f   :  { %6153 = vmatpush1.bf16.msra.mxu0 %v8559_v46  ;;  %6217 = vmatpush1.bf16.msra.mxu1 %v8562_v18  ;;  %v8574_v46 = vpack.c.bf16 %v4047_v27, %v4043_v32  ;;  %v4055_v32 = vld [vmem:[#allocation8 + $0x3b0] sm:$0xff]  ;;  %v4058_v27 = vld [vmem:[#allocation8 + $0x3c8] sm:$0xff]  ;;  %v4061_v18 = vld [vmem:[#allocation8 + $0x3e0] sm:$0xff] }
 0x760   :  { %6155 = vmatprep.subr.bf16.mxu0 %v8567_v51  ;;  %6219 = vmatprep.subr.bf16.mxu1 %v8569_v31  ;;  %v4062_v51 = vld [vmem:[#allocation8 + $0x3e8] sm:$0xff]  ;;  %v8587_v31 = vpack.c.bf16 %v4055_v32, %v4051_v37  ;;  %v8594_v23 = vpack.c.bf16 %v4061_v18, %v4057_v19 }
 0x761   :  { %9380 = vst [vmem:[#allocation68_spill] sm:$0xff] %v8574_v46  ;;  %v8589_v8 = vpack.c.bf16 %v4062_v51, %v4058_v27 }
 0x762   :  { %9383 = vst [vmem:[#allocation71_spill] sm:$0xff] %v8594_v23 }
 0x763   :  { %6157 = vmatpush1.bf16.msra.mxu0 %v8571_v55  ;;  %6221 = vmatpush1.bf16.msra.mxu1 %v8574_v46  ;;  %9381 = vst [vmem:[#allocation69_spill] sm:$0xff] %v8589_v8  ;;  %v8591_v55 = vpack.c.bf16 %v4064_v45, %v4060_v44  ;;  %v4059_v46 = vld [vmem:[#allocation8 + $0x3d0] sm:$0xff] }
 0x764   :  { %6159 = vmatprep.subr.bf16.mxu0 %v8578_v59  ;;  %6223 = vmatprep.subr.bf16.mxu1 %v8580_v12  ;;  %v8598_v37 = vpack.c.bf16 %v4063_v22, %v4059_v46 }
 0x765   :  { %9382 = vst [vmem:[#allocation70_spill] sm:$0xff] %v8591_v55 }
 0x766   :  { %9384 = vst [vmem:[#allocation72_spill] sm:$0xff] %v8598_v37 }
 0x767   :  { %6161 = vmatpush1.bf16.msra.mxu0 %v8583_v21  ;;  %6225 = vmatpush1.bf16.msra.mxu1 %v8587_v31 }
 0x768   :  { %6163 = vmatprep.subr.bf16.mxu0 %v8589_v8  ;;  %6227 = vmatprep.subr.bf16.mxu1 %v8591_v55 }
 0x76b   :  { %6165 = vmatpush1.bf16.msra.mxu0 %v8594_v23  ;;  %6229 = vmatpush1.bf16.msra.mxu1 %v8598_v37 }
 0x76c   :  { %6231 = vmatprep.subr.bf16.mxu0 %v8291_v33  ;;  %6263 = vmatprep.subr.bf16.mxu1 %v8293_v4 }
 0x7e1   :  { %v3586_v51 = vpop.f32.mrb[26].mxu0  ;;  %v3657_v32 = vpop.f32.mrb[26].mxu1 }
 0x7e2   :  { %v3587_v18 = vadd.f32 %v3586_v51, %v9327_v49  ;;  %v3588_v27 = vpop.f32.mrb[27].mxu0  ;;  %v3659_v44 = vpop.f32.mrb[27].mxu1  ;;  %v3658_v37 = vadd.f32 %v3657_v32, %v7447_v10 }
 0x7e3   :  { %v3589_v45 = vadd.f32 %v3588_v27, %v7436_v29  ;;  %v3660_v22 = vadd.f32 %v3659_v44, %v9328_v9 }
 0x7e4   :  { %v4855_v46 = vmul.f32 -1.442695, %v3587_v18 }
 0x7e5   :  { %v4856_v19 = vmul.f32 -1.442695, %v3589_v45  ;;  %v4857_v23 = vmul.f32 -1.442695, %v3660_v22 }
 0x7e6   :  { %6671 = vpow2.f32 %v4855_v46 }
 0x7e7   :  { %6673 = vpow2.f32 %v4856_v19 }
 0x7e8   :  { %6675 = vpow2.f32 %v4857_v23 }
 0x7e9   :  { %6677 = vtanh.f32 %v3658_v37 }
 0x7f0   :  { %v6672_v33 = vpop.eup %6671 }
 0x7f1   :  { %v6674_v55 = vpop.eup %6673  ;;  %v3666_v4 = vadd.f32 1.0, %v6672_v33 }
 0x7f2   :  { %v3672_v8 = vadd.f32 1.0, %v6674_v55  ;;  %v6676_v51 = vpop.eup %6675 }
 0x7f3   :  { %6679 = vrcp.f32 %v3666_v4  ;;  %v6678_v49 = vpop.eup %6677  ;;  %v3679_v46 = vadd.f32 1.0, %v6676_v51 }
 0x7f4   :  { %6681 = vrcp.f32 %v3672_v8 }
 0x7f5   :  { %6683 = vrcp.f32 %v3679_v46 }
 0x7fd   :  { %v6680_v27 = vpop.eup %6679 }
 0x7fe   :  { %v6682_v18 = vpop.eup %6681  ;;  %v3683_v45 = vmul.f32 %v6680_v27, %v6678_v49 }
 0x7ff   :  { %v3682_v19 = vmul.f32 %v6682_v18, %v8302_v42  ;;  %v6684_v42 = vpop.eup %6683 }
 0x801   :  { %v3829_v44 = vpop.f32.mrb[12].mxu0  ;;  %v3900_v22 = vpop.f32.mrb[12].mxu1  ;;  %v8610_v9 = vadd.f32 %v3683_v45, %v3682_v19 }
 0x802   :  { %v6434_v32 = vadd.f32 %v3829_v44, %v9098_v13  ;;  %v3831_v23 = vpop.f32.mrb[13].mxu0  ;;  %v3902_v37 = vpop.f32.mrb[13].mxu1  ;;  %v6450_v27 = vadd.f32 %v3900_v22, %v7319_v30 }
 0x803   :  { %v6435_v55 = vadd.f32 %v3831_v23, %v9099_v39  ;;  %6685 = vtanh.f32 %v8610_v9  ;;  %v6451_v49 = vadd.f32 %v3902_v37, %v9100_v56 }
 0x804   :  { %v4858_v8 = vmul.f32 -1.442695, %v6434_v32 }
 0x805   :  { %v4859_v33 = vmul.f32 -1.442695, %v6435_v55  ;;  %v4860_v51 = vmul.f32 -1.442695, %v6451_v49 }
 0x806   :  { %6687 = vpow2.f32 %v4858_v8 }
 0x807   :  { %6689 = vpow2.f32 %v4859_v33 }
 0x808   :  { %6691 = vpow2.f32 %v4860_v51 }
 0x809   :  { %6693 = vtanh.f32 %v6450_v27  ;;  %v9421_v27 = vld [vmem:[#allocation53_spill] sm:$0xff] }
 0x80d   :  { %v6686_v4 = vpop.eup %6685 }
 0x80e   :  { %v3686_v18 = vmul.f32 %v6686_v4, %v6684_v42 }
 0x810   :  { %v6688_v45 = vpop.eup %6687  ;;  %3690 = vst [vmem:[#allocation11 + $0x28] sm:$0xff] %v3686_v18  ;;  %4129 = vmatprep.mubr.f32.mxu0 %v3686_v18  ;;  %4200 = vmatprep.mubr.f32.mxu1 %v3686_v18  ;;  %v9422_v18 = vld [vmem:[#allocation54_spill] sm:$0xff] }
 0x811   :  { %v6690_v46 = vpop.eup %6689  ;;  %v3913_v19 = vadd.f32 1.0, %v6688_v45  ;;  %v9423_v45 = vld [vmem:[#allocation55_spill] sm:$0xff] }
 0x812   :  { %v3919_v44 = vadd.f32 1.0, %v6690_v46  ;;  %v6692_v32 = vpop.eup %6691  ;;  %v9424_v46 = vld [vmem:[#allocation56_spill] sm:$0xff] }
 0x813   :  { %6695 = vrcp.f32 %v3913_v19  ;;  %v6694_v23 = vpop.eup %6693  ;;  %v3926_v33 = vadd.f32 1.0, %v6692_v32  ;;  %v9425_v19 = vld [vmem:[#allocation57_spill] sm:$0xff]  ;;  %v9427_v32 = vld [vmem:[#allocation59_spill] sm:$0xff] }
 0x814   :  { %6697 = vrcp.f32 %v3919_v44  ;;  %v9426_v44 = vld [vmem:[#allocation58_spill] sm:$0xff] }
 0x815   :  { %6699 = vrcp.f32 %v3926_v33  ;;  %v9432_v33 = vld [vmem:[#allocation64_spill] sm:$0xff] }
 0x81d   :  { %v6696_v37 = vpop.eup %6695 }
 0x81e   :  { %v6698_v55 = vpop.eup %6697  ;;  %v3930_v8 = vmul.f32 %v6696_v37, %v6694_v23  ;;  %v9428_v23 = vld [vmem:[#allocation60_spill] sm:$0xff]  ;;  %v9429_v37 = vld [vmem:[#allocation61_spill] sm:$0xff] }
 0x81f   :  { %v3929_v22 = vmul.f32 %v6698_v55, %v8310_v35  ;;  %v6700_v42 = vpop.eup %6699  ;;  %v9386_v35 = vld [vmem:[#allocation18_spill] sm:$0xff] }
 0x820   :  { %v9430_v55 = vld [vmem:[#allocation62_spill] sm:$0xff] }
 0x821   :  { %v8618_v49 = vadd.f32 %v3930_v8, %v3929_v22  ;;  %v9431_v8 = vld [vmem:[#allocation63_spill] sm:$0xff]  ;;  %v9433_v22 = vld [vmem:[#allocation65_spill] sm:$0xff] }
 0x823   :  { %6701 = vtanh.f32 %v8618_v49 }
 0x82d   :  { %v6702_v4 = vpop.eup %6701 }
 0x82e   :  { %v3933_v51 = vmul.f32 %v6702_v4, %v6700_v42  ;;  %v9434_v42 = vld [vmem:[#allocation66_spill] sm:$0xff]  ;;  %v9435_v4 = vld [vmem:[#allocation67_spill] sm:$0xff] }
 0x830   :  { %4130 = vmatmul.mubr.f32.vlgmr.msra.gmra.mrb[28].mxu0 %v3933_v51  ;;  %4201 = vmatmul.mubr.f32.vlgmr.msra.gmra.mrb[28].mxu1 %v3933_v51 }
 0x831   :  { %6233 = vmatpush1.bf16.msra.mxu0 %v8313_v58  ;;  %6265 = vmatpush1.bf16.msra.mxu1 %v8315_v15  ;;  %v9387_v58 = vld [vmem:[#allocation19_spill] sm:$0xff]  ;;  %v9388_v15 = vld [vmem:[#allocation20_spill] sm:$0xff] }
 0x832   :  { %6235 = vmatprep.subr.bf16.mxu0 %v8319_v48  ;;  %6267 = vmatprep.subr.bf16.mxu1 %v8321_v38  ;;  %v9389_v48 = vld [vmem:[#allocation21_spill] sm:$0xff]  ;;  %v9390_v38 = vld [vmem:[#allocation22_spill] sm:$0xff] }
 0x833   :  { %4372 = vmatprep.mubr.f32.mxu0 %v9043_v16  ;;  %4443 = vmatprep.mubr.f32.mxu1 %v9043_v16  ;;  %v9385_v16 = vld [vmem:[#allocation17_spill] sm:$0xff] }
 0x835   :  { %6237 = vmatpush1.bf16.msra.mxu0 %v8327_v14  ;;  %6269 = vmatpush1.bf16.msra.mxu1 %v8329_v34  ;;  %v9391_v14 = vld [vmem:[#allocation23_spill] sm:$0xff]  ;;  %v9392_v34 = vld [vmem:[#allocation24_spill] sm:$0xff] }
 0x836   :  { %6239 = vmatprep.subr.bf16.mxu0 %v8333_v40  ;;  %6271 = vmatprep.subr.bf16.mxu1 %v8335_v63  ;;  %v9393_v40 = vld [vmem:[#allocation25_spill] sm:$0xff]  ;;  %v9394_v63 = vld [vmem:[#allocation26_spill] sm:$0xff] }
 0x839   :  { %6241 = vmatpush1.bf16.msra.mxu0 %v8341_v61  ;;  %6273 = vmatpush1.bf16.msra.mxu1 %v8343_v20  ;;  %v9395_v61 = vld [vmem:[#allocation27_spill] sm:$0xff]  ;;  %v9396_v20 = vld [vmem:[#allocation28_spill] sm:$0xff] }
 0x83a   :  { %6243 = vmatprep.subr.bf16.mxu0 %v8347_v6  ;;  %6275 = vmatprep.subr.bf16.mxu1 %v8349_v2  ;;  %v9397_v6 = vld [vmem:[#allocation29_spill] sm:$0xff]  ;;  %v9398_v2 = vld [vmem:[#allocation30_spill] sm:$0xff] }
 0x83d   :  { %6245 = vmatpush1.bf16.msra.mxu0 %v8353_v62  ;;  %6277 = vmatpush1.bf16.msra.mxu1 %v8355_v57  ;;  %v9399_v62 = vld [vmem:[#allocation31_spill] sm:$0xff]  ;;  %v9400_v57 = vld [vmem:[#allocation32_spill] sm:$0xff] }
 0x83e   :  { %6247 = vmatprep.subr.bf16.mxu0 %v8359_v50  ;;  %6279 = vmatprep.subr.bf16.mxu1 %v8361_v5  ;;  %v9401_v50 = vld [vmem:[#allocation33_spill] sm:$0xff]  ;;  %v9402_v5 = vld [vmem:[#allocation34_spill] sm:$0xff] }
 0x841   :  { %6249 = vmatpush1.bf16.msra.mxu0 %v8365_v1  ;;  %6281 = vmatpush1.bf16.msra.mxu1 %v8367_v7  ;;  %v9403_v1 = vld [vmem:[#allocation35_spill] sm:$0xff]  ;;  %v9404_v7 = vld [vmem:[#allocation36_spill] sm:$0xff] }
 0x842   :  { %6251 = vmatprep.subr.bf16.mxu0 %v8371_v28  ;;  %6283 = vmatprep.subr.bf16.mxu1 %v8373_v52  ;;  %v9405_v28 = vld [vmem:[#allocation37_spill] sm:$0xff]  ;;  %v9406_v52 = vld [vmem:[#allocation38_spill] sm:$0xff] }
 0x845   :  { %6253 = vmatpush1.bf16.msra.mxu0 %v8377_v17  ;;  %6285 = vmatpush1.bf16.msra.mxu1 %v8379_v0  ;;  %v9407_v17 = vld [vmem:[#allocation39_spill] sm:$0xff]  ;;  %v9408_v0 = vld [vmem:[#allocation40_spill] sm:$0xff] }
 0x846   :  { %6255 = vmatprep.subr.bf16.mxu0 %v8383_v41  ;;  %6287 = vmatprep.subr.bf16.mxu1 %v8385_v26  ;;  %v9409_v41 = vld [vmem:[#allocation41_spill] sm:$0xff]  ;;  %v9410_v26 = vld [vmem:[#allocation42_spill] sm:$0xff] }
 0x849   :  { %6257 = vmatpush1.bf16.msra.mxu0 %v8389_v11  ;;  %6289 = vmatpush1.bf16.msra.mxu1 %v8391_v53  ;;  %v9411_v11 = vld [vmem:[#allocation43_spill] sm:$0xff]  ;;  %v9412_v53 = vld [vmem:[#allocation44_spill] sm:$0xff] }
 0x84a   :  { %6259 = vmatprep.subr.bf16.mxu0 %v8395_v24  ;;  %6291 = vmatprep.subr.bf16.mxu1 %v8397_v60  ;;  %v9413_v24 = vld [vmem:[#allocation45_spill] sm:$0xff]  ;;  %v9414_v60 = vld [vmem:[#allocation46_spill] sm:$0xff] }
 0x84d   :  { %6261 = vmatpush1.bf16.msra.mxu0 %v8401_v36  ;;  %6293 = vmatpush1.bf16.msra.mxu1 %v8403_v25  ;;  %v9415_v36 = vld [vmem:[#allocation47_spill] sm:$0xff]  ;;  %v9416_v25 = vld [vmem:[#allocation48_spill] sm:$0xff] }
 0x84e   :  { %6295 = vmatprep.subr.bf16.mxu0 %v8411_v47  ;;  %6359 = vmatprep.subr.bf16.mxu1 %v8413_v43  ;;  %v9417_v47 = vld [vmem:[#allocation49_spill] sm:$0xff]  ;;  %v9418_v43 = vld [vmem:[#allocation50_spill] sm:$0xff] }
 0x850   :  { %4373 = vmatmul.mubr.f32.vlgmr.msra.gmra.mrb[14].mxu0 %v3933_v51  ;;  %4444 = vmatmul.mubr.f32.vlgmr.msra.gmra.mrb[14].mxu1 %v3933_v51  ;;  %v9436_v51 = vld [vmem:[#allocation68_spill] sm:$0xff] }
 0x851   :  { %6297 = vmatpush1.bf16.msra.mxu0 %v8415_v3  ;;  %6361 = vmatpush1.bf16.msra.mxu1 %v8418_v54  ;;  %v9419_v3 = vld [vmem:[#allocation51_spill] sm:$0xff]  ;;  %v9420_v54 = vld [vmem:[#allocation52_spill] sm:$0xff] }
 0x852   :  { %6299 = vmatprep.subr.bf16.mxu0 %v9385_v16  ;;  %6363 = vmatprep.subr.bf16.mxu1 %v9386_v35  ;;  %v9437_v16 = vld [vmem:[#allocation69_spill] sm:$0xff]  ;;  %v9438_v35 = vld [vmem:[#allocation70_spill] sm:$0xff] }
 0x855   :  { %6301 = vmatpush1.bf16.msra.mxu0 %v9387_v58  ;;  %6365 = vmatpush1.bf16.msra.mxu1 %v9388_v15  ;;  %v9439_v58 = vld [vmem:[#allocation71_spill] sm:$0xff]  ;;  %v9440_v15 = vld [vmem:[#allocation72_spill] sm:$0xff] }
 0x856   :  { %6303 = vmatprep.subr.bf16.mxu0 %v9389_v48  ;;  %6367 = vmatprep.subr.bf16.mxu1 %v9390_v38 }
 0x859   :  { %6305 = vmatpush1.bf16.msra.mxu0 %v9391_v14  ;;  %6369 = vmatpush1.bf16.msra.mxu1 %v9392_v34  ;;  %v9441_v14 = vld [vmem:[#allocation15_spill] sm:$0xff] }
 0x85a   :  { %6307 = vmatprep.subr.bf16.mxu0 %v9393_v40  ;;  %6371 = vmatprep.subr.bf16.mxu1 %v9394_v63 }
 0x85d   :  { %6309 = vmatpush1.bf16.msra.mxu0 %v9395_v61  ;;  %6373 = vmatpush1.bf16.msra.mxu1 %v9396_v20 }
 0x85e   :  { %6311 = vmatprep.subr.bf16.mxu0 %v9397_v6  ;;  %6375 = vmatprep.subr.bf16.mxu1 %v9398_v2 }
 0x861   :  { %6313 = vmatpush1.bf16.msra.mxu0 %v9399_v62  ;;  %6377 = vmatpush1.bf16.msra.mxu1 %v9400_v57 }
 0x862   :  { %6315 = vmatprep.subr.bf16.mxu0 %v9401_v50  ;;  %6379 = vmatprep.subr.bf16.mxu1 %v9402_v5 }
 0x865   :  { %6317 = vmatpush1.bf16.msra.mxu0 %v9403_v1  ;;  %6381 = vmatpush1.bf16.msra.mxu1 %v9404_v7 }
 0x866   :  { %6319 = vmatprep.subr.bf16.mxu0 %v9405_v28  ;;  %6383 = vmatprep.subr.bf16.mxu1 %v9406_v52 }
 0x869   :  { %6321 = vmatpush1.bf16.msra.mxu0 %v9407_v17  ;;  %6385 = vmatpush1.bf16.msra.mxu1 %v9408_v0 }
 0x86a   :  { %6323 = vmatprep.subr.bf16.mxu0 %v9409_v41  ;;  %6387 = vmatprep.subr.bf16.mxu1 %v9410_v26 }
 0x86d   :  { %6325 = vmatpush1.bf16.msra.mxu0 %v9411_v11  ;;  %6389 = vmatpush1.bf16.msra.mxu1 %v9412_v53 }
 0x86e   :  { %6327 = vmatprep.subr.bf16.mxu0 %v9413_v24  ;;  %6391 = vmatprep.subr.bf16.mxu1 %v9414_v60 }
 0x871   :  { %6329 = vmatpush1.bf16.msra.mxu0 %v9415_v36  ;;  %6393 = vmatpush1.bf16.msra.mxu1 %v9416_v25 }
 0x872   :  { %6331 = vmatprep.subr.bf16.mxu0 %v9417_v47  ;;  %6395 = vmatprep.subr.bf16.mxu1 %v9418_v43 }
 0x875   :  { %6333 = vmatpush1.bf16.msra.mxu0 %v9419_v3  ;;  %6397 = vmatpush1.bf16.msra.mxu1 %v9420_v54 }
 0x876   :  { %6335 = vmatprep.subr.bf16.mxu0 %v9421_v27  ;;  %6399 = vmatprep.subr.bf16.mxu1 %v9422_v18 }
 0x879   :  { %6337 = vmatpush1.bf16.msra.mxu0 %v9423_v45  ;;  %6401 = vmatpush1.bf16.msra.mxu1 %v9424_v46 }
 0x87a   :  { %6339 = vmatprep.subr.bf16.mxu0 %v9425_v19  ;;  %6403 = vmatprep.subr.bf16.mxu1 %v9426_v44 }
 0x87d   :  { %6341 = vmatpush1.bf16.msra.mxu0 %v9427_v32  ;;  %6405 = vmatpush1.bf16.msra.mxu1 %v9428_v23 }
 0x87e   :  { %6343 = vmatprep.subr.bf16.mxu0 %v9429_v37  ;;  %6407 = vmatprep.subr.bf16.mxu1 %v9430_v55 }
 0x881   :  { %6345 = vmatpush1.bf16.msra.mxu0 %v9431_v8  ;;  %6409 = vmatpush1.bf16.msra.mxu1 %v9432_v33 }
 0x882   :  { %6347 = vmatprep.subr.bf16.mxu0 %v9433_v22  ;;  %6411 = vmatprep.subr.bf16.mxu1 %v9434_v42 }
 0x885   :  { %6349 = vmatpush1.bf16.msra.mxu0 %v9435_v4  ;;  %6413 = vmatpush1.bf16.msra.mxu1 %v9436_v51 }
 0x886   :  { %6351 = vmatprep.subr.bf16.mxu0 %v8578_v59  ;;  %6415 = vmatprep.subr.bf16.mxu1 %v8580_v12 }
 0x889   :  { %6353 = vmatpush1.bf16.msra.mxu0 %v8583_v21  ;;  %6417 = vmatpush1.bf16.msra.mxu1 %v8587_v31  ;;  %v9442_v31 = vld [vmem:[#allocation16_spill] sm:$0xff] }
 0x88a   :  { %6355 = vmatprep.subr.bf16.mxu0 %v9437_v16  ;;  %6419 = vmatprep.subr.bf16.mxu1 %v9438_v35 }
 0x88d   :  { %6357 = vmatpush1.bf16.msra.mxu0 %v9439_v58  ;;  %6421 = vmatpush1.bf16.msra.mxu1 %v9440_v15 }
 0x903   :  { %v4131_v48 = vpop.f32.mrb[28].mxu0  ;;  %v4202_v38 = vpop.f32.mrb[28].mxu1 }
 0x904   :  { %v4132_v34 = vadd.f32 %v4131_v48, %v9441_v14  ;;  %v4133_v40 = vpop.f32.mrb[29].mxu0  ;;  %v4204_v59 = vpop.f32.mrb[29].mxu1  ;;  %v4203_v6 = vadd.f32 %v4202_v38, %v7447_v10 }
 0x905   :  { %v4134_v12 = vadd.f32 %v4133_v40, %v7436_v29  ;;  %v4205_v61 = vadd.f32 %v4204_v59, %v9442_v31 }
 0x906   :  { %v4861_v63 = vmul.f32 -1.442695, %v4132_v34 }
 0x907   :  { %v4862_v21 = vmul.f32 -1.442695, %v4134_v12  ;;  %v4863_v20 = vmul.f32 -1.442695, %v4205_v61 }
 0x908   :  { %6703 = vpow2.f32 %v4861_v63 }
 0x909   :  { %6705 = vpow2.f32 %v4862_v21 }
 0x90a   :  { %6707 = vpow2.f32 %v4863_v20 }
 0x90b   :  { %6709 = vtanh.f32 %v4203_v6 }
 0x912   :  { %v6704_v2 = vpop.eup %6703 }
 0x913   :  { %v6706_v62 = vpop.eup %6705  ;;  %v4211_v57 = vadd.f32 1.0, %v6704_v2 }
 0x914   :  { %v4217_v50 = vadd.f32 1.0, %v6706_v62  ;;  %v6708_v5 = vpop.eup %6707 }
 0x915   :  { %6711 = vrcp.f32 %v4211_v57  ;;  %v6710_v1 = vpop.eup %6709  ;;  %v4224_v17 = vadd.f32 1.0, %v6708_v5 }
 0x916   :  { %6713 = vrcp.f32 %v4217_v50 }
 0x917   :  { %6715 = vrcp.f32 %v4224_v17 }
 0x91f   :  { %v6712_v7 = vpop.eup %6711 }
 0x920   :  { %v6714_v28 = vpop.eup %6713  ;;  %v4228_v52 = vmul.f32 %v6712_v7, %v6710_v1 }
 0x921   :  { %v4227_v0 = vmul.f32 %v6714_v28, %v8610_v9  ;;  %v6716_v9 = vpop.eup %6715 }
 0x923   :  { %v4374_v41 = vpop.f32.mrb[14].mxu0  ;;  %v4445_v26 = vpop.f32.mrb[14].mxu1  ;;  %v8722_v11 = vadd.f32 %v4228_v52, %v4227_v0 }
 0x924   :  { %v6436_v53 = vadd.f32 %v4374_v41, %v9098_v13  ;;  %v4376_v24 = vpop.f32.mrb[15].mxu0  ;;  %v4447_v60 = vpop.f32.mrb[15].mxu1  ;;  %v6452_v27 = vadd.f32 %v4445_v26, %v7319_v30 }
 0x925   :  { %v6437_v36 = vadd.f32 %v4376_v24, %v9099_v39  ;;  %6717 = vtanh.f32 %v8722_v11  ;;  %v6453_v43 = vadd.f32 %v4447_v60, %v9100_v56 }
 0x926   :  { %v4864_v25 = vmul.f32 -1.442695, %v6436_v53 }
 0x927   :  { %v4865_v47 = vmul.f32 -1.442695, %v6437_v36  ;;  %v4866_v54 = vmul.f32 -1.442695, %v6453_v43 }
 0x928   :  { %6719 = vpow2.f32 %v4864_v25 }
 0x929   :  { %6721 = vpow2.f32 %v4865_v47 }
 0x92a   :  { %6723 = vpow2.f32 %v4866_v54 }
 0x92b   :  { %6725 = vtanh.f32 %v6452_v27 }
 0x92f   :  { %v6718_v3 = vpop.eup %6717 }
 0x930   :  { %v4231_v18 = vmul.f32 %v6718_v3, %v6716_v9 }
 0x932   :  { %v6720_v45 = vpop.eup %6719  ;;  %4235 = vst [vmem:[#allocation11 + $0x30] sm:$0xff] %v4231_v18  ;;  %4674 = vmatprep.mubr.f32.mxu0 %v4231_v18  ;;  %4745 = vmatprep.mubr.f32.mxu1 %v4231_v18 }
 0x933   :  { %v6722_v13 = vpop.eup %6721  ;;  %v4458_v39 = vadd.f32 1.0, %v6720_v45 }
 0x934   :  { %v4464_v46 = vadd.f32 1.0, %v6722_v13  ;;  %v6724_v19 = vpop.eup %6723 }
 0x935   :  { %6727 = vrcp.f32 %v4458_v39  ;;  %v6726_v44 = vpop.eup %6725  ;;  %v4471_v37 = vadd.f32 1.0, %v6724_v19 }
 0x936   :  { %6729 = vrcp.f32 %v4464_v46 }
 0x937   :  { %6731 = vrcp.f32 %v4471_v37 }
 0x93f   :  { %v6728_v56 = vpop.eup %6727 }
 0x940   :  { %v6730_v32 = vpop.eup %6729  ;;  %v4475_v23 = vmul.f32 %v6728_v56, %v6726_v44 }
 0x941   :  { %v4474_v30 = vmul.f32 %v6730_v32, %v8618_v49  ;;  %v6732_v8 = vpop.eup %6731 }
 0x943   :  { %v4476_v55 = vadd.f32 %v4475_v23, %v4474_v30 }
 0x945   :  { %6733 = vtanh.f32 %v4476_v55 }
 0x94f   :  { %v6734_v33 = vpop.eup %6733 }
 0x950   :  { %v4478_v22 = vmul.f32 %v6734_v33, %v6732_v8 }
 0x952   :  { %4675 = vmatmul.mubr.f32.vlgmr.msra.gmra.mrb[30].mxu0 %v4478_v22  ;;  %4746 = vmatmul.mubr.f32.vlgmr.msra.gmra.mrb[30].mxu1 %v4478_v22 }
 0xa25   :  { %v4676_v42 = vpop.f32.mrb[30].mxu0  ;;  %v4747_v4 = vpop.f32.mrb[30].mxu1 }
 0xa26   :  { %v4677_v51 = vadd.f32 %v4676_v42, %v9441_v14  ;;  %v4678_v16 = vpop.f32.mrb[31].mxu0  ;;  %v4749_v35 = vpop.f32.mrb[31].mxu1  ;;  %v4748_v34 = vadd.f32 %v4747_v4, %v7447_v10 }
 0xa27   :  { %v4679_v58 = vadd.f32 %v4678_v16, %v7436_v29  ;;  %v4750_v49 = vadd.f32 %v4749_v35, %v9442_v31 }
 0xa28   :  { %v4867_v15 = vmul.f32 -1.442695, %v4677_v51 }
 0xa29   :  { %v4868_v48 = vmul.f32 -1.442695, %v4679_v58  ;;  %v4869_v38 = vmul.f32 -1.442695, %v4750_v49 }
 0xa2a   :  { %6735 = vpow2.f32 %v4867_v15 }
 0xa2b   :  { %6737 = vpow2.f32 %v4868_v48 }
 0xa2c   :  { %6739 = vpow2.f32 %v4869_v38 }
 0xa2d   :  { %6741 = vtanh.f32 %v4748_v34 }
 0xa34   :  { %v6736_v40 = vpop.eup %6735 }
 0xa35   :  { %v6738_v59 = vpop.eup %6737  ;;  %v4756_v12 = vadd.f32 1.0, %v6736_v40 }
 0xa36   :  { %v4762_v63 = vadd.f32 1.0, %v6738_v59  ;;  %v6740_v14 = vpop.eup %6739 }
 0xa37   :  { %6743 = vrcp.f32 %v4756_v12  ;;  %v6742_v21 = vpop.eup %6741  ;;  %v4769_v6 = vadd.f32 1.0, %v6740_v14 }
 0xa38   :  { %6745 = vrcp.f32 %v4762_v63 }
 0xa39   :  { %6747 = vrcp.f32 %v4769_v6 }
 0xa41   :  { %v6744_v29 = vpop.eup %6743 }
 0xa42   :  { %v6746_v61 = vpop.eup %6745  ;;  %v4773_v20 = vmul.f32 %v6744_v29, %v6742_v21 }
 0xa43   :  { %v4772_v2 = vmul.f32 %v6746_v61, %v8722_v11  ;;  %v6748_v10 = vpop.eup %6747 }
 0xa45   :  { %v4774_v31 = vadd.f32 %v4773_v20, %v4772_v2 }
 0xa47   :  { %6749 = vtanh.f32 %v4774_v31 }
 0xa51   :  { %v6750_v62 = vpop.eup %6749 }
 0xa52   :  { %v4776_v57 = vmul.f32 %v6750_v62, %v6748_v10 }
 0xa54   :  { %4780 = vst [vmem:[#allocation11 + $0x38] sm:$0xff] %v4776_v57 }
 0xa55   :  { %6828 = shalt.err (!%p6825_p0)
}
 0xa56   :  { %s6829_s30 = scalar_lea.hbm %s8753_s6, 1024 }
 0xa57   :  { %p6830_p1 = scmp.ne.s32.totalorder %s8753_s6, %s6829_s30  ;;  %p6833_p2 = scmp.lt.u32.totalorder %s6829_s30, %s8753_s6 }
 0xa59   :  { %p6835_p3 = pnand %p6833_p2, %p6830_p1 }
 0xa5b   :  { %6838 = shalt.err (!%p6835_p3)
}
 0xa5c   :  { %s6852_s4 = smov 128   ;;  %s6853_s9 = smov 8  }
 0xa5d   :  { %4792 = dma.vmem_to_hbm [thread:$0]  %s4787_s26, 1024, %s8753_s6, [#allocation7], %s6852_s4, %s6852_s4, %s6853_s9  }
 0xa5e   :  { %6843 = dma.done.wait [#allocation7], 1024  }
 0xa5f   :  { %6844 = vsyncadd [#allocation7], 4294966272 }
 0xa60   :  { %4796 = vsyncpa [#allocation6], 1 }
 0xa61   :  { %4797 = vsyncpa [#allocation9], 1 }
 0xa62   :  { %4798 = vsyncpa [#allocation7], 1 }

</bundles_post_ra>
